<compile_context>
chip_gen: v6e
topology: v6e:2x2x1
jax: 0.10.0
libtpu: 0.0.40
codegen_flags: <defaults>
</compile_context>

<pallas_src>
import functools

import jax
import jax.numpy as jnp
from jax.experimental import pallas as pl
from jax.experimental.pallas import tpu as pltpu

KERNEL_NUM = (32, 32)      # Actor.kernel_num
VIEW_EMBED = 256           # Actor.view_embed_size


# ----------------------------------------------------------------------------- kernel
def _actor_kernel(H, W, Bb, A,
                  x_ref, feat_ref,
                  w1_ref, b1_ref, w2_ref, b2_ref,
                  fw1_ref, fb1_ref, fw2v_ref, fw2f_ref, fb2_ref,
                  fw3_ref, fb3_ref,
                  probs_ref, logp_ref, ent_ref,
                  x_pad_ref, y1_pad_ref):
    N = H * W * Bb                                   # rows in this batch block
    Hv, Wv = H - 4, W - 4
    shifts = [(kh * W + kw) * Bb for kh in range(3) for kw in range(3)]
    bf16 = jnp.bfloat16
    f32 = jnp.float32

    # Pad rows of x_pad_ref / y1_pad_ref are deliberately left uninitialized:
    # they only feed conv rows for spatial positions with i >= H-2 / j >= W-2
    # (conv1) or i >= H-4 / j >= W-4 (conv2), and fc1 consumes strictly
    # i < H-4, j < W-4 — keep that invariant if the valid window ever changes.

    # ---- conv1: in-kernel im2col (9 aligned bf16 tap slices) + ONE matmul ----
    x_pad_ref[pl.ds(0, N), :] = x_ref[...]
    xcol = jnp.concatenate(
        [x_pad_ref[pl.ds(d, N), :] for d in shifts], axis=1)       # (N, 9*C) bf16
    y1 = jnp.maximum(
        jnp.dot(xcol, w1_ref[...], preferred_element_type=f32)
        + b1_ref[...], 0.0)                                        # (N, K1) f32

    # ---- conv2: stage y1 in bf16; every tap = aligned slice; ONE matmul -----
    y1_pad_ref[pl.ds(0, N), :] = y1.astype(bf16)
    packed2 = jnp.concatenate(
        [y1_pad_ref[pl.ds(d, N), :] for d in shifts], axis=1)      # (N, 9*K1) bf16
    y2 = jnp.maximum(
        jnp.dot(packed2, w2_ref[...], preferred_element_type=f32)
        + b2_ref[...], 0.0).astype(bf16)                           # (N, K2) bf16

    # ---- fc1: gather the valid (H-4)x(W-4) window (aligned bf16 blocks) -----
    vrows = jnp.concatenate(
        [y2[(i * W + j) * Bb:(i * W + j + 1) * Bb, :]
         for i in range(Hv) for j in range(Wv)], axis=1)           # (Bb, Hv*Wv*K2)
    v = jnp.maximum(
        jnp.dot(vrows, fw1_ref[...], preferred_element_type=f32)
        + fb1_ref[...], 0.0)                                       # (Bb, 256) f32

    # ---- fc2: weight pre-split -> no lane concat of [v | feature] -----------
    a = jnp.maximum(
        jnp.dot(v.astype(bf16), fw2v_ref[...], preferred_element_type=f32)
        + jnp.dot(feat_ref[...].astype(bf16), fw2f_ref[...],
                  preferred_element_type=f32)
        + fb2_ref[...], 0.0)                                       # (Bb, hidden)

    # ---- fc3 on lane-padded (A -> 128) weights -------------------------------
    logits = jnp.dot(a.astype(bf16), fw3_ref[...],
                     preferred_element_type=f32) + fb3_ref[...]    # (Bb, A_pad)
    a_pad = logits.shape[-1]
    if A < a_pad:
        lane = jax.lax.broadcasted_iota(jnp.int32, logits.shape, 1)
        # Finite mask (NOT -inf): keeps probs*logp == 0 on padded lanes.
        logits = jnp.where(lane < A, logits, -1e30)

    # ---- softmax / log-softmax / entropy (f32) -------------------------------
    m = jnp.max(logits, axis=1, keepdims=True)
    z = logits - m
    e = jnp.exp(z)
    s = jnp.sum(e, axis=1, keepdims=True)
    probs = e * pl.reciprocal(s)                 # exact reciprocal
    logp = z - jnp.log(s)
    probs_ref[...] = probs
    logp_ref[...] = logp
    ent = -jnp.sum(probs * logp, axis=1, keepdims=True)
    ent_ref[...] = jnp.broadcast_to(ent, ent_ref.shape)            # lane-dense store


# ----------------------------------------------------------------------------- params
def init_actor_params(key, view_shape, feature_dim, action_dim):
    """Deterministic parameters in PyTorch layout:
       conv (Cout, Cin, kh, kw), linear (out, in)."""
    H, W, C = view_shape
    K1, K2 = KERNEL_NUM
    flat = (H - 4) * (W - 4) * K2
    hidden = VIEW_EMBED + feature_dim
    ks = jax.random.split(key, 10)
    s = 0.05
    return {
        "conv1_w": s * jax.random.normal(ks[0], (K1, C, 3, 3), jnp.float32),
        "conv1_b": s * jax.random.normal(ks[1], (K1,), jnp.float32),
        "conv2_w": s * jax.random.normal(ks[2], (K2, K1, 3, 3), jnp.float32),
        "conv2_b": s * jax.random.normal(ks[3], (K2,), jnp.float32),
        "fc1_w": s * jax.random.normal(ks[4], (VIEW_EMBED, flat), jnp.float32),
        "fc1_b": s * jax.random.normal(ks[5], (VIEW_EMBED,), jnp.float32),
        "fc2_w": s * jax.random.normal(ks[6], (hidden, hidden), jnp.float32),
        "fc2_b": s * jax.random.normal(ks[7], (hidden,), jnp.float32),
        "fc3_w": s * jax.random.normal(ks[8], (action_dim, hidden), jnp.float32),
        "fc3_b": s * jax.random.normal(ks[9], (action_dim,), jnp.float32),
    }


def prepare_actor_params(params, view_shape):
    """One-time repack of torch-layout params into kernel layout (bf16 weights,
       f32 biases).  Hoisted out of the per-call path."""
    H, W, C = view_shape
    K1, K2 = KERNEL_NUM
    Hv, Wv = H - 4, W - 4
    hidden = params["fc2_w"].shape[0]
    A = params["fc3_w"].shape[0]
    A_pad = ((A + 127) // 128) * 128
    bf = jnp.bfloat16

    # conv weights: (Cout, Cin, kh, kw) -> (kh, kw, Cin, Cout) -> (9*Cin, Cout)
    w1 = jnp.transpose(params["conv1_w"], (2, 3, 1, 0)).reshape(9 * C, K1)
    w2 = jnp.transpose(params["conv2_w"], (2, 3, 1, 0)).reshape(9 * K1, K2)
    # fc1: torch flattens conv output as (c, i, j); regroup to pixel-major,
    # channel-minor rows: row = (i*Wv + j)*K2 + c.
    fw1 = params["fc1_w"].reshape(VIEW_EMBED, K2, Hv, Wv)
    fw1 = jnp.transpose(fw1, (2, 3, 1, 0)).reshape(Hv * Wv * K2, VIEW_EMBED)
    # fc2: split at the [v | feature] boundary so the kernel needs no lane concat.
    fw2 = params["fc2_w"].T                                        # (in, out)
    fw2v, fw2f = fw2[:VIEW_EMBED], fw2[VIEW_EMBED:]
    # fc3: pad action dim to a lane multiple (padded lanes masked in-kernel).
    fw3 = jnp.zeros((hidden, A_pad), jnp.float32).at[:, :A].set(params["fc3_w"].T)
    fb3 = jnp.zeros((1, A_pad), jnp.float32).at[:, :A].set(params["fc3_b"])

    return {
        "H": H, "W": W, "C": C, "A": A, "A_pad": A_pad, "hidden": hidden,
        "w1": w1.astype(bf), "b1": params["conv1_b"].reshape(1, K1),
        "w2": w2.astype(bf), "b2": params["conv2_b"].reshape(1, K2),
        "fw1": fw1.astype(bf), "fb1": params["fc1_b"].reshape(1, VIEW_EMBED),
        "fw2v": fw2v.astype(bf), "fw2f": fw2f.astype(bf),
        "fb2": params["fc2_b"].reshape(1, hidden),
        "fw3": fw3.astype(bf), "fb3": fb3,
    }


# ----------------------------------------------------------------------------- glue
def _pick_block_batch(B, P):
    """Largest multiple-of-16 divisor of B keeping P*Bb rows modest, so the
       per-block footprint fits comfortably even on v7x's 64 MiB VMEM."""
    if B % 16 != 0:
        raise ValueError("batch must be a multiple of 16 (bf16 sublane alignment)")
    cap_rows = 8192
    cap = max(16, (cap_rows // P) // 16 * 16)
    bb = min(B, cap)
    bb -= bb % 16
    while bb >= 16:
        if B % bb == 0:
            return bb
        bb -= 16
    return 16


def _vmem_limit_bytes(N, shift_max, C, F, K1, K2, flat, hidden, A_pad, Bb):
    """Scoped-VMEM limit derived from the actual per-block footprint."""
    bf, f4 = 2, 4
    scratch = (N + shift_max) * (C + K1) * bf
    blocks = 2 * (N * C * bf + Bb * F * f4 + 3 * Bb * A_pad * f4)   # double-buffered I/O
    weights = ((9 * C * K1 + 9 * K1 * K2 + flat * VIEW_EMBED
                + hidden * hidden + hidden * A_pad) * bf
               + (K1 + K2 + VIEW_EMBED + hidden + A_pad) * f4)
    temps = (N * (9 * C * bf + K1 * f4 + 9 * K1 * bf + K2 * (f4 + bf))
             + Bb * (flat * bf + (VIEW_EMBED + hidden + 6 * A_pad) * f4))
    est = scratch + blocks + weights + temps
    # Cap at 64 MiB so the same setting is safe on v7x; v5e/v6e could go higher.
    return int(min(max(2 * est, 16 << 20), 64 << 20))


def actor_distribution(view_nchw, feature, prep):
    """Runs the Pallas kernel; returns (probs, log_probs, entropy)."""
    B, C, H, W = view_nchw.shape
    A, A_pad, hidden = prep["A"], prep["A_pad"], prep["hidden"]
    K1, K2 = KERNEL_NUM
    F = feature.shape[1]
    assert H == prep["H"] and W == prep["W"] and C == prep["C"]
    assert H > 4 and W > 4

    P = H * W
    Bb = _pick_block_batch(B, P)          # raises if B % 16 != 0
    NB = B // Bb
    N = P * Bb                            # rows per batch block
    shift_max = (2 * W + 2) * Bb
    flat = (H - 4) * (W - 4) * K2

    # NCHW -> (NB, H, W, Bb, C) -> (NB*N, C) bf16: pure layout glue + cast.
    x2d = jnp.transpose(view_nchw.reshape(NB, Bb, C, H, W),
                        (0, 3, 4, 1, 2)).reshape(NB * N, C).astype(jnp.bfloat16)

    kernel = functools.partial(_actor_kernel, H, W, Bb, A)
    wspec = pl.BlockSpec(memory_space=pltpu.MemorySpace.VMEM)   # resident weights
    out_block = pl.BlockSpec((Bb, A_pad), lambda nb: (nb, 0))
    vmem_limit = _vmem_limit_bytes(N, shift_max, C, F, K1, K2,
                                   flat, hidden, A_pad, Bb)

    probs_pad, logp_pad, ent_pad = pl.pallas_call(
        kernel,
        out_shape=(jax.ShapeDtypeStruct((B, A_pad), jnp.float32),
                   jax.ShapeDtypeStruct((B, A_pad), jnp.float32),
                   jax.ShapeDtypeStruct((B, A_pad), jnp.float32)),
        grid=(NB,),
        in_specs=[pl.BlockSpec((N, C), lambda nb: (nb, 0)),
                  pl.BlockSpec((Bb, F), lambda nb: (nb, 0))] + [wspec] * 11,
        out_specs=(out_block, out_block, out_block),
        scratch_shapes=[pltpu.VMEM((N + shift_max, C), jnp.bfloat16),
                        pltpu.VMEM((N + shift_max, K1), jnp.bfloat16)],
        compiler_params=pltpu.CompilerParams(
            dimension_semantics=("parallel",),
            vmem_limit_bytes=vmem_limit),
    )(x2d, feature.astype(jnp.float32),
      prep["w1"], prep["b1"], prep["w2"], prep["b2"],
      prep["fw1"], prep["fb1"], prep["fw2v"], prep["fw2f"], prep["fb2"],
      prep["fw3"], prep["fb3"])
    return probs_pad[:, :A], logp_pad[:, :A], ent_pad[:, :1]


def actor_forward(view_nchw, feature, prep, key, action=None):
    """Mirrors Actor.forward: returns (action[B,1], log_prob[B,1], entropy[B,1])."""
    probs, logp, ent = actor_distribution(view_nchw, feature, prep)
    if action is None:
        # TODO(synk): Categorical sampling stays host-side with a JAX PRNG key.
        action = jax.random.categorical(key, logp, axis=-1)
    else:
        action = action.squeeze(1)
    logp_a = jnp.take_along_axis(logp, action[:, None], axis=1)
    return action[:, None], logp_a, ent


# ----------------------------------------------------------------------------- reference
def actor_reference(view_nchw, feature, params):
    B = view_nchw.shape[0]
    x = jnp.transpose(view_nchw, (0, 2, 3, 1))                     # NHWC

    def conv(x, w, b):
        w_hwio = jnp.transpose(w, (2, 3, 1, 0))
        y = jax.lax.conv_general_dilated(
            x, w_hwio, window_strides=(1, 1), padding="VALID",
            dimension_numbers=("NHWC", "HWIO", "NHWC"))
        return jax.nn.relu(y + b)

    v = conv(x, params["conv1_w"], params["conv1_b"])
    v = conv(v, params["conv2_w"], params["conv2_b"])
    v = jnp.transpose(v, (0, 3, 1, 2)).reshape(B, -1)              # torch flatten order
    v = jax.nn.relu(v @ params["fc1_w"].T + params["fc1_b"])
    a = jnp.concatenate([v, feature], axis=1)
    a = jax.nn.relu(a @ params["fc2_w"].T + params["fc2_b"])
    logits = a @ params["fc3_w"].T + params["fc3_b"]
    logp = jax.nn.log_softmax(logits, axis=1)
    probs = jnp.exp(logp)
    ent = -jnp.sum(probs * logp, axis=1, keepdims=True)
    return probs, logp, ent


# ----------------------------------------------------------------------------- main
if __name__ == "__main__":
    key = jax.random.PRNGKey(0)
    k_param, k_view, k_feat, k_sample = jax.random.split(key, 4)

    B, H, W, C = 16, 8, 8, 6         # view_shape = (H, W, C) as in the module
    feature_dim, action_dim = 32, 9

    params = init_actor_params(k_param, (H, W, C), feature_dim, action_dim)
    prep = prepare_actor_params(params, (H, W, C))   # one-time weight repack
    view = jax.random.normal(k_view, (B, C, H, W), jnp.float32)    # NCHW like PyTorch
    feature = jax.random.normal(k_feat, (B, feature_dim), jnp.float32)

    action, logp_a, ent = actor_forward(view, feature, prep, k_sample)
    jax.block_until_ready((action, logp_a, ent))

    # Sanity check against a pure-JAX/XLA f32 reference of the same math
    # (kernel uses bf16 MXU inputs with f32 accumulation -> loose tolerance).
    probs_k, logp_k, ent_k = actor_distribution(view, feature, prep)
    probs_r, logp_r, ent_r = actor_reference(view, feature, params)
    assert bool(jnp.all(jnp.isfinite(probs_k)))
    assert bool(jnp.allclose(jnp.sum(probs_k, axis=1), 1.0, atol=1e-4))
    assert bool(jnp.allclose(probs_k, probs_r, atol=3e-2, rtol=3e-2))
    assert bool(jnp.allclose(logp_k, logp_r, atol=3e-2, rtol=3e-2))
    assert bool(jnp.allclose(ent_k, ent_r, atol=3e-2, rtol=3e-2))
    assert action.shape == (B, 1) and logp_a.shape == (B, 1) and ent.shape == (B, 1)

    print("KERNEL_OK")
</pallas_src>

<mosaic_0001>
module attributes {stable_mosaic.version = 11 : i64} {
  func.func @_actor_kernel(%arg0: i32, %arg1: memref<1024x6xbf16, #tpu.memory_space<vmem>>, %arg2: memref<16x32xf32, #tpu.memory_space<vmem>>, %arg3: memref<54x32xbf16, #tpu.memory_space<vmem>>, %arg4: memref<1x32xf32, #tpu.memory_space<vmem>>, %arg5: memref<288x32xbf16, #tpu.memory_space<vmem>>, %arg6: memref<1x32xf32, #tpu.memory_space<vmem>>, %arg7: memref<512x256xbf16, #tpu.memory_space<vmem>>, %arg8: memref<1x256xf32, #tpu.memory_space<vmem>>, %arg9: memref<256x288xbf16, #tpu.memory_space<vmem>>, %arg10: memref<32x288xbf16, #tpu.memory_space<vmem>>, %arg11: memref<1x288xf32, #tpu.memory_space<vmem>>, %arg12: memref<288x128xbf16, #tpu.memory_space<vmem>>, %arg13: memref<1x128xf32, #tpu.memory_space<vmem>>, %arg14: memref<16x128xf32, #tpu.memory_space<vmem>>, %arg15: memref<16x128xf32, #tpu.memory_space<vmem>>, %arg16: memref<16x128xf32, #tpu.memory_space<vmem>>, %arg17: memref<1312x6xbf16, #tpu.memory_space<vmem>>, %arg18: memref<1312x32xbf16, #tpu.memory_space<vmem>>) attributes {dimension_semantics = [#tpu.dimension_semantics<parallel>], iteration_bounds = array<i64: 1>, scalar_prefetch = 0 : i64, scratch_operands = 2 : i64, tpu.core_type = #tpu.core_type<tc>, window_params = [{transform_indices = @transform_0, window_bounds = array<i64: 1024, 6>}, {transform_indices = @transform_1, window_bounds = array<i64: 16, 32>}, {pipeline_mode = #tpu.pipeline_mode<synchronous>, transform_indices = @transform_2, window_bounds = array<i64: 54, 32>}, {pipeline_mode = #tpu.pipeline_mode<synchronous>, transform_indices = @transform_3, window_bounds = array<i64: 1, 32>}, {pipeline_mode = #tpu.pipeline_mode<synchronous>, transform_indices = @transform_4, window_bounds = array<i64: 288, 32>}, {pipeline_mode = #tpu.pipeline_mode<synchronous>, transform_indices = @transform_5, window_bounds = array<i64: 1, 32>}, {pipeline_mode = #tpu.pipeline_mode<synchronous>, transform_indices = @transform_6, window_bounds = array<i64: 512, 256>}, {pipeline_mode = #tpu.pipeline_mode<synchronous>, transform_indices = @transform_7, window_bounds = array<i64: 1, 256>}, {pipeline_mode = #tpu.pipeline_mode<synchronous>, transform_indices = @transform_8, window_bounds = array<i64: 256, 288>}, {pipeline_mode = #tpu.pipeline_mode<synchronous>, transform_indices = @transform_9, window_bounds = array<i64: 32, 288>}, {pipeline_mode = #tpu.pipeline_mode<synchronous>, transform_indices = @transform_10, window_bounds = array<i64: 1, 288>}, {pipeline_mode = #tpu.pipeline_mode<synchronous>, transform_indices = @transform_11, window_bounds = array<i64: 288, 128>}, {pipeline_mode = #tpu.pipeline_mode<synchronous>, transform_indices = @transform_12, window_bounds = array<i64: 1, 128>}, {transform_indices = @transform_13, window_bounds = array<i64: 16, 128>}, {transform_indices = @transform_14, window_bounds = array<i64: 16, 128>}, {transform_indices = @transform_15, window_bounds = array<i64: 16, 128>}]} {
    %c0 = arith.constant 0 : index
    %c0_0 = arith.constant 0 : index
    %0 = vector.load %arg1[%c0, %c0_0] : memref<1024x6xbf16, #tpu.memory_space<vmem>>, vector<1024x6xbf16>
    %c0_1 = arith.constant 0 : index
    %c0_2 = arith.constant 0 : index
    %1 = vector.load %arg17[%c0_1, %c0_2] : memref<1312x6xbf16, #tpu.memory_space<vmem>>, vector<1024x6xbf16>
    tpu.vector_store %arg17[%c0_1, %c0_2], %0 {strides = array<i32>} : memref<1312x6xbf16, #tpu.memory_space<vmem>>, vector<1024x6xbf16>,
    %c0_3 = arith.constant 0 : index
    %c0_4 = arith.constant 0 : index
    %2 = vector.load %arg17[%c0_3, %c0_4] : memref<1312x6xbf16, #tpu.memory_space<vmem>>, vector<1024x6xbf16>
    %c16 = arith.constant 16 : index
    %c0_5 = arith.constant 0 : index
    %3 = vector.load %arg17[%c16, %c0_5] : memref<1312x6xbf16, #tpu.memory_space<vmem>>, vector<1024x6xbf16>
    %c32 = arith.constant 32 : index
    %c0_6 = arith.constant 0 : index
    %4 = vector.load %arg17[%c32, %c0_6] : memref<1312x6xbf16, #tpu.memory_space<vmem>>, vector<1024x6xbf16>
    %c128 = arith.constant 128 : index
    %c0_7 = arith.constant 0 : index
    %5 = vector.load %arg17[%c128, %c0_7] : memref<1312x6xbf16, #tpu.memory_space<vmem>>, vector<1024x6xbf16>
    %c144 = arith.constant 144 : index
    %c0_8 = arith.constant 0 : index
    %6 = vector.load %arg17[%c144, %c0_8] : memref<1312x6xbf16, #tpu.memory_space<vmem>>, vector<1024x6xbf16>
    %c160 = arith.constant 160 : index
    %c0_9 = arith.constant 0 : index
    %7 = vector.load %arg17[%c160, %c0_9] : memref<1312x6xbf16, #tpu.memory_space<vmem>>, vector<1024x6xbf16>
    %c256 = arith.constant 256 : index
    %c0_10 = arith.constant 0 : index
    %8 = vector.load %arg17[%c256, %c0_10] : memref<1312x6xbf16, #tpu.memory_space<vmem>>, vector<1024x6xbf16>
    %c272 = arith.constant 272 : index
    %c0_11 = arith.constant 0 : index
    %9 = vector.load %arg17[%c272, %c0_11] : memref<1312x6xbf16, #tpu.memory_space<vmem>>, vector<1024x6xbf16>
    %c288 = arith.constant 288 : index
    %c0_12 = arith.constant 0 : index
    %10 = vector.load %arg17[%c288, %c0_12] : memref<1312x6xbf16, #tpu.memory_space<vmem>>, vector<1024x6xbf16>
    %11 = tpu.concatenate %2, %3, %4, %5, %6, %7, %8, %9, %10 in 1 : vector<1024x6xbf16>, vector<1024x6xbf16>, vector<1024x6xbf16>, vector<1024x6xbf16>, vector<1024x6xbf16>, vector<1024x6xbf16>, vector<1024x6xbf16>, vector<1024x6xbf16>, vector<1024x6xbf16> -> vector<1024x54xbf16>
    %c0_13 = arith.constant 0 : index
    %c0_14 = arith.constant 0 : index
    %12 = vector.load %arg3[%c0_13, %c0_14] : memref<54x32xbf16, #tpu.memory_space<vmem>>, vector<54x32xbf16>
    %cst = arith.constant dense<0.000000e+00> : vector<1024x32xf32>
    %13 = tpu.matmul %11, %12, %cst {dimension_numbers = #tpu.dot_dimension_numbers<[1], [0], [0], [1], [0, 0, 1, 1], [], []>} : vector<1024x54xbf16>, vector<54x32xbf16>, vector<1024x32xf32> -> vector<1024x32xf32>
    %c0_15 = arith.constant 0 : index
    %c0_16 = arith.constant 0 : index
    %14 = vector.load %arg4[%c0_15, %c0_16] : memref<1x32xf32, #tpu.memory_space<vmem>>, vector<1x32xf32>
    %15 = vector.broadcast %14 : vector<1x32xf32> to vector<1024x32xf32>
    %16 = arith.addf %13, %15 : vector<1024x32xf32>
    %cst_17 = arith.constant 0.000000e+00 : f32
    %17 = vector.broadcast %cst_17 : f32 to vector<1024x32xf32>
    %18 = arith.maximumf %16, %17 : vector<1024x32xf32>
    %19 = arith.truncf %18 : vector<1024x32xf32> to vector<1024x32xbf16>
    %c0_18 = arith.constant 0 : index
    %c0_19 = arith.constant 0 : index
    %20 = vector.load %arg18[%c0_18, %c0_19] : memref<1312x32xbf16, #tpu.memory_space<vmem>>, vector<1024x32xbf16>
    tpu.vector_store %arg18[%c0_18, %c0_19], %19 {strides = array<i32>} : memref<1312x32xbf16, #tpu.memory_space<vmem>>, vector<1024x32xbf16>,
    %c0_20 = arith.constant 0 : index
    %c0_21 = arith.constant 0 : index
    %21 = vector.load %arg18[%c0_20, %c0_21] : memref<1312x32xbf16, #tpu.memory_space<vmem>>, vector<1024x32xbf16>
    %c16_22 = arith.constant 16 : index
    %c0_23 = arith.constant 0 : index
    %22 = vector.load %arg18[%c16_22, %c0_23] : memref<1312x32xbf16, #tpu.memory_space<vmem>>, vector<1024x32xbf16>
    %c32_24 = arith.constant 32 : index
    %c0_25 = arith.constant 0 : index
    %23 = vector.load %arg18[%c32_24, %c0_25] : memref<1312x32xbf16, #tpu.memory_space<vmem>>, vector<1024x32xbf16>
    %c128_26 = arith.constant 128 : index
    %c0_27 = arith.constant 0 : index
    %24 = vector.load %arg18[%c128_26, %c0_27] : memref<1312x32xbf16, #tpu.memory_space<vmem>>, vector<1024x32xbf16>
    %c144_28 = arith.constant 144 : index
    %c0_29 = arith.constant 0 : index
    %25 = vector.load %arg18[%c144_28, %c0_29] : memref<1312x32xbf16, #tpu.memory_space<vmem>>, vector<1024x32xbf16>
    %c160_30 = arith.constant 160 : index
    %c0_31 = arith.constant 0 : index
    %26 = vector.load %arg18[%c160_30, %c0_31] : memref<1312x32xbf16, #tpu.memory_space<vmem>>, vector<1024x32xbf16>
    %c256_32 = arith.constant 256 : index
    %c0_33 = arith.constant 0 : index
    %27 = vector.load %arg18[%c256_32, %c0_33] : memref<1312x32xbf16, #tpu.memory_space<vmem>>, vector<1024x32xbf16>
    %c272_34 = arith.constant 272 : index
    %c0_35 = arith.constant 0 : index
    %28 = vector.load %arg18[%c272_34, %c0_35] : memref<1312x32xbf16, #tpu.memory_space<vmem>>, vector<1024x32xbf16>
    %c288_36 = arith.constant 288 : index
    %c0_37 = arith.constant 0 : index
    %29 = vector.load %arg18[%c288_36, %c0_37] : memref<1312x32xbf16, #tpu.memory_space<vmem>>, vector<1024x32xbf16>
    %30 = tpu.concatenate %21, %22, %23, %24, %25, %26, %27, %28, %29 in 1 : vector<1024x32xbf16>, vector<1024x32xbf16>, vector<1024x32xbf16>, vector<1024x32xbf16>, vector<1024x32xbf16>, vector<1024x32xbf16>, vector<1024x32xbf16>, vector<1024x32xbf16>, vector<1024x32xbf16> -> vector<1024x288xbf16>
    %c0_38 = arith.constant 0 : index
    %c0_39 = arith.constant 0 : index
    %31 = vector.load %arg5[%c0_38, %c0_39] : memref<288x32xbf16, #tpu.memory_space<vmem>>, vector<288x32xbf16>
    %cst_40 = arith.constant dense<0.000000e+00> : vector<1024x32xf32>
    %32 = tpu.matmul %30, %31, %cst_40 {dimension_numbers = #tpu.dot_dimension_numbers<[1], [0], [0], [1], [0, 0, 1, 1], [], []>} : vector<1024x288xbf16>, vector<288x32xbf16>, vector<1024x32xf32> -> vector<1024x32xf32>
    %c0_41 = arith.constant 0 : index
    %c0_42 = arith.constant 0 : index
    %33 = vector.load %arg6[%c0_41, %c0_42] : memref<1x32xf32, #tpu.memory_space<vmem>>, vector<1x32xf32>
    %34 = vector.broadcast %33 : vector<1x32xf32> to vector<1024x32xf32>
    %35 = arith.addf %32, %34 : vector<1024x32xf32>
    %cst_43 = arith.constant 0.000000e+00 : f32
    %36 = vector.broadcast %cst_43 : f32 to vector<1024x32xf32>
    %37 = arith.maximumf %35, %36 : vector<1024x32xf32>
    %38 = arith.truncf %37 : vector<1024x32xf32> to vector<1024x32xbf16>
    %39 = vector.extract_strided_slice %38 {offsets = [0, 0], sizes = [16, 32], strides = [1, 1]} : vector<1024x32xbf16> to vector<16x32xbf16>
    %40 = vector.extract_strided_slice %38 {offsets = [16, 0], sizes = [16, 32], strides = [1, 1]} : vector<1024x32xbf16> to vector<16x32xbf16>
    %41 = vector.extract_strided_slice %38 {offsets = [32, 0], sizes = [16, 32], strides = [1, 1]} : vector<1024x32xbf16> to vector<16x32xbf16>
    %42 = vector.extract_strided_slice %38 {offsets = [48, 0], sizes = [16, 32], strides = [1, 1]} : vector<1024x32xbf16> to vector<16x32xbf16>
    %43 = vector.extract_strided_slice %38 {offsets = [128, 0], sizes = [16, 32], strides = [1, 1]} : vector<1024x32xbf16> to vector<16x32xbf16>
    %44 = vector.extract_strided_slice %38 {offsets = [144, 0], sizes = [16, 32], strides = [1, 1]} : vector<1024x32xbf16> to vector<16x32xbf16>
    %45 = vector.extract_strided_slice %38 {offsets = [160, 0], sizes = [16, 32], strides = [1, 1]} : vector<1024x32xbf16> to vector<16x32xbf16>
    %46 = vector.extract_strided_slice %38 {offsets = [176, 0], sizes = [16, 32], strides = [1, 1]} : vector<1024x32xbf16> to vector<16x32xbf16>
    %47 = vector.extract_strided_slice %38 {offsets = [256, 0], sizes = [16, 32], strides = [1, 1]} : vector<1024x32xbf16> to vector<16x32xbf16>
    %48 = vector.extract_strided_slice %38 {offsets = [272, 0], sizes = [16, 32], strides = [1, 1]} : vector<1024x32xbf16> to vector<16x32xbf16>
    %49 = vector.extract_strided_slice %38 {offsets = [288, 0], sizes = [16, 32], strides = [1, 1]} : vector<1024x32xbf16> to vector<16x32xbf16>
    %50 = vector.extract_strided_slice %38 {offsets = [304, 0], sizes = [16, 32], strides = [1, 1]} : vector<1024x32xbf16> to vector<16x32xbf16>
    %51 = vector.extract_strided_slice %38 {offsets = [384, 0], sizes = [16, 32], strides = [1, 1]} : vector<1024x32xbf16> to vector<16x32xbf16>
    %52 = vector.extract_strided_slice %38 {offsets = [400, 0], sizes = [16, 32], strides = [1, 1]} : vector<1024x32xbf16> to vector<16x32xbf16>
    %53 = vector.extract_strided_slice %38 {offsets = [416, 0], sizes = [16, 32], strides = [1, 1]} : vector<1024x32xbf16> to vector<16x32xbf16>
    %54 = vector.extract_strided_slice %38 {offsets = [432, 0], sizes = [16, 32], strides = [1, 1]} : vector<1024x32xbf16> to vector<16x32xbf16>
    %55 = tpu.concatenate %39, %40, %41, %42, %43, %44, %45, %46, %47, %48, %49, %50, %51, %52, %53, %54 in 1 : vector<16x32xbf16>, vector<16x32xbf16>, vector<16x32xbf16>, vector<16x32xbf16>, vector<16x32xbf16>, vector<16x32xbf16>, vector<16x32xbf16>, vector<16x32xbf16>, vector<16x32xbf16>, vector<16x32xbf16>, vector<16x32xbf16>, vector<16x32xbf16>, vector<16x32xbf16>, vector<16x32xbf16>, vector<16x32xbf16>, vector<16x32xbf16> -> vector<16x512xbf16>
    %c0_44 = arith.constant 0 : index
    %c0_45 = arith.constant 0 : index
    %56 = vector.load %arg7[%c0_44, %c0_45] : memref<512x256xbf16, #tpu.memory_space<vmem>>, vector<512x256xbf16>
    %cst_46 = arith.constant dense<0.000000e+00> : vector<16x256xf32>
    %57 = tpu.matmul %55, %56, %cst_46 {dimension_numbers = #tpu.dot_dimension_numbers<[1], [0], [0], [1], [0, 0, 1, 1], [], []>} : vector<16x512xbf16>, vector<512x256xbf16>, vector<16x256xf32> -> vector<16x256xf32>
    %c0_47 = arith.constant 0 : index
    %c0_48 = arith.constant 0 : index
    %58 = vector.load %arg8[%c0_47, %c0_48] : memref<1x256xf32, #tpu.memory_space<vmem>>, vector<1x256xf32>
    %59 = vector.broadcast %58 : vector<1x256xf32> to vector<16x256xf32>
    %60 = arith.addf %57, %59 : vector<16x256xf32>
    %cst_49 = arith.constant 0.000000e+00 : f32
    %61 = vector.broadcast %cst_49 : f32 to vector<16x256xf32>
    %62 = arith.maximumf %60, %61 : vector<16x256xf32>
    %63 = arith.truncf %62 : vector<16x256xf32> to vector<16x256xbf16>
    %c0_50 = arith.constant 0 : index
    %c0_51 = arith.constant 0 : index
    %64 = vector.load %arg9[%c0_50, %c0_51] : memref<256x288xbf16, #tpu.memory_space<vmem>>, vector<256x288xbf16>
    %cst_52 = arith.constant dense<0.000000e+00> : vector<16x288xf32>
    %65 = tpu.matmul %63, %64, %cst_52 {dimension_numbers = #tpu.dot_dimension_numbers<[1], [0], [0], [1], [0, 0, 1, 1], [], []>} : vector<16x256xbf16>, vector<256x288xbf16>, vector<16x288xf32> -> vector<16x288xf32>
    %c0_53 = arith.constant 0 : index
    %c0_54 = arith.constant 0 : index
    %66 = vector.load %arg2[%c0_53, %c0_54] : memref<16x32xf32, #tpu.memory_space<vmem>>, vector<16x32xf32>
    %67 = arith.truncf %66 : vector<16x32xf32> to vector<16x32xbf16>
    %c0_55 = arith.constant 0 : index
    %c0_56 = arith.constant 0 : index
    %68 = vector.load %arg10[%c0_55, %c0_56] : memref<32x288xbf16, #tpu.memory_space<vmem>>, vector<32x288xbf16>
    %cst_57 = arith.constant dense<0.000000e+00> : vector<16x288xf32>
    %69 = tpu.matmul %67, %68, %cst_57 {dimension_numbers = #tpu.dot_dimension_numbers<[1], [0], [0], [1], [0, 0, 1, 1], [], []>} : vector<16x32xbf16>, vector<32x288xbf16>, vector<16x288xf32> -> vector<16x288xf32>
    %70 = arith.addf %65, %69 : vector<16x288xf32>
    %c0_58 = arith.constant 0 : index
    %c0_59 = arith.constant 0 : index
    %71 = vector.load %arg11[%c0_58, %c0_59] : memref<1x288xf32, #tpu.memory_space<vmem>>, vector<1x288xf32>
    %72 = vector.broadcast %71 : vector<1x288xf32> to vector<16x288xf32>
    %73 = arith.addf %70, %72 : vector<16x288xf32>
    %cst_60 = arith.constant 0.000000e+00 : f32
    %74 = vector.broadcast %cst_60 : f32 to vector<16x288xf32>
    %75 = arith.maximumf %73, %74 : vector<16x288xf32>
    %76 = arith.truncf %75 : vector<16x288xf32> to vector<16x288xbf16>
    %c0_61 = arith.constant 0 : index
    %c0_62 = arith.constant 0 : index
    %77 = vector.load %arg12[%c0_61, %c0_62] : memref<288x128xbf16, #tpu.memory_space<vmem>>, vector<288x128xbf16>
    %cst_63 = arith.constant dense<0.000000e+00> : vector<16x128xf32>
    %78 = tpu.matmul %76, %77, %cst_63 {dimension_numbers = #tpu.dot_dimension_numbers<[1], [0], [0], [1], [0, 0, 1, 1], [], []>} : vector<16x288xbf16>, vector<288x128xbf16>, vector<16x128xf32> -> vector<16x128xf32>
    %c0_64 = arith.constant 0 : index
    %c0_65 = arith.constant 0 : index
    %79 = vector.load %arg13[%c0_64, %c0_65] : memref<1x128xf32, #tpu.memory_space<vmem>>, vector<1x128xf32>
    %80 = vector.broadcast %79 : vector<1x128xf32> to vector<16x128xf32>
    %81 = arith.addf %78, %80 : vector<16x128xf32>
    %82 = tpu.iota {dimensions = array<i32: 1>} : vector<16x128xi32>
    %c9_i32 = arith.constant 9 : i32
    %83 = vector.broadcast %c9_i32 : i32 to vector<16x128xi32>
    %84 = arith.cmpi slt, %82, %83 : vector<16x128xi32>
    %cst_66 = arith.constant -1.000000e+30 : f32
    %85 = vector.broadcast %cst_66 : f32 to vector<16x128xf32>
    %86 = arith.select %84, %81, %85 : vector<16x128xi1>, vector<16x128xf32>
    %cst_67 = arith.constant dense<0xFF800000> : vector<16xf32>
    %87 = vector.multi_reduction <maximumf>, %86, %cst_67 [1] : vector<16x128xf32> to vector<16xf32>
    %88 = vector.shape_cast %87 : vector<16xf32> to vector<16x1xf32>
    %89 = vector.broadcast %88 : vector<16x1xf32> to vector<16x128xf32>
    %90 = arith.subf %86, %89 : vector<16x128xf32>
    %91 = math.exp %90 : vector<16x128xf32>
    %cst_68 = arith.constant dense<0.000000e+00> : vector<16xf32>
    %92 = vector.multi_reduction <add>, %91, %cst_68 [1] : vector<16x128xf32> to vector<16xf32>
    %93 = vector.shape_cast %92 : vector<16xf32> to vector<16x1xf32>
    %94 = tpu.reciprocal %93 : vector<16x1xf32> -> vector<16x1xf32>
    %95 = vector.broadcast %94 : vector<16x1xf32> to vector<16x128xf32>
    %96 = arith.mulf %91, %95 : vector<16x128xf32>
    %97 = math.log %93 : vector<16x1xf32>
    %98 = vector.broadcast %97 : vector<16x1xf32> to vector<16x128xf32>
    %99 = arith.subf %90, %98 : vector<16x128xf32>
    %c0_69 = arith.constant 0 : index
    %c0_70 = arith.constant 0 : index
    %100 = vector.load %arg14[%c0_69, %c0_70] : memref<16x128xf32, #tpu.memory_space<vmem>>, vector<16x128xf32>
    tpu.vector_store %arg14[%c0_69, %c0_70], %96 {strides = array<i32>} : memref<16x128xf32, #tpu.memory_space<vmem>>, vector<16x128xf32>,
    %c0_71 = arith.constant 0 : index
    %c0_72 = arith.constant 0 : index
    %101 = vector.load %arg15[%c0_71, %c0_72] : memref<16x128xf32, #tpu.memory_space<vmem>>, vector<16x128xf32>
    tpu.vector_store %arg15[%c0_71, %c0_72], %99 {strides = array<i32>} : memref<16x128xf32, #tpu.memory_space<vmem>>, vector<16x128xf32>,
    %102 = arith.mulf %96, %99 : vector<16x128xf32>
    %cst_73 = arith.constant dense<0.000000e+00> : vector<16xf32>
    %103 = vector.multi_reduction <add>, %102, %cst_73 [1] : vector<16x128xf32> to vector<16xf32>
    %104 = vector.shape_cast %103 : vector<16xf32> to vector<16x1xf32>
    %cst_74 = arith.constant 0.000000e+00 : f32
    %105 = vector.broadcast %cst_74 : f32 to vector<16x1xf32>
    %106 = arith.subf %105, %104 : vector<16x1xf32>
    %107 = vector.shape_cast %106 : vector<16x1xf32> to vector<16x1xf32>
    %108 = vector.broadcast %107 : vector<16x1xf32> to vector<16x128xf32>
    %c0_75 = arith.constant 0 : index
    %c0_76 = arith.constant 0 : index
    %109 = vector.load %arg16[%c0_75, %c0_76] : memref<16x128xf32, #tpu.memory_space<vmem>>, vector<16x128xf32>
    tpu.vector_store %arg16[%c0_75, %c0_76], %108 {strides = array<i32>} : memref<16x128xf32, #tpu.memory_space<vmem>>, vector<16x128xf32>,
    return
  }
  func.func @transform_0(%arg0: i32) -> (i32, i32) {
    %c0_i32 = arith.constant 0 : i32
    %c0_i32_0 = arith.constant 0 : i32
    return %arg0, %c0_i32 : i32, i32
  }
  func.func @transform_1(%arg0: i32) -> (i32, i32) {
    %c0_i32 = arith.constant 0 : i32
    %c0_i32_0 = arith.constant 0 : i32
    return %arg0, %c0_i32 : i32, i32
  }
  func.func @transform_2(%arg0: i32) -> (i32, i32) {
    %c0_i32 = arith.constant 0 : i32
    %c0_i32_0 = arith.constant 0 : i32
    %c0_i32_1 = arith.constant 0 : i32
    return %c0_i32, %c0_i32_0 : i32, i32
  }
  func.func @transform_3(%arg0: i32) -> (i32, i32) {
    %c0_i32 = arith.constant 0 : i32
    %c0_i32_0 = arith.constant 0 : i32
    %c0_i32_1 = arith.constant 0 : i32
    return %c0_i32, %c0_i32_0 : i32, i32
  }
  func.func @transform_4(%arg0: i32) -> (i32, i32) {
    %c0_i32 = arith.constant 0 : i32
    %c0_i32_0 = arith.constant 0 : i32
    %c0_i32_1 = arith.constant 0 : i32
    return %c0_i32, %c0_i32_0 : i32, i32
  }
  func.func @transform_5(%arg0: i32) -> (i32, i32) {
    %c0_i32 = arith.constant 0 : i32
    %c0_i32_0 = arith.constant 0 : i32
    %c0_i32_1 = arith.constant 0 : i32
    return %c0_i32, %c0_i32_0 : i32, i32
  }
  func.func @transform_6(%arg0: i32) -> (i32, i32) {
    %c0_i32 = arith.constant 0 : i32
    %c0_i32_0 = arith.constant 0 : i32
    %c0_i32_1 = arith.constant 0 : i32
    return %c0_i32, %c0_i32_0 : i32, i32
  }
  func.func @transform_7(%arg0: i32) -> (i32, i32) {
    %c0_i32 = arith.constant 0 : i32
    %c0_i32_0 = arith.constant 0 : i32
    %c0_i32_1 = arith.constant 0 : i32
    return %c0_i32, %c0_i32_0 : i32, i32
  }
  func.func @transform_8(%arg0: i32) -> (i32, i32) {
    %c0_i32 = arith.constant 0 : i32
    %c0_i32_0 = arith.constant 0 : i32
    %c0_i32_1 = arith.constant 0 : i32
    return %c0_i32, %c0_i32_0 : i32, i32
  }
  func.func @transform_9(%arg0: i32) -> (i32, i32) {
    %c0_i32 = arith.constant 0 : i32
    %c0_i32_0 = arith.constant 0 : i32
    %c0_i32_1 = arith.constant 0 : i32
    return %c0_i32, %c0_i32_0 : i32, i32
  }
  func.func @transform_10(%arg0: i32) -> (i32, i32) {
    %c0_i32 = arith.constant 0 : i32
    %c0_i32_0 = arith.constant 0 : i32
    %c0_i32_1 = arith.constant 0 : i32
    return %c0_i32, %c0_i32_0 : i32, i32
  }
  func.func @transform_11(%arg0: i32) -> (i32, i32) {
    %c0_i32 = arith.constant 0 : i32
    %c0_i32_0 = arith.constant 0 : i32
    %c0_i32_1 = arith.constant 0 : i32
    return %c0_i32, %c0_i32_0 : i32, i32
  }
  func.func @transform_12(%arg0: i32) -> (i32, i32) {
    %c0_i32 = arith.constant 0 : i32
    %c0_i32_0 = arith.constant 0 : i32
    %c0_i32_1 = arith.constant 0 : i32
    return %c0_i32, %c0_i32_0 : i32, i32
  }
  func.func @transform_13(%arg0: i32) -> (i32, i32) {
    %c0_i32 = arith.constant 0 : i32
    %c0_i32_0 = arith.constant 0 : i32
    return %arg0, %c0_i32 : i32, i32
  }
  func.func @transform_14(%arg0: i32) -> (i32, i32) {
    %c0_i32 = arith.constant 0 : i32
    %c0_i32_0 = arith.constant 0 : i32
    return %arg0, %c0_i32 : i32, i32
  }
  func.func @transform_15(%arg0: i32) -> (i32, i32) {
    %c0_i32 = arith.constant 0 : i32
    %c0_i32_0 = arith.constant 0 : i32
    return %arg0, %c0_i32 : i32, i32
  }
}

</mosaic_0001>

<bundles_post_ra>
// kernel: tpu_custom_call.1
= control target key start
LH: loop header
LB: loop body
LE: loop exit
PB: predicated region body
PF: predicated region fallthrough
CT: control target
= control target key end

     0   :  { %21 = vsyncpa [#allocation5], 0  ;;  %vm178_vm0 = vcmask 44032   ;;  %s10720_s28 = smov 12   ;;  %s10721_s29 = smov 6   ;;  %vm3165_vm1 = vcmask 1042432   ;;  %s16083_s0 = inlined_call_operand.vmem [shape: bf16[1024,6], index: 0, kind: input, shape index: {}]   ;;  %s16084_s1 = inlined_call_operand.vmem [shape: f32[16,32], index: 1, kind: input, shape index: {}]   ;;  %s16085_s2 = inlined_call_operand.vmem [shape: bf16[54,32], index: 2, kind: input, shape index: {}]   ;;  %s16086_s3 = inlined_call_operand.vmem [shape: f32[1,32], index: 3, kind: input, shape index: {}]   ;;  %s16087_s4 = inlined_call_operand.vmem [shape: bf16[288,32], index: 4, kind: input, shape index: {}]   ;;  %s16088_s5 = inlined_call_operand.vmem [shape: f32[1,32], index: 5, kind: input, shape index: {}]   ;;  %s16089_s6 = inlined_call_operand.vmem [shape: bf16[512,256], index: 6, kind: input, shape index: {}]   ;;  %s16090_s7 = inlined_call_operand.vmem [shape: f32[1,256], index: 7, kind: input, shape index: {}]   ;;  %s16091_s8 = inlined_call_operand.vmem [shape: bf16[256,288], index: 8, kind: input, shape index: {}]   ;;  %s16092_s9 = inlined_call_operand.vmem [shape: bf16[32,288], index: 9, kind: input, shape index: {}]   ;;  %s16093_s10 = inlined_call_operand.vmem [shape: f32[1,288], index: 10, kind: input, shape index: {}]   ;;  %s16094_s11 = inlined_call_operand.vmem [shape: bf16[288,128], index: 11, kind: input, shape index: {}]   ;;  %s16095_s12 = inlined_call_operand.vmem [shape: f32[1,128], index: 12, kind: input, shape index: {}]   ;;  %s16096_s13 = inlined_call_operand.hbm [shape: f32[16,128], index: 13, kind: output, shape index: {0}]   ;;  %s16097_s14 = inlined_call_operand.hbm [shape: f32[16,128], index: 14, kind: output, shape index: {1}]   ;;  %s16098_s15 = inlined_call_operand.hbm [shape: f32[16,128], index: 15, kind: output, shape index: {2}]  }
   0x1   :  { %v54_v0 = vld [vmem:[%s16083_s0 + $0x10] sm:$0xf]  ;;  %v55_v1 = vld [vmem:[%s16083_s0 + $0x14] sm:$0xf]  ;;  %v52_v2 = vld [vmem:[%s16083_s0 + $0x8] sm:$0xf] }
   0x2   :  { %183 = vst.msk [vmem:[#allocation2 + $0x10] sm:$0xf] %vm178_vm0, %v54_v0  ;;  %184 = vst.msk [vmem:[#allocation2 + $0x14] sm:$0xf] %vm178_vm0, %v55_v1  ;;  %v53_v3 = vld [vmem:[%s16083_s0 + $0xc] sm:$0xf] }
   0x3   :  { %181 = vst.msk [vmem:[#allocation2 + $0x8] sm:$0xf] %vm178_vm0, %v52_v2  ;;  %182 = vst.msk [vmem:[#allocation2 + $0xc] sm:$0xf] %vm178_vm0, %v53_v3  ;;  %v56_v4 = vld [vmem:[%s16083_s0 + $0x18] sm:$0xf] }
   0x4   :  { %v57_v5 = vld [vmem:[%s16083_s0 + $0x1c] sm:$0xf]  ;;  %v68_v6 = vld [vmem:[%s16083_s0 + $0x48] sm:$0xf]  ;;  %185 = vst.msk [vmem:[#allocation2 + $0x18] sm:$0xf] %vm178_vm0, %v56_v4 }
   0x5   :  { %186 = vst.msk [vmem:[#allocation2 + $0x1c] sm:$0xf] %vm178_vm0, %v57_v5  ;;  %v69_v7 = vld [vmem:[%s16083_s0 + $0x4c] sm:$0xf]  ;;  %197 = vst.msk [vmem:[#allocation2 + $0x48] sm:$0xf] %vm178_vm0, %v68_v6 }
   0x6   :  { %v66_v8 = vld [vmem:[%s16083_s0 + $0x40] sm:$0xf]  ;;  %v67_v9 = vld [vmem:[%s16083_s0 + $0x44] sm:$0xf]  ;;  %198 = vst.msk [vmem:[#allocation2 + $0x4c] sm:$0xf] %vm178_vm0, %v69_v7 }
   0x7   :  { %195 = vst.msk [vmem:[#allocation2 + $0x40] sm:$0xf] %vm178_vm0, %v66_v8  ;;  %196 = vst.msk [vmem:[#allocation2 + $0x44] sm:$0xf] %vm178_vm0, %v67_v9  ;;  %v70_v10 = vld [vmem:[%s16083_s0 + $0x50] sm:$0xf] }
   0x8   :  { %v71_v11 = vld [vmem:[%s16083_s0 + $0x54] sm:$0xf]  ;;  %199 = vst.msk [vmem:[#allocation2 + $0x50] sm:$0xf] %vm178_vm0, %v70_v10  ;;  %v72_v12 = vld [vmem:[%s16083_s0 + $0x58] sm:$0xf] }
   0x9   :  { %200 = vst.msk [vmem:[#allocation2 + $0x54] sm:$0xf] %vm178_vm0, %v71_v11  ;;  %v73_v13 = vld [vmem:[%s16083_s0 + $0x5c] sm:$0xf]  ;;  %v84_v14 = vld [vmem:[%s16083_s0 + $0x88] sm:$0xf] }
   0xa   :  { %201 = vst.msk [vmem:[#allocation2 + $0x58] sm:$0xf] %vm178_vm0, %v72_v12  ;;  %202 = vst.msk [vmem:[#allocation2 + $0x5c] sm:$0xf] %vm178_vm0, %v73_v13  ;;  %v85_v15 = vld [vmem:[%s16083_s0 + $0x8c] sm:$0xf] }
   0xb   :  { %213 = vst.msk [vmem:[#allocation2 + $0x88] sm:$0xf] %vm178_vm0, %v84_v14  ;;  %v82_v16 = vld [vmem:[%s16083_s0 + $0x80] sm:$0xf]  ;;  %214 = vst.msk [vmem:[#allocation2 + $0x8c] sm:$0xf] %vm178_vm0, %v85_v15 }
   0xc   :  { %v83_v17 = vld [vmem:[%s16083_s0 + $0x84] sm:$0xf]  ;;  %211 = vst.msk [vmem:[#allocation2 + $0x80] sm:$0xf] %vm178_vm0, %v82_v16  ;;  %v86_v18 = vld [vmem:[%s16083_s0 + $0x90] sm:$0xf] }
   0xd   :  { %v87_v19 = vld [vmem:[%s16083_s0 + $0x94] sm:$0xf]  ;;  %212 = vst.msk [vmem:[#allocation2 + $0x84] sm:$0xf] %vm178_vm0, %v83_v17  ;;  %215 = vst.msk [vmem:[#allocation2 + $0x90] sm:$0xf] %vm178_vm0, %v86_v18 }
   0xe   :  { %v10144_v20 = vld [vmem:[#allocation2 + $0x10] sm:$0xff]   ;;  %216 = vst.msk [vmem:[#allocation2 + $0x94] sm:$0xf] %vm178_vm0, %v87_v19  ;;  %v10145_v21 = vld [vmem:[#allocation2 + $0x8] sm:$0xff]   ;;  %v10900_v22 = vld [vmem:[#allocation2 + $0x18] sm:$0xff]   ;;  %s10722_s30 = smov 18  }
   0xf   :  { %929 = vrot.lane.b32.xlu1 %v10144_v20, %s10720_s28  ;;  %796 = vrot.lane.b32.xlu0 %v10145_v21, %s10721_s29  ;;  %v10905_v23 = vld [vmem:[#allocation2 + $0x48] sm:$0xff]   ;;  %v10908_v24 = vld [vmem:[#allocation2 + $0x40] sm:$0xff]   ;;  %v88_v28 = vld [vmem:[%s16083_s0 + $0x98] sm:$0xf]  ;;  %s10723_s16 = smov 24   ;;  %s10724_s19 = smov 30  }
  0x10   :  { %v10910_v25 = vld [vmem:[#allocation2 + $0x50] sm:$0xff]   ;;  %v58_v26 = vld [vmem:[%s16083_s0 + $0x20] sm:$0xf]  ;;  %v59_v27 = vld [vmem:[%s16083_s0 + $0x24] sm:$0xf]  ;;  %s10725_s20 = smov 36  }
  0x11   :  { %187 = vst.msk [vmem:[#allocation2 + $0x20] sm:$0xf] %vm178_vm0, %v58_v26  ;;  %188 = vst.msk [vmem:[#allocation2 + $0x24] sm:$0xf] %vm178_vm0, %v59_v27  ;;  %v89_v29 = vld [vmem:[%s16083_s0 + $0x9c] sm:$0xf] }
  0x12   :  { %217 = vst.msk [vmem:[#allocation2 + $0x98] sm:$0xf] %vm178_vm0, %v88_v28  ;;  %v60_v30 = vld [vmem:[%s16083_s0 + $0x28] sm:$0xf]  ;;  %v61_v31 = vld [vmem:[%s16083_s0 + $0x2c] sm:$0xf] }
  0x13   :  { %931 = vrot.lane.b32.xlu1 %v10900_v22, %s10720_s28  ;;  %798 = vrot.lane.b32.xlu0 %v10144_v20, %s10721_s29  ;;  %v10937_v32 = vld [vmem:[#allocation2 + $0x58] sm:$0xff]   ;;  %218 = vst.msk [vmem:[#allocation2 + $0x9c] sm:$0xf] %vm178_vm0, %v89_v29  ;;  %189 = vst.msk [vmem:[#allocation2 + $0x28] sm:$0xf] %vm178_vm0, %v60_v30  ;;  %v11017_v51 = vld [vmem:[#allocation2 + $0x88] sm:$0xff]  }
  0x14   :  { %190 = vst.msk [vmem:[#allocation2 + $0x2c] sm:$0xf] %vm178_vm0, %v61_v31  ;;  %v74_v33 = vld [vmem:[%s16083_s0 + $0x60] sm:$0xf]  ;;  %v75_v34 = vld [vmem:[%s16083_s0 + $0x64] sm:$0xf] }
  0x15   :  { %v76_v35 = vld [vmem:[%s16083_s0 + $0x68] sm:$0xf]  ;;  %203 = vst.msk [vmem:[#allocation2 + $0x60] sm:$0xf] %vm178_vm0, %v74_v33  ;;  %204 = vst.msk [vmem:[#allocation2 + $0x64] sm:$0xf] %vm178_vm0, %v75_v34 }
  0x16   :  { %v77_v36 = vld [vmem:[%s16083_s0 + $0x6c] sm:$0xf]  ;;  %205 = vst.msk [vmem:[#allocation2 + $0x68] sm:$0xf] %vm178_vm0, %v76_v35  ;;  %v90_v37 = vld [vmem:[%s16083_s0 + $0xa0] sm:$0xf] }
  0x17   :  { %1089 = vrot.lane.b32.xlu1 %v10905_v23, %s10722_s30  ;;  %1087 = vrot.lane.b32.xlu0 %v10908_v24, %s10722_s30  ;;  %v91_v38 = vld [vmem:[%s16083_s0 + $0xa4] sm:$0xf]  ;;  %206 = vst.msk [vmem:[#allocation2 + $0x6c] sm:$0xf] %vm178_vm0, %v77_v36  ;;  %219 = vst.msk [vmem:[#allocation2 + $0xa0] sm:$0xf] %vm178_vm0, %v90_v37 }
  0x18   :  { %220 = vst.msk [vmem:[#allocation2 + $0xa4] sm:$0xf] %vm178_vm0, %v91_v38  ;;  %v62_v39 = vld [vmem:[%s16083_s0 + $0x30] sm:$0xf]  ;;  %v63_v40 = vld [vmem:[%s16083_s0 + $0x34] sm:$0xf] }
  0x19   :  { %v92_v41 = vld [vmem:[%s16083_s0 + $0xa8] sm:$0xf]  ;;  %191 = vst.msk [vmem:[#allocation2 + $0x30] sm:$0xf] %vm178_vm0, %v62_v39  ;;  %192 = vst.msk [vmem:[#allocation2 + $0x34] sm:$0xf] %vm178_vm0, %v63_v40 }
  0x1a   :  { %v93_v42 = vld [vmem:[%s16083_s0 + $0xac] sm:$0xf]  ;;  %221 = vst.msk [vmem:[#allocation2 + $0xa8] sm:$0xf] %vm178_vm0, %v92_v41  ;;  %v64_v43 = vld [vmem:[%s16083_s0 + $0x38] sm:$0xf] }
  0x1b   :  { %1222 = vrot.lane.b32.xlu1 %v10910_v25, %s10723_s16  ;;  %1220 = vrot.lane.b32.xlu0 %v10905_v23, %s10723_s16  ;;  %v65_v44 = vld [vmem:[%s16083_s0 + $0x3c] sm:$0xf]  ;;  %222 = vst.msk [vmem:[#allocation2 + $0xac] sm:$0xf] %vm178_vm0, %v93_v42  ;;  %193 = vst.msk [vmem:[#allocation2 + $0x38] sm:$0xf] %vm178_vm0, %v64_v43 }
  0x1c   :  { %194 = vst.msk [vmem:[#allocation2 + $0x3c] sm:$0xf] %vm178_vm0, %v65_v44  ;;  %v78_v45 = vld [vmem:[%s16083_s0 + $0x70] sm:$0xf]  ;;  %v79_v46 = vld [vmem:[%s16083_s0 + $0x74] sm:$0xf] }
  0x1d   :  { %v80_v47 = vld [vmem:[%s16083_s0 + $0x78] sm:$0xf]  ;;  %207 = vst.msk [vmem:[#allocation2 + $0x70] sm:$0xf] %vm178_vm0, %v78_v45  ;;  %208 = vst.msk [vmem:[#allocation2 + $0x74] sm:$0xf] %vm178_vm0, %v79_v46 }
  0x1e   :  { %v81_v48 = vld [vmem:[%s16083_s0 + $0x7c] sm:$0xf]  ;;  %209 = vst.msk [vmem:[#allocation2 + $0x78] sm:$0xf] %vm178_vm0, %v80_v47  ;;  %v94_v49 = vld [vmem:[%s16083_s0 + $0xb0] sm:$0xf] }
  0x1f   :  { %v95_v50 = vld [vmem:[%s16083_s0 + $0xb4] sm:$0xf]  ;;  %1355 = vrot.lane.b32.xlu1 %v10937_v32, %s10724_s19  ;;  %210 = vst.msk [vmem:[#allocation2 + $0x7c] sm:$0xf] %vm178_vm0, %v81_v48  ;;  %223 = vst.msk [vmem:[#allocation2 + $0xb0] sm:$0xf] %vm178_vm0, %v94_v49  ;;  %1353 = vrot.lane.b32.xlu0 %v10910_v25, %s10724_s19 }
  0x20   :  { %224 = vst.msk [vmem:[#allocation2 + $0xb4] sm:$0xf] %vm178_vm0, %v95_v50  ;;  %v11024_v52 = vld [vmem:[#allocation2 + $0x80] sm:$0xff]   ;;  %v11028_v53 = vld [vmem:[#allocation2 + $0x90] sm:$0xff]   ;;  %s16099_s21 = smov 42   ;;  %v11036_v55 = vld [vmem:[#allocation2 + $0x98] sm:$0xff]  }
  0x21   :  { %v10154_v54 = vld [vmem:[#allocation2 + $0x20] sm:$0xff]   ;;  %v96_v56 = vld [vmem:[%s16083_s0 + $0xb8] sm:$0xf]  ;;  %v97_v57 = vld [vmem:[%s16083_s0 + $0xbc] sm:$0xf]  ;;  %s16101_s17 = smov 48  }
  0x22   :  { %v50_v58 = vld [vmem:[%s16083_s0] sm:$0xf]  ;;  %225 = vst.msk [vmem:[#allocation2 + $0xb8] sm:$0xf] %vm178_vm0, %v96_v56  ;;  %226 = vst.msk [vmem:[#allocation2 + $0xbc] sm:$0xf] %vm178_vm0, %v97_v57 }
  0x23   :  { %1513 = vrot.lane.b32.xlu1 %v11017_v51, %s10725_s20  ;;  %1511 = vrot.lane.b32.xlu0 %v11024_v52, %s10725_s20  ;;  %v51_v59 = vld [vmem:[%s16083_s0 + $0x4] sm:$0xf]  ;;  %179 = vst.msk [vmem:[#allocation2] sm:$0xf] %vm178_vm0, %v50_v58  ;;  %v98_v60 = vld [vmem:[%s16083_s0 + $0xc0] sm:$0xf] }
  0x24   :  { %v99_v61 = vld [vmem:[%s16083_s0 + $0xc4] sm:$0xf]  ;;  %v10156_v62 = vld [vmem:[#allocation2 + $0x28] sm:$0xff]   ;;  %180 = vst.msk [vmem:[#allocation2 + $0x4] sm:$0xf] %vm178_vm0, %v51_v59  ;;  %v10171_v2 = vld [vmem:[%s16085_s2 + $0x10] sm:$0xff]  }
  0x25   :  { %227 = vst.msk [vmem:[#allocation2 + $0xc0] sm:$0xf] %vm178_vm0, %v98_v60  ;;  %228 = vst.msk [vmem:[#allocation2 + $0xc4] sm:$0xf] %vm178_vm0, %v99_v61  ;;  %v100_v63 = vld [vmem:[%s16083_s0 + $0xc8] sm:$0xf] }
  0x26   :  { %v101_v0 = vld [vmem:[%s16083_s0 + $0xcc] sm:$0xf]  ;;  %229 = vst.msk [vmem:[#allocation2 + $0xc8] sm:$0xf] %vm178_vm0, %v100_v63  ;;  %v102_v5 = vld [vmem:[%s16083_s0 + $0xd0] sm:$0xf] }
  0x27   :  { %1646 = vrot.lane.b32.xlu1 %v11028_v53, %s16099_s21  ;;  %1644 = vrot.lane.b32.xlu0 %v11017_v51, %s16099_s21  ;;  %230 = vst.msk [vmem:[#allocation2 + $0xcc] sm:$0xf] %vm178_vm0, %v101_v0  ;;  %v10170_v1 = vld [vmem:[%s16085_s2 + $0x18] ss:$0 sps:$4 sm:$0x77]   ;;  %v10172_v4 = vld [vmem:[%s16085_s2 + $0x8] sm:$0xff]  }
  0x28   :  { %10124 = vmatprep.subr.msk.bf16.mxu0 %vm3165_vm1, %v10170_v1  ;;  %v3167_v3 = vsel %vm3165_vm1, %v10170_v1, 0  ;;  %v103_v6 = vld [vmem:[%s16083_s0 + $0xd4] sm:$0xf]  ;;  %231 = vst.msk [vmem:[#allocation2 + $0xd0] sm:$0xf] %vm178_vm0, %v102_v5  ;;  %v11106_v9 = vld [vmem:[#allocation2 + $0x60] sm:$0xff]  }
  0x29   :  { %9841 = vmatpush3.bf16.msra.mxu0 %v3167_v3  ;;  %232 = vst.msk [vmem:[#allocation2 + $0xd4] sm:$0xf] %vm178_vm0, %v103_v6  ;;  %v104_v7 = vld [vmem:[%s16083_s0 + $0xd8] sm:$0xf]  ;;  %v105_v8 = vld [vmem:[%s16083_s0 + $0xdc] sm:$0xf] }
  0x2a   :  { %9842 = vmatprep.subr.bf16.mxu0 %v10171_v2  ;;  %233 = vst.msk [vmem:[#allocation2 + $0xd8] sm:$0xf] %vm178_vm0, %v104_v7  ;;  %234 = vst.msk [vmem:[#allocation2 + $0xdc] sm:$0xf] %vm178_vm0, %v105_v8  ;;  %v10173_v10 = vld [vmem:[%s16085_s2] sm:$0xff]   ;;  %v11115_v11 = vld [vmem:[#allocation2 + $0x68] sm:$0xff]  }
  0x2b   :  { %800 = vrot.lane.b32.xlu1 %v10900_v22, %s10721_s29  ;;  %1777 = vrot.lane.b32.xlu0 %v11028_v53, %s16101_s17  ;;  %v106_v12 = vld [vmem:[%s16083_s0 + $0xe0] sm:$0xf]  ;;  %v107_v13 = vld [vmem:[%s16083_s0 + $0xe4] sm:$0xf]  ;;  %s16142_s23 = smov 42   ;;  %v10160_v17 = vld [vmem:[#allocation2 + $0x30] sm:$0xff]  }
  0x2c   :  { %235 = vst.msk [vmem:[#allocation2 + $0xe0] sm:$0xf] %vm178_vm0, %v106_v12  ;;  %236 = vst.msk [vmem:[#allocation2 + $0xe4] sm:$0xf] %vm178_vm0, %v107_v13  ;;  %v11133_v14 = vld [vmem:[#allocation2 + $0xa0] sm:$0xff]   ;;  %v11151_v18 = vld [vmem:[#allocation2 + $0xa8] sm:$0xff]  }
  0x2d   :  { %9843 = vmatpush3.bf16.msra.mxu0 %v10171_v2  ;;  %v108_v15 = vld [vmem:[%s16083_s0 + $0xe8] sm:$0xf]  ;;  %v109_v16 = vld [vmem:[%s16083_s0 + $0xec] sm:$0xf]  ;;  %s16143_s27 = smov 48   ;;  %v10162_v19 = vld [vmem:[#allocation2 + $0x38] sm:$0xff]  }
  0x2e   :  { %9844 = vmatprep.subr.bf16.mxu0 %v10172_v4  ;;  %237 = vst.msk [vmem:[#allocation2 + $0xe8] sm:$0xf] %vm178_vm0, %v108_v15  ;;  %238 = vst.msk [vmem:[#allocation2 + $0xec] sm:$0xf] %vm178_vm0, %v109_v16  ;;  %v11161_v20 = vld [vmem:[#allocation2 + $0x70] sm:$0xff]   ;;  %v11167_v21 = vld [vmem:[#allocation2 + $0x78] sm:$0xff]  }
  0x2f   :  { %802 = vrot.lane.b32.xlu1 %v10154_v54, %s10721_s29  ;;  %1779 = vrot.lane.b32.xlu0 %v11036_v55, %s16101_s17  ;;  %v110_v22 = vld [vmem:[%s16083_s0 + $0xf0] sm:$0xf]  ;;  %v111_v26 = vld [vmem:[%s16083_s0 + $0xf4] sm:$0xf]  ;;  %v11203_v30 = vld [vmem:[#allocation2 + $0xb8] sm:$0xff]   ;;  %vm1905_vm2 = vcmask 48128  }
  0x30   :  { %239 = vst.msk [vmem:[#allocation2 + $0xf0] sm:$0xf] %vm178_vm0, %v110_v22  ;;  %240 = vst.msk [vmem:[#allocation2 + $0xf4] sm:$0xf] %vm178_vm0, %v111_v26  ;;  %v11185_v27 = vld [vmem:[#allocation2 + $0xb0] sm:$0xff]   ;;  %v11236_v34 = vld [vmem:[#allocation2 + $0xc0] sm:$0xff]  }
  0x31   :  { %9845 = vmatpush3.bf16.msra.mxu0 %v10172_v4  ;;  %v112_v28 = vld [vmem:[%s16083_s0 + $0xf8] sm:$0xf]  ;;  %v113_v29 = vld [vmem:[%s16083_s0 + $0xfc] sm:$0xf]  ;;  %v114_v31 = vld [vmem:[%s16083_s0 + $0x100] sm:$0xf] }
  0x32   :  { %9846 = vmatprep.subr.bf16.mxu0 %v10173_v10  ;;  %241 = vst.msk [vmem:[#allocation2 + $0xf8] sm:$0xf] %vm178_vm0, %v112_v28  ;;  %242 = vst.msk [vmem:[#allocation2 + $0xfc] sm:$0xf] %vm178_vm0, %v113_v29  ;;  %v116_v38 = vld [vmem:[%s16083_s0 + $0x108] sm:$0xf] }
  0x33   :  { %935 = vrot.lane.b32.xlu1 %v10156_v62, %s10720_s28  ;;  %933 = vrot.lane.b32.xlu0 %v10154_v54, %s10720_s28  ;;  %243 = vst.msk [vmem:[#allocation2 + $0x100] sm:$0xf] %vm178_vm0, %v114_v31  ;;  %v117_v39 = vld [vmem:[%s16083_s0 + $0x10c] sm:$0xf]  ;;  %245 = vst.msk [vmem:[#allocation2 + $0x108] sm:$0xf] %vm178_vm0, %v116_v38 }
  0x34   :  { %246 = vst.msk [vmem:[#allocation2 + $0x10c] sm:$0xf] %vm178_vm0, %v117_v39  ;;  %v11254_v42 = vld [vmem:[#allocation2 + $0xc8] sm:$0xff]   ;;  %vm2098_vm3 = vcmask 97280   ;;  %v10167_v45 = vld [vmem:[#allocation2] sm:$0xff]   ;;  %vm2227_vm4 = vcmask 146432  }
  0x35   :  { %9847 = vmatpush3.bf16.msra.mxu0 %v10173_v10  ;;  %vm2356_vm5 = vcmask 195584   ;;  %vm2485_vm6 = vcmask 244736   ;;  %vm2614_vm7 = vcmask 293888   ;;  %vm2743_vm8 = vcmask 343040   ;;  %v10529_v54 = vld [vmem:[#allocation2 + $0x8] sm:$0xff]  }
  0x36   :  { %vm2872_vm9 = vcmask 392192   ;;  %vm3036_vm10 = vcmask 441344   ;;  %v118_v2 = vld [vmem:[%s16083_s0 + $0x110] sm:$0xf]  ;;  %v119_v3 = vld [vmem:[%s16083_s0 + $0x114] sm:$0xf] }
  0x37   :  { %1093 = vrot.lane.b32.xlu1 %v10937_v32, %s10722_s30  ;;  %1091 = vrot.lane.b32.xlu0 %v10910_v25, %s10722_s30  ;;  %247 = vst.msk [vmem:[#allocation2 + $0x110] sm:$0xf] %vm178_vm0, %v118_v2  ;;  %248 = vst.msk [vmem:[#allocation2 + $0x114] sm:$0xf] %vm178_vm0, %v119_v3 }
  0x3b   :  { %1226 = vrot.lane.b32.xlu1 %v11106_v9, %s10723_s16  ;;  %1224 = vrot.lane.b32.xlu0 %v10937_v32, %s10723_s16 }
  0x3f   :  { %1359 = vrot.lane.b32.xlu1 %v11115_v11, %s10724_s19  ;;  %1357 = vrot.lane.b32.xlu0 %v11106_v9, %s10724_s19 }
  0x43   :  { %1517 = vrot.lane.b32.xlu1 %v11036_v55, %s10725_s20  ;;  %1515 = vrot.lane.b32.xlu0 %v11028_v53, %s10725_s20 }
  0x47   :  { %1650 = vrot.lane.b32.xlu1 %v11133_v14, %s16142_s23  ;;  %1648 = vrot.lane.b32.xlu0 %v11036_v55, %s16142_s23 }
  0x4b   :  { %804 = vrot.lane.b32.xlu1 %v10156_v62, %s10721_s29  ;;  %1781 = vrot.lane.b32.xlu0 %v11133_v14, %s16143_s27 }
  0x4f   :  { %806 = vrot.lane.b32.xlu1 %v10160_v17, %s10721_s29  ;;  %1783 = vrot.lane.b32.xlu0 %v11151_v18, %s16143_s27 }
  0x53   :  { %939 = vrot.lane.b32.xlu1 %v10162_v19, %s10720_s28  ;;  %937 = vrot.lane.b32.xlu0 %v10160_v17, %s10720_s28 }
  0x57   :  { %1097 = vrot.lane.b32.xlu1 %v11115_v11, %s10722_s30  ;;  %1095 = vrot.lane.b32.xlu0 %v11106_v9, %s10722_s30 }
  0x5b   :  { %1230 = vrot.lane.b32.xlu1 %v11161_v20, %s10723_s16  ;;  %1228 = vrot.lane.b32.xlu0 %v11115_v11, %s10723_s16 }
  0x5f   :  { %1363 = vrot.lane.b32.xlu1 %v11167_v21, %s10724_s19  ;;  %1361 = vrot.lane.b32.xlu0 %v11161_v20, %s10724_s19 }
  0x63   :  { %1521 = vrot.lane.b32.xlu1 %v11151_v18, %s10725_s20  ;;  %1519 = vrot.lane.b32.xlu0 %v11133_v14, %s10725_s20 }
  0x67   :  { %1654 = vrot.lane.b32.xlu1 %v11185_v27, %s16142_s23  ;;  %1652 = vrot.lane.b32.xlu0 %v11151_v18, %s16142_s23 }
  0x6b   :  { %808 = vrot.lane.b32.xlu1 %v10162_v19, %s10721_s29  ;;  %1785 = vrot.lane.b32.xlu0 %v11185_v27, %s16143_s27 }
  0x6f   :  { %810 = vrot.lane.b32.xlu1 %v10908_v24, %s10721_s29  ;;  %1787 = vrot.lane.b32.xlu0 %v11203_v30, %s16143_s27 }
  0x73   :  { %943 = vrot.lane.b32.xlu1 %v10905_v23, %s10720_s28  ;;  %941 = vrot.lane.b32.xlu0 %v10908_v24, %s10720_s28  ;;  %v115_v24 = vld [vmem:[%s16083_s0 + $0x104] sm:$0xf] }
  0x74   :  { %244 = vst.msk [vmem:[#allocation2 + $0x104] sm:$0xf] %vm178_vm0, %v115_v24 }
  0x77   :  { %1101 = vrot.lane.b32.xlu1 %v11167_v21, %s10722_s30  ;;  %1099 = vrot.lane.b32.xlu0 %v11161_v20, %s10722_s30 }
  0x7b   :  { %1234 = vrot.lane.b32.xlu1 %v11024_v52, %s10723_s16  ;;  %1232 = vrot.lane.b32.xlu0 %v11167_v21, %s10723_s16 }
  0x7f   :  { %1367 = vrot.lane.b32.xlu1 %v11017_v51, %s10724_s19  ;;  %1365 = vrot.lane.b32.xlu0 %v11024_v52, %s10724_s19 }
  0x81   :  { %v930_v33 = vpop.permute.xlu1 %929  ;;  %v797_v35 = vpop.permute.xlu0 %796 }
  0x82   :  { %v1908_v48 = vsel %vm1905_vm2, %v10167_v45, %v797_v35 }
  0x83   :  { %1525 = vrot.lane.b32.xlu1 %v11203_v30, %s10725_s20  ;;  %1523 = vrot.lane.b32.xlu0 %v11185_v27, %s10725_s20 }
  0x85   :  { %v932_v36 = vpop.permute.xlu1 %931  ;;  %v799_v37 = vpop.permute.xlu0 %798 }
  0x86   :  { %v1911_v56 = vsel %vm1905_vm2, %v10529_v54, %v799_v37 }
  0x87   :  { %1658 = vrot.lane.b32.xlu1 %v11236_v34, %s16142_s23  ;;  %1656 = vrot.lane.b32.xlu0 %v11203_v30, %s16142_s23 }
  0x89   :  { %v1090_v40 = vpop.permute.xlu1 %1089  ;;  %v1088_v41 = vpop.permute.xlu0 %1087 }
  0x8b   :  { %812 = vrot.lane.b32.xlu1 %v10905_v23, %s10721_s29  ;;  %1789 = vrot.lane.b32.xlu0 %v11236_v34, %s16143_s27  ;;  %v11266_v23 = vld [vmem:[#allocation2 + $0x50] sm:$0xff]  }
  0x8d   :  { %v1223_v43 = vpop.permute.xlu1 %1222  ;;  %v1221_v44 = vpop.permute.xlu0 %1220 }
  0x8f   :  { %814 = vrot.lane.b32.xlu1 %v10910_v25, %s10721_s29  ;;  %1791 = vrot.lane.b32.xlu0 %v11254_v42, %s16143_s27 }
  0x91   :  { %v1356_v46 = vpop.permute.xlu1 %1355  ;;  %v1354_v47 = vpop.permute.xlu0 %1353 }
  0x93   :  { %947 = vrot.lane.b32.xlu1 %v10937_v32, %s10720_s28  ;;  %945 = vrot.lane.b32.xlu0 %v11266_v23, %s10720_s28  ;;  %v2100_v32 = vsel %vm2098_vm3, %v1908_v48, %v930_v33 }
  0x94   :  { %v2229_v57 = vsel %vm2227_vm4, %v2100_v32, %v1088_v41 }
  0x95   :  { %v1514_v25 = vpop.permute.xlu1 %1513  ;;  %v1512_v49 = vpop.permute.xlu0 %1511  ;;  %v2358_v59 = vsel %vm2356_vm5, %v2229_v57, %v1221_v44 }
  0x96   :  { %v2487_v60 = vsel %vm2485_vm6, %v2358_v59, %v1354_v47 }
  0x97   :  { %1105 = vrot.lane.b32.xlu1 %v11017_v51, %s10722_s30  ;;  %1103 = vrot.lane.b32.xlu0 %v11024_v52, %s10722_s30  ;;  %v2102_v52 = vsel %vm2098_vm3, %v1911_v56, %v932_v36  ;;  %v2616_v61 = vsel %vm2614_vm7, %v2487_v60, %v1512_v49 }
  0x98   :  { %v2231_v63 = vsel %vm2227_vm4, %v2102_v52, %v1090_v40 }
  0x99   :  { %v1647_v50 = vpop.permute.xlu1 %1646  ;;  %v1645_v58 = vpop.permute.xlu0 %1644 }
  0x9a   :  { %v2745_v0 = vsel %vm2743_vm8, %v2616_v61, %v1645_v58 }
  0x9b   :  { %1238 = vrot.lane.b32.xlu1 %v11028_v53, %s10723_s16  ;;  %1236 = vrot.lane.b32.xlu0 %v11017_v51, %s10723_s16  ;;  %v2360_v51 = vsel %vm2356_vm5, %v2231_v63, %v1223_v43 }
  0x9c   :  { %v2489_v5 = vsel %vm2485_vm6, %v2360_v51, %v1356_v46 }
  0x9d   :  { %v801_v62 = vpop.permute.xlu1 %800  ;;  %v1778_v1 = vpop.permute.xlu0 %1777 }
  0x9e   :  { %v2874_v4 = vsel %vm2872_vm9, %v2745_v0, %v1778_v1 }
  0x9f   :  { %1371 = vrot.lane.b32.xlu1 %v11036_v55, %s10724_s19  ;;  %1369 = vrot.lane.b32.xlu0 %v11028_v53, %s10724_s19 }
  0xa0   :  { %9848 = vmatprep.mubr.msk.bf16.mxu0 %vm3036_vm10, %v2874_v4 }
  0xa1   :  { %22 = vsyncpa [#allocation7], 0  ;;  %v2618_v6 = vsel %vm2614_vm7, %v2489_v5, %v1514_v25  ;;  %v803_v7 = vpop.permute.xlu1 %802  ;;  %v1780_v55 = vpop.permute.xlu0 %1779  ;;  %v120_v10 = vld [vmem:[%s16083_s0 + $0x118] sm:$0xf]  ;;  %v121_v12 = vld [vmem:[%s16083_s0 + $0x11c] sm:$0xf] }
  0xa2   :  { %v2747_v8 = vsel %vm2743_vm8, %v2618_v6, %v1647_v50  ;;  %v11315_v53 = vld [vmem:[#allocation2 + $0xd0] sm:$0xff]   ;;  %249 = vst.msk [vmem:[#allocation2 + $0x118] sm:$0xf] %vm178_vm0, %v120_v10  ;;  %250 = vst.msk [vmem:[#allocation2 + $0x11c] sm:$0xf] %vm178_vm0, %v121_v12  ;;  %v11326_v22 = vld [vmem:[#allocation2 + $0x58] sm:$0xff]  }
  0xa3   :  { %v2876_v13 = vsel %vm2872_vm9, %v2747_v8, %v1780_v55  ;;  %1529 = vrot.lane.b32.xlu1 %v11254_v42, %s10725_s20  ;;  %1527 = vrot.lane.b32.xlu0 %v11236_v34, %s10725_s20  ;;  %v11332_v26 = vld [vmem:[#allocation2 + $0xd8] sm:$0xff]   ;;  %v10532_v37 = vld [vmem:[#allocation2 + $0x10] sm:$0xff]   ;;  %v122_v56 = vld [vmem:[%s16083_s0 + $0x120] sm:$0xf]  ;;  %vm4354_vm11 = vcmask 257024   ;;  %s10729_s24 = smov 32  }
  0xa4   :  { %9849 = vmatmul.mubr.msk.bf16.vlgmr.msra.gmra.mxu0 %vm3036_vm10, %v2876_v13  ;;  %v11342_v36 = vld [vmem:[#allocation2 + $0x98] sm:$0xff]   ;;  %v1914_v38 = vsel %vm1905_vm2, %v10532_v37, %v801_v62  ;;  %v11347_v39 = vld [vmem:[#allocation2 + $0x90] sm:$0xff]   ;;  %v123_v57 = vld [vmem:[%s16083_s0 + $0x124] sm:$0xf]  ;;  %251 = vst.msk [vmem:[#allocation2 + $0x120] sm:$0xf] %vm178_vm0, %v122_v56 }
  0xa5   :  { %v936_v15 = vpop.permute.xlu1 %935  ;;  %v934_v16 = vpop.permute.xlu0 %933  ;;  %v10534_v45 = vld [vmem:[#allocation2 + $0x18] sm:$0xff]   ;;  %252 = vst.msk [vmem:[#allocation2 + $0x124] sm:$0xf] %vm178_vm0, %v123_v57  ;;  %v124_v0 = vld [vmem:[%s16083_s0 + $0x128] sm:$0xf]  ;;  %v11391_v3 = vld [vmem:[#allocation2 + $0xe0] sm:$0xff]  }
  0xa6   :  { %v2104_v40 = vsel %vm2098_vm3, %v1914_v38, %v934_v16  ;;  %v1917_v46 = vsel %vm1905_vm2, %v10534_v45, %v803_v7  ;;  %v125_v1 = vld [vmem:[%s16083_s0 + $0x12c] sm:$0xf]  ;;  %253 = vst.msk [vmem:[#allocation2 + $0x128] sm:$0xf] %vm178_vm0, %v124_v0  ;;  %s10730_s18 = smov 64   ;;  %vm5505_vm12 = vcmask 261120  }
  0xa7   :  { %1662 = vrot.lane.b32.xlu1 %v11315_v53, %s16142_s23  ;;  %1660 = vrot.lane.b32.xlu0 %v11254_v42, %s16142_s23  ;;  %v2106_v25 = vsel %vm2098_vm3, %v1917_v46, %v936_v15  ;;  %254 = vst.msk [vmem:[#allocation2 + $0x12c] sm:$0xf] %vm178_vm0, %v125_v1  ;;  %v11406_v7 = vld [vmem:[#allocation2 + $0xe8] sm:$0xff]   ;;  %v10535_v15 = vld [vmem:[#allocation2 + $0x20] sm:$0xff]   ;;  %vm5698_vm13 = vcmask 523264   ;;  %vm5827_vm14 = vcmask 785408  }
  0xa8   :  { %v11484_v1 = vld [vmem:[#allocation2 + $0x88] sm:$0xff]   ;;  %vm10733_vm15 = vmmov 0   ;;  %s10735_s26 = smov [#allocation4]  }
  0xa9   :  { %v1094_v17 = vpop.permute.xlu1 %1093  ;;  %v1092_v19 = vpop.permute.xlu0 %1091  ;;  %s8902_s21 = sshll.u32 %s10735_s26, 4  ;;  %s8903_s21 = int_to_ptr.vmem [resolvable:$true] %s8902_s21 }
  0xaa   :  { %v2235_v32 = vsel %vm2227_vm4, %v2106_v25, %v1094_v17 }
  0xab   :  { %816 = vrot.lane.b32.xlu1 %v11326_v22, %s10721_s29  ;;  %1793 = vrot.lane.b32.xlu0 %v11315_v53, %s16143_s27 }
  0xad   :  { %v1227_v28 = vpop.permute.xlu1 %1226  ;;  %v1225_v29 = vpop.permute.xlu0 %1224 }
  0xae   :  { %v2364_v58 = vsel %vm2356_vm5, %v2235_v32, %v1227_v28  ;;  %v129_v32 = vld [vmem:[%s16083_s0 + $0x13c] sm:$0xf] }
  0xaf   :  { %818 = vrot.lane.b32.xlu1 %v11106_v9, %s10721_s29  ;;  %1795 = vrot.lane.b32.xlu0 %v11332_v26, %s16143_s27  ;;  %258 = vst.msk [vmem:[#allocation2 + $0x13c] sm:$0xf] %vm178_vm0, %v129_v32 }
  0xb1   :  { %v1360_v31 = vpop.permute.xlu1 %1359  ;;  %v1358_v24 = vpop.permute.xlu0 %1357 }
  0xb2   :  { %v2493_v60 = vsel %vm2485_vm6, %v2364_v58, %v1360_v31 }
  0xb3   :  { %951 = vrot.lane.b32.xlu1 %v11115_v11, %s10720_s28  ;;  %949 = vrot.lane.b32.xlu0 %v11106_v9, %s10720_s28  ;;  %v2233_v9 = vsel %vm2227_vm4, %v2104_v40, %v1092_v19 }
  0xb4   :  { %v2362_v44 = vsel %vm2356_vm5, %v2233_v9, %v1225_v29  ;;  %v126_v9 = vld [vmem:[%s16083_s0 + $0x130] sm:$0xf] }
  0xb5   :  { %v1518_v33 = vpop.permute.xlu1 %1517  ;;  %v1516_v35 = vpop.permute.xlu0 %1515  ;;  %v2491_v47 = vsel %vm2485_vm6, %v2362_v44, %v1358_v24  ;;  %255 = vst.msk [vmem:[#allocation2 + $0x130] sm:$0xf] %vm178_vm0, %v126_v9  ;;  %v11535_v9 = vld [vmem:[#allocation2 + $0x100] sm:$0xff]  }
  0xb6   :  { %v2620_v48 = vsel %vm2614_vm7, %v2491_v47, %v1516_v35  ;;  %v2622_v52 = vsel %vm2614_vm7, %v2493_v60, %v1518_v33  ;;  %v11476_v60 = vld [vmem:[#allocation2 + $0xf8] sm:$0xff]  }
  0xb7   :  { %1109 = vrot.lane.b32.xlu1 %v11342_v36, %s10722_s30  ;;  %1107 = vrot.lane.b32.xlu0 %v11347_v39, %s10722_s30 }
  0xb9   :  { %v1651_v41 = vpop.permute.xlu1 %1650  ;;  %v1649_v43 = vpop.permute.xlu0 %1648 }
  0xba   :  { %v2749_v50 = vsel %vm2743_vm8, %v2620_v48, %v1649_v43  ;;  %v2751_v62 = vsel %vm2743_vm8, %v2622_v52, %v1651_v41  ;;  %v127_v43 = vld [vmem:[%s16083_s0 + $0x134] sm:$0xf] }
  0xbb   :  { %1242 = vrot.lane.b32.xlu1 %v11133_v14, %s10723_s16  ;;  %1240 = vrot.lane.b32.xlu0 %v11342_v36, %s10723_s16  ;;  %256 = vst.msk [vmem:[#allocation2 + $0x134] sm:$0xf] %vm178_vm0, %v127_v43 }
  0xbd   :  { %v805_v49 = vpop.permute.xlu1 %804  ;;  %v1782_v54 = vpop.permute.xlu0 %1781 }
  0xbe   :  { %v2878_v59 = vsel %vm2872_vm9, %v2749_v50, %v1782_v54  ;;  %v1920_v16 = vsel %vm1905_vm2, %v10535_v15, %v805_v49  ;;  %v128_v49 = vld [vmem:[%s16083_s0 + $0x138] sm:$0xf]  ;;  %v11461_v54 = vld [vmem:[#allocation2 + $0xf0] sm:$0xff]  }
  0xbf   :  { %1375 = vrot.lane.b32.xlu1 %v11151_v18, %s10724_s19  ;;  %1373 = vrot.lane.b32.xlu0 %v11133_v14, %s10724_s19  ;;  %257 = vst.msk [vmem:[#allocation2 + $0x138] sm:$0xf] %vm178_vm0, %v128_v49 }
  0xc0   :  { %9852 = vmatprep.mubr.msk.bf16.mxu0 %vm3036_vm10, %v2878_v59 }
  0xc1   :  { %v807_v61 = vpop.permute.xlu1 %806  ;;  %v1784_v63 = vpop.permute.xlu0 %1783 }
  0xc2   :  { %v2880_v2 = vsel %vm2872_vm9, %v2751_v62, %v1784_v63  ;;  %v11478_v62 = vld [vmem:[#allocation2 + $0x80] sm:$0xff]  }
  0xc3   :  { %1533 = vrot.lane.b32.xlu1 %v11332_v26, %s10725_s20  ;;  %1531 = vrot.lane.b32.xlu0 %v11315_v53, %s10725_s20 }
  0xc4   :  { %9853 = vmatmul.mubr.msk.bf16.gmra.mxu0 %vm3036_vm10, %v2880_v2 }
  0xc5   :  { %v940_v51 = vpop.permute.xlu1 %939  ;;  %v938_v4 = vpop.permute.xlu0 %937 }
  0xc6   :  { %v2108_v17 = vsel %vm2098_vm3, %v1920_v16, %v938_v4 }
  0xc7   :  { %1666 = vrot.lane.b32.xlu1 %v11391_v3, %s16142_s23  ;;  %1664 = vrot.lane.b32.xlu0 %v11332_v26, %s16142_s23 }
  0xc9   :  { %v1098_v5 = vpop.permute.xlu1 %1097  ;;  %v1096_v6 = vpop.permute.xlu0 %1095 }
  0xca   :  { %v2237_v28 = vsel %vm2227_vm4, %v2108_v17, %v1096_v6 }
  0xcb   :  { %820 = vrot.lane.b32.xlu1 %v11115_v11, %s10721_s29  ;;  %1797 = vrot.lane.b32.xlu0 %v11391_v3, %s16143_s27 }
  0xcd   :  { %v1231_v8 = vpop.permute.xlu1 %1230  ;;  %v1229_v55 = vpop.permute.xlu0 %1228 }
  0xce   :  { %v2366_v31 = vsel %vm2356_vm5, %v2237_v28, %v1229_v55 }
  0xcf   :  { %822 = vrot.lane.b32.xlu1 %v11161_v20, %s10721_s29  ;;  %1799 = vrot.lane.b32.xlu0 %v11406_v7, %s16143_s27 }
  0xd1   :  { %v1364_v10 = vpop.permute.xlu1 %1363  ;;  %v1362_v12 = vpop.permute.xlu0 %1361 }
  0xd2   :  { %v2495_v33 = vsel %vm2485_vm6, %v2366_v31, %v1362_v12  ;;  %v10540_v12 = vld [vmem:[#allocation2 + $0x38] sm:$0xff]   ;;  %v131_v31 = vld [vmem:[%s16083_s0 + $0x144] sm:$0xf] }
  0xd3   :  { %955 = vrot.lane.b32.xlu1 %v11167_v21, %s10720_s28  ;;  %953 = vrot.lane.b32.xlu0 %v11161_v20, %s10720_s28  ;;  %v10536_v20 = vld [vmem:[#allocation2 + $0x28] sm:$0xff]   ;;  %260 = vst.msk [vmem:[#allocation2 + $0x144] sm:$0xf] %vm178_vm0, %v131_v31 }
  0xd4   :  { %v1923_v24 = vsel %vm1905_vm2, %v10536_v20, %v807_v61 }
  0xd5   :  { %v1522_v11 = vpop.permute.xlu1 %1521  ;;  %v1520_v13 = vpop.permute.xlu0 %1519 }
  0xd6   :  { %v2624_v35 = vsel %vm2614_vm7, %v2495_v33, %v1520_v13 }
  0xd7   :  { %1113 = vrot.lane.b32.xlu1 %v11151_v18, %s10722_s30  ;;  %1111 = vrot.lane.b32.xlu0 %v11133_v14, %s10722_s30  ;;  %v2110_v14 = vsel %vm2098_vm3, %v1923_v24, %v940_v51  ;;  %v10539_v51 = vld [vmem:[#allocation2 + $0x30] sm:$0xff]  }
  0xd8   :  { %v2239_v38 = vsel %vm2227_vm4, %v2110_v14, %v1098_v5 }
  0xd9   :  { %v1655_v19 = vpop.permute.xlu1 %1654  ;;  %v1653_v29 = vpop.permute.xlu0 %1652 }
  0xda   :  { %v2753_v40 = vsel %vm2743_vm8, %v2624_v35, %v1653_v29  ;;  %v130_v29 = vld [vmem:[%s16083_s0 + $0x140] sm:$0xf] }
  0xdb   :  { %1246 = vrot.lane.b32.xlu1 %v11185_v27, %s10723_s16  ;;  %1244 = vrot.lane.b32.xlu0 %v11151_v18, %s10723_s16  ;;  %v2368_v18 = vsel %vm2356_vm5, %v2239_v38, %v1231_v8  ;;  %259 = vst.msk [vmem:[#allocation2 + $0x140] sm:$0xf] %vm178_vm0, %v130_v29  ;;  %v132_v38 = vld [vmem:[%s16083_s0 + $0x148] sm:$0xf] }
  0xdc   :  { %v2497_v45 = vsel %vm2485_vm6, %v2368_v18, %v1364_v10  ;;  %261 = vst.msk [vmem:[#allocation2 + $0x148] sm:$0xf] %vm178_vm0, %v132_v38 }
  0xdd   :  { %v809_v37 = vpop.permute.xlu1 %808  ;;  %v1786_v41 = vpop.permute.xlu0 %1785  ;;  %v2626_v46 = vsel %vm2614_vm7, %v2497_v45, %v1522_v11 }
  0xde   :  { %v2882_v44 = vsel %vm2872_vm9, %v2753_v40, %v1786_v41  ;;  %v2755_v25 = vsel %vm2743_vm8, %v2626_v46, %v1655_v19  ;;  %v1926_v4 = vsel %vm1905_vm2, %v10539_v51, %v809_v37  ;;  %v133_v40 = vld [vmem:[%s16083_s0 + $0x14c] sm:$0xf] }
  0xdf   :  { %1379 = vrot.lane.b32.xlu1 %v11203_v30, %s10724_s19  ;;  %1377 = vrot.lane.b32.xlu0 %v11185_v27, %s10724_s19  ;;  %262 = vst.msk [vmem:[#allocation2 + $0x14c] sm:$0xf] %vm178_vm0, %v133_v40  ;;  %v11550_v46 = vld [vmem:[#allocation2 + $0x108] sm:$0xff]  }
  0xe0   :  { %9856 = vmatprep.mubr.msk.bf16.mxu0 %vm3036_vm10, %v2882_v44  ;;  %v11628_v40 = vld [vmem:[#allocation2 + $0xa8] sm:$0xff]  }
  0xe1   :  { %v811_v47 = vpop.permute.xlu1 %810  ;;  %v1788_v48 = vpop.permute.xlu0 %1787 }
  0xe2   :  { %v2884_v50 = vsel %vm2872_vm9, %v2755_v25, %v1788_v48  ;;  %v1929_v11 = vsel %vm1905_vm2, %v10540_v12, %v811_v47 }
  0xe3   :  { %1537 = vrot.lane.b32.xlu1 %v11406_v7, %s10725_s20  ;;  %1535 = vrot.lane.b32.xlu0 %v11391_v3, %s10725_s20 }
  0xe4   :  { %9857 = vmatmul.mubr.msk.bf16.gmra.mxu0 %vm3036_vm10, %v2884_v50 }
  0xe5   :  { %v944_v56 = vpop.permute.xlu1 %943  ;;  %v942_v57 = vpop.permute.xlu0 %941 }
  0xe6   :  { %v2112_v5 = vsel %vm2098_vm3, %v1926_v4, %v942_v57 }
  0xe7   :  { %1670 = vrot.lane.b32.xlu1 %v11461_v54, %s16142_s23  ;;  %1668 = vrot.lane.b32.xlu0 %v11406_v7, %s16142_s23 }
  0xe9   :  { %v1102_v58 = vpop.permute.xlu1 %1101  ;;  %v1100_v59 = vpop.permute.xlu0 %1099 }
  0xea   :  { %v2241_v8 = vsel %vm2227_vm4, %v2112_v5, %v1100_v59 }
  0xeb   :  { %824 = vrot.lane.b32.xlu1 %v11167_v21, %s10721_s29  ;;  %1801 = vrot.lane.b32.xlu0 %v11461_v54, %s16143_s27 }
  0xed   :  { %v1235_v52 = vpop.permute.xlu1 %1234  ;;  %v1233_v61 = vpop.permute.xlu0 %1232 }
  0xee   :  { %v2370_v10 = vsel %vm2356_vm5, %v2241_v8, %v1233_v61  ;;  %v134_v8 = vld [vmem:[%s16083_s0 + $0x150] sm:$0xf] }
  0xef   :  { %826 = vrot.lane.b32.xlu1 %v11478_v62, %s10721_s29  ;;  %1803 = vrot.lane.b32.xlu0 %v11476_v60, %s16143_s27  ;;  %263 = vst.msk [vmem:[#allocation2 + $0x150] sm:$0xf] %vm178_vm0, %v134_v8  ;;  %v11690_v8 = vld [vmem:[#allocation2 + $0x128] sm:$0xff]  }
  0xf1   :  { %v1368_v63 = vpop.permute.xlu1 %1367  ;;  %v1366_v0 = vpop.permute.xlu0 %1365 }
  0xf2   :  { %v2499_v13 = vsel %vm2485_vm6, %v2370_v10, %v1366_v0 }
  0xf3   :  { %959 = vrot.lane.b32.xlu1 %v11484_v1, %s10720_s28  ;;  %957 = vrot.lane.b32.xlu0 %v11478_v62, %s10720_s28 }
  0xf5   :  { %v1526_v21 = vpop.permute.xlu1 %1525  ;;  %v1524_v2 = vpop.permute.xlu0 %1523 }
  0xf6   :  { %v2628_v15 = vsel %vm2614_vm7, %v2499_v13, %v1524_v2 }
  0xf7   :  { %1117 = vrot.lane.b32.xlu1 %v11203_v30, %s10722_s30  ;;  %1115 = vrot.lane.b32.xlu0 %v11185_v27, %s10722_s30  ;;  %v2114_v27 = vsel %vm2098_vm3, %v1929_v11, %v944_v56  ;;  %v10541_v56 = vld [vmem:[#allocation2 + $0x40] sm:$0xff]  }
  0xf8   :  { %v2243_v17 = vsel %vm2227_vm4, %v2114_v27, %v1102_v58 }
  0xf9   :  { %v1659_v6 = vpop.permute.xlu1 %1658  ;;  %v1657_v55 = vpop.permute.xlu0 %1656 }
  0xfa   :  { %v2757_v19 = vsel %vm2743_vm8, %v2628_v15, %v1657_v55  ;;  %v135_v55 = vld [vmem:[%s16083_s0 + $0x154] sm:$0xf] }
  0xfb   :  { %1250 = vrot.lane.b32.xlu1 %v11236_v34, %s10723_s16  ;;  %1248 = vrot.lane.b32.xlu0 %v11203_v30, %s10723_s16  ;;  %v2372_v30 = vsel %vm2356_vm5, %v2243_v17, %v1235_v52  ;;  %264 = vst.msk [vmem:[#allocation2 + $0x154] sm:$0xf] %vm178_vm0, %v135_v55  ;;  %v137_v17 = vld [vmem:[%s16083_s0 + $0x15c] sm:$0xf] }
  0xfc   :  { %v2501_v24 = vsel %vm2485_vm6, %v2372_v30, %v1368_v63  ;;  %266 = vst.msk [vmem:[#allocation2 + $0x15c] sm:$0xf] %vm178_vm0, %v137_v17  ;;  %v11614_v30 = vld [vmem:[#allocation2 + $0x118] sm:$0xff]  }
  0xfd   :  { %v813_v16 = vpop.permute.xlu1 %812  ;;  %v1790_v28 = vpop.permute.xlu0 %1789  ;;  %v2630_v33 = vsel %vm2614_vm7, %v2501_v24, %v1526_v21 }
  0xfe   :  { %v2886_v20 = vsel %vm2872_vm9, %v2757_v19, %v1790_v28  ;;  %v2759_v35 = vsel %vm2743_vm8, %v2630_v33, %v1659_v6  ;;  %v1932_v57 = vsel %vm1905_vm2, %v10541_v56, %v813_v16  ;;  %v136_v16 = vld [vmem:[%s16083_s0 + $0x158] sm:$0xf]  ;;  %v11605_v28 = vld [vmem:[#allocation2 + $0x110] sm:$0xff]  }
  0xff   :  { %1383 = vrot.lane.b32.xlu1 %v11254_v42, %s10724_s19  ;;  %1381 = vrot.lane.b32.xlu0 %v11236_v34, %s10724_s19  ;;  %265 = vst.msk [vmem:[#allocation2 + $0x158] sm:$0xf] %vm178_vm0, %v136_v16 }
 0x100   :  { %9860 = vmatprep.mubr.msk.bf16.mxu0 %vm3036_vm10, %v2886_v20 }
 0x101   :  { %v815_v14 = vpop.permute.xlu1 %814  ;;  %v1792_v37 = vpop.permute.xlu0 %1791 }
 0x102   :  { %v2888_v41 = vsel %vm2872_vm9, %v2759_v35, %v1792_v37  ;;  %v11622_v35 = vld [vmem:[#allocation2 + $0xa0] sm:$0xff]  }
 0x103   :  { %1541 = vrot.lane.b32.xlu1 %v11476_v60, %s10725_s20  ;;  %1539 = vrot.lane.b32.xlu0 %v11461_v54, %s10725_s20 }
 0x104   :  { %9861 = vmatmul.mubr.msk.bf16.gmra.mxu0 %vm3036_vm10, %v2888_v41 }
 0x105   :  { %v948_v43 = vpop.permute.xlu1 %947  ;;  %v946_v18 = vpop.permute.xlu0 %945 }
 0x106   :  { %v2116_v58 = vsel %vm2098_vm3, %v1932_v57, %v946_v18 }
 0x107   :  { %1674 = vrot.lane.b32.xlu1 %v11535_v9, %s16142_s23  ;;  %1672 = vrot.lane.b32.xlu0 %v11476_v60, %s16142_s23 }
 0x109   :  { %v1106_v44 = vpop.permute.xlu1 %1105  ;;  %v1104_v45 = vpop.permute.xlu0 %1103 }
 0x10a   :  { %v2245_v52 = vsel %vm2227_vm4, %v2116_v58, %v1104_v45  ;;  %v138_v58 = vld [vmem:[%s16083_s0 + $0x160] sm:$0xf] }
 0x10b   :  { %828 = vrot.lane.b32.xlu1 %v11484_v1, %s10721_s29  ;;  %1805 = vrot.lane.b32.xlu0 %v11535_v9, %s16143_s27  ;;  %267 = vst.msk [vmem:[#allocation2 + $0x160] sm:$0xf] %vm178_vm0, %v138_v58  ;;  %v145_v58 = vld [vmem:[%s16083_s0 + $0x17c] sm:$0xf] }
 0x10c   :  { %274 = vst.msk [vmem:[#allocation2 + $0x17c] sm:$0xf] %vm178_vm0, %v145_v58  ;;  %v147_v58 = vld [vmem:[%s16083_s0 + $0x184] sm:$0xf] }
 0x10d   :  { %v1239_v47 = vpop.permute.xlu1 %1238  ;;  %v1237_v25 = vpop.permute.xlu0 %1236  ;;  %276 = vst.msk [vmem:[#allocation2 + $0x184] sm:$0xf] %vm178_vm0, %v147_v58 }
 0x10e   :  { %v2374_v63 = vsel %vm2356_vm5, %v2245_v52, %v1237_v25 }
 0x10f   :  { %830 = vrot.lane.b32.xlu1 %v11347_v39, %s10721_s29  ;;  %1807 = vrot.lane.b32.xlu0 %v11550_v46, %s16143_s27 }
 0x111   :  { %v1372_v48 = vpop.permute.xlu1 %1371  ;;  %v1370_v49 = vpop.permute.xlu0 %1369 }
 0x112   :  { %v2503_v21 = vsel %vm2485_vm6, %v2374_v63, %v1370_v49 }
 0x113   :  { %963 = vrot.lane.b32.xlu1 %v11342_v36, %s10720_s28  ;;  %961 = vrot.lane.b32.xlu0 %v11347_v39, %s10720_s28  ;;  %v10542_v39 = vld [vmem:[#allocation2 + $0x48] sm:$0xff]  }
 0x114   :  { %v1935_v0 = vsel %vm1905_vm2, %v10542_v39, %v815_v14 }
 0x115   :  { %v1530_v32 = vpop.permute.xlu1 %1529  ;;  %v1528_v50 = vpop.permute.xlu0 %1527 }
 0x116   :  { %v2632_v2 = vsel %vm2614_vm7, %v2503_v21, %v1528_v50 }
 0x117   :  { %1121 = vrot.lane.b32.xlu1 %v11254_v42, %s10722_s30  ;;  %1119 = vrot.lane.b32.xlu0 %v11236_v34, %s10722_s30  ;;  %v2118_v34 = vsel %vm2098_vm3, %v1935_v0, %v948_v43 }
 0x118   :  { %v2247_v4 = vsel %vm2227_vm4, %v2118_v34, %v1106_v44  ;;  %v140_v34 = vld [vmem:[%s16083_s0 + $0x168] sm:$0xf] }
 0x119   :  { %v1663_v59 = vpop.permute.xlu1 %1662  ;;  %v1661_v61 = vpop.permute.xlu0 %1660  ;;  %269 = vst.msk [vmem:[#allocation2 + $0x168] sm:$0xf] %vm178_vm0, %v140_v34 }
 0x11a   :  { %v2761_v5 = vsel %vm2743_vm8, %v2632_v2, %v1661_v61  ;;  %v141_v2 = vld [vmem:[%s16083_s0 + $0x16c] sm:$0xf] }
 0x11b   :  { %1254 = vrot.lane.b32.xlu1 %v11315_v53, %s10723_s16  ;;  %1252 = vrot.lane.b32.xlu0 %v11254_v42, %s10723_s16  ;;  %v2376_v42 = vsel %vm2356_vm5, %v2247_v4, %v1239_v47  ;;  %v11681_v4 = vld [vmem:[#allocation2 + $0x120] sm:$0xff]   ;;  %270 = vst.msk [vmem:[#allocation2 + $0x16c] sm:$0xf] %vm178_vm0, %v141_v2  ;;  %v11775_v2 = vld [vmem:[#allocation2 + $0x138] sm:$0xff]  }
 0x11c   :  { %v2505_v12 = vsel %vm2485_vm6, %v2376_v42, %v1372_v48 }
 0x11d   :  { %v817_v51 = vpop.permute.xlu1 %816  ;;  %v1794_v6 = vpop.permute.xlu0 %1793  ;;  %v2634_v11 = vsel %vm2614_vm7, %v2505_v12, %v1530_v32 }
 0x11e   :  { %v2890_v10 = vsel %vm2872_vm9, %v2761_v5, %v1794_v6  ;;  %v2763_v27 = vsel %vm2743_vm8, %v2634_v11, %v1663_v59  ;;  %v1938_v18 = vsel %vm1905_vm2, %v11266_v23, %v817_v51  ;;  %v11698_v11 = vld [vmem:[#allocation2 + $0xb0] sm:$0xff]  }
 0x11f   :  { %1387 = vrot.lane.b32.xlu1 %v11332_v26, %s10724_s19  ;;  %1385 = vrot.lane.b32.xlu0 %v11315_v53, %s10724_s19 }
 0x120   :  { %9864 = vmatprep.mubr.msk.bf16.mxu0 %vm3036_vm10, %v2890_v10 }
 0x121   :  { %v819_v13 = vpop.permute.xlu1 %818  ;;  %v1796_v15 = vpop.permute.xlu0 %1795 }
 0x122   :  { %v2892_v19 = vsel %vm2872_vm9, %v2763_v27, %v1796_v15  ;;  %v1941_v48 = vsel %vm1905_vm2, %v11326_v22, %v819_v13  ;;  %v139_v22 = vld [vmem:[%s16083_s0 + $0x164] sm:$0xf]  ;;  %v11704_v15 = vld [vmem:[#allocation2 + $0xb8] sm:$0xff]  }
 0x123   :  { %1545 = vrot.lane.b32.xlu1 %v11550_v46, %s10725_s20  ;;  %1543 = vrot.lane.b32.xlu0 %v11535_v9, %s10725_s20  ;;  %268 = vst.msk [vmem:[#allocation2 + $0x164] sm:$0xf] %vm178_vm0, %v139_v22 }
 0x124   :  { %9865 = vmatmul.mubr.msk.bf16.gmra.mxu0 %vm3036_vm10, %v2892_v19  ;;  %v10547_v19 = vld [vmem:[#allocation2 + $0x60] sm:$0xff]  }
 0x125   :  { %v952_v29 = vpop.permute.xlu1 %951  ;;  %v950_v31 = vpop.permute.xlu0 %949 }
 0x126   :  { %v2122_v23 = vsel %vm2098_vm3, %v1941_v48, %v952_v29 }
 0x127   :  { %1678 = vrot.lane.b32.xlu1 %v11605_v28, %s16142_s23  ;;  %1676 = vrot.lane.b32.xlu0 %v11550_v46, %s16142_s23 }
 0x129   :  { %v1110_v20 = vpop.permute.xlu1 %1109  ;;  %v1108_v24 = vpop.permute.xlu0 %1107 }
 0x12a   :  { %v2251_v50 = vsel %vm2227_vm4, %v2122_v23, %v1110_v20 }
 0x12b   :  { %1811 = vrot.lane.b32.xlu1 %v11614_v30, %s16143_s27  ;;  %1809 = vrot.lane.b32.xlu0 %v11605_v28, %s16143_s27 }
 0x12d   :  { %v1243_v33 = vpop.permute.xlu1 %1242  ;;  %v1241_v14 = vpop.permute.xlu0 %1240 }
 0x12e   :  { %v2380_v59 = vsel %vm2356_vm5, %v2251_v50, %v1243_v33 }
 0x12f   :  { %834 = vrot.lane.b32.xlu1 %v11622_v35, %s10721_s29  ;;  %832 = vrot.lane.b32.xlu0 %v11342_v36, %s10721_s29  ;;  %v2120_v36 = vsel %vm2098_vm3, %v1938_v18, %v950_v31 }
 0x130   :  { %v2249_v45 = vsel %vm2227_vm4, %v2120_v36, %v1108_v24 }
 0x131   :  { %v1376_v37 = vpop.permute.xlu1 %1375  ;;  %v1374_v38 = vpop.permute.xlu0 %1373  ;;  %v2378_v25 = vsel %vm2356_vm5, %v2249_v45, %v1241_v14 }
 0x132   :  { %v2507_v49 = vsel %vm2485_vm6, %v2378_v25, %v1374_v38  ;;  %v2509_v61 = vsel %vm2485_vm6, %v2380_v59, %v1376_v37  ;;  %v10548_v37 = vld [vmem:[#allocation2 + $0x68] sm:$0xff]   ;;  %v143_v25 = vld [vmem:[%s16083_s0 + $0x174] sm:$0xf] }
 0x133   :  { %967 = vrot.lane.b32.xlu1 %v11628_v40, %s10720_s28  ;;  %965 = vrot.lane.b32.xlu0 %v11622_v35, %s10720_s28  ;;  %272 = vst.msk [vmem:[#allocation2 + $0x174] sm:$0xf] %vm178_vm0, %v143_v25  ;;  %v11764_v59 = vld [vmem:[#allocation2 + $0x130] sm:$0xff]  }
 0x135   :  { %v1534_v41 = vpop.permute.xlu1 %1533  ;;  %v1532_v43 = vpop.permute.xlu0 %1531 }
 0x136   :  { %v2638_v63 = vsel %vm2614_vm7, %v2509_v61, %v1534_v41 }
 0x137   :  { %1125 = vrot.lane.b32.xlu1 %v11332_v26, %s10722_s30  ;;  %1123 = vrot.lane.b32.xlu0 %v11315_v53, %s10722_s30  ;;  %v2636_v53 = vsel %vm2614_vm7, %v2507_v49, %v1532_v43 }
 0x139   :  { %v1667_v44 = vpop.permute.xlu1 %1666  ;;  %v1665_v47 = vpop.permute.xlu0 %1664 }
 0x13a   :  { %v2765_v56 = vsel %vm2743_vm8, %v2636_v53, %v1665_v47  ;;  %v2767_v0 = vsel %vm2743_vm8, %v2638_v63, %v1667_v44  ;;  %v142_v47 = vld [vmem:[%s16083_s0 + $0x170] sm:$0xf] }
 0x13b   :  { %1258 = vrot.lane.b32.xlu1 %v11391_v3, %s10723_s16  ;;  %1256 = vrot.lane.b32.xlu0 %v11332_v26, %s10723_s16  ;;  %271 = vst.msk [vmem:[#allocation2 + $0x170] sm:$0xf] %vm178_vm0, %v142_v47 }
 0x13d   :  { %v821_v32 = vpop.permute.xlu1 %820  ;;  %v1798_v57 = vpop.permute.xlu0 %1797 }
 0x13e   :  { %v2894_v52 = vsel %vm2872_vm9, %v2765_v56, %v1798_v57  ;;  %v1944_v29 = vsel %vm1905_vm2, %v10547_v19, %v821_v32  ;;  %v11753_v56 = vld [vmem:[%s16086_s3] ss:$0 sm:$0xff]  ;;  %v144_v57 = vld [vmem:[%s16083_s0 + $0x178] sm:$0xf] }
 0x13f   :  { %1391 = vrot.lane.b32.xlu1 %v11406_v7, %s10724_s19  ;;  %1389 = vrot.lane.b32.xlu0 %v11391_v3, %s10724_s19  ;;  %273 = vst.msk [vmem:[#allocation2 + $0x178] sm:$0xf] %vm178_vm0, %v144_v57 }
 0x140   :  { %9868 = vmatprep.mubr.msk.bf16.mxu0 %vm3036_vm10, %v2894_v52 }
 0x141   :  { %v823_v39 = vpop.permute.xlu1 %822  ;;  %v1800_v21 = vpop.permute.xlu0 %1799 }
 0x142   :  { %v2896_v51 = vsel %vm2872_vm9, %v2767_v0, %v1800_v21  ;;  %v1947_v38 = vsel %vm1905_vm2, %v10548_v37, %v823_v39  ;;  %v11795_v37 = vld [vmem:[#allocation2 + $0xc8] sm:$0xff]  }
 0x143   :  { %1549 = vrot.lane.b32.xlu1 %v11614_v30, %s10725_s20  ;;  %1547 = vrot.lane.b32.xlu0 %v11605_v28, %s10725_s20 }
 0x144   :  { %9869 = vmatmul.mubr.msk.bf16.gmra.mxu0 %vm3036_vm10, %v2896_v51 }
 0x145   :  { %v956_v5 = vpop.permute.xlu1 %955  ;;  %v954_v6 = vpop.permute.xlu0 %953 }
 0x146   :  { %v2124_v31 = vsel %vm2098_vm3, %v1944_v29, %v954_v6 }
 0x147   :  { %1682 = vrot.lane.b32.xlu1 %v11681_v4, %s16142_s23  ;;  %1680 = vrot.lane.b32.xlu0 %v11614_v30, %s16142_s23 }
 0x149   :  { %v1114_v55 = vpop.permute.xlu1 %1113  ;;  %v1112_v42 = vpop.permute.xlu0 %1111 }
 0x14a   :  { %v2253_v24 = vsel %vm2227_vm4, %v2124_v31, %v1112_v42 }
 0x14b   :  { %1815 = vrot.lane.b32.xlu1 %v11690_v8, %s16143_s27  ;;  %1813 = vrot.lane.b32.xlu0 %v11681_v4, %s16143_s27 }
 0x14d   :  { %v1247_v10 = vpop.permute.xlu1 %1246  ;;  %v1245_v12 = vpop.permute.xlu0 %1244 }
 0x14e   :  { %v2382_v14 = vsel %vm2356_vm5, %v2253_v24, %v1245_v12  ;;  %v11788_v24 = vld [vmem:[#allocation2 + $0xc0] sm:$0xff]  }
 0x14f   :  { %838 = vrot.lane.b32.xlu1 %v11698_v11, %s10721_s29  ;;  %836 = vrot.lane.b32.xlu0 %v11628_v40, %s10721_s29 }
 0x151   :  { %v1380_v13 = vpop.permute.xlu1 %1379  ;;  %v1378_v27 = vpop.permute.xlu0 %1377 }
 0x152   :  { %v2511_v41 = vsel %vm2485_vm6, %v2382_v14, %v1378_v27 }
 0x153   :  { %971 = vrot.lane.b32.xlu1 %v11704_v15, %s10720_s28  ;;  %969 = vrot.lane.b32.xlu0 %v11698_v11, %s10720_s28 }
 0x155   :  { %v1538_v16 = vpop.permute.xlu1 %1537  ;;  %v1536_v17 = vpop.permute.xlu0 %1535 }
 0x156   :  { %v2640_v43 = vsel %vm2614_vm7, %v2511_v41, %v1536_v17 }
 0x157   :  { %1129 = vrot.lane.b32.xlu1 %v11406_v7, %s10722_s30  ;;  %1127 = vrot.lane.b32.xlu0 %v11391_v3, %s10722_s30  ;;  %v2126_v3 = vsel %vm2098_vm3, %v1947_v38, %v956_v5 }
 0x158   :  { %v2255_v36 = vsel %vm2227_vm4, %v2126_v3, %v1114_v55  ;;  %v10551_v3 = vld [vmem:[#allocation2 + $0x70] sm:$0xff]  }
 0x159   :  { %v1671_v20 = vpop.permute.xlu1 %1670  ;;  %v1669_v33 = vpop.permute.xlu0 %1668 }
 0x15a   :  { %v2769_v44 = vsel %vm2743_vm8, %v2640_v43, %v1669_v33 }
 0x15b   :  { %1262 = vrot.lane.b32.xlu1 %v11461_v54, %s10723_s16  ;;  %1260 = vrot.lane.b32.xlu0 %v11406_v7, %s10723_s16  ;;  %v2384_v7 = vsel %vm2356_vm5, %v2255_v36, %v1247_v10 }
 0x15c   :  { %v2513_v49 = vsel %vm2485_vm6, %v2384_v7, %v1380_v13  ;;  %v10552_v7 = vld [vmem:[#allocation2 + $0x78] sm:$0xff]  }
 0x15d   :  { %v11726_v18 = vpop.permute.xlu1 %824  ;;  %v1802_v45 = vpop.permute.xlu0 %1801  ;;  %v2642_v23 = vsel %vm2614_vm7, %v2513_v49, %v1538_v16 }
 0x15e   :  { %v2898_v48 = vsel %vm2872_vm9, %v2769_v44, %v1802_v45  ;;  %v2771_v32 = vsel %vm2743_vm8, %v2642_v23, %v1671_v20  ;;  %v1950_v43 = vsel %vm1905_vm2, %v10551_v3, %v11726_v18 }
 0x15f   :  { %1395 = vrot.lane.b32.xlu1 %v11476_v60, %s10724_s19  ;;  %1393 = vrot.lane.b32.xlu0 %v11461_v54, %s10724_s19 }
 0x160   :  { %9872 = vmatprep.mubr.msk.bf16.mxu0 %vm3036_vm10, %v2898_v48 }
 0x161   :  { %v11747_v53 = vpop.permute.xlu1 %826  ;;  %v1804_v50 = vpop.permute.xlu0 %1803 }
 0x162   :  { %v2900_v22 = vsel %vm2872_vm9, %v2771_v32, %v1804_v50  ;;  %v1953_v48 = vsel %vm1905_vm2, %v10552_v7, %v11747_v53  ;;  %v146_v53 = vld [vmem:[%s16083_s0 + $0x180] sm:$0xf] }
 0x163   :  { %1553 = vrot.lane.b32.xlu1 %v11690_v8, %s10725_s20  ;;  %1551 = vrot.lane.b32.xlu0 %v11681_v4, %s10725_s20  ;;  %275 = vst.msk [vmem:[#allocation2 + $0x180] sm:$0xf] %vm178_vm0, %v146_v53 }
 0x164   :  { %v9850_v52 = vpop.f32.mrf.mxu0  ;;  %9873 = vmatmul.mubr.msk.bf16.gmra.mxu0 %vm3036_vm10, %v2900_v22 }
 0x165   :  { %v3212_v61 = vadd.f32 %v9850_v52, %v11753_v56  ;;  %v960_v63 = vpop.permute.xlu1 %959  ;;  %v958_v39 = vpop.permute.xlu0 %957 }
 0x166   :  { %v3203_v0 = vpop.f32.mrf.mxu0  ;;  %v2128_v36 = vsel %vm2098_vm3, %v1950_v43, %v958_v39 }
 0x167   :  { %v3716_v21 = vmax.f32 %v3212_v61, 0.0  ;;  %v3204_v34 = vadd.f32 %v11753_v56, %v3203_v0  ;;  %1686 = vrot.lane.b32.xlu1 %v11764_v59, %s16142_s23  ;;  %1684 = vrot.lane.b32.xlu0 %v11690_v8, %s16142_s23 }
 0x168   :  { %v9851_v51 = vpop.f32.mrf.mxu0 }
 0x169   :  { %v9530_v5 = vpack.c.bf16 %v3716_v21, %v3716_v21  ;;  %v3714_v6 = vmax.f32 %v3204_v34, 0.0  ;;  %v3215_v55 = vadd.f32 %v9851_v51, %v11753_v56  ;;  %v1118_v42 = vpop.permute.xlu1 %1117  ;;  %v1116_v10 = vpop.permute.xlu0 %1115  ;;  %v148_v21 = vld [vmem:[%s16083_s0 + $0x188] sm:$0xf]  ;;  %v149_v34 = vld [vmem:[%s16083_s0 + $0x18c] sm:$0xf] }
 0x16a   :  { %v3206_v12 = vpop.f32.mrf.mxu0  ;;  %v2257_v45 = vsel %vm2227_vm4, %v2128_v36, %v1116_v10  ;;  %277 = vst.msk [vmem:[#allocation2 + $0x188] sm:$0xf] %vm178_vm0, %v148_v21  ;;  %278 = vst.msk [vmem:[#allocation2 + $0x18c] sm:$0xf] %vm178_vm0, %v149_v34  ;;  %v150_v34 = vld [vmem:[%s16083_s0 + $0x190] sm:$0xf] }
 0x16b   :  { %4357 = vst.msk [vmem:[#allocation3 + $0x8] sm:$0xf] %vm4354_vm11, %v9530_v5  ;;  %v9528_v13 = vpack.c.bf16 %v3714_v6, %v3714_v6  ;;  %v3717_v27 = vmax.f32 %v3215_v55, 0.0  ;;  %v3207_v16 = vadd.f32 %v11753_v56, %v3206_v12  ;;  %1819 = vrot.lane.b32.xlu1 %v11775_v2, %s16143_s27  ;;  %1817 = vrot.lane.b32.xlu0 %v11764_v59, %s16143_s27  ;;  %v11850_v5 = vld [vmem:[#allocation2 + $0x140] sm:$0xff]  }
 0x16c   :  { %279 = vst.msk [vmem:[#allocation2 + $0x190] sm:$0xf] %vm178_vm0, %v150_v34 }
 0x16d   :  { %4355 = vst.msk [vmem:[#allocation3] sm:$0xf] %vm4354_vm11, %v9528_v13  ;;  %v9531_v17 = vpack.c.bf16 %v3717_v27, %v3717_v27  ;;  %v3715_v19 = vmax.f32 %v3207_v16, 0.0  ;;  %v1251_v29 = vpop.permute.xlu1 %1250  ;;  %v1249_v31 = vpop.permute.xlu0 %1248  ;;  %v11861_v16 = vld [vmem:[#allocation2 + $0x148] sm:$0xff]  }
 0x16e   :  { %v2386_v25 = vsel %vm2356_vm5, %v2257_v45, %v1249_v31 }
 0x16f   :  { %4358 = vst.msk [vmem:[#allocation3 + $0xc] sm:$0xf] %vm4354_vm11, %v9531_v17  ;;  %v9529_v20 = vpack.c.bf16 %v3715_v19, %v3715_v19  ;;  %842 = vrot.lane.b32.xlu1 %v11788_v24, %s10721_s29  ;;  %840 = vrot.lane.b32.xlu0 %v11704_v15, %s10721_s29 }
 0x171   :  { %4356 = vst.msk [vmem:[#allocation3 + $0x4] sm:$0xf] %vm4354_vm11, %v9529_v20  ;;  %v1384_v33 = vpop.permute.xlu1 %1383  ;;  %v1382_v14 = vpop.permute.xlu0 %1381 }
 0x172   :  { %v2515_v18 = vsel %vm2485_vm6, %v2386_v25, %v1382_v14  ;;  %v11874_v25 = vld [vmem:[#allocation2 + $0xd0] sm:$0xff]  }
 0x173   :  { %975 = vrot.lane.b32.xlu1 %v11795_v37, %s10720_s28  ;;  %973 = vrot.lane.b32.xlu0 %v11788_v24, %s10720_s28 }
 0x175   :  { %v1542_v38 = vpop.permute.xlu1 %1541  ;;  %v1540_v41 = vpop.permute.xlu0 %1539 }
 0x176   :  { %v2644_v49 = vsel %vm2614_vm7, %v2515_v18, %v1540_v41 }
 0x177   :  { %1133 = vrot.lane.b32.xlu1 %v11476_v60, %s10722_s30  ;;  %1131 = vrot.lane.b32.xlu0 %v11461_v54, %s10722_s30  ;;  %v2130_v54 = vsel %vm2098_vm3, %v1953_v48, %v960_v63 }
 0x178   :  { %v2259_v32 = vsel %vm2227_vm4, %v2130_v54, %v1118_v42 }
 0x179   :  { %v1675_v44 = vpop.permute.xlu1 %1674  ;;  %v1673_v47 = vpop.permute.xlu0 %1672 }
 0x17a   :  { %v2773_v50 = vsel %vm2743_vm8, %v2644_v49, %v1673_v47 }
 0x17b   :  { %1266 = vrot.lane.b32.xlu1 %v11535_v9, %s10723_s16  ;;  %1264 = vrot.lane.b32.xlu0 %v11476_v60, %s10723_s16  ;;  %v2388_v60 = vsel %vm2356_vm5, %v2259_v32, %v1251_v29 }
 0x17c   :  { %v2517_v52 = vsel %vm2485_vm6, %v2388_v60, %v1384_v33 }
 0x17d   :  { %v11819_v23 = vpop.permute.xlu1 %828  ;;  %v1806_v57 = vpop.permute.xlu0 %1805  ;;  %v2646_v61 = vsel %vm2614_vm7, %v2517_v52, %v1542_v38 }
 0x17e   :  { %v2902_v22 = vsel %vm2872_vm9, %v2773_v50, %v1806_v57  ;;  %v2775_v39 = vsel %vm2743_vm8, %v2646_v61, %v1675_v44  ;;  %v1956_v32 = vsel %vm1905_vm2, %v11478_v62, %v11819_v23 }
 0x17f   :  { %1399 = vrot.lane.b32.xlu1 %v11550_v46, %s10724_s19  ;;  %1397 = vrot.lane.b32.xlu0 %v11535_v9, %s10724_s19 }
 0x180   :  { %9876 = vmatprep.mubr.msk.bf16.mxu0 %vm3036_vm10, %v2902_v22 }
 0x181   :  { %v831_v63 = vpop.permute.xlu1 %830  ;;  %v1808_v0 = vpop.permute.xlu0 %1807 }
 0x182   :  { %v2904_v51 = vsel %vm2872_vm9, %v2775_v39, %v1808_v0  ;;  %v1959_v49 = vsel %vm1905_vm2, %v11484_v1, %v831_v63 }
 0x183   :  { %1557 = vrot.lane.b32.xlu1 %v11775_v2, %s10725_s20  ;;  %1555 = vrot.lane.b32.xlu0 %v11764_v59, %s10725_s20 }
 0x184   :  { %v9854_v6 = vpop.f32.mrf.mxu0  ;;  %9877 = vmatmul.mubr.msk.bf16.gmra.mxu0 %vm3036_vm10, %v2904_v51  ;;  %v151_v51 = vld [vmem:[%s16083_s0 + $0x194] sm:$0xf] }
 0x185   :  { %v3228_v55 = vadd.f32 %v9854_v6, %v11753_v56  ;;  %v964_v42 = vpop.permute.xlu1 %963  ;;  %v962_v10 = vpop.permute.xlu0 %961  ;;  %280 = vst.msk [vmem:[#allocation2 + $0x194] sm:$0xf] %vm178_vm0, %v151_v51 }
 0x186   :  { %v3219_v12 = vpop.f32.mrf.mxu0  ;;  %v2134_v50 = vsel %vm2098_vm3, %v1959_v49, %v964_v42  ;;  %v152_v42 = vld [vmem:[%s16083_s0 + $0x198] sm:$0xf] }
 0x187   :  { %v3720_v13 = vmax.f32 %v3228_v55, 0.0  ;;  %v3220_v27 = vadd.f32 %v11753_v56, %v3219_v12  ;;  %1690 = vrot.lane.b32.xlu1 %v11850_v5, %s16142_s23  ;;  %1688 = vrot.lane.b32.xlu0 %v11775_v2, %s16142_s23  ;;  %v11934_v12 = vld [vmem:[#allocation2 + $0x150] sm:$0xff]   ;;  %281 = vst.msk [vmem:[#allocation2 + $0x198] sm:$0xf] %vm178_vm0, %v152_v42 }
 0x188   :  { %v9855_v17 = vpop.f32.mrf.mxu0 }
 0x189   :  { %v9534_v19 = vpack.c.bf16 %v3720_v13, %v3720_v13  ;;  %v3718_v29 = vmax.f32 %v3220_v27, 0.0  ;;  %v3231_v31 = vadd.f32 %v9855_v17, %v11753_v56  ;;  %v1122_v20 = vpop.permute.xlu1 %1121  ;;  %v1120_v33 = vpop.permute.xlu0 %1119 }
 0x18a   :  { %v3222_v14 = vpop.f32.mrf.mxu0  ;;  %v2263_v57 = vsel %vm2227_vm4, %v2134_v50, %v1122_v20  ;;  %v11957_v50 = vld [vmem:[#allocation2 + $0xe0] sm:$0xff]  }
 0x18b   :  { %4361 = vst.msk [vmem:[#allocation3 + $0x18] sm:$0xf] %vm4354_vm11, %v9534_v19  ;;  %v9532_v38 = vpack.c.bf16 %v3718_v29, %v3718_v29  ;;  %v3721_v41 = vmax.f32 %v3231_v31, 0.0  ;;  %v3223_v3 = vadd.f32 %v11753_v56, %v3222_v14  ;;  %1823 = vrot.lane.b32.xlu1 %v11861_v16, %s16143_s27  ;;  %1821 = vrot.lane.b32.xlu0 %v11850_v5, %s16143_s27 }
 0x18d   :  { %4359 = vst.msk [vmem:[#allocation3 + $0x10] sm:$0xf] %vm4354_vm11, %v9532_v38  ;;  %v9535_v43 = vpack.c.bf16 %v3721_v41, %v3721_v41  ;;  %v3719_v36 = vmax.f32 %v3223_v3, 0.0  ;;  %v1255_v44 = vpop.permute.xlu1 %1254  ;;  %v1253_v45 = vpop.permute.xlu0 %1252 }
 0x18e   :  { %v2392_v1 = vsel %vm2356_vm5, %v2263_v57, %v1255_v44 }
 0x18f   :  { %4362 = vst.msk [vmem:[#allocation3 + $0x1c] sm:$0xf] %vm4354_vm11, %v9535_v43  ;;  %v9533_v47 = vpack.c.bf16 %v3719_v36, %v3719_v36  ;;  %846 = vrot.lane.b32.xlu1 %v11874_v25, %s10721_s29  ;;  %844 = vrot.lane.b32.xlu0 %v11795_v37, %s10721_s29 }
 0x191   :  { %4360 = vst.msk [vmem:[#allocation3 + $0x14] sm:$0xf] %vm4354_vm11, %v9533_v47  ;;  %v1388_v7 = vpop.permute.xlu1 %1387  ;;  %v1386_v48 = vpop.permute.xlu0 %1385 }
 0x192   :  { %v2521_v52 = vsel %vm2485_vm6, %v2392_v1, %v1388_v7 }
 0x193   :  { %979 = vrot.lane.b32.xlu1 %v11332_v26, %s10720_s28  ;;  %977 = vrot.lane.b32.xlu0 %v11874_v25, %s10720_s28  ;;  %v2132_v26 = vsel %vm2098_vm3, %v1956_v32, %v962_v10  ;;  %v153_v10 = vld [vmem:[%s16083_s0 + $0x19c] sm:$0xf] }
 0x194   :  { %v2261_v58 = vsel %vm2227_vm4, %v2132_v26, %v1120_v33  ;;  %282 = vst.msk [vmem:[#allocation2 + $0x19c] sm:$0xf] %vm178_vm0, %v153_v10  ;;  %v11944_v33 = vld [vmem:[#allocation2 + $0x158] sm:$0xff]  }
 0x195   :  { %v1546_v18 = vpop.permute.xlu1 %1545  ;;  %v1544_v54 = vpop.permute.xlu0 %1543  ;;  %v2390_v22 = vsel %vm2356_vm5, %v2261_v58, %v1253_v45  ;;  %v11961_v26 = vld [vmem:[#allocation2 + $0xd8] sm:$0xff]   ;;  %v11966_v58 = vld [vmem:[#allocation2 + $0xe8] sm:$0xff]  }
 0x196   :  { %v2519_v62 = vsel %vm2485_vm6, %v2390_v22, %v1386_v48  ;;  %v10557_v22 = vld [vmem:[#allocation2 + $0x98] sm:$0xff]  }
 0x197   :  { %1137 = vrot.lane.b32.xlu1 %v11550_v46, %s10722_s30  ;;  %1135 = vrot.lane.b32.xlu0 %v11535_v9, %s10722_s30  ;;  %v2650_v9 = vsel %vm2614_vm7, %v2521_v52, %v1546_v18  ;;  %v2648_v23 = vsel %vm2614_vm7, %v2519_v62, %v1544_v54  ;;  %v10558_v62 = vld [vmem:[#allocation2 + $0x90] sm:$0xff]  }
 0x199   :  { %v1679_v53 = vpop.permute.xlu1 %1678  ;;  %v1677_v60 = vpop.permute.xlu0 %1676 }
 0x19a   :  { %v2779_v61 = vsel %vm2743_vm8, %v2650_v9, %v1679_v53  ;;  %v2777_v39 = vsel %vm2743_vm8, %v2648_v23, %v1677_v60 }
 0x19b   :  { %1270 = vrot.lane.b32.xlu1 %v11605_v28, %s10723_s16  ;;  %1268 = vrot.lane.b32.xlu0 %v11550_v46, %s10723_s16 }
 0x19d   :  { %v1812_v63 = vpop.permute.xlu1 %1811  ;;  %v1810_v21 = vpop.permute.xlu0 %1809 }
 0x19e   :  { %v2908_v0 = vsel %vm2872_vm9, %v2779_v61, %v1812_v63  ;;  %v2906_v46 = vsel %vm2872_vm9, %v2777_v39, %v1810_v21 }
 0x19f   :  { %1403 = vrot.lane.b32.xlu1 %v11614_v30, %s10724_s19  ;;  %1401 = vrot.lane.b32.xlu0 %v11605_v28, %s10724_s19 }
 0x1a0   :  { %9880 = vmatprep.mubr.msk.bf16.mxu0 %vm3036_vm10, %v2906_v46 }
 0x1a1   :  { %9881 = vmatmul.mubr.msk.bf16.gmra.mxu0 %vm3036_vm10, %v2908_v0  ;;  %v835_v6 = vpop.permute.xlu1 %834  ;;  %v833_v55 = vpop.permute.xlu0 %832 }
 0x1a2   :  { %v1965_v52 = vsel %vm1905_vm2, %v10557_v22, %v835_v6  ;;  %v1962_v9 = vsel %vm1905_vm2, %v10558_v62, %v833_v55 }
 0x1a3   :  { %1561 = vrot.lane.b32.xlu1 %v11861_v16, %s10725_s20  ;;  %1559 = vrot.lane.b32.xlu0 %v11850_v5, %s10725_s20 }
 0x1a4   :  { %v9858_v13 = vpop.f32.mrf.mxu0 }
 0x1a5   :  { %v3244_v27 = vadd.f32 %v9858_v13, %v11753_v56  ;;  %v968_v17 = vpop.permute.xlu1 %967  ;;  %v966_v19 = vpop.permute.xlu0 %965 }
 0x1a6   :  { %v3235_v29 = vpop.f32.mrf.mxu0  ;;  %v2138_v23 = vsel %vm2098_vm3, %v1965_v52, %v968_v17  ;;  %v2136_v61 = vsel %vm2098_vm3, %v1962_v9, %v966_v19  ;;  %v154_v19 = vld [vmem:[%s16083_s0 + $0x1a0] sm:$0xf] }
 0x1a7   :  { %v3724_v31 = vmax.f32 %v3244_v27, 0.0  ;;  %v3236_v20 = vadd.f32 %v11753_v56, %v3235_v29  ;;  %1694 = vrot.lane.b32.xlu1 %v11934_v12, %s16142_s23  ;;  %1692 = vrot.lane.b32.xlu0 %v11861_v16, %s16142_s23  ;;  %v155_v29 = vld [vmem:[%s16083_s0 + $0x1a4] sm:$0xf]  ;;  %283 = vst.msk [vmem:[#allocation2 + $0x1a0] sm:$0xf] %vm178_vm0, %v154_v19 }
 0x1a8   :  { %v9859_v14 = vpop.f32.mrf.mxu0  ;;  %284 = vst.msk [vmem:[#allocation2 + $0x1a4] sm:$0xf] %vm178_vm0, %v155_v29 }
 0x1a9   :  { %v9538_v38 = vpack.c.bf16 %v3724_v31, %v3724_v31  ;;  %v3722_v41 = vmax.f32 %v3236_v20, 0.0  ;;  %v3247_v3 = vadd.f32 %v9859_v14, %v11753_v56  ;;  %v1126_v43 = vpop.permute.xlu1 %1125  ;;  %v1124_v36 = vpop.permute.xlu0 %1123  ;;  %v156_v14 = vld [vmem:[%s16083_s0 + $0x1a8] sm:$0xf] }
 0x1aa   :  { %v3238_v44 = vpop.f32.mrf.mxu0  ;;  %v2267_v63 = vsel %vm2227_vm4, %v2138_v23, %v1126_v43  ;;  %v2265_v0 = vsel %vm2227_vm4, %v2136_v61, %v1124_v36  ;;  %285 = vst.msk [vmem:[#allocation2 + $0x1a8] sm:$0xf] %vm178_vm0, %v156_v14 }
 0x1ab   :  { %4365 = vst.msk [vmem:[#allocation3 + $0x28] sm:$0xf] %vm4354_vm11, %v9538_v38  ;;  %v9536_v45 = vpack.c.bf16 %v3722_v41, %v3722_v41  ;;  %v3725_v47 = vmax.f32 %v3247_v3, 0.0  ;;  %v3239_v7 = vadd.f32 %v11753_v56, %v3238_v44  ;;  %1827 = vrot.lane.b32.xlu1 %v11944_v33, %s16143_s27  ;;  %1825 = vrot.lane.b32.xlu0 %v11934_v12, %s16143_s27  ;;  %v157_v38 = vld [vmem:[%s16083_s0 + $0x1ac] sm:$0xf]  ;;  %v12018_v41 = vld [vmem:[#allocation2 + $0x160] sm:$0xff]  }
 0x1ac   :  { %286 = vst.msk [vmem:[#allocation2 + $0x1ac] sm:$0xf] %vm178_vm0, %v157_v38 }
 0x1ad   :  { %4363 = vst.msk [vmem:[#allocation3 + $0x20] sm:$0xf] %vm4354_vm11, %v9536_v45  ;;  %v9539_v48 = vpack.c.bf16 %v3725_v47, %v3725_v47  ;;  %v3723_v18 = vmax.f32 %v3239_v7, 0.0  ;;  %v1259_v54 = vpop.permute.xlu1 %1258  ;;  %v1257_v49 = vpop.permute.xlu0 %1256 }
 0x1ae   :  { %v2396_v21 = vsel %vm2356_vm5, %v2267_v63, %v1259_v54  ;;  %v2394_v51 = vsel %vm2356_vm5, %v2265_v0, %v1257_v49 }
 0x1af   :  { %4366 = vst.msk [vmem:[#allocation3 + $0x2c] sm:$0xf] %vm4354_vm11, %v9539_v48  ;;  %v9537_v32 = vpack.c.bf16 %v3723_v18, %v3723_v18  ;;  %850 = vrot.lane.b32.xlu1 %v11957_v50, %s10721_s29  ;;  %848 = vrot.lane.b32.xlu0 %v11961_v26, %s10721_s29  ;;  %v12028_v48 = vld [vmem:[#allocation2 + $0x168] sm:$0xff]  }
 0x1b1   :  { %4364 = vst.msk [vmem:[#allocation3 + $0x24] sm:$0xf] %vm4354_vm11, %v9537_v32  ;;  %v1392_v57 = vpop.permute.xlu1 %1391  ;;  %v1390_v53 = vpop.permute.xlu0 %1389 }
 0x1b2   :  { %v2525_v46 = vsel %vm2485_vm6, %v2396_v21, %v1392_v57  ;;  %v2523_v6 = vsel %vm2485_vm6, %v2394_v51, %v1390_v53 }
 0x1b3   :  { %983 = vrot.lane.b32.xlu1 %v11966_v58, %s10720_s28  ;;  %981 = vrot.lane.b32.xlu0 %v11957_v50, %s10720_s28 }
 0x1b5   :  { %v1550_v1 = vpop.permute.xlu1 %1549  ;;  %v1548_v60 = vpop.permute.xlu0 %1547 }
 0x1b6   :  { %v2652_v55 = vsel %vm2614_vm7, %v2523_v6, %v1548_v60 }
 0x1b7   :  { %1141 = vrot.lane.b32.xlu1 %v11614_v30, %s10722_s30  ;;  %1139 = vrot.lane.b32.xlu0 %v11605_v28, %s10722_s30  ;;  %v2654_v28 = vsel %vm2614_vm7, %v2525_v46, %v1550_v1 }
 0x1b9   :  { %v1683_v39 = vpop.permute.xlu1 %1682  ;;  %v1681_v34 = vpop.permute.xlu0 %1680 }
 0x1ba   :  { %v2783_v42 = vsel %vm2743_vm8, %v2654_v28, %v1683_v39  ;;  %v2781_v13 = vsel %vm2743_vm8, %v2652_v55, %v1681_v34  ;;  %v12041_v39 = vld [vmem:[#allocation2 + $0xf0] sm:$0xff]   ;;  %v12048_v34 = vld [vmem:[#allocation2 + $0xf8] sm:$0xff]  }
 0x1bb   :  { %1274 = vrot.lane.b32.xlu1 %v11681_v4, %s10723_s16  ;;  %1272 = vrot.lane.b32.xlu0 %v11614_v30, %s10723_s16 }
 0x1bd   :  { %v1816_v10 = vpop.permute.xlu1 %1815  ;;  %v1814_v17 = vpop.permute.xlu0 %1813 }
 0x1be   :  { %v2912_v27 = vsel %vm2872_vm9, %v2783_v42, %v1816_v10  ;;  %v2910_v30 = vsel %vm2872_vm9, %v2781_v13, %v1814_v17 }
 0x1bf   :  { %1407 = vrot.lane.b32.xlu1 %v11690_v8, %s10724_s19  ;;  %1405 = vrot.lane.b32.xlu0 %v11681_v4, %s10724_s19 }
 0x1c0   :  { %9884 = vmatprep.mubr.msk.bf16.mxu0 %vm3036_vm10, %v2910_v30 }
 0x1c1   :  { %9885 = vmatmul.mubr.msk.bf16.gmra.mxu0 %vm3036_vm10, %v2912_v27  ;;  %v839_v31 = vpop.permute.xlu1 %838  ;;  %v837_v20 = vpop.permute.xlu0 %836 }
 0x1c2   :  { %v1971_v6 = vsel %vm1905_vm2, %v11628_v40, %v839_v31  ;;  %v1968_v28 = vsel %vm1905_vm2, %v11622_v35, %v837_v20 }
 0x1c3   :  { %1565 = vrot.lane.b32.xlu1 %v11944_v33, %s10725_s20  ;;  %1563 = vrot.lane.b32.xlu0 %v11934_v12, %s10725_s20 }
 0x1c4   :  { %v9862_v3 = vpop.f32.mrf.mxu0 }
 0x1c5   :  { %v3260_v43 = vadd.f32 %v9862_v3, %v11753_v56  ;;  %v972_v36 = vpop.permute.xlu1 %971  ;;  %v970_v44 = vpop.permute.xlu0 %969 }
 0x1c6   :  { %v3251_v45 = vpop.f32.mrf.mxu0  ;;  %v2142_v55 = vsel %vm2098_vm3, %v1971_v6, %v972_v36  ;;  %v2140_v42 = vsel %vm2098_vm3, %v1968_v28, %v970_v44  ;;  %v159_v36 = vld [vmem:[%s16083_s0 + $0x1b4] sm:$0xf] }
 0x1c7   :  { %v3728_v47 = vmax.f32 %v3260_v43, 0.0  ;;  %v3252_v7 = vadd.f32 %v11753_v56, %v3251_v45  ;;  %1698 = vrot.lane.b32.xlu1 %v12018_v41, %s16142_s23  ;;  %1696 = vrot.lane.b32.xlu0 %v11944_v33, %s16142_s23  ;;  %v158_v43 = vld [vmem:[%s16083_s0 + $0x1b0] sm:$0xf]  ;;  %288 = vst.msk [vmem:[#allocation2 + $0x1b4] sm:$0xf] %vm178_vm0, %v159_v36 }
 0x1c8   :  { %v9863_v18 = vpop.f32.mrf.mxu0  ;;  %287 = vst.msk [vmem:[#allocation2 + $0x1b0] sm:$0xf] %vm178_vm0, %v158_v43 }
 0x1c9   :  { %v9542_v54 = vpack.c.bf16 %v3728_v47, %v3728_v47  ;;  %v3726_v49 = vmax.f32 %v3252_v7, 0.0  ;;  %v3263_v32 = vadd.f32 %v9863_v18, %v11753_v56  ;;  %v1130_v57 = vpop.permute.xlu1 %1129  ;;  %v1128_v53 = vpop.permute.xlu0 %1127  ;;  %v160_v47 = vld [vmem:[%s16083_s0 + $0x1b8] sm:$0xf]  ;;  %v161_v7 = vld [vmem:[%s16083_s0 + $0x1bc] sm:$0xf]  ;;  %v12102_v18 = vld [vmem:[#allocation2 + $0x170] sm:$0xff]  }
 0x1ca   :  { %v3254_v1 = vpop.f32.mrf.mxu0  ;;  %v2271_v10 = vsel %vm2227_vm4, %v2142_v55, %v1130_v57  ;;  %v2269_v27 = vsel %vm2227_vm4, %v2140_v42, %v1128_v53  ;;  %289 = vst.msk [vmem:[#allocation2 + $0x1b8] sm:$0xf] %vm178_vm0, %v160_v47  ;;  %290 = vst.msk [vmem:[#allocation2 + $0x1bc] sm:$0xf] %vm178_vm0, %v161_v7 }
 0x1cb   :  { %4369 = vst.msk [vmem:[#allocation3 + $0x38] sm:$0xf] %vm4354_vm11, %v9542_v54  ;;  %v9540_v60 = vpack.c.bf16 %v3726_v49, %v3726_v49  ;;  %v3729_v22 = vmax.f32 %v3263_v32, 0.0  ;;  %v3255_v52 = vadd.f32 %v11753_v56, %v3254_v1  ;;  %1831 = vrot.lane.b32.xlu1 %v12028_v48, %s16143_s27  ;;  %1829 = vrot.lane.b32.xlu0 %v12018_v41, %s16143_s27 }
 0x1cd   :  { %4367 = vst.msk [vmem:[#allocation3 + $0x30] sm:$0xf] %vm4354_vm11, %v9540_v60  ;;  %v9543_v62 = vpack.c.bf16 %v3729_v22, %v3729_v22  ;;  %v3727_v9 = vmax.f32 %v3255_v52, 0.0  ;;  %v1263_v23 = vpop.permute.xlu1 %1262  ;;  %v1261_v61 = vpop.permute.xlu0 %1260  ;;  %v12112_v22 = vld [vmem:[#allocation2 + $0x178] sm:$0xff]  }
 0x1ce   :  { %v2400_v40 = vsel %vm2356_vm5, %v2271_v10, %v1263_v23  ;;  %v2398_v19 = vsel %vm2356_vm5, %v2269_v27, %v1261_v61 }
 0x1cf   :  { %4370 = vst.msk [vmem:[#allocation3 + $0x3c] sm:$0xf] %vm4354_vm11, %v9543_v62  ;;  %v9541_v63 = vpack.c.bf16 %v3727_v9, %v3727_v9  ;;  %854 = vrot.lane.b32.xlu1 %v12041_v39, %s10721_s29  ;;  %852 = vrot.lane.b32.xlu0 %v11966_v58, %s10721_s29 }
 0x1d1   :  { %4368 = vst.msk [vmem:[#allocation3 + $0x34] sm:$0xf] %vm4354_vm11, %v9541_v63  ;;  %v1396_v0 = vpop.permute.xlu1 %1395  ;;  %v1394_v21 = vpop.permute.xlu0 %1393 }
 0x1d2   :  { %v2529_v29 = vsel %vm2485_vm6, %v2400_v40, %v1396_v0  ;;  %v2527_v35 = vsel %vm2485_vm6, %v2398_v19, %v1394_v21 }
 0x1d3   :  { %987 = vrot.lane.b32.xlu1 %v12048_v34, %s10720_s28  ;;  %985 = vrot.lane.b32.xlu0 %v12041_v39, %s10720_s28 }
 0x1d5   :  { %v1554_v51 = vpop.permute.xlu1 %1553  ;;  %v1552_v46 = vpop.permute.xlu0 %1551 }
 0x1d6   :  { %v2656_v30 = vsel %vm2614_vm7, %v2527_v35, %v1552_v46 }
 0x1d7   :  { %1145 = vrot.lane.b32.xlu1 %v11690_v8, %s10722_s30  ;;  %1143 = vrot.lane.b32.xlu0 %v11681_v4, %s10722_s30  ;;  %v2658_v4 = vsel %vm2614_vm7, %v2529_v29, %v1554_v51 }
 0x1d9   :  { %v1687_v13 = vpop.permute.xlu1 %1686  ;;  %v1685_v17 = vpop.permute.xlu0 %1684 }
 0x1da   :  { %v2787_v31 = vsel %vm2743_vm8, %v2658_v4, %v1687_v13  ;;  %v2785_v14 = vsel %vm2743_vm8, %v2656_v30, %v1685_v17  ;;  %v12125_v13 = vld [vmem:[#allocation2 + $0x100] sm:$0xff]   ;;  %v12132_v17 = vld [vmem:[#allocation2 + $0x108] sm:$0xff]  }
 0x1db   :  { %1278 = vrot.lane.b32.xlu1 %v11764_v59, %s10723_s16  ;;  %1276 = vrot.lane.b32.xlu0 %v11690_v8, %s10723_s16 }
 0x1dd   :  { %v1820_v20 = vpop.permute.xlu1 %1819  ;;  %v1818_v3 = vpop.permute.xlu0 %1817 }
 0x1de   :  { %v2916_v38 = vsel %vm2872_vm9, %v2787_v31, %v1820_v20  ;;  %v2914_v8 = vsel %vm2872_vm9, %v2785_v14, %v1818_v3 }
 0x1df   :  { %1411 = vrot.lane.b32.xlu1 %v11775_v2, %s10724_s19  ;;  %1409 = vrot.lane.b32.xlu0 %v11764_v59, %s10724_s19 }
 0x1e0   :  { %9888 = vmatprep.mubr.msk.bf16.mxu0 %vm3036_vm10, %v2914_v8 }
 0x1e1   :  { %9889 = vmatmul.mubr.msk.bf16.gmra.mxu0 %vm3036_vm10, %v2916_v38  ;;  %v843_v44 = vpop.permute.xlu1 %842  ;;  %v841_v45 = vpop.permute.xlu0 %840 }
 0x1e2   :  { %v1977_v35 = vsel %vm1905_vm2, %v11704_v15, %v843_v44  ;;  %v1974_v4 = vsel %vm1905_vm2, %v11698_v11, %v841_v45 }
 0x1e3   :  { %1569 = vrot.lane.b32.xlu1 %v12028_v48, %s10725_s20  ;;  %1567 = vrot.lane.b32.xlu0 %v12018_v41, %s10725_s20 }
 0x1e4   :  { %v9866_v54 = vpop.f32.mrf.mxu0 }
 0x1e5   :  { %v3276_v49 = vadd.f32 %v9866_v54, %v11753_v56  ;;  %v976_v32 = vpop.permute.xlu1 %975  ;;  %v974_v57 = vpop.permute.xlu0 %973 }
 0x1e6   :  { %v3267_v53 = vpop.f32.mrf.mxu0  ;;  %v2146_v30 = vsel %vm2098_vm3, %v1977_v35, %v976_v32  ;;  %v2144_v31 = vsel %vm2098_vm3, %v1974_v4, %v974_v57  ;;  %v163_v32 = vld [vmem:[%s16083_s0 + $0x1c4] sm:$0xf] }
 0x1e7   :  { %v3732_v1 = vmax.f32 %v3276_v49, 0.0  ;;  %v3268_v60 = vadd.f32 %v11753_v56, %v3267_v53  ;;  %1702 = vrot.lane.b32.xlu1 %v12102_v18, %s16142_s23  ;;  %1700 = vrot.lane.b32.xlu0 %v12028_v48, %s16142_s23  ;;  %v162_v49 = vld [vmem:[%s16083_s0 + $0x1c0] sm:$0xf]  ;;  %292 = vst.msk [vmem:[#allocation2 + $0x1c4] sm:$0xf] %vm178_vm0, %v163_v32 }
 0x1e8   :  { %v9867_v52 = vpop.f32.mrf.mxu0  ;;  %291 = vst.msk [vmem:[#allocation2 + $0x1c0] sm:$0xf] %vm178_vm0, %v162_v49 }
 0x1e9   :  { %v9546_v62 = vpack.c.bf16 %v3732_v1, %v3732_v1  ;;  %v3730_v9 = vmax.f32 %v3268_v60, 0.0  ;;  %v3279_v23 = vadd.f32 %v9867_v52, %v11753_v56  ;;  %v1134_v61 = vpop.permute.xlu1 %1133  ;;  %v1132_v63 = vpop.permute.xlu0 %1131  ;;  %v164_v1 = vld [vmem:[%s16083_s0 + $0x1c8] sm:$0xf]  ;;  %v165_v60 = vld [vmem:[%s16083_s0 + $0x1cc] sm:$0xf]  ;;  %v12186_v52 = vld [vmem:[#allocation2 + $0x180] sm:$0xff]  }
 0x1ea   :  { %v3270_v0 = vpop.f32.mrf.mxu0  ;;  %v2275_v20 = vsel %vm2227_vm4, %v2146_v30, %v1134_v61  ;;  %v2273_v38 = vsel %vm2227_vm4, %v2144_v31, %v1132_v63  ;;  %293 = vst.msk [vmem:[#allocation2 + $0x1c8] sm:$0xf] %vm178_vm0, %v164_v1  ;;  %294 = vst.msk [vmem:[#allocation2 + $0x1cc] sm:$0xf] %vm178_vm0, %v165_v60 }
 0x1eb   :  { %4373 = vst.msk [vmem:[#allocation3 + $0x48] sm:$0xf] %vm4354_vm11, %v9546_v62  ;;  %v9544_v21 = vpack.c.bf16 %v3730_v9, %v3730_v9  ;;  %v3733_v51 = vmax.f32 %v3279_v23, 0.0  ;;  %v3271_v46 = vadd.f32 %v11753_v56, %v3270_v0  ;;  %1835 = vrot.lane.b32.xlu1 %v12112_v22, %s16143_s27  ;;  %1833 = vrot.lane.b32.xlu0 %v12102_v18, %s16143_s27 }
 0x1ed   :  { %4371 = vst.msk [vmem:[#allocation3 + $0x40] sm:$0xf] %vm4354_vm11, %v9544_v21  ;;  %v9547_v6 = vpack.c.bf16 %v3733_v51, %v3733_v51  ;;  %v3731_v28 = vmax.f32 %v3271_v46, 0.0  ;;  %v1267_v55 = vpop.permute.xlu1 %1266  ;;  %v1265_v42 = vpop.permute.xlu0 %1264  ;;  %v12196_v51 = vld [vmem:[#allocation2 + $0x188] sm:$0xff]  }
 0x1ee   :  { %v2404_v15 = vsel %vm2356_vm5, %v2275_v20, %v1267_v55  ;;  %v2402_v43 = vsel %vm2356_vm5, %v2273_v38, %v1265_v42 }
 0x1ef   :  { %4374 = vst.msk [vmem:[#allocation3 + $0x4c] sm:$0xf] %vm4354_vm11, %v9547_v6  ;;  %v9545_v10 = vpack.c.bf16 %v3731_v28, %v3731_v28  ;;  %858 = vrot.lane.b32.xlu1 %v12125_v13, %s10721_s29  ;;  %856 = vrot.lane.b32.xlu0 %v12048_v34, %s10721_s29 }
 0x1f1   :  { %4372 = vst.msk [vmem:[#allocation3 + $0x44] sm:$0xf] %vm4354_vm11, %v9545_v10  ;;  %v1400_v27 = vpop.permute.xlu1 %1399  ;;  %v1398_v40 = vpop.permute.xlu0 %1397 }
 0x1f2   :  { %v2533_v36 = vsel %vm2485_vm6, %v2404_v15, %v1400_v27  ;;  %v2531_v11 = vsel %vm2485_vm6, %v2402_v43, %v1398_v40  ;;  %v12216_v15 = vld [vmem:[#allocation2 + $0x118] sm:$0xff]  }
 0x1f3   :  { %991 = vrot.lane.b32.xlu1 %v12132_v17, %s10720_s28  ;;  %989 = vrot.lane.b32.xlu0 %v12125_v13, %s10720_s28 }
 0x1f5   :  { %v1558_v19 = vpop.permute.xlu1 %1557  ;;  %v1556_v29 = vpop.permute.xlu0 %1555 }
 0x1f6   :  { %v2660_v8 = vsel %vm2614_vm7, %v2531_v11, %v1556_v29 }
 0x1f7   :  { %1149 = vrot.lane.b32.xlu1 %v11775_v2, %s10722_s30  ;;  %1147 = vrot.lane.b32.xlu0 %v11764_v59, %s10722_s30  ;;  %v2662_v59 = vsel %vm2614_vm7, %v2533_v36, %v1558_v19 }
 0x1f9   :  { %v1691_v14 = vpop.permute.xlu1 %1690  ;;  %v1689_v3 = vpop.permute.xlu0 %1688 }
 0x1fa   :  { %v2791_v44 = vsel %vm2743_vm8, %v2662_v59, %v1691_v14  ;;  %v2789_v47 = vsel %vm2743_vm8, %v2660_v8, %v1689_v3  ;;  %v12209_v14 = vld [vmem:[#allocation2 + $0x110] sm:$0xff]  }
 0x1fb   :  { %1282 = vrot.lane.b32.xlu1 %v11850_v5, %s10723_s16  ;;  %1280 = vrot.lane.b32.xlu0 %v11775_v2, %s10723_s16 }
 0x1fd   :  { %v1824_v45 = vpop.permute.xlu1 %1823  ;;  %v1822_v54 = vpop.permute.xlu0 %1821 }
 0x1fe   :  { %v2920_v7 = vsel %vm2872_vm9, %v2791_v44, %v1824_v45  ;;  %v2918_v2 = vsel %vm2872_vm9, %v2789_v47, %v1822_v54 }
 0x1ff   :  { %1415 = vrot.lane.b32.xlu1 %v11861_v16, %s10724_s19  ;;  %1413 = vrot.lane.b32.xlu0 %v11850_v5, %s10724_s19 }
 0x200   :  { %9892 = vmatprep.mubr.msk.bf16.mxu0 %vm3036_vm10, %v2918_v2 }
 0x201   :  { %9893 = vmatmul.mubr.msk.bf16.gmra.mxu0 %vm3036_vm10, %v2920_v7  ;;  %v847_v57 = vpop.permute.xlu1 %846  ;;  %v845_v53 = vpop.permute.xlu0 %844 }
 0x202   :  { %v1983_v36 = vsel %vm1905_vm2, %v11795_v37, %v847_v57  ;;  %v1980_v11 = vsel %vm1905_vm2, %v11788_v24, %v845_v53 }
 0x203   :  { %1573 = vrot.lane.b32.xlu1 %v12112_v22, %s10725_s20  ;;  %1571 = vrot.lane.b32.xlu0 %v12102_v18, %s10725_s20 }
 0x204   :  { %v9870_v62 = vpop.f32.mrf.mxu0 }
 0x205   :  { %v3292_v9 = vadd.f32 %v9870_v62, %v11753_v56  ;;  %v980_v23 = vpop.permute.xlu1 %979  ;;  %v978_v61 = vpop.permute.xlu0 %977  ;;  %v166_v62 = vld [vmem:[%s16083_s0 + $0x1d0] sm:$0xf] }
 0x206   :  { %v3283_v63 = vpop.f32.mrf.mxu0  ;;  %v2150_v59 = vsel %vm2098_vm3, %v1983_v36, %v980_v23  ;;  %v2148_v8 = vsel %vm2098_vm3, %v1980_v11, %v978_v61  ;;  %295 = vst.msk [vmem:[#allocation2 + $0x1d0] sm:$0xf] %vm178_vm0, %v166_v62 }
 0x207   :  { %v3736_v0 = vmax.f32 %v3292_v9, 0.0  ;;  %v3284_v21 = vadd.f32 %v11753_v56, %v3283_v63  ;;  %1706 = vrot.lane.b32.xlu1 %v12186_v52, %s16142_s23  ;;  %1704 = vrot.lane.b32.xlu0 %v12112_v22, %s16142_s23  ;;  %v167_v9 = vld [vmem:[%s16083_s0 + $0x1d4] sm:$0xf]  ;;  %v168_v63 = vld [vmem:[%s16083_s0 + $0x1d8] sm:$0xf] }
 0x208   :  { %v9871_v46 = vpop.f32.mrf.mxu0  ;;  %296 = vst.msk [vmem:[#allocation2 + $0x1d4] sm:$0xf] %vm178_vm0, %v167_v9  ;;  %297 = vst.msk [vmem:[#allocation2 + $0x1d8] sm:$0xf] %vm178_vm0, %v168_v63 }
 0x209   :  { %v9550_v6 = vpack.c.bf16 %v3736_v0, %v3736_v0  ;;  %v3734_v28 = vmax.f32 %v3284_v21, 0.0  ;;  %v3295_v55 = vadd.f32 %v9871_v46, %v11753_v56  ;;  %v1138_v42 = vpop.permute.xlu1 %1137  ;;  %v1136_v10 = vpop.permute.xlu0 %1135  ;;  %v169_v0 = vld [vmem:[%s16083_s0 + $0x1dc] sm:$0xf]  ;;  %v12270_v21 = vld [vmem:[#allocation2 + $0x190] sm:$0xff]  }
 0x20a   :  { %v3286_v27 = vpop.f32.mrf.mxu0  ;;  %v2279_v44 = vsel %vm2227_vm4, %v2150_v59, %v1138_v42  ;;  %v2277_v47 = vsel %vm2227_vm4, %v2148_v8, %v1136_v10  ;;  %298 = vst.msk [vmem:[#allocation2 + $0x1dc] sm:$0xf] %vm178_vm0, %v169_v0 }
 0x20b   :  { %4377 = vst.msk [vmem:[#allocation3 + $0x58] sm:$0xf] %vm4354_vm11, %v9550_v6  ;;  %v9548_v40 = vpack.c.bf16 %v3734_v28, %v3734_v28  ;;  %v3737_v19 = vmax.f32 %v3295_v55, 0.0  ;;  %v3287_v29 = vadd.f32 %v11753_v56, %v3286_v27  ;;  %1839 = vrot.lane.b32.xlu1 %v12196_v51, %s16143_s27  ;;  %1837 = vrot.lane.b32.xlu0 %v12186_v52, %s16143_s27  ;;  %v12279_v6 = vld [vmem:[%s16086_s3] ss:$0 sm:$0xff] }
 0x20d   :  { %4375 = vst.msk [vmem:[#allocation3 + $0x50] sm:$0xf] %vm4354_vm11, %v9548_v40  ;;  %v9551_v35 = vpack.c.bf16 %v3737_v19, %v3737_v19  ;;  %v3735_v4 = vmax.f32 %v3287_v29, 0.0  ;;  %v1271_v30 = vpop.permute.xlu1 %1270  ;;  %v1269_v31 = vpop.permute.xlu0 %1268  ;;  %v12285_v19 = vld [vmem:[#allocation2 + $0x198] sm:$0xff]  }
 0x20e   :  { %v2408_v37 = vsel %vm2356_vm5, %v2279_v44, %v1271_v30  ;;  %v2406_v54 = vsel %vm2356_vm5, %v2277_v47, %v1269_v31 }
 0x20f   :  { %4378 = vst.msk [vmem:[#allocation3 + $0x5c] sm:$0xf] %vm4354_vm11, %v9551_v35  ;;  %v9549_v20 = vpack.c.bf16 %v3735_v4, %v3735_v4  ;;  %862 = vrot.lane.b32.xlu1 %v12209_v14, %s10721_s29  ;;  %860 = vrot.lane.b32.xlu0 %v12132_v17, %s10721_s29 }
 0x211   :  { %4376 = vst.msk [vmem:[#allocation3 + $0x54] sm:$0xf] %vm4354_vm11, %v9549_v20  ;;  %v1404_v56 = vpop.permute.xlu1 %1403  ;;  %v1402_v38 = vpop.permute.xlu0 %1401 }
 0x212   :  { %v2537_v49 = vsel %vm2485_vm6, %v2408_v37, %v1404_v56  ;;  %v2535_v24 = vsel %vm2485_vm6, %v2406_v54, %v1402_v38 }
 0x213   :  { %995 = vrot.lane.b32.xlu1 %v12216_v15, %s10720_s28  ;;  %993 = vrot.lane.b32.xlu0 %v12209_v14, %s10720_s28 }
 0x215   :  { %v1562_v3 = vpop.permute.xlu1 %1561  ;;  %v1560_v43 = vpop.permute.xlu0 %1559 }
 0x216   :  { %v2664_v32 = vsel %vm2614_vm7, %v2535_v24, %v1560_v43 }
 0x217   :  { %1153 = vrot.lane.b32.xlu1 %v11861_v16, %s10722_s30  ;;  %1151 = vrot.lane.b32.xlu0 %v11850_v5, %s10722_s30  ;;  %v2666_v5 = vsel %vm2614_vm7, %v2537_v49, %v1562_v3 }
 0x219   :  { %v1695_v45 = vpop.permute.xlu1 %1694  ;;  %v1693_v7 = vpop.permute.xlu0 %1692 }
 0x21a   :  { %v2795_v2 = vsel %vm2743_vm8, %v2666_v5, %v1695_v45  ;;  %v2793_v53 = vsel %vm2743_vm8, %v2664_v32, %v1693_v7  ;;  %v12298_v45 = vld [vmem:[#allocation2 + $0x120] sm:$0xff]   ;;  %v12305_v7 = vld [vmem:[#allocation2 + $0x128] sm:$0xff]  }
 0x21b   :  { %1286 = vrot.lane.b32.xlu1 %v11934_v12, %s10723_s16  ;;  %1284 = vrot.lane.b32.xlu0 %v11861_v16, %s10723_s16 }
 0x21d   :  { %v1828_v57 = vpop.permute.xlu1 %1827  ;;  %v1826_v60 = vpop.permute.xlu0 %1825 }
 0x21e   :  { %v2924_v1 = vsel %vm2872_vm9, %v2795_v2, %v1828_v57  ;;  %v2922_v16 = vsel %vm2872_vm9, %v2793_v53, %v1826_v60 }
 0x21f   :  { %1419 = vrot.lane.b32.xlu1 %v11944_v33, %s10724_s19  ;;  %1417 = vrot.lane.b32.xlu0 %v11934_v12, %s10724_s19 }
 0x220   :  { %9896 = vmatprep.mubr.msk.bf16.mxu0 %vm3036_vm10, %v2922_v16 }
 0x221   :  { %9897 = vmatmul.mubr.msk.bf16.gmra.mxu0 %vm3036_vm10, %v2924_v1  ;;  %v851_v23 = vpop.permute.xlu1 %850  ;;  %v849_v61 = vpop.permute.xlu0 %848 }
 0x222   :  { %v1989_v24 = vsel %vm1905_vm2, %v11961_v26, %v851_v23  ;;  %v1986_v5 = vsel %vm1905_vm2, %v11874_v25, %v849_v61 }
 0x223   :  { %1577 = vrot.lane.b32.xlu1 %v12196_v51, %s10725_s20  ;;  %1575 = vrot.lane.b32.xlu0 %v12186_v52, %s10725_s20 }
 0x224   :  { %v9874_v46 = vpop.f32.mrf.mxu0 }
 0x225   :  { %v3308_v28 = vadd.f32 %v12279_v6, %v9874_v46  ;;  %v984_v55 = vpop.permute.xlu1 %983  ;;  %v982_v42 = vpop.permute.xlu0 %981 }
 0x226   :  { %v3299_v10 = vpop.f32.mrf.mxu0  ;;  %v2154_v32 = vsel %vm2098_vm3, %v1989_v24, %v984_v55  ;;  %v2152_v2 = vsel %vm2098_vm3, %v1986_v5, %v982_v42  ;;  %v171_v55 = vld [vmem:[%s16083_s0 + $0x1e4] sm:$0xf] }
 0x227   :  { %v3740_v27 = vmax.f32 %v3308_v28, 0.0  ;;  %v3300_v40 = vadd.f32 %v12279_v6, %v3299_v10  ;;  %1710 = vrot.lane.b32.xlu1 %v12270_v21, %s16142_s23  ;;  %1708 = vrot.lane.b32.xlu0 %v12196_v51, %s16142_s23  ;;  %v170_v28 = vld [vmem:[%s16083_s0 + $0x1e0] sm:$0xf]  ;;  %300 = vst.msk [vmem:[#allocation2 + $0x1e4] sm:$0xf] %vm178_vm0, %v171_v55 }
 0x228   :  { %v9875_v29 = vpop.f32.mrf.mxu0  ;;  %299 = vst.msk [vmem:[#allocation2 + $0x1e0] sm:$0xf] %vm178_vm0, %v170_v28 }
 0x229   :  { %v9554_v35 = vpack.c.bf16 %v3740_v27, %v3740_v27  ;;  %v3738_v4 = vmax.f32 %v3300_v40, 0.0  ;;  %v3311_v30 = vadd.f32 %v12279_v6, %v9875_v29  ;;  %v1142_v31 = vpop.permute.xlu1 %1141  ;;  %v1140_v20 = vpop.permute.xlu0 %1139  ;;  %v172_v27 = vld [vmem:[%s16083_s0 + $0x1e8] sm:$0xf]  ;;  %v173_v40 = vld [vmem:[%s16083_s0 + $0x1ec] sm:$0xf]  ;;  %v12359_v29 = vld [vmem:[#allocation2 + $0x1a0] sm:$0xff]  }
 0x22a   :  { %v3302_v56 = vpop.f32.mrf.mxu0  ;;  %v2283_v57 = vsel %vm2227_vm4, %v2154_v32, %v1142_v31  ;;  %v2281_v1 = vsel %vm2227_vm4, %v2152_v2, %v1140_v20  ;;  %301 = vst.msk [vmem:[#allocation2 + $0x1e8] sm:$0xf] %vm178_vm0, %v172_v27  ;;  %302 = vst.msk [vmem:[#allocation2 + $0x1ec] sm:$0xf] %vm178_vm0, %v173_v40 }
 0x22b   :  { %4381 = vst.msk [vmem:[#allocation3 + $0x68] sm:$0xf] %vm4354_vm11, %v9554_v35  ;;  %v9552_v38 = vpack.c.bf16 %v3738_v4, %v3738_v4  ;;  %v3741_v3 = vmax.f32 %v3311_v30, 0.0  ;;  %v3303_v43 = vadd.f32 %v12279_v6, %v3302_v56  ;;  %1843 = vrot.lane.b32.xlu1 %v12285_v19, %s16143_s27  ;;  %1841 = vrot.lane.b32.xlu0 %v12270_v21, %s16143_s27 }
 0x22d   :  { %4379 = vst.msk [vmem:[#allocation3 + $0x60] sm:$0xf] %vm4354_vm11, %v9552_v38  ;;  %v9555_v36 = vpack.c.bf16 %v3741_v3, %v3741_v3  ;;  %v3739_v11 = vmax.f32 %v3303_v43, 0.0  ;;  %v1275_v59 = vpop.permute.xlu1 %1274  ;;  %v1273_v8 = vpop.permute.xlu0 %1272  ;;  %v12369_v3 = vld [vmem:[#allocation2 + $0x1a8] sm:$0xff]  }
 0x22e   :  { %v2412_v26 = vsel %vm2356_vm5, %v2283_v57, %v1275_v59  ;;  %v2410_v62 = vsel %vm2356_vm5, %v2281_v1, %v1273_v8 }
 0x22f   :  { %4382 = vst.msk [vmem:[#allocation3 + $0x6c] sm:$0xf] %vm4354_vm11, %v9555_v36  ;;  %v9553_v44 = vpack.c.bf16 %v3739_v11, %v3739_v11  ;;  %866 = vrot.lane.b32.xlu1 %v12298_v45, %s10721_s29  ;;  %864 = vrot.lane.b32.xlu0 %v12216_v15, %s10721_s29 }
 0x231   :  { %4380 = vst.msk [vmem:[#allocation3 + $0x64] sm:$0xf] %vm4354_vm11, %v9553_v44  ;;  %v1408_v47 = vpop.permute.xlu1 %1407  ;;  %v1406_v37 = vpop.permute.xlu0 %1405 }
 0x232   :  { %v2541_v9 = vsel %vm2485_vm6, %v2412_v26, %v1408_v47  ;;  %v2539_v25 = vsel %vm2485_vm6, %v2410_v62, %v1406_v37 }
 0x233   :  { %999 = vrot.lane.b32.xlu1 %v12305_v7, %s10720_s28  ;;  %997 = vrot.lane.b32.xlu0 %v12298_v45, %s10720_s28 }
 0x235   :  { %v1566_v54 = vpop.permute.xlu1 %1565  ;;  %v1564_v49 = vpop.permute.xlu0 %1563 }
 0x236   :  { %v2668_v16 = vsel %vm2614_vm7, %v2539_v25, %v1564_v49 }
 0x237   :  { %1157 = vrot.lane.b32.xlu1 %v11944_v33, %s10722_s30  ;;  %1155 = vrot.lane.b32.xlu0 %v11934_v12, %s10722_s30  ;;  %v2670_v12 = vsel %vm2614_vm7, %v2541_v9, %v1566_v54 }
 0x239   :  { %v1699_v53 = vpop.permute.xlu1 %1698  ;;  %v1697_v60 = vpop.permute.xlu0 %1696 }
 0x23a   :  { %v2799_v23 = vsel %vm2743_vm8, %v2670_v12, %v1699_v53  ;;  %v2797_v63 = vsel %vm2743_vm8, %v2668_v16, %v1697_v60  ;;  %v12382_v53 = vld [vmem:[#allocation2 + $0x130] sm:$0xff]   ;;  %v12389_v60 = vld [vmem:[#allocation2 + $0x138] sm:$0xff]  }
 0x23b   :  { %1290 = vrot.lane.b32.xlu1 %v12018_v41, %s10723_s16  ;;  %1288 = vrot.lane.b32.xlu0 %v11944_v33, %s10723_s16 }
 0x23d   :  { %v1832_v61 = vpop.permute.xlu1 %1831  ;;  %v1830_v46 = vpop.permute.xlu0 %1829 }
 0x23e   :  { %v2928_v0 = vsel %vm2872_vm9, %v2799_v23, %v1832_v61  ;;  %v2926_v33 = vsel %vm2872_vm9, %v2797_v63, %v1830_v46 }
 0x23f   :  { %1423 = vrot.lane.b32.xlu1 %v12028_v48, %s10724_s19  ;;  %1421 = vrot.lane.b32.xlu0 %v12018_v41, %s10724_s19 }
 0x240   :  { %9900 = vmatprep.mubr.msk.bf16.mxu0 %vm3036_vm10, %v2926_v33 }
 0x241   :  { %9901 = vmatmul.mubr.msk.bf16.gmra.mxu0 %vm3036_vm10, %v2928_v0  ;;  %v855_v42 = vpop.permute.xlu1 %854  ;;  %v853_v10 = vpop.permute.xlu0 %852 }
 0x242   :  { %v1995_v25 = vsel %vm1905_vm2, %v11966_v58, %v855_v42  ;;  %v1992_v12 = vsel %vm1905_vm2, %v11957_v50, %v853_v10 }
 0x243   :  { %1581 = vrot.lane.b32.xlu1 %v12285_v19, %s10725_s20  ;;  %1579 = vrot.lane.b32.xlu0 %v12270_v21, %s10725_s20 }
 0x244   :  { %v9878_v35 = vpop.f32.mrf.mxu0 }
 0x245   :  { %v3324_v4 = vadd.f32 %v12279_v6, %v9878_v35  ;;  %v988_v30 = vpop.permute.xlu1 %987  ;;  %v986_v31 = vpop.permute.xlu0 %985 }
 0x246   :  { %v3315_v20 = vpop.f32.mrf.mxu0  ;;  %v2158_v16 = vsel %vm2098_vm3, %v1995_v25, %v988_v30  ;;  %v2156_v23 = vsel %vm2098_vm3, %v1992_v12, %v986_v31  ;;  %v175_v30 = vld [vmem:[%s16083_s0 + $0x1f4] sm:$0xf] }
 0x247   :  { %v3744_v56 = vmax.f32 %v3324_v4, 0.0  ;;  %v3316_v38 = vadd.f32 %v12279_v6, %v3315_v20  ;;  %1714 = vrot.lane.b32.xlu1 %v12359_v29, %s16142_s23  ;;  %1712 = vrot.lane.b32.xlu0 %v12285_v19, %s16142_s23  ;;  %v174_v4 = vld [vmem:[%s16083_s0 + $0x1f0] sm:$0xf]  ;;  %304 = vst.msk [vmem:[#allocation2 + $0x1f4] sm:$0xf] %vm178_vm0, %v175_v30 }
 0x248   :  { %v9879_v43 = vpop.f32.mrf.mxu0  ;;  %303 = vst.msk [vmem:[#allocation2 + $0x1f0] sm:$0xf] %vm178_vm0, %v174_v4 }
 0x249   :  { %v9558_v36 = vpack.c.bf16 %v3744_v56, %v3744_v56  ;;  %v3742_v11 = vmax.f32 %v3316_v38, 0.0  ;;  %v3327_v59 = vadd.f32 %v12279_v6, %v9879_v43  ;;  %v1146_v8 = vpop.permute.xlu1 %1145  ;;  %v1144_v44 = vpop.permute.xlu0 %1143  ;;  %v176_v43 = vld [vmem:[%s16083_s0 + $0x1f8] sm:$0xf] }
 0x24a   :  { %v3318_v47 = vpop.f32.mrf.mxu0  ;;  %v2287_v61 = vsel %vm2227_vm4, %v2158_v16, %v1146_v8  ;;  %v2285_v0 = vsel %vm2227_vm4, %v2156_v23, %v1144_v44  ;;  %305 = vst.msk [vmem:[#allocation2 + $0x1f8] sm:$0xf] %vm178_vm0, %v176_v43 }
 0x24b   :  { %4385 = vst.msk [vmem:[#allocation3 + $0x78] sm:$0xf] %vm4354_vm11, %v9558_v36  ;;  %v9556_v37 = vpack.c.bf16 %v3742_v11, %v3742_v11  ;;  %v3745_v54 = vmax.f32 %v3327_v59, 0.0  ;;  %v3319_v49 = vadd.f32 %v12279_v6, %v3318_v47  ;;  %1847 = vrot.lane.b32.xlu1 %v12369_v3, %s16143_s27  ;;  %1845 = vrot.lane.b32.xlu0 %v12359_v29, %s16143_s27  ;;  %v177_v36 = vld [vmem:[%s16083_s0 + $0x1fc] sm:$0xf]  ;;  %v12444_v59 = vld [vmem:[#allocation2 + $0x1b0] sm:$0xff]  }
 0x24c   :  { %306 = vst.msk [vmem:[#allocation2 + $0x1fc] sm:$0xf] %vm178_vm0, %v177_v36  ;;  %s10731_s0 = smov 96  }
 0x24d   :  { %4383 = vst.msk [vmem:[#allocation3 + $0x70] sm:$0xf] %vm4354_vm11, %v9556_v37  ;;  %v9559_v24 = vpack.c.bf16 %v3745_v54, %v3745_v54  ;;  %v3743_v5 = vmax.f32 %v3319_v49, 0.0  ;;  %v1279_v32 = vpop.permute.xlu1 %1278  ;;  %v1277_v2 = vpop.permute.xlu0 %1276 }
 0x24e   :  { %v2416_v58 = vsel %vm2356_vm5, %v2287_v61, %v1279_v32  ;;  %v2414_v28 = vsel %vm2356_vm5, %v2285_v0, %v1277_v2  ;;  %v12454_v2 = vld [vmem:[#allocation2 + $0x1b8] sm:$0xff]  }
 0x24f   :  { %4386 = vst.msk [vmem:[#allocation3 + $0x7c] sm:$0xf] %vm4354_vm11, %v9559_v24  ;;  %v9557_v57 = vpack.c.bf16 %v3743_v5, %v3743_v5  ;;  %870 = vrot.lane.b32.xlu1 %v12382_v53, %s10721_s29  ;;  %868 = vrot.lane.b32.xlu0 %v12305_v7, %s10721_s29 }
 0x251   :  { %4384 = vst.msk [vmem:[#allocation3 + $0x74] sm:$0xf] %vm4354_vm11, %v9557_v57  ;;  %v1412_v1 = vpop.permute.xlu1 %1411  ;;  %v1410_v26 = vpop.permute.xlu0 %1409 }
 0x252   :  { %v2545_v55 = vsel %vm2485_vm6, %v2416_v58, %v1412_v1  ;;  %v2543_v50 = vsel %vm2485_vm6, %v2414_v28, %v1410_v26 }
 0x253   :  { %1003 = vrot.lane.b32.xlu1 %v12389_v60, %s10720_s28  ;;  %1001 = vrot.lane.b32.xlu0 %v12382_v53, %s10720_s28 }
 0x255   :  { %v1570_v62 = vpop.permute.xlu1 %1569  ;;  %v1568_v9 = vpop.permute.xlu0 %1567 }
 0x256   :  { %v2672_v33 = vsel %vm2614_vm7, %v2543_v50, %v1568_v9 }
 0x257   :  { %1161 = vrot.lane.b32.xlu1 %v12028_v48, %s10722_s30  ;;  %1159 = vrot.lane.b32.xlu0 %v12018_v41, %s10722_s30  ;;  %v2674_v41 = vsel %vm2614_vm7, %v2545_v55, %v1570_v62 }
 0x259   :  { %v1703_v63 = vpop.permute.xlu1 %1702  ;;  %v1701_v46 = vpop.permute.xlu0 %1700 }
 0x25a   :  { %v2803_v42 = vsel %vm2743_vm8, %v2674_v41, %v1703_v63  ;;  %v2801_v27 = vsel %vm2743_vm8, %v2672_v33, %v1701_v46  ;;  %v12467_v63 = vld [vmem:[#allocation2 + $0x140] sm:$0xff]   ;;  %v12473_v46 = vld [vmem:[#allocation2 + $0x148] sm:$0xff]  }
 0x25b   :  { %1294 = vrot.lane.b32.xlu1 %v12102_v18, %s10723_s16  ;;  %1292 = vrot.lane.b32.xlu0 %v12028_v48, %s10723_s16 }
 0x25d   :  { %v1836_v10 = vpop.permute.xlu1 %1835  ;;  %v1834_v35 = vpop.permute.xlu0 %1833 }
 0x25e   :  { %v2932_v40 = vsel %vm2872_vm9, %v2803_v42, %v1836_v10  ;;  %v2930_v48 = vsel %vm2872_vm9, %v2801_v27, %v1834_v35 }
 0x25f   :  { %1427 = vrot.lane.b32.xlu1 %v12112_v22, %s10724_s19  ;;  %1425 = vrot.lane.b32.xlu0 %v12102_v18, %s10724_s19 }
 0x260   :  { %9904 = vmatprep.mubr.msk.bf16.mxu0 %vm3036_vm10, %v2930_v48 }
 0x261   :  { %v9882_v31 = vpop.f32.mrf.mxu0  ;;  %9905 = vmatmul.mubr.msk.bf16.gmra.mxu0 %vm3036_vm10, %v2932_v40  ;;  %v859_v20 = vpop.permute.xlu1 %858 }
 0x262   :  { %v3340_v56 = vadd.f32 %v12279_v6, %v9882_v31  ;;  %v857_v38 = vpop.permute.xlu0 %856  ;;  %v2001_v50 = vsel %vm1905_vm2, %v12048_v34, %v859_v20 }
 0x263   :  { %v3331_v11 = vpop.f32.mrf.mxu0  ;;  %1585 = vrot.lane.b32.xlu1 %v12369_v3, %s10725_s20  ;;  %1583 = vrot.lane.b32.xlu0 %v12359_v29, %s10725_s20  ;;  %v1998_v41 = vsel %vm1905_vm2, %v12041_v39, %v857_v38 }
 0x264   :  { %v3748_v8 = vmax.f32 %v3340_v56, 0.0  ;;  %v3332_v44 = vadd.f32 %v12279_v6, %v3331_v11 }
 0x265   :  { %v9883_v47 = vpop.f32.mrf.mxu0  ;;  %v992_v37 = vpop.permute.xlu1 %991 }
 0x266   :  { %v9562_v54 = vpack.c.bf16 %v3748_v8, %v3748_v8  ;;  %v3746_v49 = vmax.f32 %v3332_v44, 0.0  ;;  %v3343_v24 = vadd.f32 %v12279_v6, %v9883_v47  ;;  %v990_v5 = vpop.permute.xlu0 %989  ;;  %v2162_v33 = vsel %vm2098_vm3, %v2001_v50, %v992_v37  ;;  %v12514_v37 = vld [vmem:[#allocation2 + $0x1c0] sm:$0xff]  }
 0x267   :  { %v3334_v32 = vpop.f32.mrf.mxu0  ;;  %1718 = vrot.lane.b32.xlu1 %v12444_v59, %s16142_s23  ;;  %1716 = vrot.lane.b32.xlu0 %v12369_v3, %s16142_s23  ;;  %v2160_v42 = vsel %vm2098_vm3, %v1998_v41, %v990_v5  ;;  %v12535_v41 = vld [vmem:[#allocation2 + $0x150] sm:$0xff]  }
 0x268   :  { %4389 = vst.msk [vmem:[#allocation3 + $0x88] sm:$0xf] %vm4354_vm11, %v9562_v54  ;;  %v9560_v57 = vpack.c.bf16 %v3746_v49, %v3746_v49  ;;  %v3749_v1 = vmax.f32 %v3343_v24, 0.0  ;;  %v3335_v26 = vadd.f32 %v12279_v6, %v3334_v32 }
 0x269   :  { %v1150_v62 = vpop.permute.xlu1 %1149 }
 0x26a   :  { %4387 = vst.msk [vmem:[#allocation3 + $0x80] sm:$0xf] %vm4354_vm11, %v9560_v57  ;;  %v9563_v9 = vpack.c.bf16 %v3749_v1, %v3749_v1  ;;  %v3747_v25 = vmax.f32 %v3335_v26, 0.0  ;;  %v1148_v12 = vpop.permute.xlu0 %1147  ;;  %v2291_v10 = vsel %vm2227_vm4, %v2162_v33, %v1150_v62 }
 0x26b   :  { %1851 = vrot.lane.b32.xlu1 %v12454_v2, %s16143_s27  ;;  %1849 = vrot.lane.b32.xlu0 %v12444_v59, %s16143_s27  ;;  %v2289_v40 = vsel %vm2227_vm4, %v2160_v42, %v1148_v12 }
 0x26c   :  { %4390 = vst.msk [vmem:[#allocation3 + $0x8c] sm:$0xf] %vm4354_vm11, %v9563_v9  ;;  %v9561_v16 = vpack.c.bf16 %v3747_v25, %v3747_v25  ;;  %v12522_v9 = vld [vmem:[#allocation2 + $0x1c8] sm:$0xff]  }
 0x26d   :  { %v1283_v23 = vpop.permute.xlu1 %1282 }
 0x26e   :  { %4388 = vst.msk [vmem:[#allocation3 + $0x84] sm:$0xf] %vm4354_vm11, %v9561_v16  ;;  %v1281_v61 = vpop.permute.xlu0 %1280  ;;  %v2420_v34 = vsel %vm2356_vm5, %v2291_v10, %v1283_v23  ;;  %v12541_v10 = vld [vmem:[#allocation2 + $0x158] sm:$0xff]  }
 0x26f   :  { %874 = vrot.lane.b32.xlu1 %v12467_v63, %s10721_s29  ;;  %872 = vrot.lane.b32.xlu0 %v12389_v60, %s10721_s29  ;;  %v2418_v4 = vsel %vm2356_vm5, %v2289_v40, %v1281_v61 }
 0x271   :  { %v1416_v0 = vpop.permute.xlu1 %1415 }
 0x272   :  { %v1414_v58 = vpop.permute.xlu0 %1413  ;;  %v2549_v30 = vsel %vm2485_vm6, %v2420_v34, %v1416_v0 }
 0x273   :  { %1007 = vrot.lane.b32.xlu1 %v12473_v46, %s10720_s28  ;;  %1005 = vrot.lane.b32.xlu0 %v12467_v63, %s10720_s28  ;;  %v2547_v39 = vsel %vm2485_vm6, %v2418_v4, %v1414_v58 }
 0x275   :  { %v1574_v28 = vpop.permute.xlu1 %1573 }
 0x276   :  { %v1572_v55 = vpop.permute.xlu0 %1571 }
 0x277   :  { %1165 = vrot.lane.b32.xlu1 %v12112_v22, %s10722_s30  ;;  %1163 = vrot.lane.b32.xlu0 %v12102_v18, %s10722_s30  ;;  %v2678_v18 = vsel %vm2614_vm7, %v2549_v30, %v1574_v28  ;;  %v2676_v48 = vsel %vm2614_vm7, %v2547_v39, %v1572_v55 }
 0x279   :  { %v1707_v27 = vpop.permute.xlu1 %1706 }
 0x27a   :  { %v1705_v35 = vpop.permute.xlu0 %1704  ;;  %v2807_v31 = vsel %vm2743_vm8, %v2678_v18, %v1707_v27 }
 0x27b   :  { %1298 = vrot.lane.b32.xlu1 %v12186_v52, %s10723_s16  ;;  %1296 = vrot.lane.b32.xlu0 %v12112_v22, %s10723_s16  ;;  %v2805_v56 = vsel %vm2743_vm8, %v2676_v48, %v1705_v35 }
 0x27d   :  { %v1840_v20 = vpop.permute.xlu1 %1839 }
 0x27e   :  { %v2936_v38 = vsel %vm2872_vm9, %v2807_v31, %v1840_v20  ;;  %v1838_v43 = vpop.permute.xlu0 %1837 }
 0x27f   :  { %v2934_v36 = vsel %vm2872_vm9, %v2805_v56, %v1838_v43  ;;  %1431 = vrot.lane.b32.xlu1 %v12196_v51, %s10724_s19  ;;  %1429 = vrot.lane.b32.xlu0 %v12186_v52, %s10724_s19 }
 0x280   :  { %9908 = vmatprep.mubr.msk.bf16.mxu0 %vm3036_vm10, %v2934_v36 }
 0x281   :  { %v9886_v22 = vpop.f32.mrf.mxu0  ;;  %9909 = vmatmul.mubr.msk.bf16.gmra.mxu0 %vm3036_vm10, %v2936_v38  ;;  %v863_v11 = vpop.permute.xlu1 %862 }
 0x282   :  { %v3356_v8 = vadd.f32 %v12279_v6, %v9886_v22  ;;  %v861_v44 = vpop.permute.xlu0 %860  ;;  %v2007_v34 = vsel %vm1905_vm2, %v12132_v17, %v863_v11 }
 0x283   :  { %v3347_v47 = vpop.f32.mrf.mxu0  ;;  %1589 = vrot.lane.b32.xlu1 %v12454_v2, %s10725_s20  ;;  %1587 = vrot.lane.b32.xlu0 %v12444_v59, %s10725_s20  ;;  %v2004_v35 = vsel %vm1905_vm2, %v12125_v13, %v861_v44 }
 0x284   :  { %v3752_v54 = vmax.f32 %v3356_v8, 0.0  ;;  %v3348_v49 = vadd.f32 %v12279_v6, %v3347_v47 }
 0x285   :  { %v9887_v24 = vpop.f32.mrf.mxu0  ;;  %v996_v5 = vpop.permute.xlu1 %995 }
 0x286   :  { %v9566_v32 = vpack.c.bf16 %v3752_v54, %v3752_v54  ;;  %v3750_v57 = vmax.f32 %v3348_v49, 0.0  ;;  %v3359_v1 = vadd.f32 %v12279_v6, %v9887_v24  ;;  %v994_v26 = vpop.permute.xlu0 %993  ;;  %v2166_v4 = vsel %vm2098_vm3, %v2007_v34, %v996_v5  ;;  %v12582_v5 = vld [vmem:[#allocation2 + $0x1d0] sm:$0xff]  }
 0x287   :  { %v3350_v62 = vpop.f32.mrf.mxu0  ;;  %1722 = vrot.lane.b32.xlu1 %v12514_v37, %s16142_s23  ;;  %1720 = vrot.lane.b32.xlu0 %v12454_v2, %s16142_s23  ;;  %v2164_v30 = vsel %vm2098_vm3, %v2004_v35, %v994_v26  ;;  %v12603_v35 = vld [vmem:[#allocation2 + $0x160] sm:$0xff]  }
 0x288   :  { %4393 = vst.msk [vmem:[#allocation3 + $0x98] sm:$0xf] %vm4354_vm11, %v9566_v32  ;;  %v9564_v25 = vpack.c.bf16 %v3750_v57, %v3750_v57  ;;  %v3753_v12 = vmax.f32 %v3359_v1, 0.0  ;;  %v3351_v16 = vadd.f32 %v12279_v6, %v3350_v62 }
 0x289   :  { %v1154_v23 = vpop.permute.xlu1 %1153 }
 0x28a   :  { %4391 = vst.msk [vmem:[#allocation3 + $0x90] sm:$0xf] %vm4354_vm11, %v9564_v25  ;;  %v9567_v61 = vpack.c.bf16 %v3753_v12, %v3753_v12  ;;  %v3751_v0 = vmax.f32 %v3351_v16, 0.0  ;;  %v1152_v58 = vpop.permute.xlu0 %1151  ;;  %v2295_v39 = vsel %vm2227_vm4, %v2166_v4, %v1154_v23 }
 0x28b   :  { %1855 = vrot.lane.b32.xlu1 %v12522_v9, %s16143_s27  ;;  %1853 = vrot.lane.b32.xlu0 %v12514_v37, %s16143_s27  ;;  %v2293_v48 = vsel %vm2227_vm4, %v2164_v30, %v1152_v58 }
 0x28c   :  { %4394 = vst.msk [vmem:[#allocation3 + $0x9c] sm:$0xf] %vm4354_vm11, %v9567_v61  ;;  %v9565_v28 = vpack.c.bf16 %v3751_v0, %v3751_v0  ;;  %v12590_v61 = vld [vmem:[#allocation2 + $0x1d8] sm:$0xff]  }
 0x28d   :  { %v1287_v55 = vpop.permute.xlu1 %1286 }
 0x28e   :  { %4392 = vst.msk [vmem:[#allocation3 + $0x94] sm:$0xf] %vm4354_vm11, %v9565_v28  ;;  %v1285_v50 = vpop.permute.xlu0 %1284  ;;  %v2424_v17 = vsel %vm2356_vm5, %v2295_v39, %v1287_v55  ;;  %v12609_v39 = vld [vmem:[#allocation2 + $0x168] sm:$0xff]  }
 0x28f   :  { %878 = vrot.lane.b32.xlu1 %v12535_v41, %s10721_s29  ;;  %876 = vrot.lane.b32.xlu0 %v12473_v46, %s10721_s29  ;;  %v2422_v20 = vsel %vm2356_vm5, %v2293_v48, %v1285_v50 }
 0x291   :  { %v1420_v33 = vpop.permute.xlu1 %1419 }
 0x292   :  { %v1418_v42 = vpop.permute.xlu0 %1417  ;;  %v2553_v56 = vsel %vm2485_vm6, %v2424_v17, %v1420_v33 }
 0x293   :  { %1011 = vrot.lane.b32.xlu1 %v12541_v10, %s10720_s28  ;;  %1009 = vrot.lane.b32.xlu0 %v12535_v41, %s10720_s28  ;;  %v2551_v13 = vsel %vm2485_vm6, %v2422_v20, %v1418_v42 }
 0x295   :  { %v1578_v27 = vpop.permute.xlu1 %1577 }
 0x296   :  { %v1576_v40 = vpop.permute.xlu0 %1575 }
 0x297   :  { %1169 = vrot.lane.b32.xlu1 %v12196_v51, %s10722_s30  ;;  %1167 = vrot.lane.b32.xlu0 %v12186_v52, %s10722_s30  ;;  %v2682_v52 = vsel %vm2614_vm7, %v2553_v56, %v1578_v27  ;;  %v2680_v38 = vsel %vm2614_vm7, %v2551_v13, %v1576_v40 }
 0x299   :  { %v1711_v18 = vpop.permute.xlu1 %1710 }
 0x29a   :  { %v1709_v31 = vpop.permute.xlu0 %1708  ;;  %v2811_v43 = vsel %vm2743_vm8, %v2682_v52, %v1711_v18 }
 0x29b   :  { %1302 = vrot.lane.b32.xlu1 %v12270_v21, %s10723_s16  ;;  %1300 = vrot.lane.b32.xlu0 %v12196_v51, %s10723_s16  ;;  %v2809_v22 = vsel %vm2743_vm8, %v2680_v38, %v1709_v31 }
 0x29d   :  { %v1844_v36 = vpop.permute.xlu1 %1843 }
 0x29e   :  { %v2940_v11 = vsel %vm2872_vm9, %v2811_v43, %v1844_v36  ;;  %v1842_v8 = vpop.permute.xlu0 %1841 }
 0x29f   :  { %v2938_v44 = vsel %vm2872_vm9, %v2809_v22, %v1842_v8  ;;  %1435 = vrot.lane.b32.xlu1 %v12285_v19, %s10724_s19  ;;  %1433 = vrot.lane.b32.xlu0 %v12270_v21, %s10724_s19 }
 0x2a0   :  { %9912 = vmatprep.mubr.msk.bf16.mxu0 %vm3036_vm10, %v2938_v44 }
 0x2a1   :  { %v9890_v51 = vpop.f32.mrf.mxu0  ;;  %9913 = vmatmul.mubr.msk.bf16.gmra.mxu0 %vm3036_vm10, %v2940_v11  ;;  %v867_v47 = vpop.permute.xlu1 %866 }
 0x2a2   :  { %v3372_v54 = vadd.f32 %v12279_v6, %v9890_v51  ;;  %v865_v49 = vpop.permute.xlu0 %864  ;;  %v2013_v17 = vsel %vm1905_vm2, %v12216_v15, %v867_v47 }
 0x2a3   :  { %v3363_v24 = vpop.f32.mrf.mxu0  ;;  %1593 = vrot.lane.b32.xlu1 %v12522_v9, %s10725_s20  ;;  %1591 = vrot.lane.b32.xlu0 %v12514_v37, %s10725_s20  ;;  %v2010_v31 = vsel %vm1905_vm2, %v12209_v14, %v865_v49 }
 0x2a4   :  { %v3756_v32 = vmax.f32 %v3372_v54, 0.0  ;;  %v3364_v57 = vadd.f32 %v12279_v6, %v3363_v24 }
 0x2a5   :  { %v9891_v1 = vpop.f32.mrf.mxu0  ;;  %v1000_v26 = vpop.permute.xlu1 %999 }
 0x2a6   :  { %v9570_v62 = vpack.c.bf16 %v3756_v32, %v3756_v32  ;;  %v3754_v25 = vmax.f32 %v3364_v57, 0.0  ;;  %v3375_v12 = vadd.f32 %v12279_v6, %v9891_v1  ;;  %v998_v16 = vpop.permute.xlu0 %997  ;;  %v2170_v20 = vsel %vm2098_vm3, %v2013_v17, %v1000_v26  ;;  %v12650_v26 = vld [vmem:[#allocation2 + $0x1e0] sm:$0xff]  }
 0x2a7   :  { %v3366_v23 = vpop.f32.mrf.mxu0  ;;  %1726 = vrot.lane.b32.xlu1 %v12582_v5, %s16142_s23  ;;  %1724 = vrot.lane.b32.xlu0 %v12522_v9, %s16142_s23  ;;  %v2168_v56 = vsel %vm2098_vm3, %v2010_v31, %v998_v16  ;;  %v12671_v31 = vld [vmem:[#allocation2 + $0x170] sm:$0xff]  }
 0x2a8   :  { %4397 = vst.msk [vmem:[#allocation3 + $0xa8] sm:$0xf] %vm4354_vm11, %v9570_v62  ;;  %v9568_v0 = vpack.c.bf16 %v3754_v25, %v3754_v25  ;;  %v3757_v58 = vmax.f32 %v3375_v12, 0.0  ;;  %v3367_v28 = vadd.f32 %v12279_v6, %v3366_v23 }
 0x2a9   :  { %v1158_v55 = vpop.permute.xlu1 %1157 }
 0x2aa   :  { %4395 = vst.msk [vmem:[#allocation3 + $0xa0] sm:$0xf] %vm4354_vm11, %v9568_v0  ;;  %v9571_v50 = vpack.c.bf16 %v3757_v58, %v3757_v58  ;;  %v3755_v33 = vmax.f32 %v3367_v28, 0.0  ;;  %v1156_v42 = vpop.permute.xlu0 %1155  ;;  %v2299_v13 = vsel %vm2227_vm4, %v2170_v20, %v1158_v55 }
 0x2ab   :  { %1859 = vrot.lane.b32.xlu1 %v12590_v61, %s16143_s27  ;;  %1857 = vrot.lane.b32.xlu0 %v12582_v5, %s16143_s27  ;;  %v2297_v38 = vsel %vm2227_vm4, %v2168_v56, %v1156_v42 }
 0x2ac   :  { %4398 = vst.msk [vmem:[#allocation3 + $0xac] sm:$0xf] %vm4354_vm11, %v9571_v50  ;;  %v9569_v27 = vpack.c.bf16 %v3755_v33, %v3755_v33  ;;  %v12658_v50 = vld [vmem:[#allocation2 + $0x1e8] sm:$0xff]  }
 0x2ad   :  { %v1291_v40 = vpop.permute.xlu1 %1290 }
 0x2ae   :  { %4396 = vst.msk [vmem:[#allocation3 + $0xa4] sm:$0xf] %vm4354_vm11, %v9569_v27  ;;  %v1289_v34 = vpop.permute.xlu0 %1288  ;;  %v2428_v15 = vsel %vm2356_vm5, %v2299_v13, %v1291_v40  ;;  %v12677_v13 = vld [vmem:[#allocation2 + $0x178] sm:$0xff]  }
 0x2af   :  { %882 = vrot.lane.b32.xlu1 %v12603_v35, %s10721_s29  ;;  %880 = vrot.lane.b32.xlu0 %v12541_v10, %s10721_s29  ;;  %v2426_v36 = vsel %vm2356_vm5, %v2297_v38, %v1289_v34 }
 0x2b1   :  { %v1424_v4 = vpop.permute.xlu1 %1423 }
 0x2b2   :  { %v1422_v30 = vpop.permute.xlu0 %1421  ;;  %v2557_v22 = vsel %vm2485_vm6, %v2428_v15, %v1424_v4 }
 0x2b3   :  { %1015 = vrot.lane.b32.xlu1 %v12609_v39, %s10720_s28  ;;  %1013 = vrot.lane.b32.xlu0 %v12603_v35, %s10720_s28  ;;  %v2555_v14 = vsel %vm2485_vm6, %v2426_v36, %v1422_v30 }
 0x2b5   :  { %v1582_v18 = vpop.permute.xlu1 %1581 }
 0x2b6   :  { %v1580_v48 = vpop.permute.xlu0 %1579 }
 0x2b7   :  { %1173 = vrot.lane.b32.xlu1 %v12285_v19, %s10722_s30  ;;  %1171 = vrot.lane.b32.xlu0 %v12270_v21, %s10722_s30  ;;  %v2686_v21 = vsel %vm2614_vm7, %v2557_v22, %v1582_v18  ;;  %v2684_v11 = vsel %vm2614_vm7, %v2555_v14, %v1580_v48 }
 0x2b9   :  { %v1715_v52 = vpop.permute.xlu1 %1714 }
 0x2ba   :  { %v1713_v43 = vpop.permute.xlu0 %1712  ;;  %v2815_v8 = vsel %vm2743_vm8, %v2686_v21, %v1715_v52 }
 0x2bb   :  { %1306 = vrot.lane.b32.xlu1 %v12359_v29, %s10723_s16  ;;  %1304 = vrot.lane.b32.xlu0 %v12285_v19, %s10723_s16  ;;  %v2813_v51 = vsel %vm2743_vm8, %v2684_v11, %v1713_v43 }
 0x2bd   :  { %v1848_v44 = vpop.permute.xlu1 %1847 }
 0x2be   :  { %v2944_v47 = vsel %vm2872_vm9, %v2815_v8, %v1848_v44  ;;  %v1846_v54 = vpop.permute.xlu0 %1845 }
 0x2bf   :  { %v2942_v49 = vsel %vm2872_vm9, %v2813_v51, %v1846_v54  ;;  %1439 = vrot.lane.b32.xlu1 %v12369_v3, %s10724_s19  ;;  %1437 = vrot.lane.b32.xlu0 %v12359_v29, %s10724_s19 }
 0x2c0   :  { %9916 = vmatprep.mubr.msk.bf16.mxu0 %vm3036_vm10, %v2942_v49 }
 0x2c1   :  { %v9894_v19 = vpop.f32.mrf.mxu0  ;;  %9917 = vmatmul.mubr.msk.bf16.gmra.mxu0 %vm3036_vm10, %v2944_v47  ;;  %v871_v24 = vpop.permute.xlu1 %870 }
 0x2c2   :  { %v3388_v32 = vadd.f32 %v12279_v6, %v9894_v19  ;;  %v869_v57 = vpop.permute.xlu0 %868  ;;  %v2019_v15 = vsel %vm1905_vm2, %v12305_v7, %v871_v24 }
 0x2c3   :  { %v3379_v1 = vpop.f32.mrf.mxu0  ;;  %1597 = vrot.lane.b32.xlu1 %v12590_v61, %s10725_s20  ;;  %1595 = vrot.lane.b32.xlu0 %v12582_v5, %s10725_s20  ;;  %v2016_v43 = vsel %vm1905_vm2, %v12298_v45, %v869_v57 }
 0x2c4   :  { %v3760_v62 = vmax.f32 %v3388_v32, 0.0  ;;  %v3380_v25 = vadd.f32 %v12279_v6, %v3379_v1 }
 0x2c5   :  { %v9895_v12 = vpop.f32.mrf.mxu0  ;;  %v1004_v16 = vpop.permute.xlu1 %1003 }
 0x2c6   :  { %v9574_v23 = vpack.c.bf16 %v3760_v62, %v3760_v62  ;;  %v3758_v0 = vmax.f32 %v3380_v25, 0.0  ;;  %v3391_v58 = vadd.f32 %v12279_v6, %v9895_v12  ;;  %v1002_v28 = vpop.permute.xlu0 %1001  ;;  %v2174_v36 = vsel %vm2098_vm3, %v2019_v15, %v1004_v16  ;;  %v12718_v16 = vld [vmem:[#allocation2 + $0x1f0] sm:$0xff]   ;;  %v12739_v15 = vld [vmem:[#allocation2 + $0x180] sm:$0xff]  }
 0x2c7   :  { %v3382_v55 = vpop.f32.mrf.mxu0  ;;  %1730 = vrot.lane.b32.xlu1 %v12650_v26, %s16142_s23  ;;  %1728 = vrot.lane.b32.xlu0 %v12590_v61, %s16142_s23  ;;  %v2172_v22 = vsel %vm2098_vm3, %v2016_v43, %v1002_v28 }
 0x2c8   :  { %4401 = vst.msk [vmem:[#allocation3 + $0xb8] sm:$0xf] %vm4354_vm11, %v9574_v23  ;;  %v9572_v33 = vpack.c.bf16 %v3758_v0, %v3758_v0  ;;  %v3761_v42 = vmax.f32 %v3391_v58, 0.0  ;;  %v3383_v27 = vadd.f32 %v12279_v6, %v3382_v55 }
 0x2c9   :  { %v1162_v40 = vpop.permute.xlu1 %1161 }
 0x2ca   :  { %4399 = vst.msk [vmem:[#allocation3 + $0xb0] sm:$0xf] %vm4354_vm11, %v9572_v33  ;;  %v9575_v34 = vpack.c.bf16 %v3761_v42, %v3761_v42  ;;  %v3759_v4 = vmax.f32 %v3383_v27, 0.0  ;;  %v1160_v30 = vpop.permute.xlu0 %1159  ;;  %v2303_v14 = vsel %vm2227_vm4, %v2174_v36, %v1162_v40 }
 0x2cb   :  { %1863 = vrot.lane.b32.xlu1 %v12658_v50, %s16143_s27  ;;  %1861 = vrot.lane.b32.xlu0 %v12650_v26, %s16143_s27  ;;  %v2301_v11 = vsel %vm2227_vm4, %v2172_v22, %v1160_v30  ;;  %v12745_v22 = vld [vmem:[#allocation2 + $0x188] sm:$0xff]  }
 0x2cc   :  { %4402 = vst.msk [vmem:[#allocation3 + $0xbc] sm:$0xf] %vm4354_vm11, %v9575_v34  ;;  %v9573_v18 = vpack.c.bf16 %v3759_v4, %v3759_v4  ;;  %v12726_v34 = vld [vmem:[#allocation2 + $0x1f8] sm:$0xff]  }
 0x2cd   :  { %v1295_v48 = vpop.permute.xlu1 %1294 }
 0x2ce   :  { %4400 = vst.msk [vmem:[#allocation3 + $0xb4] sm:$0xf] %vm4354_vm11, %v9573_v18  ;;  %v1293_v17 = vpop.permute.xlu0 %1292  ;;  %v2432_v7 = vsel %vm2356_vm5, %v2303_v14, %v1295_v48 }
 0x2cf   :  { %886 = vrot.lane.b32.xlu1 %v12671_v31, %s10721_s29  ;;  %884 = vrot.lane.b32.xlu0 %v12609_v39, %s10721_s29  ;;  %v2430_v44 = vsel %vm2356_vm5, %v2301_v11, %v1293_v17 }
 0x2d1   :  { %v1428_v20 = vpop.permute.xlu1 %1427 }
 0x2d2   :  { %v1426_v56 = vpop.permute.xlu0 %1425  ;;  %v2561_v51 = vsel %vm2485_vm6, %v2432_v7, %v1428_v20 }
 0x2d3   :  { %1019 = vrot.lane.b32.xlu1 %v12677_v13, %s10720_s28  ;;  %1017 = vrot.lane.b32.xlu0 %v12671_v31, %s10720_s28  ;;  %v2559_v45 = vsel %vm2485_vm6, %v2430_v44, %v1426_v56 }
 0x2d5   :  { %v1586_v52 = vpop.permute.xlu1 %1585 }
 0x2d6   :  { %v1584_v38 = vpop.permute.xlu0 %1583 }
 0x2d7   :  { %1177 = vrot.lane.b32.xlu1 %v12369_v3, %s10722_s30  ;;  %1175 = vrot.lane.b32.xlu0 %v12359_v29, %s10722_s30  ;;  %v2690_v29 = vsel %vm2614_vm7, %v2561_v51, %v1586_v52  ;;  %v2688_v47 = vsel %vm2614_vm7, %v2559_v45, %v1584_v38 }
 0x2d9   :  { %v1719_v21 = vpop.permute.xlu1 %1718 }
 0x2da   :  { %v1717_v8 = vpop.permute.xlu0 %1716  ;;  %v2819_v54 = vsel %vm2743_vm8, %v2690_v29, %v1719_v21 }
 0x2db   :  { %1310 = vrot.lane.b32.xlu1 %v12444_v59, %s10723_s16  ;;  %1308 = vrot.lane.b32.xlu0 %v12369_v3, %s10723_s16  ;;  %v2817_v19 = vsel %vm2743_vm8, %v2688_v47, %v1717_v8 }
 0x2dd   :  { %v1852_v49 = vpop.permute.xlu1 %1851 }
 0x2de   :  { %v2948_v24 = vsel %vm2872_vm9, %v2819_v54, %v1852_v49  ;;  %v1850_v32 = vpop.permute.xlu0 %1849 }
 0x2df   :  { %v2946_v57 = vsel %vm2872_vm9, %v2817_v19, %v1850_v32  ;;  %1443 = vrot.lane.b32.xlu1 %v12454_v2, %s10724_s19  ;;  %1441 = vrot.lane.b32.xlu0 %v12444_v59, %s10724_s19 }
 0x2e0   :  { %9920 = vmatprep.mubr.msk.bf16.mxu0 %vm3036_vm10, %v2946_v57 }
 0x2e1   :  { %v9898_v3 = vpop.f32.mrf.mxu0  ;;  %9921 = vmatmul.mubr.msk.bf16.gmra.mxu0 %vm3036_vm10, %v2948_v24  ;;  %v875_v1 = vpop.permute.xlu1 %874 }
 0x2e2   :  { %v3404_v62 = vadd.f32 %v12279_v6, %v9898_v3  ;;  %v873_v25 = vpop.permute.xlu0 %872  ;;  %v2025_v11 = vsel %vm1905_vm2, %v12389_v60, %v875_v1 }
 0x2e3   :  { %v3395_v12 = vpop.f32.mrf.mxu0  ;;  %1601 = vrot.lane.b32.xlu1 %v12658_v50, %s10725_s20  ;;  %1599 = vrot.lane.b32.xlu0 %v12650_v26, %s10725_s20  ;;  %v2022_v7 = vsel %vm1905_vm2, %v12382_v53, %v873_v25 }
 0x2e4   :  { %v3764_v23 = vmax.f32 %v3404_v62, 0.0  ;;  %v3396_v0 = vadd.f32 %v12279_v6, %v3395_v12  ;;  %v12786_v12 = vld [vmem:[%s16086_s3] ss:$0 sm:$0xff] }
 0x2e5   :  { %v9899_v58 = vpop.f32.mrf.mxu0  ;;  %v1008_v28 = vpop.permute.xlu1 %1007 }
 0x2e6   :  { %v9578_v55 = vpack.c.bf16 %v3764_v23, %v3764_v23  ;;  %v3762_v33 = vmax.f32 %v3396_v0, 0.0  ;;  %v3407_v42 = vadd.f32 %v12279_v6, %v9899_v58  ;;  %v1006_v27 = vpop.permute.xlu0 %1005  ;;  %v2178_v8 = vsel %vm2098_vm3, %v2025_v11, %v1008_v28  ;;  %v12791_v28 = vld [vmem:[#allocation2 + $0x200] sm:$0xff]  }
 0x2e7   :  { %v3398_v40 = vpop.f32.mrf.mxu0  ;;  %1734 = vrot.lane.b32.xlu1 %v12718_v16, %s16142_s23  ;;  %1732 = vrot.lane.b32.xlu0 %v12658_v50, %s16142_s23  ;;  %v2176_v44 = vsel %vm2098_vm3, %v2022_v7, %v1006_v27  ;;  %v12812_v7 = vld [vmem:[#allocation2 + $0x190] sm:$0xff]  }
 0x2e8   :  { %4405 = vst.msk [vmem:[#allocation3 + $0xc8] sm:$0xf] %vm4354_vm11, %v9578_v55  ;;  %v9576_v4 = vpack.c.bf16 %v3762_v33, %v3762_v33  ;;  %v3765_v30 = vmax.f32 %v3407_v42, 0.0  ;;  %v3399_v18 = vadd.f32 %v12279_v6, %v3398_v40 }
 0x2e9   :  { %v1166_v48 = vpop.permute.xlu1 %1165 }
 0x2ea   :  { %4403 = vst.msk [vmem:[#allocation3 + $0xc0] sm:$0xf] %vm4354_vm11, %v9576_v4  ;;  %v9579_v17 = vpack.c.bf16 %v3765_v30, %v3765_v30  ;;  %v3763_v20 = vmax.f32 %v3399_v18, 0.0  ;;  %v1164_v56 = vpop.permute.xlu0 %1163  ;;  %v2307_v51 = vsel %vm2227_vm4, %v2178_v8, %v1166_v48 }
 0x2eb   :  { %1867 = vrot.lane.b32.xlu1 %v12726_v34, %s16143_s27  ;;  %1865 = vrot.lane.b32.xlu0 %v12718_v16, %s16143_s27  ;;  %v2305_v29 = vsel %vm2227_vm4, %v2176_v44, %v1164_v56 }
 0x2ec   :  { %4406 = vst.msk [vmem:[#allocation3 + $0xcc] sm:$0xf] %vm4354_vm11, %v9579_v17  ;;  %v9577_v52 = vpack.c.bf16 %v3763_v20, %v3763_v20  ;;  %v12799_v17 = vld [vmem:[#allocation2 + $0x208] sm:$0xff]  }
 0x2ed   :  { %v1299_v38 = vpop.permute.xlu1 %1298 }
 0x2ee   :  { %4404 = vst.msk [vmem:[#allocation3 + $0xc4] sm:$0xf] %vm4354_vm11, %v9577_v52  ;;  %v1297_v6 = vpop.permute.xlu0 %1296  ;;  %v2436_v60 = vsel %vm2356_vm5, %v2307_v51, %v1299_v38  ;;  %v12818_v51 = vld [vmem:[#allocation2 + $0x198] sm:$0xff]  }
 0x2ef   :  { %890 = vrot.lane.b32.xlu1 %v12739_v15, %s10721_s29  ;;  %888 = vrot.lane.b32.xlu0 %v12677_v13, %s10721_s29  ;;  %v2434_v54 = vsel %vm2356_vm5, %v2305_v29, %v1297_v6 }
 0x2f1   :  { %v1432_v43 = vpop.permute.xlu1 %1431 }
 0x2f2   :  { %v1430_v36 = vpop.permute.xlu0 %1429  ;;  %v2565_v49 = vsel %vm2485_vm6, %v2436_v60, %v1432_v43 }
 0x2f3   :  { %1023 = vrot.lane.b32.xlu1 %v12745_v22, %s10720_s28  ;;  %1021 = vrot.lane.b32.xlu0 %v12739_v15, %s10720_s28  ;;  %v2563_v53 = vsel %vm2485_vm6, %v2434_v54, %v1430_v36 }
 0x2f5   :  { %v1590_v14 = vpop.permute.xlu1 %1589 }
 0x2f6   :  { %v1588_v21 = vpop.permute.xlu0 %1587 }
 0x2f7   :  { %1181 = vrot.lane.b32.xlu1 %v12454_v2, %s10722_s30  ;;  %1179 = vrot.lane.b32.xlu0 %v12444_v59, %s10722_s30  ;;  %v2694_v59 = vsel %vm2614_vm7, %v2565_v49, %v1590_v14  ;;  %v2692_v19 = vsel %vm2614_vm7, %v2563_v53, %v1588_v21 }
 0x2f9   :  { %v1723_v45 = vpop.permute.xlu1 %1722 }
 0x2fa   :  { %v1721_v47 = vpop.permute.xlu0 %1720  ;;  %v2823_v24 = vsel %vm2743_vm8, %v2694_v59, %v1723_v45 }
 0x2fb   :  { %1314 = vrot.lane.b32.xlu1 %v12514_v37, %s10723_s16  ;;  %1312 = vrot.lane.b32.xlu0 %v12454_v2, %s10723_s16  ;;  %v2821_v57 = vsel %vm2743_vm8, %v2692_v19, %v1721_v47 }
 0x2fd   :  { %v1856_v32 = vpop.permute.xlu1 %1855 }
 0x2fe   :  { %v2952_v3 = vsel %vm2872_vm9, %v2823_v24, %v1856_v32  ;;  %v1854_v1 = vpop.permute.xlu0 %1853 }
 0x2ff   :  { %v2950_v62 = vsel %vm2872_vm9, %v2821_v57, %v1854_v1  ;;  %1447 = vrot.lane.b32.xlu1 %v12522_v9, %s10724_s19  ;;  %1445 = vrot.lane.b32.xlu0 %v12514_v37, %s10724_s19  ;;  %v16103_v1 = vmov 0  }
 0x300   :  { %9924 = vmatprep.mubr.msk.bf16.mxu0 %vm3036_vm10, %v2950_v62  ;;  %6550 = vmatprep.subr.bf16.mxu1 %v16103_v1 }
 0x301   :  { %v9902_v2 = vpop.f32.mrf.mxu0  ;;  %9925 = vmatmul.mubr.msk.bf16.gmra.mxu0 %vm3036_vm10, %v2952_v3  ;;  %v879_v25 = vpop.permute.xlu1 %878 }
 0x302   :  { %v3420_v23 = vadd.f32 %v12786_v12, %v9902_v2  ;;  %v877_v0 = vpop.permute.xlu0 %876  ;;  %v2031_v60 = vsel %vm1905_vm2, %v12473_v46, %v879_v25 }
 0x303   :  { %v3411_v58 = vpop.f32.mrf.mxu0  ;;  %1605 = vrot.lane.b32.xlu1 %v12726_v34, %s10725_s20  ;;  %1603 = vrot.lane.b32.xlu0 %v12718_v16, %s10725_s20  ;;  %v2028_v47 = vsel %vm1905_vm2, %v12467_v63, %v877_v0  ;;  %v10233_v63 = vld [vmem:[%s16087_s4 + $0x38] sm:$0xff]  }
 0x304   :  { %v3768_v55 = vmax.f32 %v3420_v23, 0.0  ;;  %v3412_v33 = vadd.f32 %v12786_v12, %v3411_v58  ;;  %6551 = vmatpush1.bf16.msra.mxu1 %v10233_v63  ;;  %v12915_v63 = vld [vmem:[#allocation2 + $0x1a8] sm:$0xff]  }
 0x305   :  { %v9903_v42 = vpop.f32.mrf.mxu0  ;;  %v1012_v27 = vpop.permute.xlu1 %1011  ;;  %6552 = vmatprep.subr.bf16.mxu1 %v16103_v1 }
 0x306   :  { %v9582_v40 = vpack.c.bf16 %v3768_v55, %v3768_v55  ;;  %v3766_v4 = vmax.f32 %v3412_v33, 0.0  ;;  %v3423_v30 = vadd.f32 %v12786_v12, %v9903_v42  ;;  %v1010_v18 = vpop.permute.xlu0 %1009  ;;  %v2182_v54 = vsel %vm2098_vm3, %v2031_v60, %v1012_v27 }
 0x307   :  { %v3414_v48 = vpop.f32.mrf.mxu0  ;;  %1738 = vrot.lane.b32.xlu1 %v12791_v28, %s16142_s23  ;;  %1736 = vrot.lane.b32.xlu0 %v12726_v34, %s16142_s23  ;;  %v2180_v49 = vsel %vm2098_vm3, %v2028_v47, %v1010_v18  ;;  %v10235_v18 = vld [vmem:[%s16087_s4 + $0x28] sm:$0xff]  }
 0x308   :  { %4409 = vst.msk [vmem:[#allocation3 + $0xd8] sm:$0xf] %vm4354_vm11, %v9582_v40  ;;  %v9580_v20 = vpack.c.bf16 %v3766_v4, %v3766_v4  ;;  %v3769_v56 = vmax.f32 %v3423_v30, 0.0  ;;  %v3415_v52 = vadd.f32 %v12786_v12, %v3414_v48  ;;  %v12872_v30 = vld [vmem:[#allocation2 + $0x210] sm:$0xff]  }
 0x309   :  { %v1170_v38 = vpop.permute.xlu1 %1169 }
 0x30a   :  { %4407 = vst.msk [vmem:[#allocation3 + $0xd0] sm:$0xf] %vm4354_vm11, %v9580_v20  ;;  %v9583_v6 = vpack.c.bf16 %v3769_v56, %v3769_v56  ;;  %v3767_v43 = vmax.f32 %v3415_v52, 0.0  ;;  %v1168_v36 = vpop.permute.xlu0 %1167  ;;  %v2311_v53 = vsel %vm2227_vm4, %v2182_v54, %v1170_v38 }
 0x30b   :  { %1871 = vrot.lane.b32.xlu1 %v12799_v17, %s16143_s27  ;;  %1869 = vrot.lane.b32.xlu0 %v12791_v28, %s16143_s27  ;;  %v2309_v19 = vsel %vm2227_vm4, %v2180_v49, %v1168_v36  ;;  %v10238_v49 = vld [vmem:[%s16087_s4 + $0x18] sm:$0xff]  }
 0x30c   :  { %4410 = vst.msk [vmem:[#allocation3 + $0xdc] sm:$0xf] %vm4354_vm11, %v9583_v6  ;;  %v9581_v14 = vpack.c.bf16 %v3767_v43, %v3767_v43 }
 0x30d   :  { %v1303_v21 = vpop.permute.xlu1 %1302 }
 0x30e   :  { %4408 = vst.msk [vmem:[#allocation3 + $0xd4] sm:$0xf] %vm4354_vm11, %v9581_v14  ;;  %v1301_v11 = vpop.permute.xlu0 %1300  ;;  %v2440_v46 = vsel %vm2356_vm5, %v2311_v53, %v1303_v21  ;;  %v12884_v21 = vld [vmem:[#allocation2 + $0x218] sm:$0xff]  }
 0x30f   :  { %894 = vrot.lane.b32.xlu1 %v12812_v7, %s10721_s29  ;;  %892 = vrot.lane.b32.xlu0 %v12745_v22, %s10721_s29  ;;  %v2438_v32 = vsel %vm2356_vm5, %v2309_v19, %v1301_v11  ;;  %v10236_v11 = vld [vmem:[%s16087_s4 + $0x20] sm:$0xff]  }
 0x311   :  { %v1436_v8 = vpop.permute.xlu1 %1435 }
 0x312   :  { %v1434_v44 = vpop.permute.xlu0 %1433  ;;  %v2569_v57 = vsel %vm2485_vm6, %v2440_v46, %v1436_v8  ;;  %v12905_v46 = vld [vmem:[#allocation2 + $0x1a0] sm:$0xff]  }
 0x313   :  { %1027 = vrot.lane.b32.xlu1 %v12818_v51, %s10720_s28  ;;  %1025 = vrot.lane.b32.xlu0 %v12812_v7, %s10720_s28 }
 0x315   :  { %v1594_v45 = vpop.permute.xlu1 %1593 }
 0x316   :  { %v1592_v29 = vpop.permute.xlu0 %1591  ;;  %v2698_v3 = vsel %vm2614_vm7, %v2569_v57, %v1594_v45 }
 0x317   :  { %1185 = vrot.lane.b32.xlu1 %v12522_v9, %s10722_s30  ;;  %1183 = vrot.lane.b32.xlu0 %v12514_v37, %s10722_s30  ;;  %v2567_v37 = vsel %vm2485_vm6, %v2438_v32, %v1434_v44 }
 0x318   :  { %v2696_v62 = vsel %vm2614_vm7, %v2567_v37, %v1592_v29  ;;  %v10242_v37 = vld [vmem:[%s16087_s4 + $0x8] sm:$0xff]  }
 0x319   :  { %v1727_v59 = vpop.permute.xlu1 %1726 }
 0x31a   :  { %v1725_v24 = vpop.permute.xlu0 %1724  ;;  %v2827_v2 = vsel %vm2743_vm8, %v2698_v3, %v1727_v59 }
 0x31b   :  { %1318 = vrot.lane.b32.xlu1 %v12582_v5, %s10723_s16  ;;  %1316 = vrot.lane.b32.xlu0 %v12522_v9, %s10723_s16  ;;  %v2825_v23 = vsel %vm2743_vm8, %v2696_v62, %v1725_v24  ;;  %v10234_v9 = vld [vmem:[%s16087_s4 + $0x30] sm:$0xff]  }
 0x31c   :  { %6553 = vmatpush1.bf16.msra.mxu1 %v10234_v9  ;;  %v10240_v24 = vld [vmem:[%s16087_s4 + $0x10] sm:$0xff]  }
 0x31d   :  { %v1860_v25 = vpop.permute.xlu1 %1859  ;;  %6554 = vmatprep.subr.bf16.mxu1 %v16103_v1 }
 0x31e   :  { %v2956_v0 = vsel %vm2872_vm9, %v2827_v2, %v1860_v25  ;;  %v1858_v58 = vpop.permute.xlu0 %1857  ;;  %v10244_v25 = vld [vmem:[%s16087_s4] sm:$0xff]  }
 0x31f   :  { %v2954_v55 = vsel %vm2872_vm9, %v2825_v23, %v1858_v58  ;;  %1451 = vrot.lane.b32.xlu1 %v12590_v61, %s10724_s19  ;;  %1449 = vrot.lane.b32.xlu0 %v12582_v5, %s10724_s19 }
 0x320   :  { %9928 = vmatprep.mubr.msk.bf16.mxu0 %vm3036_vm10, %v2954_v55  ;;  %6555 = vmatpush1.bf16.msra.mxu1 %v10235_v18 }
 0x321   :  { %v9906_v33 = vpop.f32.mrf.mxu0  ;;  %9929 = vmatmul.mubr.msk.bf16.gmra.mxu0 %vm3036_vm10, %v2956_v0  ;;  %v12864_v42 = vpop.permute.xlu1 %882  ;;  %6556 = vmatprep.subr.bf16.mxu1 %v16103_v1 }
 0x322   :  { %v3436_v27 = vadd.f32 %v12786_v12, %v9906_v33  ;;  %v12867_v40 = vpop.permute.xlu0 %880  ;;  %v2037_v2 = vsel %vm1905_vm2, %v12541_v10, %v12864_v42 }
 0x323   :  { %v3427_v4 = vpop.f32.mrf.mxu0  ;;  %1609 = vrot.lane.b32.xlu1 %v12799_v17, %s10725_s20  ;;  %1607 = vrot.lane.b32.xlu0 %v12791_v28, %s10725_s20  ;;  %v2034_v23 = vsel %vm1905_vm2, %v12535_v41, %v12867_v40 }
 0x324   :  { %v3772_v48 = vmax.f32 %v3436_v27, 0.0  ;;  %v3428_v20 = vadd.f32 %v12786_v12, %v3427_v4  ;;  %6557 = vmatpush1.bf16.msra.mxu1 %v10236_v11 }
 0x325   :  { %v9907_v56 = vpop.f32.mrf.mxu0  ;;  %v1016_v52 = vpop.permute.xlu1 %1015  ;;  %6558 = vmatprep.subr.bf16.mxu1 %v16103_v1 }
 0x326   :  { %v9586_v38 = vpack.c.bf16 %v3772_v48, %v3772_v48  ;;  %v3770_v6 = vmax.f32 %v3428_v20, 0.0  ;;  %v3439_v43 = vadd.f32 %v12786_v12, %v9907_v56  ;;  %v1014_v36 = vpop.permute.xlu0 %1013  ;;  %v2186_v0 = vsel %vm2098_vm3, %v2037_v2, %v1016_v52 }
 0x327   :  { %v3430_v14 = vpop.f32.mrf.mxu0  ;;  %1742 = vrot.lane.b32.xlu1 %v12872_v30, %s16142_s23  ;;  %1740 = vrot.lane.b32.xlu0 %v12799_v17, %s16142_s23  ;;  %v2184_v58 = vsel %vm2098_vm3, %v2034_v23, %v1014_v36 }
 0x328   :  { %4413 = vst.msk [vmem:[#allocation3 + $0xe8] sm:$0xf] %vm4354_vm11, %v9586_v38  ;;  %v9584_v8 = vpack.c.bf16 %v3770_v6, %v3770_v6  ;;  %v3773_v44 = vmax.f32 %v3439_v43, 0.0  ;;  %v3431_v45 = vadd.f32 %v12786_v12, %v3430_v14  ;;  %6559 = vmatpush1.bf16.msra.mxu1 %v10238_v49 }
 0x329   :  { %v1174_v29 = vpop.permute.xlu1 %1173  ;;  %6560 = vmatprep.subr.bf16.mxu1 %v16103_v1 }
 0x32a   :  { %4411 = vst.msk [vmem:[#allocation3 + $0xe0] sm:$0xf] %vm4354_vm11, %v9584_v8  ;;  %v9587_v60 = vpack.c.bf16 %v3773_v44, %v3773_v44  ;;  %v3771_v47 = vmax.f32 %v3431_v45, 0.0  ;;  %v1172_v54 = vpop.permute.xlu0 %1171  ;;  %v2315_v10 = vsel %vm2227_vm4, %v2186_v0, %v1174_v29  ;;  %v12978_v44 = vld [vmem:[#allocation2 + $0x220] sm:$0xff]   ;;  %v10249_v45 = vld [vmem:[%s16087_s4 + $0x68] sm:$0xff]  }
 0x32b   :  { %1875 = vrot.lane.b32.xlu1 %v12884_v21, %s16143_s27  ;;  %1873 = vrot.lane.b32.xlu0 %v12872_v30, %s16143_s27  ;;  %v2313_v9 = vsel %vm2227_vm4, %v2184_v58, %v1172_v54  ;;  %v10252_v58 = vld [vmem:[%s16087_s4 + $0x58] sm:$0xff]  }
 0x32c   :  { %4414 = vst.msk [vmem:[#allocation3 + $0xec] sm:$0xf] %vm4354_vm11, %v9587_v60  ;;  %v9585_v53 = vpack.c.bf16 %v3771_v47, %v3771_v47  ;;  %6561 = vmatpush1.bf16.msra.mxu1 %v10240_v24 }
 0x32d   :  { %v1307_v59 = vpop.permute.xlu1 %1306  ;;  %6562 = vmatprep.subr.bf16.mxu1 %v16103_v1 }
 0x32e   :  { %4412 = vst.msk [vmem:[#allocation3 + $0xe4] sm:$0xf] %vm4354_vm11, %v9585_v53  ;;  %v1305_v19 = vpop.permute.xlu0 %1304  ;;  %v2444_v33 = vsel %vm2356_vm5, %v2315_v10, %v1307_v59 }
 0x32f   :  { %898 = vrot.lane.b32.xlu1 %v12905_v46, %s10721_s29  ;;  %896 = vrot.lane.b32.xlu0 %v12818_v51, %s10721_s29  ;;  %v2442_v41 = vsel %vm2356_vm5, %v2313_v9, %v1305_v19  ;;  %v13009_v9 = vld [vmem:[#allocation3 + $0x50] sm:$0xff]  }
 0x330   :  { %6563 = vmatpush1.bf16.msra.mxu1 %v10242_v37 }
 0x331   :  { %v1440_v32 = vpop.permute.xlu1 %1439  ;;  %6564 = vmatprep.subr.bf16.mxu1 %v16103_v1 }
 0x332   :  { %v1438_v57 = vpop.permute.xlu0 %1437  ;;  %v2573_v27 = vsel %vm2485_vm6, %v2444_v33, %v1440_v32  ;;  %v12990_v32 = vld [vmem:[#allocation2 + $0x228] sm:$0xff]  }
 0x333   :  { %1031 = vrot.lane.b32.xlu1 %v12915_v63, %s10720_s28  ;;  %1029 = vrot.lane.b32.xlu0 %v12905_v46, %s10720_s28  ;;  %v2571_v40 = vsel %vm2485_vm6, %v2442_v41, %v1438_v57  ;;  %v10250_v57 = vld [vmem:[%s16087_s4 + $0x60] sm:$0xff]  }
 0x334   :  { %6565 = vmatpush1.bf16.msra.mxu1 %v10244_v25 }
 0x335   :  { %v1598_v3 = vpop.permute.xlu1 %1597  ;;  %6566 = vmatprep.subr.bf16.mxu1 %v16103_v1 }
 0x336   :  { %v1596_v62 = vpop.permute.xlu0 %1595  ;;  %v2702_v4 = vsel %vm2614_vm7, %v2573_v27, %v1598_v3 }
 0x337   :  { %1189 = vrot.lane.b32.xlu1 %v12590_v61, %s10722_s30  ;;  %1187 = vrot.lane.b32.xlu0 %v12582_v5, %s10722_s30  ;;  %v10246_v5 = vld [vmem:[%s16087_s4 + $0x78] sm:$0xff]   ;;  %v2700_v18 = vsel %vm2614_vm7, %v2571_v40, %v1596_v62  ;;  %v10256_v40 = vld [vmem:[%s16087_s4 + $0x48] sm:$0xff]  }
 0x338   :  { %6567 = vmatpush2.bf16.msra.mxu1 %v10246_v5  ;;  %v13021_v5 = vld [vmem:[#allocation2 + $0x1b0] sm:$0xff]  }
 0x339   :  { %v1731_v55 = vpop.permute.xlu1 %1730  ;;  %6568 = vmatprep.subr.bf16.mxu1 %v16103_v1 }
 0x33a   :  { %v1729_v42 = vpop.permute.xlu0 %1728  ;;  %v2831_v48 = vsel %vm2743_vm8, %v2702_v4, %v1731_v55 }
 0x33b   :  { %1322 = vrot.lane.b32.xlu1 %v12650_v26, %s10723_s16  ;;  %1320 = vrot.lane.b32.xlu0 %v12590_v61, %s10723_s16  ;;  %v2829_v56 = vsel %vm2743_vm8, %v2700_v18, %v1729_v42  ;;  %v10248_v61 = vld [vmem:[%s16087_s4 + $0x70] sm:$0xff]  }
 0x33c   :  { %6569 = vmatpush2.bf16.msra.mxu1 %v10248_v61  ;;  %v10255_v42 = vld [vmem:[%s16087_s4 + $0x50] sm:$0xff]  }
 0x33d   :  { %v1864_v20 = vpop.permute.xlu1 %1863  ;;  %6570 = vmatprep.subr.bf16.mxu1 %v16103_v1  ;;  %v13030_v18 = vld [vmem:[#allocation3 + $0x80] sm:$0xff]  }
 0x33e   :  { %v2960_v52 = vsel %vm2872_vm9, %v2831_v48, %v1864_v20  ;;  %v1862_v38 = vpop.permute.xlu0 %1861  ;;  %v13032_v20 = vld [vmem:[#allocation3 + $0x8] sm:$0xff]  }
 0x33f   :  { %v2958_v6 = vsel %vm2872_vm9, %v2829_v56, %v1862_v38  ;;  %1455 = vrot.lane.b32.xlu1 %v12658_v50, %s10724_s19  ;;  %1453 = vrot.lane.b32.xlu0 %v12650_v26, %s10724_s19 }
 0x340   :  { %9932 = vmatprep.mubr.msk.bf16.mxu0 %vm3036_vm10, %v2958_v6  ;;  %6571 = vmatpush2.bf16.msra.mxu1 %v10249_v45 }
 0x341   :  { %v9910_v43 = vpop.f32.mrf.mxu0  ;;  %9933 = vmatmul.mubr.msk.bf16.gmra.mxu0 %vm3036_vm10, %v2960_v52  ;;  %v12970_v36 = vpop.permute.xlu1 %886  ;;  %6572 = vmatprep.subr.bf16.mxu1 %v16103_v1  ;;  %v10257_v52 = vld [vmem:[%s16087_s4 + $0x40] sm:$0xff]  }
 0x342   :  { %v3452_v14 = vadd.f32 %v12786_v12, %v9910_v43  ;;  %v12973_v11 = vpop.permute.xlu0 %884  ;;  %v2043_v56 = vsel %vm1905_vm2, %v12609_v39, %v12970_v36 }
 0x343   :  { %v3443_v8 = vpop.f32.mrf.mxu0  ;;  %1613 = vrot.lane.b32.xlu1 %v12884_v21, %s10725_s20  ;;  %1611 = vrot.lane.b32.xlu0 %v12872_v30, %s10725_s20  ;;  %v2040_v38 = vsel %vm1905_vm2, %v12603_v35, %v12973_v11 }
 0x344   :  { %v3776_v29 = vmax.f32 %v3452_v14, 0.0  ;;  %v3444_v60 = vadd.f32 %v12786_v12, %v3443_v8  ;;  %6573 = vmatpush2.bf16.msra.mxu1 %v10250_v57 }
 0x345   :  { %v9911_v47 = vpop.f32.mrf.mxu0  ;;  %v1020_v54 = vpop.permute.xlu1 %1019  ;;  %6574 = vmatprep.subr.bf16.mxu1 %v16103_v1 }
 0x346   :  { %v9590_v49 = vpack.c.bf16 %v3776_v29, %v3776_v29  ;;  %v3774_v53 = vmax.f32 %v3444_v60, 0.0  ;;  %v3455_v59 = vadd.f32 %v12786_v12, %v9911_v47  ;;  %v1018_v19 = vpop.permute.xlu0 %1017  ;;  %v2190_v6 = vsel %vm2098_vm3, %v2043_v56, %v1020_v54  ;;  %v13059_v60 = vld [vmem:[#allocation2 + $0x1b8] sm:$0xff]  }
 0x347   :  { %v3446_v24 = vpop.f32.mrf.mxu0  ;;  %1746 = vrot.lane.b32.xlu1 %v12978_v44, %s16142_s23  ;;  %1744 = vrot.lane.b32.xlu0 %v12884_v21, %s16142_s23  ;;  %v2188_v61 = vsel %vm2098_vm3, %v2040_v38, %v1018_v19 }
 0x348   :  { %4417 = vst.msk [vmem:[#allocation3 + $0xf8] sm:$0xf] %vm4354_vm11, %v9590_v49  ;;  %v9588_v37 = vpack.c.bf16 %v3774_v53, %v3774_v53  ;;  %v3777_v3 = vmax.f32 %v3455_v59, 0.0  ;;  %v3447_v62 = vadd.f32 %v12786_v12, %v3446_v24  ;;  %6575 = vmatpush2.bf16.msra.mxu1 %v10252_v58  ;;  %v13065_v53 = vld [vmem:[#allocation3 + $0x88] sm:$0xff]   ;;  %v13069_v24 = vld [vmem:[#allocation3 + $0x10] sm:$0xff]  }
 0x349   :  { %v1178_v2 = vpop.permute.xlu1 %1177  ;;  %6576 = vmatprep.subr.bf16.mxu1 %v16103_v1 }
 0x34a   :  { %4415 = vst.msk [vmem:[#allocation3 + $0xf0] sm:$0xf] %vm4354_vm11, %v9588_v37  ;;  %v9591_v25 = vpack.c.bf16 %v3777_v3, %v3777_v3  ;;  %v3775_v23 = vmax.f32 %v3447_v62, 0.0  ;;  %v1176_v0 = vpop.permute.xlu0 %1175  ;;  %v2319_v39 = vsel %vm2227_vm4, %v2190_v6, %v1178_v2 }
 0x34b   :  { %1879 = vrot.lane.b32.xlu1 %v12990_v32, %s16143_s27  ;;  %1877 = vrot.lane.b32.xlu0 %v12978_v44, %s16143_s27  ;;  %v2317_v36 = vsel %vm2227_vm4, %v2188_v61, %v1176_v0 }
 0x34c   :  { %4418 = vst.msk [vmem:[#allocation3 + $0xfc] sm:$0xf] %vm4354_vm11, %v9591_v25  ;;  %v9589_v10 = vpack.c.bf16 %v3775_v23, %v3775_v23  ;;  %6577 = vmatpush2.bf16.msra.mxu1 %v10255_v42 }
 0x34d   :  { %v1311_v55 = vpop.permute.xlu1 %1310  ;;  %6578 = vmatprep.subr.bf16.mxu1 %v16103_v1 }
 0x34e   :  { %4416 = vst.msk [vmem:[#allocation3 + $0xf4] sm:$0xf] %vm4354_vm11, %v9589_v10  ;;  %v1309_v33 = vpop.permute.xlu0 %1308  ;;  %v2448_v14 = vsel %vm2356_vm5, %v2319_v39, %v1311_v55 }
 0x34f   :  { %4990 = vrot.lane.b32.xlu1 %v13009_v9, %s10729_s24  ;;  %900 = vrot.lane.b32.xlu0 %v12915_v63, %s10721_s29  ;;  %v2446_v45 = vsel %vm2356_vm5, %v2317_v36, %v1309_v33  ;;  %v13102_v36 = vld [vmem:[#allocation2 + $0x230] sm:$0xff]  }
 0x350   :  { %6579 = vmatpush2.bf16.msra.mxu1 %v10256_v40 }
 0x351   :  { %v1444_v41 = vpop.permute.xlu1 %1443  ;;  %6580 = vmatprep.subr.bf16.mxu1 %v16103_v1 }
 0x352   :  { %v1442_v27 = vpop.permute.xlu0 %1441  ;;  %v2577_v35 = vsel %vm2485_vm6, %v2448_v14, %v1444_v41 }
 0x353   :  { %1033 = vrot.lane.b32.xlu1 %v13021_v5, %s10720_s28  ;;  %902 = vrot.lane.b32.xlu0 %v13021_v5, %s10721_s29  ;;  %v2575_v11 = vsel %vm2485_vm6, %v2446_v45, %v1442_v27  ;;  %v13085_v27 = vld [vmem:[#allocation3 + $0x40] sm:$0xff]   ;;  %v13108_v45 = vld [vmem:[#allocation2 + $0x238] sm:$0xff]  }
 0x354   :  { %6581 = vmatpush2.bf16.msra.mxu1 %v10257_v52 }
 0x355   :  { %v1602_v4 = vpop.permute.xlu1 %1601 }
 0x356   :  { %v1600_v48 = vpop.permute.xlu0 %1599  ;;  %v2706_v29 = vsel %vm2614_vm7, %v2577_v35, %v1602_v4 }
 0x357   :  { %5133 = vrot.lane.b32.xlu1 %v13030_v18, %s10730_s18  ;;  %4972 = vrot.lane.b32.xlu0 %v13032_v20, %s10729_s24  ;;  %v2704_v47 = vsel %vm2614_vm7, %v2575_v11, %v1600_v48 }
 0x359   :  { %v1735_v43 = vpop.permute.xlu1 %1734 }
 0x35a   :  { %v1733_v8 = vpop.permute.xlu0 %1732  ;;  %v2835_v54 = vsel %vm2743_vm8, %v2706_v29, %v1735_v43 }
 0x35b   :  { %1191 = vrot.lane.b32.xlu1 %v12650_v26, %s10722_s30  ;;  %1035 = vrot.lane.b32.xlu0 %v13059_v60, %s10720_s28  ;;  %v2833_v59 = vsel %vm2743_vm8, %v2704_v47, %v1733_v8 }
 0x35d   :  { %v1868_v49 = vpop.permute.xlu1 %1867 }
 0x35e   :  { %v2964_v26 = vsel %vm2872_vm9, %v2835_v54, %v1868_v49  ;;  %v1866_v19 = vpop.permute.xlu0 %1865 }
 0x35f   :  { %v2962_v57 = vsel %vm2872_vm9, %v2833_v59, %v1866_v19  ;;  %5281 = vrot.lane.b32.xlu1 %v13065_v53, %s10731_s0  ;;  %5105 = vrot.lane.b32.xlu0 %v13069_v24, %s10730_s18  ;;  %v13125_v19 = vld [vmem:[#allocation3 + $0x58] sm:$0xff]  }
 0x360   :  { %9936 = vmatprep.mubr.msk.bf16.mxu0 %vm3036_vm10, %v2962_v57 }
 0x361   :  { %v9914_v37 = vpop.f32.mrf.mxu0  ;;  %9937 = vmatmul.mubr.msk.bf16.gmra.mxu0 %vm3036_vm10, %v2964_v26  ;;  %v891_v3 = vpop.permute.xlu1 %890 }
 0x362   :  { %v3468_v62 = vadd.f32 %v12786_v12, %v9914_v37  ;;  %v889_v2 = vpop.permute.xlu0 %888  ;;  %v2049_v29 = vsel %vm1905_vm2, %v12677_v13, %v891_v3 }
 0x363   :  { %v3459_v25 = vpop.f32.mrf.mxu0  ;;  %1324 = vrot.lane.b32.xlu1 %v12658_v50, %s10723_s16  ;;  %1193 = vrot.lane.b32.xlu0 %v12658_v50, %s10722_s30 }
 0x364   :  { %v3780_v23 = vmax.f32 %v3468_v62, 0.0  ;;  %v3460_v0 = vadd.f32 %v12786_v12, %v3459_v25 }
 0x365   :  { %v9915_v58 = vpop.f32.mrf.mxu0  ;;  %v1024_v10 = vpop.permute.xlu1 %1023 }
 0x366   :  { %v9594_v55 = vpack.c.bf16 %v3780_v23, %v3780_v23  ;;  %v3778_v33 = vmax.f32 %v3460_v0, 0.0  ;;  %v3471_v42 = vadd.f32 %v12786_v12, %v9915_v58  ;;  %v1022_v41 = vpop.permute.xlu0 %1021  ;;  %v2194_v47 = vsel %vm2098_vm3, %v2049_v29, %v1024_v10  ;;  %v13137_v23 = vld [vmem:[#allocation3 + $0x18] sm:$0xff]  }
 0x367   :  { %v3462_v40 = vpop.f32.mrf.mxu0  ;;  %1326 = vrot.lane.b32.xlu1 %v12718_v16, %s10723_s16  ;;  %5263 = vrot.lane.b32.xlu0 %v13085_v27, %s10731_s0 }
 0x368   :  { %4421 = vst.msk [vmem:[#allocation3 + $0x108] sm:$0xf] %vm4354_vm11, %v9594_v55  ;;  %v9592_v4 = vpack.c.bf16 %v3778_v33, %v3778_v33  ;;  %v3781_v48 = vmax.f32 %v3471_v42, 0.0  ;;  %v3463_v56 = vadd.f32 %v12786_v12, %v3462_v40 }
 0x369   :  { %v1182_v50 = vpop.permute.xlu1 %1181 }
 0x36a   :  { %4419 = vst.msk [vmem:[#allocation3 + $0x100] sm:$0xf] %vm4354_vm11, %v9592_v4  ;;  %v9595_v52 = vpack.c.bf16 %v3781_v48, %v3781_v48  ;;  %v3779_v38 = vmax.f32 %v3463_v56, 0.0  ;;  %v1180_v6 = vpop.permute.xlu0 %1179  ;;  %v13151_v48 = vld [vmem:[#allocation3 + $0x90] sm:$0xff]  }
 0x36b   :  { %1459 = vrot.lane.b32.xlu1 %v12726_v34, %s10724_s19  ;;  %1457 = vrot.lane.b32.xlu0 %v12718_v16, %s10724_s19 }
 0x36c   :  { %4422 = vst.msk [vmem:[#allocation3 + $0x10c] sm:$0xf] %vm4354_vm11, %v9595_v52  ;;  %v9593_v61 = vpack.c.bf16 %v3779_v38, %v3779_v38 }
 0x36d   :  { %v1315_v39 = vpop.permute.xlu1 %1314 }
 0x36e   :  { %4420 = vst.msk [vmem:[#allocation3 + $0x104] sm:$0xf] %vm4354_vm11, %v9593_v61  ;;  %v1313_v43 = vpop.permute.xlu0 %1312  ;;  %v13158_v61 = vld [vmem:[#allocation3 + $0x60] sm:$0xff]  }
 0x36f   :  { %1617 = vrot.lane.b32.xlu1 %v12990_v32, %s10725_s20  ;;  %1615 = vrot.lane.b32.xlu0 %v12978_v44, %s10725_s20  ;;  %v2046_v44 = vsel %vm1905_vm2, %v12671_v31, %v889_v2 }
 0x370   :  { %v2192_v54 = vsel %vm2098_vm3, %v2046_v44, %v1022_v41  ;;  %v13148_v41 = vld [vmem:[#allocation3 + $0x48] sm:$0xff]  }
 0x371   :  { %v1448_v14 = vpop.permute.xlu1 %1447  ;;  %v2321_v59 = vsel %vm2227_vm4, %v2192_v54, %v1180_v6 }
 0x372   :  { %v1446_v8 = vpop.permute.xlu0 %1445  ;;  %v2450_v57 = vsel %vm2356_vm5, %v2321_v59, %v1313_v43  ;;  %v13168_v59 = vld [vmem:[#allocation2 + $0x1c0] sm:$0xff]  }
 0x373   :  { %1750 = vrot.lane.b32.xlu1 %v13102_v36, %s16142_s23  ;;  %1748 = vrot.lane.b32.xlu0 %v12990_v32, %s16142_s23  ;;  %v2323_v32 = vsel %vm2227_vm4, %v2194_v47, %v1182_v50  ;;  %v2579_v37 = vsel %vm2485_vm6, %v2450_v57, %v1446_v8 }
 0x374   :  { %v2452_v13 = vsel %vm2356_vm5, %v2323_v32, %v1315_v39 }
 0x375   :  { %v1606_v35 = vpop.permute.xlu1 %1605  ;;  %v2581_v31 = vsel %vm2485_vm6, %v2452_v13, %v1448_v14 }
 0x376   :  { %v1604_v11 = vpop.permute.xlu0 %1603  ;;  %v2710_v3 = vsel %vm2614_vm7, %v2581_v31, %v1606_v35 }
 0x377   :  { %1883 = vrot.lane.b32.xlu1 %v13108_v45, %s16143_s27  ;;  %1881 = vrot.lane.b32.xlu0 %v13102_v36, %s16143_s27  ;;  %v2708_v62 = vsel %vm2614_vm7, %v2579_v37, %v1604_v11 }
 0x379   :  { %v1739_v49 = vpop.permute.xlu1 %1738 }
 0x37a   :  { %v1737_v26 = vpop.permute.xlu0 %1736  ;;  %v2839_v2 = vsel %vm2743_vm8, %v2710_v3, %v1739_v49  ;;  %v13182_v3 = vld [vmem:[#allocation2 + $0x1c8] sm:$0xff]  }
 0x37b   :  { %4974 = vrot.lane.b32.xlu1 %v13069_v24, %s10729_s24  ;;  %4992 = vrot.lane.b32.xlu0 %v13125_v19, %s10729_s24  ;;  %v2837_v0 = vsel %vm2743_vm8, %v2708_v62, %v1737_v26 }
 0x37d   :  { %v1872_v25 = vpop.permute.xlu1 %1871 }
 0x37e   :  { %v2968_v58 = vsel %vm2872_vm9, %v2839_v2, %v1872_v25  ;;  %v1870_v10 = vpop.permute.xlu0 %1869  ;;  %v13186_v2 = vld [vmem:[#allocation3 + $0x98] sm:$0xff]  }
 0x37f   :  { %v2966_v55 = vsel %vm2872_vm9, %v2837_v0, %v1870_v10  ;;  %5107 = vrot.lane.b32.xlu1 %v13137_v23, %s10730_s18  ;;  %5135 = vrot.lane.b32.xlu0 %v13065_v53, %s10730_s18  ;;  %v13188_v0 = vld [vmem:[#allocation3 + $0x20] sm:$0xff]  }
 0x380   :  { %9940 = vmatprep.mubr.msk.bf16.mxu0 %vm3036_vm10, %v2966_v55 }
 0x381   :  { %v9918_v33 = vpop.f32.mrf.mxu0  ;;  %9941 = vmatmul.mubr.msk.bf16.gmra.mxu0 %vm3036_vm10, %v2968_v58  ;;  %v895_v42 = vpop.permute.xlu1 %894 }
 0x382   :  { %v3484_v40 = vadd.f32 %v12786_v12, %v9918_v33  ;;  %v893_v4 = vpop.permute.xlu0 %892  ;;  %v2055_v58 = vsel %vm1905_vm2, %v12745_v22, %v895_v42 }
 0x383   :  { %v3475_v56 = vpop.f32.mrf.mxu0  ;;  %5265 = vrot.lane.b32.xlu1 %v13148_v41, %s10731_s0  ;;  %5283 = vrot.lane.b32.xlu0 %v13151_v48, %s10731_s0 }
 0x384   :  { %v3784_v50 = vmax.f32 %v3484_v40, 0.0  ;;  %v3476_v52 = vadd.f32 %v12786_v12, %v3475_v56 }
 0x385   :  { %v9919_v38 = vpop.f32.mrf.mxu0  ;;  %v1028_v6 = vpop.permute.xlu1 %1027 }
 0x386   :  { %v9598_v39 = vpack.c.bf16 %v3784_v50, %v3784_v50  ;;  %v3782_v43 = vmax.f32 %v3476_v52, 0.0  ;;  %v3487_v14 = vadd.f32 %v12786_v12, %v9919_v38  ;;  %v1026_v8 = vpop.permute.xlu0 %1025  ;;  %v2198_v10 = vsel %vm2098_vm3, %v2055_v58, %v1028_v6 }
 0x387   :  { %v3478_v35 = vpop.f32.mrf.mxu0  ;;  %4994 = vrot.lane.b32.xlu1 %v13158_v61, %s10729_s24  ;;  %904 = vrot.lane.b32.xlu0 %v13059_v60, %s10721_s29 }
 0x388   :  { %4425 = vst.msk [vmem:[#allocation3 + $0x118] sm:$0xf] %vm4354_vm11, %v9598_v39  ;;  %v9596_v11 = vpack.c.bf16 %v3782_v43, %v3782_v43  ;;  %v3785_v29 = vmax.f32 %v3487_v14, 0.0  ;;  %v3479_v44 = vadd.f32 %v12786_v12, %v3478_v35 }
 0x389   :  { %v1186_v47 = vpop.permute.xlu1 %1185 }
 0x38a   :  { %4423 = vst.msk [vmem:[#allocation3 + $0x110] sm:$0xf] %vm4354_vm11, %v9596_v11  ;;  %v9599_v54 = vpack.c.bf16 %v3785_v29, %v3785_v29  ;;  %v3783_v32 = vmax.f32 %v3479_v44, 0.0  ;;  %v1184_v49 = vpop.permute.xlu0 %1183  ;;  %v2327_v33 = vsel %vm2227_vm4, %v2198_v10, %v1186_v47 }
 0x38b   :  { %1037 = vrot.lane.b32.xlu1 %v13168_v59, %s10720_s28  ;;  %906 = vrot.lane.b32.xlu0 %v13168_v59, %s10721_s29 }
 0x38c   :  { %4426 = vst.msk [vmem:[#allocation3 + $0x11c] sm:$0xf] %vm4354_vm11, %v9599_v54  ;;  %v9597_v13 = vpack.c.bf16 %v3783_v32, %v3783_v32 }
 0x38d   :  { %v1319_v26 = vpop.permute.xlu1 %1318 }
 0x38e   :  { %4424 = vst.msk [vmem:[#allocation3 + $0x114] sm:$0xf] %vm4354_vm11, %v9597_v13  ;;  %v1317_v57 = vpop.permute.xlu0 %1316  ;;  %v2456_v22 = vsel %vm2356_vm5, %v2327_v33, %v1319_v26 }
 0x38f   :  { %5137 = vrot.lane.b32.xlu1 %v13151_v48, %s10730_s18  ;;  %4976 = vrot.lane.b32.xlu0 %v13137_v23, %s10729_s24 }
 0x391   :  { %v1452_v31 = vpop.permute.xlu1 %1451 }
 0x392   :  { %v1450_v37 = vpop.permute.xlu0 %1449  ;;  %v2585_v52 = vsel %vm2485_vm6, %v2456_v22, %v1452_v31 }
 0x393   :  { %1195 = vrot.lane.b32.xlu1 %v12718_v16, %s10722_s30  ;;  %1039 = vrot.lane.b32.xlu0 %v13182_v3, %s10720_s28  ;;  %v2052_v16 = vsel %vm1905_vm2, %v12739_v15, %v893_v4 }
 0x394   :  { %v2196_v55 = vsel %vm2098_vm3, %v2052_v16, %v1026_v8 }
 0x395   :  { %v1610_v62 = vpop.permute.xlu1 %1609  ;;  %v2325_v56 = vsel %vm2227_vm4, %v2196_v55, %v1184_v49 }
 0x396   :  { %v1608_v25 = vpop.permute.xlu0 %1607  ;;  %v2454_v50 = vsel %vm2356_vm5, %v2325_v56, %v1317_v57  ;;  %v2714_v4 = vsel %vm2614_vm7, %v2585_v52, %v1610_v62  ;;  %v13253_v52 = vld [vmem:[#allocation3 + $0x68] sm:$0xff]  }
 0x397   :  { %5285 = vrot.lane.b32.xlu1 %v13186_v2, %s10731_s0  ;;  %5109 = vrot.lane.b32.xlu0 %v13188_v0, %s10730_s18  ;;  %v2583_v15 = vsel %vm2485_vm6, %v2454_v50, %v1450_v37 }
 0x398   :  { %v2712_v38 = vsel %vm2614_vm7, %v2583_v15, %v1608_v25  ;;  %v13231_v25 = vld [vmem:[#allocation2 + $0x240] sm:$0xff]   ;;  %v13259_v15 = vld [vmem:[#allocation3 + $0x28] sm:$0xff]  }
 0x399   :  { %v1743_v40 = vpop.permute.xlu1 %1742 }
 0x39a   :  { %v1741_v42 = vpop.permute.xlu0 %1740  ;;  %v2843_v6 = vsel %vm2743_vm8, %v2714_v4, %v1743_v40  ;;  %v13240_v40 = vld [vmem:[#allocation2 + $0x248] sm:$0xff]  }
 0x39b   :  { %1328 = vrot.lane.b32.xlu1 %v12726_v34, %s10723_s16  ;;  %1197 = vrot.lane.b32.xlu0 %v12726_v34, %s10722_s30  ;;  %v2841_v43 = vsel %vm2743_vm8, %v2712_v38, %v1741_v42  ;;  %v10267_v42 = vld [vmem:[%s16087_s4 + $0x88] sm:$0xff]  }
 0x39c   :  { %9976 = vmatprep.subr.bf16.mxu0 %v10267_v42 }
 0x39d   :  { %v1876_v39 = vpop.permute.xlu1 %1875  ;;  %9977 = vmatpush3.bf16.msra.mxu0 %v10267_v42 }
 0x39e   :  { %v2972_v14 = vsel %vm2872_vm9, %v2843_v6, %v1876_v39  ;;  %v1874_v8 = vpop.permute.xlu0 %1873 }
 0x39f   :  { %v2970_v35 = vsel %vm2872_vm9, %v2841_v43, %v1874_v8  ;;  %1330 = vrot.lane.b32.xlu1 %v12791_v28, %s10723_s16  ;;  %5267 = vrot.lane.b32.xlu0 %v13009_v9, %s10731_s0 }
 0x3a0   :  { %9944 = vmatprep.mubr.msk.bf16.mxu0 %vm3036_vm10, %v2970_v35 }
 0x3a1   :  { %v9922_v34 = vpop.f32.mrf.mxu0  ;;  %9945 = vmatmul.mubr.msk.bf16.gmra.mxu0 %vm3036_vm10, %v2972_v14  ;;  %v899_v11 = vpop.permute.xlu1 %898 }
 0x3a2   :  { %v3500_v29 = vadd.f32 %v12786_v12, %v9922_v34  ;;  %v897_v44 = vpop.permute.xlu0 %896  ;;  %v2061_v38 = vsel %vm1905_vm2, %v12818_v51, %v899_v11  ;;  %v13274_v11 = vld [vmem:[#allocation3 + $0xa0] sm:$0xff]  }
 0x3a3   :  { %v3491_v47 = vpop.f32.mrf.mxu0  ;;  %1463 = vrot.lane.b32.xlu1 %v12799_v17, %s10724_s19  ;;  %1461 = vrot.lane.b32.xlu0 %v12791_v28, %s10724_s19  ;;  %v2058_v6 = vsel %vm1905_vm2, %v12812_v7, %v897_v44 }
 0x3a4   :  { %v3788_v54 = vmax.f32 %v3500_v29, 0.0  ;;  %v3492_v32 = vadd.f32 %v12786_v12, %v3491_v47 }
 0x3a5   :  { %v9923_v49 = vpop.f32.mrf.mxu0  ;;  %v1032_v13 = vpop.permute.xlu1 %1031 }
 0x3a6   :  { %v9602_v26 = vpack.c.bf16 %v3788_v54, %v3788_v54  ;;  %v3786_v57 = vmax.f32 %v3492_v32, 0.0  ;;  %v3503_v31 = vadd.f32 %v12786_v12, %v9923_v49  ;;  %v1030_v37 = vpop.permute.xlu0 %1029  ;;  %v2202_v39 = vsel %vm2098_vm3, %v2061_v38, %v1032_v13  ;;  %v13286_v13 = vld [vmem:[#allocation3 + $0x70] sm:$0xff]  }
 0x3a7   :  { %v3494_v62 = vpop.f32.mrf.mxu0  ;;  %1621 = vrot.lane.b32.xlu1 %v13108_v45, %s10725_s20  ;;  %1619 = vrot.lane.b32.xlu0 %v13102_v36, %s10725_s20  ;;  %v2200_v43 = vsel %vm2098_vm3, %v2058_v6, %v1030_v37 }
 0x3a8   :  { %4429 = vst.msk [vmem:[#allocation3 + $0x128] sm:$0xf] %vm4354_vm11, %v9602_v26  ;;  %v9600_v17 = vpack.c.bf16 %v3786_v57, %v3786_v57  ;;  %v3789_v58 = vmax.f32 %v3503_v31, 0.0  ;;  %v3495_v16 = vadd.f32 %v12786_v12, %v3494_v62 }
 0x3a9   :  { %v1190_v28 = vpop.permute.xlu1 %1189 }
 0x3aa   :  { %4427 = vst.msk [vmem:[#allocation3 + $0x120] sm:$0xf] %vm4354_vm11, %v9600_v17  ;;  %v9603_v10 = vpack.c.bf16 %v3789_v58, %v3789_v58  ;;  %v3787_v55 = vmax.f32 %v3495_v16, 0.0  ;;  %v1188_v33 = vpop.permute.xlu0 %1187  ;;  %v2331_v14 = vsel %vm2227_vm4, %v2202_v39, %v1190_v28  ;;  %v13300_v58 = vld [vmem:[%s16086_s3] ss:$0 sm:$0xff] }
 0x3ab   :  { %1754 = vrot.lane.b32.xlu1 %v13231_v25, %s16142_s23  ;;  %1752 = vrot.lane.b32.xlu0 %v13108_v45, %s16142_s23  ;;  %v2329_v35 = vsel %vm2227_vm4, %v2200_v43, %v1188_v33 }
 0x3ac   :  { %4430 = vst.msk [vmem:[#allocation3 + $0x12c] sm:$0xf] %vm4354_vm11, %v9603_v10  ;;  %v9601_v56 = vpack.c.bf16 %v3787_v55, %v3787_v55  ;;  %v13305_v55 = vld [vmem:[#allocation2 + $0x1d0] sm:$0xff]  }
 0x3ad   :  { %v1323_v12 = vpop.permute.xlu1 %1322 }
 0x3ae   :  { %4428 = vst.msk [vmem:[#allocation3 + $0x124] sm:$0xf] %vm4354_vm11, %v9601_v56  ;;  %v1321_v36 = vpop.permute.xlu0 %1320  ;;  %v2460_v51 = vsel %vm2356_vm5, %v2331_v14, %v1323_v12 }
 0x3af   :  { %1887 = vrot.lane.b32.xlu1 %v13240_v40, %s16143_s27  ;;  %1885 = vrot.lane.b32.xlu0 %v13231_v25, %s16143_s27  ;;  %v2458_v29 = vsel %vm2356_vm5, %v2329_v35, %v1321_v36 }
 0x3b1   :  { %v1456_v22 = vpop.permute.xlu1 %1455 }
 0x3b2   :  { %v1454_v50 = vpop.permute.xlu0 %1453  ;;  %v2589_v7 = vsel %vm2485_vm6, %v2460_v51, %v1456_v22  ;;  %v13324_v51 = vld [vmem:[#allocation2 + $0x200] sm:$0xff]  }
 0x3b3   :  { %4978 = vrot.lane.b32.xlu1 %v13188_v0, %s10729_s24  ;;  %4996 = vrot.lane.b32.xlu0 %v13253_v52, %s10729_s24  ;;  %v2587_v44 = vsel %vm2485_vm6, %v2458_v29, %v1454_v50  ;;  %v13329_v29 = vld [vmem:[#allocation2 + $0x1d8] sm:$0xff]  }
 0x3b5   :  { %v1614_v45 = vpop.permute.xlu1 %1613 }
 0x3b6   :  { %v1612_v4 = vpop.permute.xlu0 %1611  ;;  %v2718_v47 = vsel %vm2614_vm7, %v2589_v7, %v1614_v45 }
 0x3b7   :  { %5111 = vrot.lane.b32.xlu1 %v13259_v15, %s10730_s18  ;;  %5139 = vrot.lane.b32.xlu0 %v13186_v2, %s10730_s18  ;;  %v2716_v54 = vsel %vm2614_vm7, %v2587_v44, %v1612_v4  ;;  %v13333_v44 = vld [vmem:[#allocation3 + $0xa8] sm:$0xff]  }
 0x3b9   :  { %v1747_v8 = vpop.permute.xlu1 %1746 }
 0x3ba   :  { %v1745_v34 = vpop.permute.xlu0 %1744  ;;  %v2847_v32 = vsel %vm2743_vm8, %v2718_v47, %v1747_v8 }
 0x3bb   :  { %5269 = vrot.lane.b32.xlu1 %v13125_v19, %s10731_s0  ;;  %5287 = vrot.lane.b32.xlu0 %v13274_v11, %s10731_s0  ;;  %v2845_v26 = vsel %vm2743_vm8, %v2716_v54, %v1745_v34  ;;  %v13336_v54 = vld [vmem:[#allocation3 + $0x30] sm:$0xff]  }
 0x3bd   :  { %v1880_v49 = vpop.permute.xlu1 %1879 }
 0x3be   :  { %v2976_v57 = vsel %vm2872_vm9, %v2847_v32, %v1880_v49  ;;  %v1878_v31 = vpop.permute.xlu0 %1877 }
 0x3bf   :  { %v2974_v37 = vsel %vm2872_vm9, %v2845_v26, %v1878_v31  ;;  %4998 = vrot.lane.b32.xlu1 %v13286_v13, %s10729_s24  ;;  %908 = vrot.lane.b32.xlu0 %v13182_v3, %s10721_s29 }
 0x3c0   :  { %9948 = vmatprep.mubr.msk.bf16.mxu0 %vm3036_vm10, %v2974_v37  ;;  %v13353_v37 = vld [vmem:[#allocation2 + $0x208] sm:$0xff]  }
 0x3c1   :  { %v9926_v62 = vpop.f32.mrf.mxu0  ;;  %9949 = vmatmul.mubr.msk.bf16.gmra.mxu0 %vm3036_vm10, %v2976_v57  ;;  %v4991_v17 = vpop.permute.xlu1 %4990 }
 0x3c2   :  { %v3516_v16 = vadd.f32 %v13300_v58, %v9926_v62  ;;  %v13303_v28 = vpop.permute.xlu0 %900  ;;  %v13342_v32 = vsel %vm5505_vm12, %v13148_v41, %v4991_v17 }
 0x3c3   :  { %v3507_v10 = vpop.f32.mrf.mxu0  ;;  %1041 = vrot.lane.b32.xlu1 %v13305_v55, %s10720_s28  ;;  %910 = vrot.lane.b32.xlu0 %v13305_v55, %s10721_s29 }
 0x3c4   :  { %v3792_v33 = vmax.f32 %v3516_v16, 0.0  ;;  %v3508_v56 = vadd.f32 %v13300_v58, %v3507_v10  ;;  %v10251_v16 = vld [vmem:[#allocation3] sm:$0xff]  }
 0x3c5   :  { %v9927_v12 = vpop.f32.mrf.mxu0  ;;  %v13312_v36 = vpop.permute.xlu1 %1033 }
 0x3c6   :  { %v9606_v22 = vpack.c.bf16 %v3792_v33, %v3792_v33  ;;  %v3790_v42 = vmax.f32 %v3508_v56, 0.0  ;;  %v3519_v50 = vadd.f32 %v13300_v58, %v9927_v12  ;;  %v903_v45 = vpop.permute.xlu0 %902 }
 0x3c7   :  { %v3510_v4 = vpop.f32.mrf.mxu0  ;;  %5141 = vrot.lane.b32.xlu1 %v13274_v11, %s10730_s18  ;;  %4980 = vrot.lane.b32.xlu0 %v13259_v15, %s10729_s24 }
 0x3c8   :  { %4433 = vst.msk [vmem:[#allocation3 + $0x138] sm:$0xf] %vm4354_vm11, %v9606_v22  ;;  %v9604_v38 = vpack.c.bf16 %v3790_v42, %v3790_v42  ;;  %v3793_v6 = vmax.f32 %v3519_v50, 0.0  ;;  %v3511_v39 = vadd.f32 %v13300_v58, %v3510_v4  ;;  %v13372_v4 = vld [vmem:[#allocation2 + $0x250] sm:$0xff]  }
 0x3c9   :  { %v13321_v43 = vpop.permute.xlu1 %5133 }
 0x3ca   :  { %4431 = vst.msk [vmem:[#allocation3 + $0x130] sm:$0xf] %vm4354_vm11, %v9604_v38  ;;  %v9607_v14 = vpack.c.bf16 %v3793_v6, %v3793_v6  ;;  %v3791_v8 = vmax.f32 %v3511_v39, 0.0  ;;  %v4973_v35 = vpop.permute.xlu0 %4972  ;;  %v6047_v26 = vsel %vm5698_vm13, %v13342_v32, %v13321_v43 }
 0x3cb   :  { %1199 = vrot.lane.b32.xlu1 %v13324_v51, %s10722_s30  ;;  %1043 = vrot.lane.b32.xlu0 %v13329_v29, %s10720_s28  ;;  %v5508_v10 = vsel %vm5505_vm12, %v10251_v16, %v4973_v35 }
 0x3cc   :  { %4434 = vst.msk [vmem:[#allocation3 + $0x13c] sm:$0xf] %vm4354_vm11, %v9607_v14  ;;  %v9605_v34 = vpack.c.bf16 %v3791_v8, %v3791_v8  ;;  %v2067_v14 = vsel %vm1905_vm2, %v12915_v63, %v903_v45 }
 0x3cd   :  { %v1192_v7 = vpop.permute.xlu1 %1191 }
 0x3ce   :  { %4432 = vst.msk [vmem:[#allocation3 + $0x134] sm:$0xf] %vm4354_vm11, %v9605_v34  ;;  %v1036_v47 = vpop.permute.xlu0 %1035 }
 0x3cf   :  { %5289 = vrot.lane.b32.xlu1 %v13333_v44, %s10731_s0  ;;  %5113 = vrot.lane.b32.xlu0 %v13336_v54, %s10730_s18  ;;  %v2206_v34 = vsel %vm2098_vm3, %v2067_v14, %v1036_v47 }
 0x3d1   :  { %v13346_v49 = vpop.permute.xlu1 %5281 }
 0x3d2   :  { %v5106_v57 = vpop.permute.xlu0 %5105  ;;  %v6125_v31 = vsel %vm5827_vm14, %v6047_v26, %v13346_v49 }
 0x3d3   :  { %6582 = vmatprep.mubr.bf16.mxu1 %v6125_v31  ;;  %1332 = vrot.lane.b32.xlu1 %v13353_v37, %s10723_s16  ;;  %v5700_v56 = vsel %vm5698_vm13, %v5508_v10, %v5106_v57 }
 0x3d4   :  { %1201 = vrot.lane.b32.xlu0 %v13353_v37, %s10722_s30 }
 0x3d5   :  { %v1325_v62 = vpop.permute.xlu1 %1324 }
 0x3d6   :  { %v1194_v17 = vpop.permute.xlu0 %1193 }
 0x3d7   :  { %1334 = vrot.lane.b32.xlu1 %v12872_v30, %s10723_s16 }
 0x3d8   :  { %5271 = vrot.lane.b32.xlu0 %v13158_v61, %s10731_s0 }
 0x3d9   :  { %v1327_v33 = vpop.permute.xlu1 %1326 }
 0x3da   :  { %v5264_v12 = vpop.permute.xlu0 %5263 }
 0x3db   :  { %1467 = vrot.lane.b32.xlu1 %v12884_v21, %s10724_s19  ;;  %v5829_v22 = vsel %vm5827_vm14, %v5700_v56, %v5264_v12  ;;  %v2064_v21 = vsel %vm1905_vm2, %v12905_v46, %v13303_v28 }
 0x3dc   :  { %1465 = vrot.lane.b32.xlu0 %v12872_v30, %s10724_s19  ;;  %6583 = vmatmul.mubr.bf16.vlgmr.msra.gmra.mxu1 %v5829_v22  ;;  %v2204_v8 = vsel %vm2098_vm3, %v2064_v21, %v13312_v36  ;;  %v2335_v36 = vsel %vm2227_vm4, %v2206_v34, %v1194_v17 }
 0x3dd   :  { %v1460_v42 = vpop.permute.xlu1 %1459  ;;  %v2333_v26 = vsel %vm2227_vm4, %v2204_v8, %v1192_v7  ;;  %v2464_v31 = vsel %vm2356_vm5, %v2335_v36, %v1327_v33 }
 0x3de   :  { %v1458_v50 = vpop.permute.xlu0 %1457  ;;  %v2462_v63 = vsel %vm2356_vm5, %v2333_v26, %v1325_v62  ;;  %v2593_v7 = vsel %vm2485_vm6, %v2464_v31, %v1460_v42 }
 0x3df   :  { %1625 = vrot.lane.b32.xlu1 %v13240_v40, %s10725_s20  ;;  %v2591_v12 = vsel %vm2485_vm6, %v2462_v63, %v1458_v50 }
 0x3e0   :  { %1623 = vrot.lane.b32.xlu0 %v13231_v25, %s10725_s20  ;;  %v13386_v25 = vld [vmem:[#allocation2 + $0x258] sm:$0xff]  }
 0x3e1   :  { %v9930_v38 = vpop.f32.mrf.mxu0  ;;  %v1618_v6 = vpop.permute.xlu1 %1617 }
 0x3e2   :  { %v3532_v39 = vadd.f32 %v13300_v58, %v9930_v38  ;;  %v1616_v30 = vpop.permute.xlu0 %1615 }
 0x3e3   :  { %v3523_v35 = vpop.f32.mrf.mxu0  ;;  %1758 = vrot.lane.b32.xlu1 %v13372_v4, %s16142_s23  ;;  %v2720_v38 = vsel %vm2614_vm7, %v2591_v12, %v1616_v30 }
 0x3e4   :  { %v3796_v46 = vmax.f32 %v3532_v39, 0.0  ;;  %v3524_v28 = vadd.f32 %v13300_v58, %v3523_v35  ;;  %1756 = vrot.lane.b32.xlu0 %v13240_v40, %s16142_s23  ;;  %v2722_v40 = vsel %vm2614_vm7, %v2593_v7, %v1618_v6  ;;  %v13411_v35 = vld [vmem:[#allocation3 + $0x78] sm:$0xff]  }
 0x3e5   :  { %v9931_v45 = vpop.f32.mrf.mxu0  ;;  %v1751_v57 = vpop.permute.xlu1 %1750 }
 0x3e6   :  { %v9610_v16 = vpack.c.bf16 %v3796_v46, %v3796_v46  ;;  %v3794_v10 = vmax.f32 %v3524_v28, 0.0  ;;  %v3535_v47 = vadd.f32 %v13300_v58, %v9931_v45  ;;  %v1749_v56 = vpop.permute.xlu0 %1748  ;;  %v2851_v42 = vsel %vm2743_vm8, %v2722_v40, %v1751_v57  ;;  %v13421_v46 = vld [vmem:[#allocation3 + $0x38] sm:$0xff]   ;;  %v13430_v45 = vld [vmem:[#allocation3 + $0xb0] sm:$0xff]  }
 0x3e7   :  { %v3526_v22 = vpop.f32.mrf.mxu0  ;;  %1891 = vrot.lane.b32.xlu1 %v13386_v25, %s16143_s27  ;;  %v2849_v39 = vsel %vm2743_vm8, %v2720_v38, %v1749_v56 }
 0x3e8   :  { %4437 = vst.msk [vmem:[#allocation3 + $0x148] sm:$0xf] %vm4354_vm11, %v9610_v16  ;;  %v9608_v62 = vpack.c.bf16 %v3794_v10, %v3794_v10  ;;  %v3797_v17 = vmax.f32 %v3535_v47, 0.0  ;;  %v3527_v33 = vadd.f32 %v13300_v58, %v3526_v22  ;;  %1889 = vrot.lane.b32.xlu0 %v13372_v4, %s16143_s27  ;;  %v13457_v22 = vld [vmem:[#allocation2 + $0x1e0] sm:$0xff]  }
 0x3e9   :  { %v1884_v50 = vpop.permute.xlu1 %1883 }
 0x3ea   :  { %4435 = vst.msk [vmem:[#allocation3 + $0x140] sm:$0xf] %vm4354_vm11, %v9608_v62  ;;  %v9611_v21 = vpack.c.bf16 %v3797_v17, %v3797_v17  ;;  %v3795_v14 = vmax.f32 %v3527_v33, 0.0  ;;  %v2980_v6 = vsel %vm2872_vm9, %v2851_v42, %v1884_v50  ;;  %v1882_v8 = vpop.permute.xlu0 %1881  ;;  %v10595_v50 = vld [vmem:[#allocation2 + $0x210] sm:$0xff]  }
 0x3eb   :  { %v2978_v34 = vsel %vm2872_vm9, %v2849_v39, %v1882_v8  ;;  %4982 = vrot.lane.b32.xlu1 %v13336_v54, %s10729_s24 }
 0x3ec   :  { %4438 = vst.msk [vmem:[#allocation3 + $0x14c] sm:$0xf] %vm4354_vm11, %v9611_v21  ;;  %v9609_v30 = vpack.c.bf16 %v3795_v14, %v3795_v14  ;;  %5000 = vrot.lane.b32.xlu0 %v13411_v35, %s10729_s24  ;;  %9952 = vmatprep.mubr.msk.bf16.mxu0 %vm3036_vm10, %v2978_v34  ;;  %v13476_v14 = vld [vmem:[#allocation2 + $0x1e8] sm:$0xff]  }
 0x3ed   :  { %9953 = vmatmul.mubr.msk.bf16.gmra.mxu0 %vm3036_vm10, %v2980_v6  ;;  %v4975_v26 = vpop.permute.xlu1 %4974  ;;  %v13480_v34 = vld [vmem:[#allocation3 + $0xb8] sm:$0xff]  }
 0x3ee   :  { %4436 = vst.msk [vmem:[#allocation3 + $0x144] sm:$0xf] %vm4354_vm11, %v9609_v30  ;;  %v4993_v28 = vpop.permute.xlu0 %4992  ;;  %v5511_v57 = vsel %vm5505_vm12, %v13032_v20, %v4975_v26 }
 0x3ef   :  { %5115 = vrot.lane.b32.xlu1 %v13421_v46, %s10730_s18  ;;  %v13440_v31 = vsel %vm5505_vm12, %v13009_v9, %v4993_v28 }
 0x3f0   :  { %5143 = vrot.lane.b32.xlu0 %v13333_v44, %s10730_s18 }
 0x3f1   :  { %v5108_v63 = vpop.permute.xlu1 %5107 }
 0x3f2   :  { %v13428_v36 = vpop.permute.xlu0 %5135  ;;  %v5702_v16 = vsel %vm5698_vm13, %v5511_v57, %v5108_v63 }
 0x3f3   :  { %5273 = vrot.lane.b32.xlu1 %v13253_v52, %s10731_s0  ;;  %v6048_v47 = vsel %vm5698_vm13, %v13440_v31, %v13428_v36 }
 0x3f4   :  { %5291 = vrot.lane.b32.xlu0 %v13430_v45, %s10731_s0 }
 0x3f5   :  { %v5266_v10 = vpop.permute.xlu1 %5265 }
 0x3f6   :  { %v13446_v56 = vpop.permute.xlu0 %5283  ;;  %v5832_v7 = vsel %vm5827_vm14, %v5702_v16, %v5266_v10 }
 0x3f7   :  { %5002 = vrot.lane.b32.xlu1 %v13030_v18, %s10729_s24  ;;  %v6127_v20 = vsel %vm5827_vm14, %v6048_v47, %v13446_v56 }
 0x3f8   :  { %912 = vrot.lane.b32.xlu0 %v13329_v29, %s10721_s29  ;;  %6590 = vmatprep.mubr.bf16.mxu1 %v6127_v20 }
 0x3f9   :  { %6591 = vmatmul.mubr.bf16.gmra.mxu1 %v5832_v7  ;;  %v4995_v9 = vpop.permute.xlu1 %4994 }
 0x3fa   :  { %v13455_v12 = vpop.permute.xlu0 %904  ;;  %v13487_v16 = vsel %vm5505_vm12, %v13125_v19, %v4995_v9 }
 0x3fb   :  { %1045 = vrot.lane.b32.xlu1 %v13457_v22, %s10720_s28 }
 0x3fc   :  { %914 = vrot.lane.b32.xlu0 %v13457_v22, %s10721_s29 }
 0x3fd   :  { %v13463_v18 = vpop.permute.xlu1 %1037 }
 0x3fe   :  { %v13465_v40 = vpop.permute.xlu0 %906 }
 0x3ff   :  { %5145 = vrot.lane.b32.xlu1 %v13430_v45, %s10730_s18 }
 0x400   :  { %4984 = vrot.lane.b32.xlu0 %v13421_v46, %s10729_s24 }
 0x401   :  { %v9934_v62 = vpop.f32.mrf.mxu0  ;;  %v13471_v17 = vpop.permute.xlu1 %5137 }
 0x402   :  { %v3548_v33 = vadd.f32 %v13300_v58, %v9934_v62  ;;  %v4977_v38 = vpop.permute.xlu0 %4976  ;;  %v6049_v20 = vsel %vm5698_vm13, %v13487_v16, %v13471_v17 }
 0x403   :  { %v3539_v42 = vpop.f32.mrf.mxu0  ;;  %1203 = vrot.lane.b32.xlu1 %v10595_v50, %s10722_s30  ;;  %v10597_v50 = vld [vmem:[#allocation2 + $0x218] sm:$0xff]  }
 0x404   :  { %v3800_v21 = vmax.f32 %v3548_v33, 0.0  ;;  %v3540_v39 = vadd.f32 %v13300_v58, %v3539_v42  ;;  %1047 = vrot.lane.b32.xlu0 %v13476_v14, %s10720_s28 }
 0x405   :  { %v9935_v6 = vpop.f32.mrf.mxu0  ;;  %v1196_v8 = vpop.permute.xlu1 %1195 }
 0x406   :  { %v9614_v30 = vpack.c.bf16 %v3800_v21, %v3800_v21  ;;  %v3798_v26 = vmax.f32 %v3540_v39, 0.0  ;;  %v3551_v28 = vadd.f32 %v13300_v58, %v9935_v6  ;;  %v1040_v63 = vpop.permute.xlu0 %1039 }
 0x407   :  { %v3542_v57 = vpop.f32.mrf.mxu0  ;;  %5293 = vrot.lane.b32.xlu1 %v13480_v34, %s10731_s0 }
 0x408   :  { %4441 = vst.msk [vmem:[#allocation3 + $0x158] sm:$0xf] %vm4354_vm11, %v9614_v30  ;;  %v9612_v10 = vpack.c.bf16 %v3798_v26, %v3798_v26  ;;  %v3801_v47 = vmax.f32 %v3551_v28, 0.0  ;;  %v3543_v7 = vadd.f32 %v13300_v58, %v3542_v57  ;;  %5117 = vrot.lane.b32.xlu0 %v13085_v27, %s10730_s18  ;;  %v13505_v30 = vld [vmem:[#allocation2 + $0x220] sm:$0xff]   ;;  %v5514_v26 = vsel %vm5505_vm12, %v13069_v24, %v4977_v38 }
 0x409   :  { %v13496_v62 = vpop.permute.xlu1 %5285  ;;  %v13523_v24 = vld [vmem:[#allocation2 + $0x260] sm:$0xff]  }
 0x40a   :  { %4439 = vst.msk [vmem:[#allocation3 + $0x150] sm:$0xf] %vm4354_vm11, %v9612_v10  ;;  %v9615_v33 = vpack.c.bf16 %v3801_v47, %v3801_v47  ;;  %v3799_v19 = vmax.f32 %v3543_v7, 0.0  ;;  %v5110_v9 = vpop.permute.xlu0 %5109  ;;  %v6129_v42 = vsel %vm5827_vm14, %v6049_v20, %v13496_v62  ;;  %v13514_v47 = vld [vmem:[#allocation2 + $0x228] sm:$0xff]  }
 0x40b   :  { %1336 = vrot.lane.b32.xlu1 %v10597_v50, %s10723_s16  ;;  %6598 = vmatprep.mubr.bf16.mxu1 %v6129_v42  ;;  %v5704_v57 = vsel %vm5698_vm13, %v5514_v26, %v5110_v9  ;;  %v2073_v9 = vsel %vm1905_vm2, %v13059_v60, %v13465_v40  ;;  %v13532_v42 = vld [vmem:[#allocation2 + $0x268] sm:$0xff]  }
 0x40c   :  { %4442 = vst.msk [vmem:[#allocation3 + $0x15c] sm:$0xf] %vm4354_vm11, %v9615_v33  ;;  %v9613_v21 = vpack.c.bf16 %v3799_v19, %v3799_v19  ;;  %1205 = vrot.lane.b32.xlu0 %v10597_v50, %s10722_s30  ;;  %v2070_v50 = vsel %vm1905_vm2, %v13021_v5, %v13455_v12 }
 0x40d   :  { %v1329_v39 = vpop.permute.xlu1 %1328 }
 0x40e   :  { %4440 = vst.msk [vmem:[#allocation3 + $0x154] sm:$0xf] %vm4354_vm11, %v9613_v21  ;;  %v1198_v6 = vpop.permute.xlu0 %1197  ;;  %v2210_v21 = vsel %vm2098_vm3, %v2073_v9, %v1040_v63 }
 0x40f   :  { %1338 = vrot.lane.b32.xlu1 %v13505_v30, %s10723_s16  ;;  %v2339_v26 = vsel %vm2227_vm4, %v2210_v21, %v1198_v6 }
 0x410   :  { %5275 = vrot.lane.b32.xlu0 %v13286_v13, %s10731_s0 }
 0x411   :  { %v1331_v28 = vpop.permute.xlu1 %1330 }
 0x412   :  { %v5268_v10 = vpop.permute.xlu0 %5267 }
 0x413   :  { %1471 = vrot.lane.b32.xlu1 %v13514_v47, %s10724_s19  ;;  %v5835_v7 = vsel %vm5827_vm14, %v5704_v57, %v5268_v10  ;;  %v2468_v57 = vsel %vm2356_vm5, %v2339_v26, %v1331_v28 }
 0x414   :  { %1469 = vrot.lane.b32.xlu0 %v13505_v30, %s10724_s19  ;;  %6599 = vmatmul.mubr.bf16.gmra.mxu1 %v5835_v7 }
 0x415   :  { %v1464_v20 = vpop.permute.xlu1 %1463 }
 0x416   :  { %v1462_v33 = vpop.permute.xlu0 %1461  ;;  %v2597_v5 = vsel %vm2485_vm6, %v2468_v57, %v1464_v20 }
 0x417   :  { %1629 = vrot.lane.b32.xlu1 %v13386_v25, %s10725_s20 }
 0x418   :  { %1627 = vrot.lane.b32.xlu0 %v13372_v4, %s10725_s20  ;;  %v2208_v4 = vsel %vm2098_vm3, %v2070_v50, %v13463_v18 }
 0x419   :  { %v1622_v38 = vpop.permute.xlu1 %1621  ;;  %v2337_v40 = vsel %vm2227_vm4, %v2208_v4, %v1196_v8 }
 0x41a   :  { %v1620_v19 = vpop.permute.xlu0 %1619  ;;  %v2466_v7 = vsel %vm2356_vm5, %v2337_v40, %v1329_v39  ;;  %v2726_v12 = vsel %vm2614_vm7, %v2597_v5, %v1622_v38 }
 0x41b   :  { %1762 = vrot.lane.b32.xlu1 %v13523_v24, %s16142_s23 }
 0x41c   :  { %1760 = vrot.lane.b32.xlu0 %v13386_v25, %s16142_s23  ;;  %v2595_v25 = vsel %vm2485_vm6, %v2466_v7, %v1462_v33 }
 0x41d   :  { %v1755_v60 = vpop.permute.xlu1 %1754  ;;  %v2724_v18 = vsel %vm2614_vm7, %v2595_v25, %v1620_v19 }
 0x41e   :  { %v1753_v10 = vpop.permute.xlu0 %1752  ;;  %v2855_v8 = vsel %vm2743_vm8, %v2726_v12, %v1755_v60 }
 0x41f   :  { %1895 = vrot.lane.b32.xlu1 %v13532_v42, %s16143_s27  ;;  %v2853_v39 = vsel %vm2743_vm8, %v2724_v18, %v1753_v10 }
 0x420   :  { %1893 = vrot.lane.b32.xlu0 %v13523_v24, %s16143_s27 }
 0x421   :  { %v9938_v63 = vpop.f32.mrf.mxu0  ;;  %v1888_v6 = vpop.permute.xlu1 %1887 }
 0x422   :  { %v3564_v28 = vadd.f32 %v13300_v58, %v9938_v63  ;;  %v2984_v20 = vsel %vm2872_vm9, %v2855_v8, %v1888_v6  ;;  %v1886_v9 = vpop.permute.xlu0 %1885  ;;  %v13576_v8 = vld [vmem:[#allocation3 + $0xc0] sm:$0xff]  }
 0x423   :  { %v2982_v33 = vsel %vm2872_vm9, %v2853_v39, %v1886_v9  ;;  %v3555_v50 = vpop.f32.mrf.mxu0  ;;  %4986 = vrot.lane.b32.xlu1 %v13085_v27, %s10729_s24 }
 0x424   :  { %v3804_v38 = vmax.f32 %v3564_v28, 0.0  ;;  %v3556_v19 = vadd.f32 %v13300_v58, %v3555_v50  ;;  %5004 = vrot.lane.b32.xlu0 %v13065_v53, %s10729_s24  ;;  %9956 = vmatprep.mubr.msk.bf16.mxu0 %vm3036_vm10, %v2982_v33 }
 0x425   :  { %v9939_v21 = vpop.f32.mrf.mxu0  ;;  %9957 = vmatmul.mubr.msk.bf16.gmra.mxu0 %vm3036_vm10, %v2984_v20  ;;  %v4979_v4 = vpop.permute.xlu1 %4978 }
 0x426   :  { %v9618_v26 = vpack.c.bf16 %v3804_v38, %v3804_v38  ;;  %v3802_v60 = vmax.f32 %v3556_v19, 0.0  ;;  %v3567_v40 = vadd.f32 %v13300_v58, %v9939_v21  ;;  %v4997_v57 = vpop.permute.xlu0 %4996  ;;  %v5517_v63 = vsel %vm5505_vm12, %v13137_v23, %v4979_v4  ;;  %v13605_v19 = vld [vmem:[#allocation2 + $0x1f0] sm:$0xff]   ;;  %v10280_v4 = vld [vmem:[%s16087_s4 + $0x80] sm:$0xff]  }
 0x427   :  { %v3558_v10 = vpop.f32.mrf.mxu0  ;;  %5119 = vrot.lane.b32.xlu1 %v13148_v41, %s10730_s18  ;;  %v13587_v39 = vsel %vm5505_vm12, %v13158_v61, %v4997_v57  ;;  %9978 = vmatprep.subr.bf16.mxu0 %v10280_v4 }
 0x428   :  { %4445 = vst.msk [vmem:[#allocation3 + $0x168] sm:$0xf] %vm4354_vm11, %v9618_v26  ;;  %v9616_v27 = vpack.c.bf16 %v3802_v60, %v3802_v60  ;;  %v3805_v7 = vmax.f32 %v3567_v40, 0.0  ;;  %v3559_v53 = vadd.f32 %v13300_v58, %v3558_v10  ;;  %5147 = vrot.lane.b32.xlu0 %v13480_v34, %s10730_s18  ;;  %9979 = vmatpush3.bf16.msra.mxu0 %v10280_v4  ;;  %v13626_v40 = vld [vmem:[#allocation2 + $0x1f8] sm:$0xff]  }
 0x429   :  { %v5112_v5 = vpop.permute.xlu1 %5111 }
 0x42a   :  { %4443 = vst.msk [vmem:[#allocation3 + $0x160] sm:$0xf] %vm4354_vm11, %v9616_v27  ;;  %v9619_v25 = vpack.c.bf16 %v3805_v7, %v3805_v7  ;;  %v3803_v12 = vmax.f32 %v3559_v53, 0.0  ;;  %v13574_v18 = vpop.permute.xlu0 %5139  ;;  %v5706_v28 = vsel %vm5698_vm13, %v5517_v63, %v5112_v5  ;;  %v10602_v7 = vld [vmem:[#allocation3 + $0x50] sm:$0xff]  }
 0x42b   :  { %5277 = vrot.lane.b32.xlu1 %v13411_v35, %s10731_s0  ;;  %v6050_v9 = vsel %vm5698_vm13, %v13587_v39, %v13574_v18 }
 0x42c   :  { %4446 = vst.msk [vmem:[#allocation3 + $0x16c] sm:$0xf] %vm4354_vm11, %v9619_v25  ;;  %v9617_v6 = vpack.c.bf16 %v3803_v12, %v3803_v12  ;;  %5295 = vrot.lane.b32.xlu0 %v13576_v8, %s10731_s0 }
 0x42d   :  { %v5270_v20 = vpop.permute.xlu1 %5269 }
 0x42e   :  { %4444 = vst.msk [vmem:[#allocation3 + $0x164] sm:$0xf] %vm4354_vm11, %v9617_v6  ;;  %v13594_v33 = vpop.permute.xlu0 %5287  ;;  %v5838_v23 = vsel %vm5827_vm14, %v5706_v28, %v5270_v20 }
 0x42f   :  { %5006 = vrot.lane.b32.xlu1 %v13151_v48, %s10729_s24  ;;  %v6131_v61 = vsel %vm5827_vm14, %v6050_v9, %v13594_v33 }
 0x430   :  { %916 = vrot.lane.b32.xlu0 %v13476_v14, %s10721_s29  ;;  %6606 = vmatprep.mubr.bf16.mxu1 %v6131_v61 }
 0x431   :  { %6607 = vmatmul.mubr.bf16.gmra.mxu1 %v5838_v23  ;;  %v4999_v50 = vpop.permute.xlu1 %4998 }
 0x432   :  { %v13603_v38 = vpop.permute.xlu0 %908  ;;  %v13638_v27 = vsel %vm5505_vm12, %v13253_v52, %v4999_v50 }
 0x433   :  { %1049 = vrot.lane.b32.xlu1 %v13605_v19, %s10720_s28 }
 0x434   :  { %918 = vrot.lane.b32.xlu0 %v13605_v19, %s10721_s29 }
 0x435   :  { %v13611_v48 = vpop.permute.xlu1 %1041 }
 0x436   :  { %v13613_v21 = vpop.permute.xlu0 %910 }
 0x437   :  { %5149 = vrot.lane.b32.xlu1 %v13576_v8, %s10730_s18 }
 0x438   :  { %4988 = vrot.lane.b32.xlu0 %v13148_v41, %s10729_s24  ;;  %v13632_v41 = vld [vmem:[#allocation3 + $0xc8] sm:$0xff]  }
 0x439   :  { %v13622_v26 = vpop.permute.xlu1 %5141 }
 0x43a   :  { %v4981_v60 = vpop.permute.xlu0 %4980 }
 0x43b   :  { %1207 = vrot.lane.b32.xlu1 %v13505_v30, %s10722_s30  ;;  %v6051_v30 = vsel %vm5698_vm13, %v13638_v27, %v13622_v26 }
 0x43c   :  { %1051 = vrot.lane.b32.xlu0 %v13626_v40, %s10720_s28 }
 0x43d   :  { %v13630_v57 = vpop.permute.xlu1 %1199 }
 0x43e   :  { %v1044_v10 = vpop.permute.xlu0 %1043 }
 0x43f   :  { %5297 = vrot.lane.b32.xlu1 %v13632_v41, %s10731_s0 }
 0x440   :  { %5121 = vrot.lane.b32.xlu0 %v10602_v7, %s10730_s18 }
 0x441   :  { %v9942_v53 = vpop.f32.mrf.mxu0  ;;  %v13644_v5 = vpop.permute.xlu1 %5289 }
 0x442   :  { %v3580_v25 = vadd.f32 %v13300_v58, %v9942_v53  ;;  %v5114_v12 = vpop.permute.xlu0 %5113  ;;  %v6133_v63 = vsel %vm5827_vm14, %v6051_v30, %v13644_v5  ;;  %v13655_v30 = vld [vmem:[#allocation2 + $0x230] sm:$0xff]  }
 0x443   :  { %v3571_v6 = vpop.f32.mrf.mxu0  ;;  %1340 = vrot.lane.b32.xlu1 %v13514_v47, %s10723_s16  ;;  %6614 = vmatprep.mubr.bf16.mxu1 %v6133_v63 }
 0x444   :  { %v3808_v52 = vmax.f32 %v3580_v25, 0.0  ;;  %v3572_v28 = vadd.f32 %v13300_v58, %v3571_v6  ;;  %1209 = vrot.lane.b32.xlu0 %v13514_v47, %s10722_s30  ;;  %v13661_v47 = vld [vmem:[#allocation3 + $0x80] sm:$0xff]   ;;  %v5520_v6 = vsel %vm5505_vm12, %v13188_v0, %v4981_v60 }
 0x445   :  { %v9943_v20 = vpop.f32.mrf.mxu0  ;;  %v1333_v9 = vpop.permute.xlu1 %1332 }
 0x446   :  { %v9622_v23 = vpack.c.bf16 %v3808_v52, %v3808_v52  ;;  %v3806_v61 = vmax.f32 %v3572_v28, 0.0  ;;  %v3583_v50 = vadd.f32 %v13300_v58, %v9943_v20  ;;  %v1202_v4 = vpop.permute.xlu0 %1201  ;;  %v5708_v28 = vsel %vm5698_vm13, %v5520_v6, %v5114_v12  ;;  %v13680_v12 = vld [vmem:[#allocation2 + $0x270] sm:$0xff]  }
 0x447   :  { %v3574_v7 = vpop.f32.mrf.mxu0  ;;  %1342 = vrot.lane.b32.xlu1 %v13655_v30, %s10723_s16  ;;  %v2076_v6 = vsel %vm1905_vm2, %v13168_v59, %v13603_v38 }
 0x448   :  { %4449 = vst.msk [vmem:[#allocation3 + $0x178] sm:$0xf] %vm4354_vm11, %v9622_v23  ;;  %v9620_v53 = vpack.c.bf16 %v3806_v61, %v3806_v61  ;;  %v3809_v25 = vmax.f32 %v3583_v50, 0.0  ;;  %v3575_v63 = vadd.f32 %v13300_v58, %v3574_v7  ;;  %5279 = vrot.lane.b32.xlu0 %v13661_v47, %s10731_s0  ;;  %v13669_v61 = vld [vmem:[#allocation2 + $0x238] sm:$0xff]  }
 0x449   :  { %v1335_v52 = vpop.permute.xlu1 %1334 }
 0x44a   :  { %4447 = vst.msk [vmem:[#allocation3 + $0x170] sm:$0xf] %vm4354_vm11, %v9620_v53  ;;  %v9623_v20 = vpack.c.bf16 %v3809_v25, %v3809_v25  ;;  %v3807_v1 = vmax.f32 %v3575_v63, 0.0  ;;  %v5272_v23 = vpop.permute.xlu0 %5271  ;;  %v13689_v63 = vld [vmem:[#allocation2 + $0x278] sm:$0xff]  }
 0x44b   :  { %1475 = vrot.lane.b32.xlu1 %v13669_v61, %s10724_s19  ;;  %v5841_v50 = vsel %vm5827_vm14, %v5708_v28, %v5272_v23 }
 0x44c   :  { %4450 = vst.msk [vmem:[#allocation3 + $0x17c] sm:$0xf] %vm4354_vm11, %v9623_v20  ;;  %v9621_v7 = vpack.c.bf16 %v3807_v1, %v3807_v1  ;;  %1473 = vrot.lane.b32.xlu0 %v13655_v30, %s10724_s19  ;;  %6615 = vmatmul.mubr.bf16.gmra.mxu1 %v5841_v50  ;;  %v2079_v1 = vsel %vm1905_vm2, %v13182_v3, %v13613_v21 }
 0x44d   :  { %v1468_v0 = vpop.permute.xlu1 %1467  ;;  %v2214_v28 = vsel %vm2098_vm3, %v2079_v1, %v1044_v10  ;;  %v10289_v1 = vld [vmem:[%s16089_s6 + $0x170] ss:$8 sps:$4 sm:$0xff]  }
 0x44e   :  { %4448 = vst.msk [vmem:[#allocation3 + $0x174] sm:$0xf] %vm4354_vm11, %v9621_v7  ;;  %v1466_v60 = vpop.permute.xlu0 %1465  ;;  %v2343_v20 = vsel %vm2227_vm4, %v2214_v28, %v1202_v4 }
 0x44f   :  { %1633 = vrot.lane.b32.xlu1 %v13532_v42, %s10725_s20  ;;  %v2472_v23 = vsel %vm2356_vm5, %v2343_v20, %v1335_v52 }
 0x450   :  { %1631 = vrot.lane.b32.xlu0 %v13523_v24, %s10725_s20  ;;  %v2212_v24 = vsel %vm2098_vm3, %v2076_v6, %v13611_v48  ;;  %v2601_v59 = vsel %vm2485_vm6, %v2472_v23, %v1468_v0  ;;  %v10291_v6 = vld [vmem:[%s16089_s6 + $0x174] ss:$8 sps:$4 sm:$0xff]  }
 0x451   :  { %v1626_v53 = vpop.permute.xlu1 %1625  ;;  %v2341_v21 = vsel %vm2227_vm4, %v2212_v24, %v13630_v57  ;;  %8003 = vmatprep.subr.bf16.mxu1 %v10291_v6 }
 0x452   :  { %v1624_v25 = vpop.permute.xlu0 %1623  ;;  %v2470_v7 = vsel %vm2356_vm5, %v2341_v21, %v1333_v9  ;;  %v2730_v38 = vsel %vm2614_vm7, %v2601_v59, %v1626_v53  ;;  %v13722_v53 = vld [vmem:[#allocation3 + $0xd0] sm:$0xff]   ;;  %8004 = vmatpush1.bf16.msra.mxu1 %v10289_v1 }
 0x453   :  { %1766 = vrot.lane.b32.xlu1 %v13680_v12, %s16142_s23 }
 0x454   :  { %1764 = vrot.lane.b32.xlu0 %v13532_v42, %s16142_s23  ;;  %v2599_v42 = vsel %vm2485_vm6, %v2470_v7, %v1466_v60 }
 0x455   :  { %v1759_v3 = vpop.permute.xlu1 %1758  ;;  %v2728_v48 = vsel %vm2614_vm7, %v2599_v42, %v1624_v25 }
 0x456   :  { %v1757_v50 = vpop.permute.xlu0 %1756  ;;  %v2859_v57 = vsel %vm2743_vm8, %v2730_v38, %v1759_v3 }
 0x457   :  { %1899 = vrot.lane.b32.xlu1 %v13689_v63, %s16143_s27  ;;  %v2857_v4 = vsel %vm2743_vm8, %v2728_v48, %v1757_v50 }
 0x458   :  { %1897 = vrot.lane.b32.xlu0 %v13680_v12, %s16143_s27 }
 0x459   :  { %v1892_v10 = vpop.permute.xlu1 %1891 }
 0x45a   :  { %v2988_v9 = vsel %vm2872_vm9, %v2859_v57, %v1892_v10  ;;  %v1890_v52 = vpop.permute.xlu0 %1889 }
 0x45b   :  { %v2986_v0 = vsel %vm2872_vm9, %v2857_v4, %v1890_v52  ;;  %5151 = vrot.lane.b32.xlu1 %v13632_v41, %s10730_s18 }
 0x45c   :  { %5008 = vrot.lane.b32.xlu0 %v13186_v2, %s10729_s24  ;;  %9960 = vmatprep.mubr.msk.bf16.mxu0 %vm3036_vm10, %v2986_v0  ;;  %v10606_v2 = vld [vmem:[#allocation3 + $0x58] sm:$0xff]  }
 0x45d   :  { %9961 = vmatmul.mubr.msk.bf16.gmra.mxu0 %vm3036_vm10, %v2988_v9  ;;  %v4983_v60 = vpop.permute.xlu1 %4982 }
 0x45e   :  { %v5001_v25 = vpop.permute.xlu0 %5000  ;;  %v5523_v23 = vsel %vm5505_vm12, %v13259_v15, %v4983_v60 }
 0x45f   :  { %5299 = vrot.lane.b32.xlu1 %v13722_v53, %s10731_s0  ;;  %v13742_v50 = vsel %vm5505_vm12, %v13286_v13, %v5001_v25 }
 0x460   :  { %5123 = vrot.lane.b32.xlu0 %v10606_v2, %s10730_s18 }
 0x461   :  { %v9946_v28 = vpop.f32.mrf.mxu0  ;;  %v5116_v24 = vpop.permute.xlu1 %5115 }
 0x462   :  { %v3596_v20 = vadd.f32 %v13300_v58, %v9946_v28  ;;  %v13734_v3 = vpop.permute.xlu0 %5143  ;;  %v5710_v42 = vsel %vm5698_vm13, %v5523_v23, %v5116_v24 }
 0x463   :  { %16144 = vst [vmem:[#allocation11_spill] sm:$0xff] %v13734_v3  ;;  %v3587_v21 = vpop.f32.mrf.mxu0  ;;  %5010 = vrot.lane.b32.xlu1 %v13274_v11, %s10729_s24  ;;  %v6052_v38 = vsel %vm5698_vm13, %v13742_v50, %v13734_v3 }
 0x464   :  { %v3812_v7 = vmax.f32 %v3596_v20, 0.0  ;;  %v3588_v59 = vadd.f32 %v13300_v58, %v3587_v21  ;;  %920 = vrot.lane.b32.xlu0 %v13626_v40, %s10721_s29  ;;  %v10607_v21 = vld [vmem:[#allocation3 + $0x60] sm:$0xff]  }
 0x465   :  { %v9947_v11 = vpop.f32.mrf.mxu0  ;;  %v5274_v48 = vpop.permute.xlu1 %5273 }
 0x466   :  { %v9626_v57 = vpack.c.bf16 %v3812_v7, %v3812_v7  ;;  %v3810_v15 = vmax.f32 %v3588_v59, 0.0  ;;  %v3599_v10 = vadd.f32 %v13300_v58, %v9947_v11  ;;  %v13752_v13 = vpop.permute.xlu0 %5291  ;;  %v5844_v4 = vsel %vm5827_vm14, %v5710_v42, %v5274_v48  ;;  %v13781_v7 = vld [vmem:[#allocation3 + $0xd8] sm:$0xff]  }
 0x467   :  { %v3590_v9 = vpop.f32.mrf.mxu0  ;;  %1053 = vrot.lane.b32.xlu1 %v13324_v51, %s10720_s28  ;;  %v6135_v52 = vsel %vm5827_vm14, %v6052_v38, %v13752_v13  ;;  %v10608_v38 = vld [vmem:[#allocation2 + $0x240] sm:$0xff]  }
 0x468   :  { %4453 = vst.msk [vmem:[#allocation3 + $0x188] sm:$0xf] %vm4354_vm11, %v9626_v57  ;;  %v9624_v0 = vpack.c.bf16 %v3810_v15, %v3810_v15  ;;  %v3813_v60 = vmax.f32 %v3599_v10, 0.0  ;;  %v3591_v25 = vadd.f32 %v13300_v58, %v3590_v9  ;;  %922 = vrot.lane.b32.xlu0 %v13324_v51, %s10721_s29  ;;  %6620 = vmatprep.mubr.bf16.mxu1 %v6135_v52  ;;  %v10609_v10 = vld [vmem:[#allocation2 + $0x248] sm:$0xff]  }
 0x469   :  { %6621 = vmatmul.mubr.bf16.gmra.mxu1 %v5844_v4  ;;  %v5003_v1 = vpop.permute.xlu1 %5002  ;;  %v10298_v52 = vld [vmem:[%s16089_s6 + $0x160] ss:$8 sps:$4 sm:$0xff]  }
 0x46a   :  { %4451 = vst.msk [vmem:[#allocation3 + $0x180] sm:$0xf] %vm4354_vm11, %v9624_v0  ;;  %v9627_v6 = vpack.c.bf16 %v3813_v60, %v3813_v60  ;;  %v3811_v2 = vmax.f32 %v3591_v25, 0.0  ;;  %v13764_v28 = vpop.permute.xlu0 %912  ;;  %v10300_v0 = vld [vmem:[%s16089_s6 + $0x164] ss:$8 sps:$4 sm:$0xff]  }
 0x46b   :  { %1055 = vrot.lane.b32.xlu1 %v13353_v37, %s10720_s28  ;;  %8005 = vmatprep.subr.bf16.mxu1 %v10300_v0 }
 0x46c   :  { %4454 = vst.msk [vmem:[#allocation3 + $0x18c] sm:$0xf] %vm4354_vm11, %v9627_v6  ;;  %v9625_v24 = vpack.c.bf16 %v3811_v2, %v3811_v2  ;;  %5153 = vrot.lane.b32.xlu0 %v13722_v53, %s10730_s18  ;;  %8006 = vmatpush1.bf16.msra.mxu1 %v10298_v52 }
 0x46d   :  { %v13771_v20 = vpop.permute.xlu1 %1045 }
 0x46e   :  { %4452 = vst.msk [vmem:[#allocation3 + $0x184] sm:$0xf] %vm4354_vm11, %v9625_v24  ;;  %v13774_v51 = vpop.permute.xlu0 %914 }
 0x46f   :  { %5125 = vrot.lane.b32.xlu1 %v10607_v21, %s10730_s18 }
 0x470   :  { %1211 = vrot.lane.b32.xlu0 %v13655_v30, %s10722_s30  ;;  %v13792_v30 = vsel %vm5505_vm12, %v13411_v35, %v5003_v1 }
 0x471   :  { %v13779_v23 = vpop.permute.xlu1 %5145 }
 0x472   :  { %16145 = vst [vmem:[#allocation12_spill] sm:$0xff] %v13779_v23  ;;  %v4985_v37 = vpop.permute.xlu0 %4984  ;;  %v6053_v11 = vsel %vm5698_vm13, %v13792_v30, %v13779_v23 }
 0x473   :  { %1213 = vrot.lane.b32.xlu1 %v13669_v61, %s10722_s30  ;;  %v5526_v60 = vsel %vm5505_vm12, %v13336_v54, %v4985_v37 }
 0x474   :  { %5301 = vrot.lane.b32.xlu0 %v13781_v7, %s10731_s0 }
 0x475   :  { %v13787_v59 = vpop.permute.xlu1 %1203 }
 0x476   :  { %v1048_v42 = vpop.permute.xlu0 %1047 }
 0x477   :  { %1346 = vrot.lane.b32.xlu1 %v10608_v38, %s10723_s16 }
 0x478   :  { %1344 = vrot.lane.b32.xlu0 %v13669_v61, %s10723_s16  ;;  %v10273_v61 = vld [vmem:[#allocation2 + $0x280] sm:$0xff]  }
 0x479   :  { %v13799_v48 = vpop.permute.xlu1 %5293 }
 0x47a   :  { %v5118_v57 = vpop.permute.xlu0 %5117  ;;  %v6137_v15 = vsel %vm5827_vm14, %v6053_v11, %v13799_v48 }
 0x47b   :  { %1479 = vrot.lane.b32.xlu1 %v10609_v10, %s10724_s19  ;;  %6626 = vmatprep.mubr.bf16.mxu1 %v6137_v15  ;;  %v5712_v6 = vsel %vm5698_vm13, %v5526_v60, %v5118_v57 }
 0x47c   :  { %1477 = vrot.lane.b32.xlu0 %v10608_v38, %s10724_s19  ;;  %v10274_v38 = vld [vmem:[#allocation2 + $0x288] sm:$0xff]  }
 0x47d   :  { %v1337_v4 = vpop.permute.xlu1 %1336 }
 0x47e   :  { %v1206_v9 = vpop.permute.xlu0 %1205 }
 0x47f   :  { %1637 = vrot.lane.b32.xlu1 %v13689_v63, %s10725_s20 }
 0x480   :  { %1635 = vrot.lane.b32.xlu0 %v13680_v12, %s10725_s20 }
 0x481   :  { %v9950_v25 = vpop.f32.mrf.mxu0  ;;  %v1339_v1 = vpop.permute.xlu1 %1338 }
 0x482   :  { %v3612_v2 = vadd.f32 %v13300_v58, %v9950_v25  ;;  %v5276_v24 = vpop.permute.xlu0 %5275 }
 0x483   :  { %v3603_v12 = vpop.f32.mrf.mxu0  ;;  %1770 = vrot.lane.b32.xlu1 %v10273_v61, %s16142_s23  ;;  %v5847_v21 = vsel %vm5827_vm14, %v5712_v6, %v5276_v24 }
 0x484   :  { %v3816_v11 = vmax.f32 %v3612_v2, 0.0  ;;  %v3604_v15 = vadd.f32 %v13300_v58, %v3603_v12  ;;  %1768 = vrot.lane.b32.xlu0 %v13689_v63, %s16142_s23  ;;  %6627 = vmatmul.mubr.bf16.gmra.mxu1 %v5847_v21 }
 0x485   :  { %v9951_v54 = vpop.f32.mrf.mxu0  ;;  %v1472_v37 = vpop.permute.xlu1 %1471 }
 0x486   :  { %v9630_v57 = vpack.c.bf16 %v3816_v11, %v3816_v11  ;;  %v3814_v10 = vmax.f32 %v3604_v15, 0.0  ;;  %v3615_v0 = vadd.f32 %v13300_v58, %v9951_v54  ;;  %v1470_v60 = vpop.permute.xlu0 %1469  ;;  %v2085_v11 = vsel %vm1905_vm2, %v13329_v29, %v13774_v51  ;;  %v13845_v54 = vld [vmem:[#allocation3 + $0xe0] sm:$0xff]  }
 0x487   :  { %v3606_v25 = vpop.f32.mrf.mxu0  ;;  %1903 = vrot.lane.b32.xlu1 %v10274_v38, %s16143_s27  ;;  %v2082_v38 = vsel %vm1905_vm2, %v13305_v55, %v13764_v28 }
 0x488   :  { %4457 = vst.msk [vmem:[#allocation3 + $0x198] sm:$0xf] %vm4354_vm11, %v9630_v57  ;;  %v9628_v52 = vpack.c.bf16 %v3814_v10, %v3814_v10  ;;  %v3817_v6 = vmax.f32 %v3615_v0, 0.0  ;;  %v3607_v2 = vadd.f32 %v13300_v58, %v3606_v25  ;;  %1901 = vrot.lane.b32.xlu0 %v10273_v61, %s16143_s27  ;;  %v2218_v58 = vsel %vm2098_vm3, %v2085_v11, %v1048_v42  ;;  %v10610_v10 = vld [vmem:[#allocation3 + $0x68] sm:$0xff]  }
 0x489   :  { %v1630_v63 = vpop.permute.xlu1 %1629  ;;  %v2216_v15 = vsel %vm2098_vm3, %v2082_v38, %v13771_v20  ;;  %v2347_v29 = vsel %vm2227_vm4, %v2218_v58, %v1206_v9 }
 0x48a   :  { %4455 = vst.msk [vmem:[#allocation3 + $0x190] sm:$0xf] %vm4354_vm11, %v9628_v52  ;;  %v9631_v24 = vpack.c.bf16 %v3817_v6, %v3817_v6  ;;  %v3815_v12 = vmax.f32 %v3607_v2, 0.0  ;;  %v1628_v21 = vpop.permute.xlu0 %1627  ;;  %v2345_v57 = vsel %vm2227_vm4, %v2216_v15, %v13787_v59  ;;  %v2476_v55 = vsel %vm2356_vm5, %v2347_v29, %v1339_v1  ;;  %v13869_v6 = vld [vmem:[#allocation3 + $0xe8] sm:$0xff]  }
 0x48b   :  { %5155 = vrot.lane.b32.xlu1 %v13781_v7, %s10730_s18  ;;  %v2474_v42 = vsel %vm2356_vm5, %v2345_v57, %v1337_v4 }
 0x48c   :  { %4458 = vst.msk [vmem:[#allocation3 + $0x19c] sm:$0xf] %vm4354_vm11, %v9631_v24  ;;  %v9629_v61 = vpack.c.bf16 %v3815_v12, %v3815_v12  ;;  %5012 = vrot.lane.b32.xlu0 %v13333_v44, %s10729_s24  ;;  %v2605_v44 = vsel %vm2485_vm6, %v2476_v55, %v1472_v37  ;;  %v2603_v20 = vsel %vm2485_vm6, %v2474_v42, %v1470_v60 }
 0x48d   :  { %v1763_v51 = vpop.permute.xlu1 %1762  ;;  %v2734_v9 = vsel %vm2614_vm7, %v2605_v44, %v1630_v63  ;;  %v2732_v59 = vsel %vm2614_vm7, %v2603_v20, %v1628_v21  ;;  %v10611_v63 = vld [vmem:[#allocation3 + $0x70] sm:$0xff]   ;;  %v13915_v20 = vld [vmem:[#allocation3 + $0xf8] sm:$0xff]  }
 0x48e   :  { %4456 = vst.msk [vmem:[#allocation3 + $0x194] sm:$0xf] %vm4354_vm11, %v9629_v61  ;;  %v1761_v28 = vpop.permute.xlu0 %1760  ;;  %v2863_v1 = vsel %vm2743_vm8, %v2734_v9, %v1763_v51  ;;  %v13889_v61 = vld [vmem:[#allocation3 + $0xf0] sm:$0xff]   ;;  %v10308_v9 = vld [vmem:[%s16089_s6 + $0x154] ss:$8 sps:$4 sm:$0xff]  }
 0x48f   :  { %5303 = vrot.lane.b32.xlu1 %v13845_v54, %s10731_s0  ;;  %v2861_v25 = vsel %vm2743_vm8, %v2732_v59, %v1761_v28  ;;  %8007 = vmatprep.subr.bf16.mxu1 %v10308_v9 }
 0x490   :  { %5127 = vrot.lane.b32.xlu0 %v10610_v10, %s10730_s18  ;;  %v13929_v10 = vld [vmem:[#allocation3 + $0x100] sm:$0xff]  }
 0x491   :  { %v1896_v0 = vpop.permute.xlu1 %1895 }
 0x492   :  { %v2992_v4 = vsel %vm2872_vm9, %v2863_v1, %v1896_v0  ;;  %v1894_v37 = vpop.permute.xlu0 %1893 }
 0x493   :  { %v2990_v52 = vsel %vm2872_vm9, %v2861_v25, %v1894_v37  ;;  %5157 = vrot.lane.b32.xlu1 %v13845_v54, %s10730_s18 }
 0x494   :  { %5014 = vrot.lane.b32.xlu0 %v13430_v45, %s10729_s24  ;;  %9964 = vmatprep.mubr.msk.bf16.mxu0 %vm3036_vm10, %v2990_v52  ;;  %v10613_v52 = vld [vmem:[#allocation3 + $0x88] sm:$0xff]  }
 0x495   :  { %9965 = vmatmul.mubr.msk.bf16.gmra.mxu0 %vm3036_vm10, %v2992_v4  ;;  %v4987_v60 = vpop.permute.xlu1 %4986 }
 0x496   :  { %v5005_v2 = vpop.permute.xlu0 %5004  ;;  %v5529_v45 = vsel %vm5505_vm12, %v13421_v46, %v4987_v60 }
 0x497   :  { %5305 = vrot.lane.b32.xlu1 %v13869_v6, %s10731_s0  ;;  %v13886_v11 = vsel %vm5505_vm12, %v13661_v47, %v5005_v2 }
 0x498   :  { %5129 = vrot.lane.b32.xlu0 %v10611_v63, %s10730_s18 }
 0x499   :  { %v5120_v24 = vpop.permute.xlu1 %5119 }
 0x49a   :  { %v13874_v12 = vpop.permute.xlu0 %5147  ;;  %v5714_v38 = vsel %vm5698_vm13, %v5529_v45, %v5120_v24 }
 0x49b   :  { %16146 = vst [vmem:[#allocation13_spill] sm:$0xff] %v13874_v12  ;;  %5159 = vrot.lane.b32.xlu1 %v13869_v6, %s10730_s18  ;;  %v6054_v15 = vsel %vm5698_vm13, %v13886_v11, %v13874_v12 }
 0x49c   :  { %5016 = vrot.lane.b32.xlu0 %v13480_v34, %s10729_s24  ;;  %v13882_v21 = vpop.f32.mrf.mxu1 }
 0x49d   :  { %16147 = vst [vmem:[#allocation14_spill] sm:$0xff] %v13882_v21  ;;  %v5278_v58 = vpop.permute.xlu1 %5277 }
 0x49e   :  { %v13894_v29 = vpop.permute.xlu0 %5295  ;;  %v6586_v46 = vpop.f32.mrf.mxu1  ;;  %v5850_v34 = vsel %vm5827_vm14, %v5714_v38, %v5278_v58 }
 0x49f   :  { %5307 = vrot.lane.b32.xlu1 %v13889_v61, %s10731_s0  ;;  %v6139_v47 = vsel %vm5827_vm14, %v6054_v15, %v13894_v29 }
 0x4a0   :  { %5131 = vrot.lane.b32.xlu0 %v13411_v35, %s10730_s18  ;;  %v13903_v51 = vpop.f32.mrf.mxu1  ;;  %6632 = vmatprep.mubr.bf16.mxu1 %v6139_v47  ;;  %v10306_v35 = vld [vmem:[%s16089_s6 + $0x150] ss:$8 sps:$4 sm:$0xff]  }
 0x4a1   :  { %16148 = vst [vmem:[#allocation15_spill] sm:$0xff] %v13903_v51  ;;  %6633 = vmatmul.mubr.bf16.gmra.mxu1 %v5850_v34  ;;  %v5007_v57 = vpop.permute.xlu1 %5006  ;;  %v13959_v47 = vld [vmem:[#allocation3 + $0x108] sm:$0xff]  }
 0x4a2   :  { %v13905_v55 = vpop.permute.xlu0 %916  ;;  %v6589_v28 = vpop.f32.mrf.mxu1  ;;  %8008 = vmatpush1.bf16.msra.mxu1 %v10306_v35  ;;  %v13948_v60 = vsel %vm5505_vm12, %v10613_v52, %v5007_v57 }
 0x4a3   :  { %5161 = vrot.lane.b32.xlu1 %v13889_v61, %s10730_s18 }
 0x4a4   :  { %5018 = vrot.lane.b32.xlu0 %v13576_v8, %s10729_s24 }
 0x4a5   :  { %v13911_v42 = vpop.permute.xlu1 %1049 }
 0x4a6   :  { %v13913_v44 = vpop.permute.xlu0 %918 }
 0x4a7   :  { %5020 = vrot.lane.b32.xlu1 %v13632_v41, %s10729_s24  ;;  %v13940_v41 = vld [vmem:[%s16086_s3] ss:$0 sm:$0xff] }
 0x4a8   :  { %5309 = vrot.lane.b32.xlu0 %v13915_v20, %s10731_s0 }
 0x4a9   :  { %v13927_v8 = vpop.permute.xlu1 %5149 }
 0x4aa   :  { %16149 = vst [vmem:[#allocation16_spill] sm:$0xff] %v13927_v8  ;;  %v4989_v59 = vpop.permute.xlu0 %4988  ;;  %v6055_v24 = vsel %vm5698_vm13, %v13948_v60, %v13927_v8 }
 0x4ab   :  { %5311 = vrot.lane.b32.xlu1 %v13929_v10, %s10731_s0 }
 0x4ac   :  { %5163 = vrot.lane.b32.xlu0 %v13915_v20, %s10730_s18 }
 0x4ad   :  { %v9954_v1 = vpop.f32.mrf.mxu0  ;;  %v13935_v0 = vpop.permute.xlu1 %1207 }
 0x4ae   :  { %v3628_v25 = vadd.f32 %v13940_v41, %v9954_v1  ;;  %v13943_v4 = vpop.permute.xlu0 %1051 }
 0x4af   :  { %v3619_v37 = vpop.f32.mrf.mxu0  ;;  %5165 = vrot.lane.b32.xlu1 %v13929_v10, %s10730_s18 }
 0x4b0   :  { %v3820_v2 = vmax.f32 %v3628_v25, 0.0  ;;  %v3620_v63 = vadd.f32 %v13940_v41, %v3619_v37  ;;  %5022 = vrot.lane.b32.xlu0 %v13722_v53, %s10729_s24  ;;  %v13969_v37 = vld [vmem:[#allocation3 + $0x110] sm:$0xff]  }
 0x4b1   :  { %v9955_v45 = vpop.f32.mrf.mxu0  ;;  %v13956_v38 = vpop.permute.xlu1 %5297  ;;  %16150 = vst [vmem:[#allocation17_spill] sm:$0xff] %v13969_v37 }
 0x4b2   :  { %v9634_v58 = vpack.c.bf16 %v3820_v2, %v3820_v2  ;;  %v3818_v15 = vmax.f32 %v3620_v63, 0.0  ;;  %v3631_v46 = vadd.f32 %v13940_v41, %v9955_v45  ;;  %v5122_v34 = vpop.permute.xlu0 %5121  ;;  %v6141_v57 = vsel %vm5827_vm14, %v6055_v24, %v13956_v38  ;;  %v10614_v45 = vld [vmem:[#allocation3 + $0x40] sm:$0xff]  }
 0x4b3   :  { %v3622_v28 = vpop.f32.mrf.mxu0  ;;  %5024 = vrot.lane.b32.xlu1 %v13781_v7, %s10729_s24  ;;  %6638 = vmatprep.mubr.bf16.mxu1 %v6141_v57 }
 0x4b4   :  { %4461 = vst.msk [vmem:[#allocation3 + $0x1a8] sm:$0xf] %vm4354_vm11, %v9634_v58  ;;  %v9632_v35 = vpack.c.bf16 %v3818_v15, %v3818_v15  ;;  %v3821_v9 = vmax.f32 %v3631_v46, 0.0  ;;  %v3623_v1 = vadd.f32 %v13940_v41, %v3622_v28  ;;  %5313 = vrot.lane.b32.xlu0 %v13959_v47, %s10731_s0  ;;  %v5532_v58 = vsel %vm5505_vm12, %v10614_v45, %v4989_v59  ;;  %v10316_v45 = vld [vmem:[%s16089_s6 + $0x144] ss:$8 sps:$4 sm:$0xff]  }
 0x4b5   :  { %v1341_v25 = vpop.permute.xlu1 %1340  ;;  %v5716_v57 = vsel %vm5698_vm13, %v5532_v58, %v5122_v34  ;;  %8009 = vmatprep.subr.bf16.mxu1 %v10316_v45 }
 0x4b6   :  { %4459 = vst.msk [vmem:[#allocation3 + $0x1a0] sm:$0xf] %vm4354_vm11, %v9632_v35  ;;  %v9635_v52 = vpack.c.bf16 %v3821_v9, %v3821_v9  ;;  %v3819_v2 = vmax.f32 %v3623_v1, 0.0  ;;  %v1210_v63 = vpop.permute.xlu0 %1209 }
 0x4b7   :  { %5315 = vrot.lane.b32.xlu1 %v13969_v37, %s10731_s0 }
 0x4b8   :  { %4462 = vst.msk [vmem:[#allocation3 + $0x1ac] sm:$0xf] %vm4354_vm11, %v9635_v52  ;;  %v9633_v24 = vpack.c.bf16 %v3819_v2, %v3819_v2  ;;  %5167 = vrot.lane.b32.xlu0 %v13959_v47, %s10730_s18  ;;  %v13989_v2 = vld [vmem:[#allocation3 + $0x118] sm:$0xff]  }
 0x4b9   :  { %v13978_v15 = vpop.f32.mrf.mxu1  ;;  %v1343_v46 = vpop.permute.xlu1 %1342  ;;  %16153 = vst [vmem:[#allocation20_spill] sm:$0xff] %v13989_v2 }
 0x4ba   :  { %16151 = vst [vmem:[#allocation18_spill] sm:$0xff] %v13978_v15  ;;  %4460 = vst.msk [vmem:[#allocation3 + $0x1a4] sm:$0xf] %vm4354_vm11, %v9633_v24  ;;  %v5280_v28 = vpop.permute.xlu0 %5279  ;;  %v10314_v24 = vld [vmem:[%s16089_s6 + $0x140] ss:$8 sps:$4 sm:$0xff]  }
 0x4bb   :  { %v6594_v35 = vpop.f32.mrf.mxu1  ;;  %5169 = vrot.lane.b32.xlu1 %v13969_v37, %s10730_s18  ;;  %v5853_v9 = vsel %vm5827_vm14, %v5716_v57, %v5280_v28  ;;  %v14001_v57 = vld [vmem:[#allocation3 + $0x120] sm:$0xff]   ;;  %8010 = vmatpush1.bf16.msra.mxu1 %v10314_v24  ;;  %v14123_v15 = vld [vmem:[#allocation3 + $0x150] sm:$0xff]  }
 0x4bc   :  { %5026 = vrot.lane.b32.xlu0 %v13845_v54, %s10729_s24  ;;  %6639 = vmatmul.mubr.bf16.gmra.mxu1 %v5853_v9  ;;  %v2091_v35 = vsel %vm1905_vm2, %v13476_v14, %v13913_v44  ;;  %v2088_v9 = vsel %vm1905_vm2, %v13457_v22, %v13905_v55 }
 0x4bd   :  { %v13987_v1 = vpop.f32.mrf.mxu1  ;;  %v1476_v59 = vpop.permute.xlu1 %1475  ;;  %v2220_v45 = vsel %vm2098_vm3, %v2088_v9, %v13911_v42 }
 0x4be   :  { %16152 = vst [vmem:[#allocation19_spill] sm:$0xff] %v13987_v1  ;;  %v1474_v52 = vpop.permute.xlu0 %1473  ;;  %v2349_v44 = vsel %vm2227_vm4, %v2220_v45, %v13935_v0 }
 0x4bf   :  { %v6597_v34 = vpop.f32.mrf.mxu1  ;;  %5028 = vrot.lane.b32.xlu1 %v13869_v6, %s10729_s24  ;;  %v2478_v22 = vsel %vm2356_vm5, %v2349_v44, %v1341_v25 }
 0x4c0   :  { %5317 = vrot.lane.b32.xlu0 %v13989_v2, %s10731_s0  ;;  %v2222_v34 = vsel %vm2098_vm3, %v2091_v35, %v13943_v4  ;;  %v2607_v4 = vsel %vm2485_vm6, %v2478_v22, %v1474_v52  ;;  %v14033_v35 = vld [vmem:[#allocation3 + $0x128] sm:$0xff]  }
 0x4c1   :  { %v1634_v58 = vpop.permute.xlu1 %1633  ;;  %v2351_v51 = vsel %vm2227_vm4, %v2222_v34, %v1210_v63 }
 0x4c2   :  { %v1632_v28 = vpop.permute.xlu0 %1631  ;;  %v2480_v24 = vsel %vm2356_vm5, %v2351_v51, %v1343_v46 }
 0x4c3   :  { %5319 = vrot.lane.b32.xlu1 %v14001_v57, %s10731_s0  ;;  %v2609_v55 = vsel %vm2485_vm6, %v2480_v24, %v1476_v59  ;;  %v2736_v63 = vsel %vm2614_vm7, %v2607_v4, %v1632_v28  ;;  %v14046_v28 = vld [vmem:[#allocation3 + $0x90] sm:$0xff]  }
 0x4c4   :  { %5171 = vrot.lane.b32.xlu0 %v13989_v2, %s10730_s18  ;;  %v2738_v42 = vsel %vm2614_vm7, %v2609_v55, %v1634_v58 }
 0x4c5   :  { %v1767_v14 = vpop.permute.xlu1 %1766 }
 0x4c6   :  { %v1765_v1 = vpop.permute.xlu0 %1764  ;;  %v2867_v0 = vsel %vm2743_vm8, %v2738_v42, %v1767_v14 }
 0x4c7   :  { %5173 = vrot.lane.b32.xlu1 %v14001_v57, %s10730_s18  ;;  %v2865_v46 = vsel %vm2743_vm8, %v2736_v63, %v1765_v1  ;;  %v14044_v1 = vld [vmem:[#allocation3 + $0x130] sm:$0xff]  }
 0x4c8   :  { %5030 = vrot.lane.b32.xlu0 %v13889_v61, %s10729_s24 }
 0x4c9   :  { %v1900_v51 = vpop.permute.xlu1 %1899 }
 0x4ca   :  { %v2996_v25 = vsel %vm2872_vm9, %v2867_v0, %v1900_v51  ;;  %v1898_v59 = vpop.permute.xlu0 %1897  ;;  %v14075_v51 = vld [vmem:[#allocation3 + $0x138] sm:$0xff]  }
 0x4cb   :  { %v2994_v9 = vsel %vm2872_vm9, %v2865_v46, %v1898_v59  ;;  %5032 = vrot.lane.b32.xlu1 %v13915_v20, %s10729_s24 }
 0x4cc   :  { %5321 = vrot.lane.b32.xlu0 %v14033_v35, %s10731_s0  ;;  %9968 = vmatprep.mubr.msk.bf16.mxu0 %vm3036_vm10, %v2994_v9 }
 0x4cd   :  { %9969 = vmatmul.mubr.msk.bf16.gmra.mxu0 %vm3036_vm10, %v2996_v25  ;;  %v14042_v52 = vpop.permute.xlu1 %5151  ;;  %v14085_v25 = vld [vmem:[#allocation3 + $0x140] sm:$0xff]  }
 0x4ce   :  { %16154 = vst [vmem:[#allocation21_spill] sm:$0xff] %v14042_v52  ;;  %v5009_v58 = vpop.permute.xlu0 %5008 }
 0x4cf   :  { %v14050_v34 = vsel %vm5505_vm12, %v14046_v28, %v5009_v58  ;;  %5323 = vrot.lane.b32.xlu1 %v14044_v1, %s10731_s0 }
 0x4d0   :  { %5175 = vrot.lane.b32.xlu0 %v14033_v35, %s10730_s18  ;;  %v6056_v14 = vsel %vm5698_vm13, %v14050_v34, %v14042_v52 }
 0x4d1   :  { %v14056_v45 = vpop.permute.xlu1 %5299 }
 0x4d2   :  { %v5124_v44 = vpop.permute.xlu0 %5123  ;;  %v6143_v24 = vsel %vm5827_vm14, %v6056_v14, %v14056_v45 }
 0x4d3   :  { %v5718_v22 = vsel %vm5698_vm13, %v13342_v32, %v5124_v44  ;;  %5177 = vrot.lane.b32.xlu1 %v14044_v1, %s10730_s18  ;;  %6646 = vmatprep.mubr.bf16.mxu1 %v6143_v24  ;;  %v14103_v24 = vld [vmem:[#allocation3 + $0x148] sm:$0xff]  }
 0x4d4   :  { %5034 = vrot.lane.b32.xlu0 %v13929_v10, %s10729_s24  ;;  %v14069_v55 = vpop.f32.mrf.mxu1  ;;  %v5856_v4 = vsel %vm5827_vm14, %v5718_v22, %v13346_v49  ;;  %v10318_v22 = vld [vmem:[%s16089_s6 + $0x130] ss:$8 sps:$4 sm:$0xff]  }
 0x4d5   :  { %16155 = vst [vmem:[#allocation22_spill] sm:$0xff] %v14069_v55  ;;  %6647 = vmatmul.mubr.bf16.gmra.mxu1 %v5856_v4  ;;  %v5011_v42 = vpop.permute.xlu1 %5010  ;;  %v10320_v4 = vld [vmem:[%s16089_s6 + $0x134] ss:$8 sps:$4 sm:$0xff]  }
 0x4d6   :  { %v14073_v63 = vpop.permute.xlu0 %920  ;;  %v6602_v0 = vpop.f32.mrf.mxu1  ;;  %8011 = vmatprep.subr.bf16.mxu1 %v10320_v4 }
 0x4d7   :  { %5036 = vrot.lane.b32.xlu1 %v13959_v47, %s10729_s24  ;;  %v14115_v0 = vld [vmem:[#allocation3 + $0x98] sm:$0xff]   ;;  %8012 = vmatpush1.bf16.msra.mxu1 %v10318_v22 }
 0x4d8   :  { %5325 = vrot.lane.b32.xlu0 %v14075_v51, %s10731_s0  ;;  %v14081_v32 = vpop.f32.mrf.mxu1 }
 0x4d9   :  { %16156 = vst [vmem:[#allocation23_spill] sm:$0xff] %v14081_v32  ;;  %v14083_v46 = vpop.permute.xlu1 %1053 }
 0x4da   :  { %v14087_v49 = vpop.permute.xlu0 %922  ;;  %v6605_v59 = vpop.f32.mrf.mxu1 }
 0x4db   :  { %5327 = vrot.lane.b32.xlu1 %v14085_v25, %s10731_s0  ;;  %v14119_v59 = vsel %vm5505_vm12, %v14115_v0, %v5011_v42 }
 0x4dc   :  { %5179 = vrot.lane.b32.xlu0 %v14075_v51, %s10730_s18  ;;  %16158 = vst [vmem:[#allocation25_spill] sm:$0xff] %v14119_v59 }
 0x4dd   :  { %v14093_v9 = vpop.permute.xlu1 %1055 }
 0x4de   :  { %v14095_v58 = vpop.permute.xlu0 %5153 }
 0x4df   :  { %16157 = vst [vmem:[#allocation24_spill] sm:$0xff] %v14095_v58  ;;  %5181 = vrot.lane.b32.xlu1 %v14085_v25, %s10730_s18  ;;  %v6057_v52 = vsel %vm5698_vm13, %v14119_v59, %v14095_v58 }
 0x4e0   :  { %5038 = vrot.lane.b32.xlu0 %v13969_v37, %s10729_s24 }
 0x4e1   :  { %v5126_v14 = vpop.permute.xlu1 %5125 }
 0x4e2   :  { %v14101_v44 = vpop.permute.xlu0 %1211  ;;  %v5720_v32 = vsel %vm5698_vm13, %v13440_v31, %v5126_v14 }
 0x4e3   :  { %5040 = vrot.lane.b32.xlu1 %v13989_v2, %s10729_s24  ;;  %v5859_v22 = vsel %vm5827_vm14, %v5720_v32, %v13446_v56 }
 0x4e4   :  { %5329 = vrot.lane.b32.xlu0 %v14103_v24, %s10731_s0 }
 0x4e5   :  { %v9958_v55 = vpop.f32.mrf.mxu0  ;;  %v1214_v21 = vpop.permute.xlu1 %1213 }
 0x4e6   :  { %v3644_v4 = vadd.f32 %v13940_v41, %v9958_v55  ;;  %v14129_v8 = vpop.permute.xlu0 %5301 }
 0x4e7   :  { %v3635_v12 = vpop.f32.mrf.mxu0  ;;  %5331 = vrot.lane.b32.xlu1 %v14123_v15, %s10731_s0  ;;  %v6145_v31 = vsel %vm5827_vm14, %v6057_v52, %v14129_v8 }
 0x4e8   :  { %v3824_v42 = vmax.f32 %v3644_v4, 0.0  ;;  %v3636_v14 = vadd.f32 %v13940_v41, %v3635_v12  ;;  %5183 = vrot.lane.b32.xlu0 %v14103_v24, %s10730_s18  ;;  %6654 = vmatprep.mubr.bf16.mxu1 %v6145_v31 }
 0x4e9   :  { %v9959_v55 = vpop.f32.mrf.mxu0  ;;  %6655 = vmatmul.mubr.bf16.gmra.mxu1 %v5859_v22  ;;  %v1347_v58 = vpop.permute.xlu1 %1346 }
 0x4ea   :  { %v9638_v23 = vpack.c.bf16 %v3824_v42, %v3824_v42  ;;  %v3822_v2 = vmax.f32 %v3636_v14, 0.0  ;;  %v3647_v59 = vadd.f32 %v13940_v41, %v9959_v55  ;;  %v1345_v3 = vpop.permute.xlu0 %1344  ;;  %v14148_v14 = vld [vmem:[#allocation3 + $0x158] sm:$0xff]   ;;  %v2097_v55 = vsel %vm1905_vm2, %v13626_v40, %v14087_v49 }
 0x4eb   :  { %v3638_v37 = vpop.f32.mrf.mxu0  ;;  %5185 = vrot.lane.b32.xlu1 %v14123_v15, %s10730_s18 }
 0x4ec   :  { %4465 = vst.msk [vmem:[#allocation3 + $0x1b8] sm:$0xf] %vm4354_vm11, %v9638_v23  ;;  %v9636_v12 = vpack.c.bf16 %v3822_v2, %v3822_v2  ;;  %v3825_v52 = vmax.f32 %v3647_v59, 0.0  ;;  %v3639_v4 = vadd.f32 %v13940_v41, %v3638_v37  ;;  %5042 = vrot.lane.b32.xlu0 %v14001_v57, %s10729_s24  ;;  %v14157_v59 = vld [vmem:[#allocation3 + $0x160] sm:$0xff]  }
 0x4ed   :  { %v1480_v56 = vpop.permute.xlu1 %1479 }
 0x4ee   :  { %4463 = vst.msk [vmem:[#allocation3 + $0x1b0] sm:$0xf] %vm4354_vm11, %v9636_v12  ;;  %v9639_v32 = vpack.c.bf16 %v3825_v52, %v3825_v52  ;;  %v3823_v31 = vmax.f32 %v3639_v4, 0.0  ;;  %v1478_v42 = vpop.permute.xlu0 %1477  ;;  %v2094_v52 = vsel %vm1905_vm2, %v13605_v19, %v14073_v63  ;;  %v2226_v4 = vsel %vm2098_vm3, %v2097_v55, %v14093_v9 }
 0x4ef   :  { %5044 = vrot.lane.b32.xlu1 %v14033_v35, %s10729_s24 }
 0x4f0   :  { %4466 = vst.msk [vmem:[#allocation3 + $0x1bc] sm:$0xf] %vm4354_vm11, %v9639_v32  ;;  %v9637_v23 = vpack.c.bf16 %v3823_v31, %v3823_v31  ;;  %5333 = vrot.lane.b32.xlu0 %v14148_v14, %s10731_s0  ;;  %v2224_v32 = vsel %vm2098_vm3, %v2094_v52, %v14083_v46  ;;  %v2355_v31 = vsel %vm2227_vm4, %v2226_v4, %v1214_v21 }
 0x4f1   :  { %v14155_v37 = vpop.f32.mrf.mxu1  ;;  %v1638_v2 = vpop.permute.xlu1 %1637 }
 0x4f2   :  { %16159 = vst [vmem:[#allocation26_spill] sm:$0xff] %v14155_v37  ;;  %4464 = vst.msk [vmem:[#allocation3 + $0x1b4] sm:$0xf] %vm4354_vm11, %v9637_v23  ;;  %v1636_v22 = vpop.permute.xlu0 %1635  ;;  %v2353_v23 = vsel %vm2227_vm4, %v2224_v32, %v14101_v44  ;;  %v14192_v32 = vld [vmem:[#allocation3 + $0x168] sm:$0xff]   ;;  %v14354_v37 = vld [vmem:[#allocation3 + $0x1a0] sm:$0xff]  }
 0x4f3   :  { %v6610_v12 = vpop.f32.mrf.mxu1  ;;  %5335 = vrot.lane.b32.xlu1 %v14157_v59, %s10731_s0  ;;  %v2482_v63 = vsel %vm2356_vm5, %v2353_v23, %v1345_v3 }
 0x4f4   :  { %5187 = vrot.lane.b32.xlu0 %v14148_v14, %s10730_s18  ;;  %v2484_v12 = vsel %vm2356_vm5, %v2355_v31, %v1347_v58  ;;  %v2611_v46 = vsel %vm2485_vm6, %v2482_v63, %v1478_v42 }
 0x4f5   :  { %v14175_v40 = vpop.f32.mrf.mxu1  ;;  %v1771_v49 = vpop.permute.xlu1 %1770  ;;  %v2613_v9 = vsel %vm2485_vm6, %v2484_v12, %v1480_v56  ;;  %v2740_v44 = vsel %vm2614_vm7, %v2611_v46, %v1636_v22 }
 0x4f6   :  { %16160 = vst [vmem:[#allocation27_spill] sm:$0xff] %v14175_v40  ;;  %v1769_v19 = vpop.permute.xlu0 %1768  ;;  %v2742_v21 = vsel %vm2614_vm7, %v2613_v9, %v1638_v2  ;;  %v14203_v2 = vld [vmem:[#allocation3 + $0x170] sm:$0xff]  }
 0x4f7   :  { %v6613_v55 = vpop.f32.mrf.mxu1  ;;  %5189 = vrot.lane.b32.xlu1 %v14157_v59, %s10730_s18  ;;  %v2871_v58 = vsel %vm2743_vm8, %v2742_v21, %v1771_v49  ;;  %v2869_v3 = vsel %vm2743_vm8, %v2740_v44, %v1769_v19  ;;  %v10617_v49 = vld [vmem:[#allocation3 + $0xa0] sm:$0xff]  }
 0x4f8   :  { %5046 = vrot.lane.b32.xlu0 %v14044_v1, %s10729_s24  ;;  %v10323_v55 = vld [vmem:[%s16089_s6 + $0x120] ss:$8 sps:$4 sm:$0xff]  }
 0x4f9   :  { %v1904_v52 = vpop.permute.xlu1 %1903 }
 0x4fa   :  { %v3000_v56 = vsel %vm2872_vm9, %v2871_v58, %v1904_v52  ;;  %v1902_v4 = vpop.permute.xlu0 %1901  ;;  %v14240_v58 = vld [vmem:[#allocation3 + $0x178] sm:$0xff]   ;;  %v10618_v52 = vld [vmem:[#allocation3 + $0xa8] sm:$0xff]  }
 0x4fb   :  { %v2998_v31 = vsel %vm2872_vm9, %v2869_v3, %v1902_v4  ;;  %5048 = vrot.lane.b32.xlu1 %v14075_v51, %s10729_s24 }
 0x4fc   :  { %5337 = vrot.lane.b32.xlu0 %v14192_v32, %s10731_s0  ;;  %9972 = vmatprep.mubr.msk.bf16.mxu0 %vm3036_vm10, %v2998_v31 }
 0x4fd   :  { %9973 = vmatmul.mubr.msk.bf16.gmra.mxu0 %vm3036_vm10, %v3000_v56  ;;  %v14201_v42 = vpop.permute.xlu1 %5155 }
 0x4fe   :  { %9980 = vmatprep.mubr.msk.bf16.mxu0 %vm5505_vm12, %v14046_v28  ;;  %v5013_v22 = vpop.permute.xlu0 %5012  ;;  %v10325_v28 = vld [vmem:[%s16089_s6 + $0x124] ss:$8 sps:$4 sm:$0xff]  }
 0x4ff   :  { %v14208_v23 = vsel %vm5505_vm12, %v10617_v49, %v5013_v22  ;;  %5339 = vrot.lane.b32.xlu1 %v14203_v2, %s10731_s0  ;;  %8013 = vmatprep.subr.bf16.mxu1 %v10325_v28 }
 0x500   :  { %5191 = vrot.lane.b32.xlu0 %v14192_v32, %s10730_s18  ;;  %v6058_v19 = vsel %vm5698_vm13, %v14208_v23, %v14201_v42  ;;  %8014 = vmatpush1.bf16.msra.mxu1 %v10323_v55 }
 0x501   :  { %v14214_v12 = vpop.permute.xlu1 %5303 }
 0x502   :  { %v5128_v63 = vpop.permute.xlu0 %5127  ;;  %v6147_v9 = vsel %vm5827_vm14, %v6058_v19, %v14214_v12 }
 0x503   :  { %v5722_v46 = vsel %vm5698_vm13, %v13487_v16, %v5128_v63  ;;  %5193 = vrot.lane.b32.xlu1 %v14203_v2, %s10730_s18  ;;  %6662 = vmatprep.mubr.bf16.mxu1 %v6147_v9  ;;  %v10619_v63 = vld [vmem:[#allocation3 + $0xb0] sm:$0xff]  }
 0x504   :  { %5050 = vrot.lane.b32.xlu0 %v14085_v25, %s10729_s24  ;;  %v5862_v21 = vsel %vm5827_vm14, %v5722_v46, %v13496_v62 }
 0x505   :  { %6663 = vmatmul.mubr.bf16.gmra.mxu1 %v5862_v21  ;;  %9981 = vmatmul.mubr.msk.bf16.vlgmr.msra.gmra.mxu0 %vm5505_vm12, %v14115_v0  ;;  %v14237_v44 = vpop.permute.xlu1 %5157  ;;  %v14251_v0 = vld [vmem:[#allocation3 + $0x180] sm:$0xff]  }
 0x506   :  { %16161 = vst [vmem:[#allocation28_spill] sm:$0xff] %v14237_v44  ;;  %9984 = vmatprep.mubr.msk.bf16.mxu0 %vm5505_vm12, %v10617_v49  ;;  %v5015_v16 = vpop.permute.xlu0 %5014 }
 0x507   :  { %v14243_v3 = vsel %vm5505_vm12, %v10618_v52, %v5015_v16  ;;  %5052 = vrot.lane.b32.xlu1 %v14103_v24, %s10729_s24 }
 0x508   :  { %5341 = vrot.lane.b32.xlu0 %v14240_v58, %s10731_s0  ;;  %v6059_v56 = vsel %vm5698_vm13, %v14243_v3, %v14237_v44 }
 0x509   :  { %v14249_v62 = vpop.permute.xlu1 %5305 }
 0x50a   :  { %v5130_v4 = vpop.permute.xlu0 %5129  ;;  %v6149_v31 = vsel %vm5827_vm14, %v6059_v56, %v14249_v62  ;;  %v14282_v56 = vld [vmem:[#allocation3 + $0x188] sm:$0xff]  }
 0x50b   :  { %v5724_v22 = vsel %vm5698_vm13, %v13587_v39, %v5130_v4  ;;  %5343 = vrot.lane.b32.xlu1 %v14251_v0, %s10731_s0  ;;  %6670 = vmatprep.mubr.bf16.mxu1 %v6149_v31 }
 0x50c   :  { %5195 = vrot.lane.b32.xlu0 %v14240_v58, %s10730_s18  ;;  %v6616_v49 = vpop.f32.mrf.mxu1  ;;  %v5865_v19 = vsel %vm5827_vm14, %v5724_v22, %v13594_v33 }
 0x50d   :  { %6671 = vmatmul.mubr.bf16.gmra.mxu1 %v5865_v19  ;;  %9985 = vmatmul.mubr.msk.bf16.gmra.mxu0 %vm5505_vm12, %v10618_v52  ;;  %v14267_v28 = vpop.permute.xlu1 %5159  ;;  %v10620_v49 = vld [vmem:[#allocation3 + $0xb8] sm:$0xff]  }
 0x50e   :  { %16162 = vst [vmem:[#allocation29_spill] sm:$0xff] %v14267_v28  ;;  %9988 = vmatprep.mubr.msk.bf16.mxu0 %vm5505_vm12, %v10619_v63  ;;  %v5017_v39 = vpop.permute.xlu0 %5016  ;;  %v6617_v9 = vpop.f32.mrf.mxu1 }
 0x50f   :  { %v14271_v55 = vsel %vm5505_vm12, %v10619_v63, %v5017_v39  ;;  %5197 = vrot.lane.b32.xlu1 %v14251_v0, %s10730_s18  ;;  %v14297_v63 = vld [vmem:[#allocation3 + $0x190] sm:$0xff]   ;;  %v10621_v39 = vld [vmem:[#allocation3 + $0xc0] sm:$0xff]  }
 0x510   :  { %5054 = vrot.lane.b32.xlu0 %v14123_v15, %s10729_s24  ;;  %v6618_v33 = vpop.f32.mrf.mxu1  ;;  %v6060_v21 = vsel %vm5698_vm13, %v14271_v55, %v14267_v28 }
 0x511   :  { %v14277_v46 = vpop.permute.xlu1 %5307 }
 0x512   :  { %v5132_v16 = vpop.permute.xlu0 %5131  ;;  %v6619_v52 = vpop.f32.mrf.mxu1  ;;  %v6151_v4 = vsel %vm5827_vm14, %v6060_v21, %v14277_v46 }
 0x513   :  { %v5726_v31 = vsel %vm5698_vm13, %v13638_v27, %v5132_v16  ;;  %5056 = vrot.lane.b32.xlu1 %v14148_v14, %s10729_s24  ;;  %6676 = vmatprep.mubr.bf16.mxu1 %v6151_v4  ;;  %v5728_v52 = vsel %vm5698_vm13, %v13742_v50, %v13321_v43  ;;  %v14334_v50 = vld [vmem:[#allocation3 + $0x198] sm:$0xff]  }
 0x514   :  { %5345 = vrot.lane.b32.xlu0 %v14282_v56, %s10731_s0  ;;  %v5868_v22 = vsel %vm5827_vm14, %v5726_v31, %v13644_v5  ;;  %v5871_v4 = vsel %vm5827_vm14, %v5728_v52, %v13752_v13  ;;  %v10326_v13 = vld [vmem:[%s16089_s6 + $0x110] ss:$8 sps:$4 sm:$0xff]  }
 0x515   :  { %6677 = vmatmul.mubr.bf16.gmra.mxu1 %v5868_v22  ;;  %9989 = vmatmul.mubr.msk.bf16.gmra.mxu0 %vm5505_vm12, %v10620_v49  ;;  %v14295_v19 = vpop.permute.xlu1 %5161  ;;  %v10622_v22 = vld [vmem:[#allocation3 + $0xc8] sm:$0xff]  }
 0x516   :  { %16163 = vst [vmem:[#allocation30_spill] sm:$0xff] %v14295_v19  ;;  %9992 = vmatprep.mubr.msk.bf16.mxu0 %vm5505_vm12, %v10621_v39  ;;  %v5019_v27 = vpop.permute.xlu0 %5018 }
 0x517   :  { %v14301_v9 = vsel %vm5505_vm12, %v10620_v49, %v5019_v27  ;;  %5347 = vrot.lane.b32.xlu1 %v14297_v63, %s10731_s0 }
 0x518   :  { %5199 = vrot.lane.b32.xlu0 %v14282_v56, %s10730_s18  ;;  %v6061_v21 = vsel %vm5698_vm13, %v14301_v9, %v14295_v19 }
 0x519   :  { %v5021_v5 = vpop.permute.xlu1 %5020 }
 0x51a   :  { %v14307_v33 = vpop.permute.xlu0 %5309  ;;  %v14327_v27 = vsel %vm5505_vm12, %v10621_v39, %v5021_v5 }
 0x51b   :  { %5201 = vrot.lane.b32.xlu1 %v14297_v63, %s10730_s18  ;;  %v6153_v16 = vsel %vm5827_vm14, %v6061_v21, %v14307_v33 }
 0x51c   :  { %5058 = vrot.lane.b32.xlu0 %v14157_v59, %s10729_s24  ;;  %6682 = vmatprep.mubr.bf16.mxu1 %v6153_v16  ;;  %v10328_v16 = vld [vmem:[%s16089_s6 + $0x114] ss:$8 sps:$4 sm:$0xff]  }
 0x51d   :  { %v9962_v31 = vpop.f32.mrf.mxu0  ;;  %6683 = vmatmul.mubr.bf16.gmra.mxu1 %v5871_v4  ;;  %9993 = vmatmul.mubr.msk.bf16.gmra.mxu0 %vm5505_vm12, %v10622_v22  ;;  %v14324_v49 = vpop.permute.xlu1 %5311 }
 0x51e   :  { %v3660_v21 = vadd.f32 %v13940_v41, %v9962_v31  ;;  %9996 = vmatprep.mubr.msk.bf16.mxu0 %vm5505_vm12, %v13722_v53  ;;  %v14332_v43 = vpop.permute.xlu0 %5163  ;;  %8015 = vmatprep.subr.bf16.mxu1 %v10328_v16  ;;  %v5730_v16 = vsel %vm5698_vm13, %v13792_v30, %v13428_v36 }
 0x51f   :  { %16164 = vst [vmem:[#allocation31_spill] sm:$0xff] %v14332_v43  ;;  %v6062_v39 = vsel %vm5698_vm13, %v14327_v27, %v14332_v43  ;;  %v3651_v5 = vpop.f32.mrf.mxu0  ;;  %5060 = vrot.lane.b32.xlu1 %v14192_v32, %s10729_s24  ;;  %8016 = vmatpush1.bf16.msra.mxu1 %v10326_v13 }
 0x520   :  { %v3828_v53 = vmax.f32 %v3660_v21, 0.0  ;;  %v3652_v52 = vadd.f32 %v13940_v41, %v3651_v5  ;;  %5349 = vrot.lane.b32.xlu0 %v14334_v50, %s10731_s0  ;;  %v6155_v4 = vsel %vm5827_vm14, %v6062_v39, %v14324_v49 }
 0x521   :  { %v9963_v31 = vpop.f32.mrf.mxu0  ;;  %6688 = vmatprep.mubr.bf16.mxu1 %v6155_v4  ;;  %v14352_v40 = vpop.permute.xlu1 %5165  ;;  %v10623_v4 = vld [vmem:[#allocation3 + $0xd0] sm:$0xff]  }
 0x522   :  { %16165 = vst [vmem:[#allocation32_spill] sm:$0xff] %v14352_v40  ;;  %v9642_v43 = vpack.c.bf16 %v3828_v53, %v3828_v53  ;;  %v3826_v19 = vmax.f32 %v3652_v52, 0.0  ;;  %v3663_v21 = vadd.f32 %v13940_v41, %v9963_v31  ;;  %v5023_v28 = vpop.permute.xlu0 %5022 }
 0x523   :  { %v14358_v5 = vsel %vm5505_vm12, %v10622_v22, %v5023_v28  ;;  %v3654_v44 = vpop.f32.mrf.mxu0  ;;  %5351 = vrot.lane.b32.xlu1 %v14354_v37, %s10731_s0  ;;  %v5874_v28 = vsel %vm5827_vm14, %v5730_v16, %v13799_v48  ;;  %v14396_v16 = vld [vmem:[#allocation3 + $0x1a8] sm:$0xff]  }
 0x524   :  { %4469 = vst.msk [vmem:[#allocation3 + $0x1c8] sm:$0xf] %vm4354_vm11, %v9642_v43  ;;  %v9640_v39 = vpack.c.bf16 %v3826_v19, %v3826_v19  ;;  %v3829_v13 = vmax.f32 %v3663_v21, 0.0  ;;  %v3655_v53 = vadd.f32 %v13940_v41, %v3654_v44  ;;  %5203 = vrot.lane.b32.xlu0 %v14334_v50, %s10730_s18  ;;  %v6063_v44 = vsel %vm5698_vm13, %v14358_v5, %v14352_v40  ;;  %v16179_v40 = vld [vmem:[#allocation12_spill] sm:$0xff] }
 0x525   :  { %6689 = vmatmul.mubr.bf16.gmra.mxu1 %v5874_v28  ;;  %9997 = vmatmul.mubr.msk.bf16.gmra.mxu0 %vm5505_vm12, %v13781_v7  ;;  %v5025_v22 = vpop.permute.xlu1 %5024 }
 0x526   :  { %4467 = vst.msk [vmem:[#allocation3 + $0x1c0] sm:$0xf] %vm4354_vm11, %v9640_v39  ;;  %v9643_v36 = vpack.c.bf16 %v3829_v13, %v3829_v13  ;;  %v3827_v30 = vmax.f32 %v3655_v53, 0.0  ;;  %10000 = vmatprep.mubr.msk.bf16.mxu0 %vm5505_vm12, %v13845_v54  ;;  %v14376_v19 = vpop.permute.xlu0 %5313  ;;  %v14392_v31 = vsel %vm5505_vm12, %v10623_v4, %v5025_v22  ;;  %v5732_v53 = vsel %vm5698_vm13, %v13886_v11, %v13471_v17 }
 0x527   :  { %5205 = vrot.lane.b32.xlu1 %v14354_v37, %s10730_s18  ;;  %v6157_v7 = vsel %vm5827_vm14, %v6063_v44, %v14376_v19  ;;  %v5877_v28 = vsel %vm5827_vm14, %v5732_v53, %v13894_v29  ;;  %v14416_v44 = vld [vmem:[#allocation3 + $0x1b0] sm:$0xff]   ;;  %v10624_v29 = vld [vmem:[#allocation3 + $0xd8] sm:$0xff]   ;;  %v5734_v4 = vsel %vm5698_vm13, %v13948_v60, %v13574_v18 }
 0x528   :  { %4470 = vst.msk [vmem:[#allocation3 + $0x1cc] sm:$0xf] %vm4354_vm11, %v9643_v36  ;;  %v9641_v48 = vpack.c.bf16 %v3827_v30, %v3827_v30  ;;  %5062 = vrot.lane.b32.xlu0 %v14203_v2, %s10729_s24  ;;  %6694 = vmatprep.mubr.bf16.mxu1 %v6157_v7  ;;  %v14451_v60 = vld [vmem:[#allocation3 + $0x1b8] sm:$0xff]  }
 0x529   :  { %v6622_v43 = vpop.f32.mrf.mxu1  ;;  %v14388_v52 = vpop.permute.xlu1 %5315 }
 0x52a   :  { %4468 = vst.msk [vmem:[#allocation3 + $0x1c4] sm:$0xf] %vm4354_vm11, %v9641_v48  ;;  %v14394_v21 = vpop.permute.xlu0 %5167 }
 0x52b   :  { %16166 = vst [vmem:[#allocation33_spill] sm:$0xff] %v14394_v21  ;;  %v6064_v39 = vsel %vm5698_vm13, %v14392_v31, %v14394_v21  ;;  %v6623_v13 = vpop.f32.mrf.mxu1  ;;  %5064 = vrot.lane.b32.xlu1 %v14240_v58, %s10729_s24 }
 0x52c   :  { %5353 = vrot.lane.b32.xlu0 %v14396_v16, %s10731_s0  ;;  %v6159_v22 = vsel %vm5827_vm14, %v6064_v39, %v14388_v52  ;;  %v5880_v39 = vsel %vm5827_vm14, %v5734_v4, %v13956_v38 }
 0x52d   :  { %v6624_v36 = vpop.f32.mrf.mxu1  ;;  %6695 = vmatmul.mubr.bf16.gmra.mxu1 %v5877_v28  ;;  %10001 = vmatmul.mubr.msk.bf16.gmra.mxu0 %vm5505_vm12, %v13869_v6  ;;  %v14414_v30 = vpop.permute.xlu1 %5169 }
 0x52e   :  { %16167 = vst [vmem:[#allocation34_spill] sm:$0xff] %v14414_v30  ;;  %10004 = vmatprep.mubr.msk.bf16.mxu0 %vm5505_vm12, %v13889_v61  ;;  %v5027_v17 = vpop.permute.xlu0 %5026  ;;  %6702 = vmatprep.mubr.bf16.mxu1 %v6159_v22 }
 0x52f   :  { %v6625_v11 = vpop.f32.mrf.mxu1  ;;  %5355 = vrot.lane.b32.xlu1 %v14416_v44, %s10731_s0  ;;  %v14425_v7 = vsel %vm5505_vm12, %v10624_v29, %v5027_v17  ;;  %v5736_v29 = vsel %vm5698_vm13, %v14050_v34, %v13622_v26 }
 0x530   :  { %5207 = vrot.lane.b32.xlu0 %v14396_v16, %s10730_s18  ;;  %v6065_v13 = vsel %vm5698_vm13, %v14425_v7, %v14414_v30 }
 0x531   :  { %v5029_v48 = vpop.permute.xlu1 %5028  ;;  %v14463_v36 = vld [vmem:[#allocation3 + $0x1c0] sm:$0xff]  }
 0x532   :  { %v14427_v43 = vpop.permute.xlu0 %5317  ;;  %v14459_v38 = vsel %vm5505_vm12, %v13845_v54, %v5029_v48  ;;  %16170 = vst [vmem:[#allocation37_spill] sm:$0xff] %v14463_v36  ;;  %v5883_v54 = vsel %vm5827_vm14, %v5736_v29, %v14056_v45  ;;  %v16175_v29 = vld [vmem:[#allocation25_spill] sm:$0xff] }
 0x533   :  { %5209 = vrot.lane.b32.xlu1 %v14416_v44, %s10730_s18  ;;  %v6161_v28 = vsel %vm5827_vm14, %v6065_v13, %v14427_v43 }
 0x534   :  { %5066 = vrot.lane.b32.xlu0 %v14251_v0, %s10729_s24 }
 0x535   :  { %6703 = vmatmul.mubr.bf16.gmra.mxu1 %v5880_v39  ;;  %10005 = vmatmul.mubr.msk.bf16.gmra.mxu0 %vm5505_vm12, %v13915_v20  ;;  %v14443_v53 = vpop.permute.xlu1 %5319  ;;  %v16171_v39 = vld [vmem:[#allocation17_spill] sm:$0xff] }
 0x536   :  { %10008 = vmatprep.mubr.msk.bf16.mxu0 %vm5505_vm12, %v13929_v10  ;;  %v14449_v18 = vpop.permute.xlu0 %5171  ;;  %6710 = vmatprep.mubr.bf16.mxu1 %v6161_v28  ;;  %v14497_v28 = vld [vmem:[#allocation3 + $0x1c8] sm:$0xff]  }
 0x537   :  { %16168 = vst [vmem:[#allocation35_spill] sm:$0xff] %v14449_v18  ;;  %5068 = vrot.lane.b32.xlu1 %v14282_v56, %s10729_s24  ;;  %v6066_v17 = vsel %vm5698_vm13, %v14459_v38, %v14449_v18  ;;  %16173 = vst [vmem:[#allocation38_spill] sm:$0xff] %v14497_v28  ;;  %v16176_v18 = vld [vmem:[#allocation20_spill] sm:$0xff] }
 0x538   :  { %5357 = vrot.lane.b32.xlu0 %v14451_v60, %s10731_s0  ;;  %v6163_v4 = vsel %vm5827_vm14, %v6066_v17, %v14443_v53  ;;  %v16174_v17 = vld [vmem:[#allocation11_spill] sm:$0xff] }
 0x539   :  { %v14461_v22 = vpop.permute.xlu1 %5173 }
 0x53a   :  { %16169 = vst [vmem:[#allocation36_spill] sm:$0xff] %v14461_v22  ;;  %v5031_v11 = vpop.permute.xlu0 %5030 }
 0x53b   :  { %5359 = vrot.lane.b32.xlu1 %v14463_v36, %s10731_s0  ;;  %v14491_v26 = vsel %vm5505_vm12, %v13869_v6, %v5031_v11 }
 0x53c   :  { %5211 = vrot.lane.b32.xlu0 %v14451_v60, %s10730_s18  ;;  %v6067_v11 = vsel %vm5698_vm13, %v14491_v26, %v14461_v22 }
 0x53d   :  { %6711 = vmatmul.mubr.bf16.gmra.mxu1 %v5883_v54  ;;  %10009 = vmatmul.mubr.msk.bf16.gmra.mxu0 %vm5505_vm12, %v13959_v47  ;;  %v5033_v48 = vpop.permute.xlu1 %5032  ;;  %v5738_v54 = vsel %vm5698_vm13, %v16175_v29, %v16174_v17 }
 0x53e   :  { %10012 = vmatprep.mubr.msk.bf16.mxu0 %vm5505_vm12, %v16171_v39  ;;  %v14483_v13 = vpop.permute.xlu0 %5321  ;;  %6718 = vmatprep.mubr.bf16.mxu1 %v6163_v4  ;;  %v5886_v6 = vsel %vm5827_vm14, %v5738_v54, %v14129_v8  ;;  %v10331_v8 = vld [vmem:[%s16089_s6 + $0x100] ss:$8 sps:$4 sm:$0xff]   ;;  %v10333_v54 = vld [vmem:[%s16089_s6 + $0x104] ss:$8 sps:$4 sm:$0xff]  }
 0x53f   :  { %5213 = vrot.lane.b32.xlu1 %v14463_v36, %s10730_s18  ;;  %v6165_v17 = vsel %vm5827_vm14, %v6067_v11, %v14483_v13  ;;  %8017 = vmatprep.subr.bf16.mxu1 %v10333_v54  ;;  %v14529_v11 = vsel %vm5505_vm12, %v13889_v61, %v5033_v48  ;;  %v5740_v36 = vsel %vm5698_vm13, %v14208_v23, %v16179_v40 }
 0x540   :  { %5070 = vrot.lane.b32.xlu0 %v14297_v63, %s10729_s24  ;;  %8018 = vmatpush1.bf16.msra.mxu1 %v10331_v8  ;;  %v5889_v61 = vsel %vm5827_vm14, %v5740_v36, %v14214_v12  ;;  %v16182_v36 = vld [vmem:[#allocation13_spill] sm:$0xff] }
 0x541   :  { %v14493_v34 = vpop.permute.xlu1 %5323  ;;  %v5742_v54 = vsel %vm5698_vm13, %v14243_v3, %v16182_v36 }
 0x542   :  { %v14495_v45 = vpop.permute.xlu0 %5175 }
 0x543   :  { %16172 = vst [vmem:[#allocation17_spill] sm:$0xff] %v14495_v45  ;;  %5072 = vrot.lane.b32.xlu1 %v14334_v50, %s10729_s24 }
 0x544   :  { %5361 = vrot.lane.b32.xlu0 %v14497_v28, %s10731_s0  ;;  %v6628_v4 = vpop.f32.mrf.mxu1 }
 0x545   :  { %6719 = vmatmul.mubr.bf16.gmra.mxu1 %v5886_v6  ;;  %10013 = vmatmul.mubr.msk.bf16.gmra.mxu0 %vm5505_vm12, %v16176_v18  ;;  %v14513_v30 = vpop.permute.xlu1 %5177 }
 0x546   :  { %16177 = vst [vmem:[#allocation11_spill] sm:$0xff] %v14513_v30  ;;  %10016 = vmatprep.mubr.msk.bf16.mxu0 %vm5505_vm12, %v14001_v57  ;;  %v5035_v29 = vpop.permute.xlu0 %5034  ;;  %v6629_v4 = vpop.f32.mrf.mxu1  ;;  %6726 = vmatprep.mubr.bf16.mxu1 %v6165_v17  ;;  %v6068_v17 = vsel %vm5698_vm13, %v14529_v11, %v14495_v45 }
 0x547   :  { %v6167_v8 = vsel %vm5827_vm14, %v6068_v17, %v14493_v34  ;;  %v14555_v40 = vsel %vm5505_vm12, %v13915_v20, %v5035_v29 }
 0x548   :  { %5215 = vrot.lane.b32.xlu0 %v14497_v28, %s10730_s18  ;;  %v6630_v6 = vpop.f32.mrf.mxu1  ;;  %16181 = vst [vmem:[#allocation12_spill] sm:$0xff] %v14555_v40  ;;  %v6069_v17 = vsel %vm5698_vm13, %v14555_v40, %v14513_v30  ;;  %v16183_v40 = vld [vmem:[#allocation16_spill] sm:$0xff] }
 0x549   :  { %v5037_v22 = vpop.permute.xlu1 %5036  ;;  %v5892_v6 = vsel %vm5827_vm14, %v5742_v54, %v14249_v62 }
 0x54a   :  { %v14534_v4 = vpop.permute.xlu0 %5325  ;;  %v6631_v21 = vpop.f32.mrf.mxu1 }
 0x54b   :  { %16178 = vst [vmem:[#allocation25_spill] sm:$0xff] %v14534_v4  ;;  %v6169_v29 = vsel %vm5827_vm14, %v6069_v17, %v14534_v4 }
 0x54c   :  { %5074 = vrot.lane.b32.xlu0 %v14354_v37, %s10729_s24 }
 0x54d   :  { %6727 = vmatmul.mubr.bf16.gmra.mxu1 %v5889_v61  ;;  %10017 = vmatmul.mubr.msk.bf16.gmra.mxu0 %vm5505_vm12, %v14033_v35  ;;  %v14545_v48 = vpop.permute.xlu1 %5327 }
 0x54e   :  { %10020 = vmatprep.mubr.msk.bf16.mxu0 %vm5505_vm12, %v14044_v1  ;;  %v14551_v21 = vpop.permute.xlu0 %5179  ;;  %6732 = vmatprep.mubr.bf16.mxu1 %v6167_v8 }
 0x54f   :  { %16180 = vst [vmem:[#allocation20_spill] sm:$0xff] %v14551_v21 }
 0x551   :  { %v14557_v23 = vpop.permute.xlu1 %5181 }
 0x552   :  { %v5039_v12 = vpop.permute.xlu0 %5038 }
 0x555   :  { %v9966_v61 = vpop.f32.mrf.mxu0  ;;  %6733 = vmatmul.mubr.bf16.gmra.mxu1 %v5892_v6  ;;  %10021 = vmatmul.mubr.msk.bf16.gmra.mxu0 %vm5505_vm12, %v14075_v51  ;;  %v14569_v20 = vpop.permute.xlu1 %5040  ;;  %v14581_v6 = vsel %vm5505_vm12, %v13929_v10, %v5037_v22 }
 0x556   :  { %v3676_v8 = vadd.f32 %v13940_v41, %v9966_v61  ;;  %10024 = vmatprep.mubr.msk.bf16.mxu0 %vm5505_vm12, %v14085_v25  ;;  %v14576_v3 = vpop.permute.xlu0 %5329  ;;  %6738 = vmatprep.mubr.bf16.mxu1 %v6169_v29  ;;  %v6070_v17 = vsel %vm5698_vm13, %v14581_v6, %v14551_v21 }
 0x557   :  { %v3667_v62 = vpop.f32.mrf.mxu0 }
 0x558   :  { %v3832_v36 = vmax.f32 %v3676_v8, 0.0  ;;  %v3668_v54 = vadd.f32 %v13940_v41, %v3667_v62  ;;  %v5744_v62 = vsel %vm5698_vm13, %v14271_v55, %v16183_v40  ;;  %v10336_v55 = vld [vmem:[%s16089_s6 + $0x70] ss:$8 sps:$4 sm:$0xff]  }
 0x559   :  { %v9967_v30 = vpop.f32.mrf.mxu0  ;;  %v14583_v45 = vpop.permute.xlu1 %5331  ;;  %v5895_v21 = vsel %vm5827_vm14, %v5744_v62, %v14277_v46  ;;  %v10341_v40 = vld [vmem:[%s16089_s6 + $0x1f0] ss:$8 sps:$4 sm:$0xff]  }
 0x55a   :  { %v9646_v61 = vpack.c.bf16 %v3832_v36, %v3832_v36  ;;  %v3830_v25 = vmax.f32 %v3668_v54, 0.0  ;;  %v3679_v4 = vadd.f32 %v13940_v41, %v9967_v30  ;;  %v14589_v29 = vpop.permute.xlu0 %5183  ;;  %v6171_v36 = vsel %vm5827_vm14, %v6070_v17, %v14545_v48  ;;  %v10343_v54 = vld [vmem:[%s16089_s6 + $0x1f4] ss:$8 sps:$4 sm:$0xff]  }
 0x55b   :  { %v3670_v8 = vpop.f32.mrf.mxu0  ;;  %8019 = vmatprep.subr.bf16.mxu1 %v10343_v54 }
 0x55c   :  { %4473 = vst.msk [vmem:[#allocation3 + $0x1d8] sm:$0xf] %vm4354_vm11, %v9646_v61  ;;  %v9644_v10 = vpack.c.bf16 %v3830_v25, %v3830_v25  ;;  %v3833_v22 = vmax.f32 %v3679_v4, 0.0  ;;  %v3671_v28 = vadd.f32 %v13940_v41, %v3670_v8  ;;  %v10338_v41 = vld [vmem:[%s16089_s6 + $0x74] ss:$8 sps:$4 sm:$0xff]   ;;  %v16184_v8 = vld [vmem:[#allocation21_spill] sm:$0xff]  ;;  %8020 = vmatpush2.bf16.msra.mxu1 %v10341_v40 }
 0x55d   :  { %6739 = vmatmul.mubr.bf16.gmra.mxu1 %v5895_v21  ;;  %10025 = vmatmul.mubr.msk.bf16.gmra.mxu0 %vm5505_vm12, %v14103_v24  ;;  %v14600_v30 = vpop.permute.xlu1 %5185  ;;  %v5746_v62 = vsel %vm5698_vm13, %v14301_v9, %v16184_v8 }
 0x55e   :  { %4471 = vst.msk [vmem:[#allocation3 + $0x1d0] sm:$0xf] %vm4354_vm11, %v9644_v10  ;;  %v9647_v46 = vpack.c.bf16 %v3833_v22, %v3833_v22  ;;  %v3831_v4 = vmax.f32 %v3671_v28, 0.0  ;;  %10028 = vmatprep.mubr.msk.bf16.mxu0 %vm5505_vm12, %v14123_v15  ;;  %v5043_v24 = vpop.permute.xlu0 %5042  ;;  %6744 = vmatprep.mubr.bf16.mxu1 %v6171_v36  ;;  %v14622_v28 = vsel %vm5505_vm12, %v13959_v47, %v5039_v12 }
 0x55f   :  { %7960 = vmatprep.subr.bf16.mxu0 %v10338_v41  ;;  %v5898_v10 = vsel %vm5827_vm14, %v5746_v62, %v14307_v33  ;;  %v6071_v47 = vsel %vm5698_vm13, %v14622_v28, %v14557_v23  ;;  %v5750_v62 = vsel %vm5698_vm13, %v14358_v5, %v14201_v42 }
 0x560   :  { %4474 = vst.msk [vmem:[#allocation3 + $0x1dc] sm:$0xf] %vm4354_vm11, %v9647_v46  ;;  %v9645_v21 = vpack.c.bf16 %v3831_v4, %v3831_v4  ;;  %7961 = vmatpush1.bf16.msra.mxu0 %v10336_v55  ;;  %v6173_v36 = vsel %vm5827_vm14, %v6071_v47, %v14576_v3  ;;  %v14656_v46 = vsel %vm5505_vm12, %v16171_v39, %v14569_v20 }
 0x561   :  { %v6634_v15 = vpop.f32.mrf.mxu1  ;;  %v5045_v17 = vpop.permute.xlu1 %5044 }
 0x562   :  { %4472 = vst.msk [vmem:[#allocation3 + $0x1d4] sm:$0xf] %vm4354_vm11, %v9645_v21  ;;  %v14625_v61 = vpop.permute.xlu0 %5333  ;;  %v16187_v21 = vld [vmem:[#allocation24_spill] sm:$0xff]  ;;  %v14690_v15 = vsel %vm5505_vm12, %v16176_v18, %v5043_v24  ;;  %v5904_v18 = vsel %vm5827_vm14, %v5750_v62, %v14376_v19  ;;  %v14718_v5 = vsel %vm5505_vm12, %v14001_v57, %v5045_v17 }
 0x563   :  { %v6635_v25 = vpop.f32.mrf.mxu1  ;;  %v5748_v40 = vsel %vm5698_vm13, %v14327_v27, %v16187_v21  ;;  %v6073_v24 = vsel %vm5698_vm13, %v14690_v15, %v14600_v30 }
 0x564   :  { %v5901_v54 = vsel %vm5827_vm14, %v5748_v40, %v14324_v49  ;;  %v10348_v49 = vld [vmem:[%s16089_s6 + $0x64] ss:$8 sps:$4 sm:$0xff]   ;;  %v6177_v47 = vsel %vm5827_vm14, %v6073_v24, %v14625_v61 }
 0x565   :  { %v6636_v12 = vpop.f32.mrf.mxu1  ;;  %6745 = vmatmul.mubr.bf16.gmra.mxu1 %v5898_v10  ;;  %10029 = vmatmul.mubr.msk.bf16.gmra.mxu0 %vm5505_vm12, %v14148_v14  ;;  %v14637_v22 = vpop.permute.xlu1 %5335 }
 0x566   :  { %10032 = vmatprep.mubr.msk.bf16.mxu0 %vm5505_vm12, %v14157_v59  ;;  %v14643_v9 = vpop.permute.xlu0 %5187  ;;  %6750 = vmatprep.mubr.bf16.mxu1 %v6173_v36  ;;  %v6072_v59 = vsel %vm5698_vm13, %v14656_v46, %v14589_v29 }
 0x567   :  { %16185 = vst [vmem:[#allocation13_spill] sm:$0xff] %v14643_v9  ;;  %v6637_v33 = vpop.f32.mrf.mxu1  ;;  %v14645_v55 = vld [vmem:[#allocation3 + $0x1d8] sm:$0xff]   ;;  %v6175_v27 = vsel %vm5827_vm14, %v6072_v59, %v14583_v45  ;;  %7962 = vmatprep.subr.bf16.mxu0 %v10348_v49  ;;  %v6074_v12 = vsel %vm5698_vm13, %v14718_v5, %v14643_v9  ;;  %v16204_v9 = vld [vmem:[#allocation12_spill] sm:$0xff] }
 0x568   :  { %5365 = vrot.lane.b32.xlu0 %v14645_v55, %s10731_s0  ;;  %v16190_v33 = vld [vmem:[#allocation28_spill] sm:$0xff]  ;;  %v6179_v17 = vsel %vm5827_vm14, %v6074_v12, %v14637_v22  ;;  %v16194_v12 = vld [vmem:[#allocation29_spill] sm:$0xff] }
 0x569   :  { %v14647_v41 = vpop.permute.xlu1 %5189  ;;  %v14651_v14 = vld [vmem:[#allocation3 + $0x1d0] sm:$0xff]   ;;  %v5752_v59 = vsel %vm5698_vm13, %v14392_v31, %v16190_v33  ;;  %v5754_v33 = vsel %vm5698_vm13, %v14425_v7, %v16194_v12 }
 0x56a   :  { %16186 = vst [vmem:[#allocation16_spill] sm:$0xff] %v14647_v41  ;;  %v5047_v4 = vpop.permute.xlu0 %5046  ;;  %5363 = vrot.lane.b32.xlu1 %v14651_v14, %s10731_s0  ;;  %v5907_v40 = vsel %vm5827_vm14, %v5752_v59, %v14388_v52  ;;  %v10351_v52 = vld [vmem:[%s16089_s6 + $0x50] ss:$8 sps:$4 sm:$0xff]   ;;  %v5910_v59 = vsel %vm5827_vm14, %v5754_v33, %v14427_v43  ;;  %v10359_v33 = vld [vmem:[%s16089_s6 + $0x40] ss:$8 sps:$4 sm:$0xff]  }
 0x56b   :  { %v14760_v62 = vsel %vm5505_vm12, %v14033_v35, %v5047_v4 }
 0x56c   :  { %5219 = vrot.lane.b32.xlu0 %v14645_v55, %s10730_s18  ;;  %v6075_v35 = vsel %vm5698_vm13, %v14760_v62, %v14647_v41  ;;  %v16203_v41 = vld [vmem:[#allocation33_spill] sm:$0xff] }
 0x56d   :  { %6751 = vmatmul.mubr.bf16.gmra.mxu1 %v5901_v54  ;;  %10033 = vmatmul.mubr.msk.bf16.gmra.mxu0 %vm5505_vm12, %v14192_v32  ;;  %v14670_v39 = vpop.permute.xlu1 %5048  ;;  %v10346_v32 = vld [vmem:[%s16089_s6 + $0x60] ss:$8 sps:$4 sm:$0xff]  }
 0x56e   :  { %10036 = vmatprep.mubr.msk.bf16.mxu0 %vm5505_vm12, %v14203_v2  ;;  %v14676_v20 = vpop.permute.xlu0 %5337  ;;  %6758 = vmatprep.mubr.bf16.mxu1 %v6175_v27  ;;  %v10353_v27 = vld [vmem:[%s16089_s6 + $0x54] ss:$8 sps:$4 sm:$0xff]   ;;  %v14787_v43 = vsel %vm5505_vm12, %v14044_v1, %v14670_v39 }
 0x56f   :  { %5217 = vrot.lane.b32.xlu1 %v14651_v14, %s10730_s18  ;;  %7963 = vmatpush1.bf16.msra.mxu0 %v10346_v32  ;;  %v10354_v32 = vld [vmem:[%s16089_s6 + $0x1e0] ss:$8 sps:$4 sm:$0xff]  }
 0x570   :  { %5078 = vrot.lane.b32.xlu0 %v14416_v44, %s10729_s24  ;;  %7964 = vmatprep.subr.bf16.mxu0 %v10353_v27 }
 0x571   :  { %v14692_v25 = vpop.permute.xlu1 %5339 }
 0x572   :  { %v14696_v8 = vpop.permute.xlu0 %5191 }
 0x573   :  { %16188 = vst [vmem:[#allocation21_spill] sm:$0xff] %v14696_v8  ;;  %5076 = vrot.lane.b32.xlu1 %v14396_v16, %s10729_s24  ;;  %7965 = vmatpush1.bf16.msra.mxu0 %v10351_v52  ;;  %v16195_v52 = vld [vmem:[#allocation30_spill] sm:$0xff] }
 0x575   :  { %6759 = vmatmul.mubr.bf16.gmra.mxu1 %v5904_v18  ;;  %10037 = vmatmul.mubr.msk.bf16.gmra.mxu0 %vm5505_vm12, %v14240_v58  ;;  %v14710_v10 = vpop.permute.xlu1 %5193 }
 0x576   :  { %16189 = vst [vmem:[#allocation24_spill] sm:$0xff] %v14710_v10  ;;  %10040 = vmatprep.mubr.msk.bf16.mxu0 %vm5505_vm12, %v14251_v0  ;;  %v5051_v42 = vpop.permute.xlu0 %5050  ;;  %6766 = vmatprep.mubr.bf16.mxu1 %v6177_v47 }
 0x579   :  { %v14720_v19 = vpop.permute.xlu1 %5052 }
 0x57a   :  { %v14725_v36 = vpop.permute.xlu0 %5341 }
 0x57c   :  { %v14730_v21 = vpop.f32.mrf.mxu1 }
 0x57d   :  { %6767 = vmatmul.mubr.bf16.gmra.mxu1 %v5907_v40  ;;  %10041 = vmatmul.mubr.msk.bf16.gmra.mxu0 %vm5505_vm12, %v14282_v56  ;;  %v14736_v57 = vpop.permute.xlu1 %5343  ;;  %v6181_v40 = vsel %vm5827_vm14, %v6075_v35, %v14676_v20  ;;  %v14826_v35 = vsel %vm5505_vm12, %v14075_v51, %v5051_v42 }
 0x57e   :  { %16191 = vst [vmem:[#allocation28_spill] sm:$0xff] %v14736_v57  ;;  %10044 = vmatprep.mubr.msk.bf16.mxu0 %vm5505_vm12, %v14297_v63  ;;  %v14742_v54 = vpop.permute.xlu0 %5195  ;;  %v6642_v31 = vpop.f32.mrf.mxu1  ;;  %6774 = vmatprep.mubr.bf16.mxu1 %v6179_v17  ;;  %v10356_v63 = vld [vmem:[%s16089_s6 + $0x1e4] ss:$8 sps:$4 sm:$0xff]  }
 0x57f   :  { %16192 = vst [vmem:[#allocation39_spill] sm:$0xff] %v14742_v54  ;;  %8021 = vmatprep.subr.bf16.mxu1 %v10356_v63  ;;  %v14810_v63 = vld [vmem:[%s16086_s3] ss:$0 sm:$0xff] }
 0x580   :  { %v14756_v49 = vpop.f32.mrf.mxu1  ;;  %8022 = vmatpush2.bf16.msra.mxu1 %v10354_v32 }
 0x581   :  { %16193 = vst [vmem:[#allocation40_spill] sm:$0xff] %v14756_v49  ;;  %v14762_v18 = vpop.permute.xlu1 %5197  ;;  %v16205_v49 = vld [vmem:[#allocation25_spill] sm:$0xff] }
 0x582   :  { %v14764_v24 = vpop.permute.xlu0 %5054  ;;  %v6645_v47 = vpop.f32.mrf.mxu1 }
 0x585   :  { %6775 = vmatmul.mubr.bf16.gmra.mxu1 %v5910_v59  ;;  %10045 = vmatmul.mubr.msk.bf16.gmra.mxu0 %vm5505_vm12, %v14334_v50  ;;  %v14776_v4 = vpop.permute.xlu1 %5056  ;;  %v6076_v50 = vsel %vm5698_vm13, %v14787_v43, %v14696_v8  ;;  %v10361_v59 = vld [vmem:[%s16089_s6 + $0x44] ss:$8 sps:$4 sm:$0xff]  }
 0x586   :  { %10048 = vmatprep.mubr.msk.bf16.mxu0 %vm5505_vm12, %v14354_v37  ;;  %v14782_v7 = vpop.permute.xlu0 %5345  ;;  %6782 = vmatprep.mubr.bf16.mxu1 %v6181_v40  ;;  %v5756_v37 = vsel %vm5698_vm13, %v14459_v38, %v16195_v52  ;;  %v6183_v39 = vsel %vm5827_vm14, %v6076_v50, %v14692_v25  ;;  %v16196_v50 = vld [vmem:[#allocation31_spill] sm:$0xff] }
 0x587   :  { %v5913_v27 = vsel %vm5827_vm14, %v5756_v37, %v14443_v53  ;;  %v5758_v52 = vsel %vm5698_vm13, %v14491_v26, %v16196_v50  ;;  %7966 = vmatprep.subr.bf16.mxu0 %v10361_v59  ;;  %v6077_v26 = vsel %vm5698_vm13, %v14826_v35, %v14710_v10 }
 0x588   :  { %7967 = vmatpush1.bf16.msra.mxu0 %v10359_v33 }
 0x589   :  { %v14789_v17 = vpop.permute.xlu1 %5347 }
 0x58a   :  { %v14794_v31 = vpop.permute.xlu0 %5199 }
 0x58d   :  { %v9970_v32 = vpop.f32.mrf.mxu0  ;;  %6783 = vmatmul.mubr.bf16.gmra.mxu1 %v5913_v27  ;;  %10049 = vmatmul.mubr.msk.bf16.gmra.mxu0 %vm5505_vm12, %v14396_v16  ;;  %v14803_v1 = vpop.permute.xlu1 %5201 }
 0x58e   :  { %v3692_v38 = vadd.f32 %v14810_v63, %v9970_v32  ;;  %10052 = vmatprep.mubr.msk.bf16.mxu0 %vm5505_vm12, %v14416_v44  ;;  %v14815_v53 = vpop.permute.xlu0 %5058  ;;  %6788 = vmatprep.mubr.bf16.mxu1 %v6183_v39 }
 0x58f   :  { %v3683_v47 = vpop.f32.mrf.mxu0 }
 0x590   :  { %v3836_v16 = vmax.f32 %v3692_v38, 0.0  ;;  %v3684_v12 = vadd.f32 %v14810_v63, %v3683_v47  ;;  %v5916_v47 = vsel %vm5827_vm14, %v5758_v52, %v14483_v13  ;;  %v6185_v13 = vsel %vm5827_vm14, %v6077_v26, %v14725_v36 }
 0x591   :  { %v9971_v44 = vpop.f32.mrf.mxu0  ;;  %v14828_v40 = vpop.permute.xlu1 %5060 }
 0x592   :  { %v9650_v37 = vpack.c.bf16 %v3836_v16, %v3836_v16  ;;  %v3834_v27 = vmax.f32 %v3684_v12, 0.0  ;;  %v3695_v32 = vadd.f32 %v14810_v63, %v9971_v44  ;;  %v14834_v39 = vpop.permute.xlu0 %5349  ;;  %v16198_v44 = vld [vmem:[#allocation37_spill] sm:$0xff] }
 0x593   :  { %v3686_v38 = vpop.f32.mrf.mxu0 }
 0x594   :  { %4477 = vst.msk [vmem:[#allocation3 + $0x1e8] sm:$0xf] %vm4354_vm11, %v9650_v37  ;;  %v9648_v51 = vpack.c.bf16 %v3834_v27, %v3834_v27  ;;  %v3837_v42 = vmax.f32 %v3695_v32, 0.0  ;;  %v3687_v8 = vadd.f32 %v14810_v63, %v3686_v38  ;;  %v10626_v27 = vld [vmem:[#allocation3 + $0x140] sm:$0xff]  }
 0x595   :  { %v14843_v16 = vpop.f32.mrf.mxu1  ;;  %6789 = vmatmul.mubr.bf16.gmra.mxu1 %v5916_v47  ;;  %10053 = vmatmul.mubr.msk.bf16.gmra.mxu0 %vm5505_vm12, %v14451_v60  ;;  %v14847_v12 = vpop.permute.xlu1 %5351  ;;  %v14859_v32 = vsel %vm5505_vm12, %v10626_v27, %v14720_v19 }
 0x596   :  { %16197 = vst [vmem:[#allocation29_spill] sm:$0xff] %v14847_v12  ;;  %4475 = vst.msk [vmem:[#allocation3 + $0x1e0] sm:$0xf] %vm4354_vm11, %v9648_v51  ;;  %v9651_v33 = vpack.c.bf16 %v3837_v42, %v3837_v42  ;;  %v3835_v59 = vmax.f32 %v3687_v8, 0.0  ;;  %10056 = vmatprep.mubr.msk.bf16.mxu0 %vm5505_vm12, %v16198_v44  ;;  %v14854_v50 = vpop.permute.xlu0 %5203  ;;  %6794 = vmatprep.mubr.bf16.mxu1 %v6185_v13  ;;  %v6078_v8 = vsel %vm5698_vm13, %v14859_v32, %v14742_v54  ;;  %v16199_v42 = vld [vmem:[#allocation32_spill] sm:$0xff] }
 0x597   :  { %v6650_v52 = vpop.f32.mrf.mxu1  ;;  %v5760_v26 = vsel %vm5698_vm13, %v14529_v11, %v16199_v42  ;;  %v10371_v42 = vld [vmem:[%s16089_s6 + $0x1d4] ss:$8 sps:$4 sm:$0xff]  }
 0x598   :  { %4478 = vst.msk [vmem:[#allocation3 + $0x1ec] sm:$0xf] %vm4354_vm11, %v9651_v33  ;;  %v9649_v37 = vpack.c.bf16 %v3835_v59, %v3835_v59  ;;  %v5919_v19 = vsel %vm5827_vm14, %v5760_v26, %v14493_v34  ;;  %v16200_v33 = vld [vmem:[#allocation38_spill] sm:$0xff]  ;;  %v6187_v52 = vsel %vm5827_vm14, %v6078_v8, %v14736_v57  ;;  %v10366_v34 = vld [vmem:[%s16089_s6 + $0x30] ss:$8 sps:$4 sm:$0xff]   ;;  %8023 = vmatprep.subr.bf16.mxu1 %v10371_v42 }
 0x599   :  { %v14861_v38 = vpop.f32.mrf.mxu1  ;;  %v14863_v47 = vpop.permute.xlu1 %5205  ;;  %v10368_v8 = vld [vmem:[%s16089_s6 + $0x34] ss:$8 sps:$4 sm:$0xff]   ;;  %v5762_v57 = vsel %vm5698_vm13, %v16204_v9, %v16203_v41 }
 0x59a   :  { %4476 = vst.msk [vmem:[#allocation3 + $0x1e4] sm:$0xf] %vm4354_vm11, %v9649_v37  ;;  %v14869_v51 = vpop.permute.xlu0 %5062  ;;  %7968 = vmatprep.subr.bf16.mxu0 %v10368_v8 }
 0x59b   :  { %v6653_v13 = vpop.f32.mrf.mxu1  ;;  %7969 = vmatpush1.bf16.msra.mxu0 %v10366_v34 }
 0x59d   :  { %6795 = vmatmul.mubr.bf16.gmra.mxu1 %v5919_v19  ;;  %10057 = vmatmul.mubr.msk.bf16.gmra.mxu0 %vm5505_vm12, %v16200_v33  ;;  %v5065_v59 = vpop.permute.xlu1 %5064 }
 0x59e   :  { %v14882_v37 = vsel %vm5505_vm12, %v14203_v2, %v5065_v59  ;;  %10060 = vmatprep.mubr.msk.bf16.mxu0 %vm5505_vm12, %v14651_v14  ;;  %v14886_v11 = vpop.permute.xlu0 %5353  ;;  %6800 = vmatprep.mubr.bf16.mxu1 %v6187_v52  ;;  %v10369_v2 = vld [vmem:[%s16089_s6 + $0x1d0] ss:$8 sps:$4 sm:$0xff]  }
 0x59f   :  { %16201 = vst [vmem:[#allocation30_spill] sm:$0xff] %v14886_v11  ;;  %v14888_v27 = vld [vmem:[#allocation3 + $0x1e8] sm:$0xff]   ;;  %v5792_v26 = vsel %vm5698_vm13, %v14882_v37, %v14762_v18  ;;  %8024 = vmatpush2.bf16.msra.mxu1 %v10369_v2 }
 0x5a0   :  { %5369 = vrot.lane.b32.xlu0 %v14888_v27, %s10731_s0  ;;  %v10627_v59 = vld [vmem:[#allocation3 + $0x148] sm:$0xff]  }
 0x5a1   :  { %v14905_v13 = vpop.permute.xlu1 %5355  ;;  %v14909_v19 = vld [vmem:[#allocation3 + $0x1e0] sm:$0xff]   ;;  %v14913_v52 = vsel %vm5505_vm12, %v10627_v59, %v14764_v24  ;;  %v5922_v24 = vsel %vm5827_vm14, %v5762_v57, %v16205_v49  ;;  %v10628_v49 = vld [vmem:[#allocation3 + $0x150] sm:$0xff]  }
 0x5a2   :  { %v14917_v54 = vsel %vm5827_vm14, %v5792_v26, %v14905_v13  ;;  %v14919_v10 = vpop.permute.xlu0 %5207  ;;  %5367 = vrot.lane.b32.xlu1 %v14909_v19, %s10731_s0  ;;  %v6079_v8 = vsel %vm5698_vm13, %v14913_v52, %v14762_v18  ;;  %v14949_v18 = vsel %vm5505_vm12, %v10628_v49, %v14776_v4 }
 0x5a3   :  { %16202 = vst [vmem:[#allocation31_spill] sm:$0xff] %v14917_v54  ;;  %v6189_v41 = vsel %vm5827_vm14, %v6079_v8, %v14782_v7  ;;  %v6080_v42 = vsel %vm5698_vm13, %v14949_v18, %v14794_v31  ;;  %v16215_v54 = vld [vmem:[#allocation14_spill] sm:$0xff] }
 0x5a4   :  { %5223 = vrot.lane.b32.xlu0 %v14888_v27, %s10730_s18  ;;  %v6191_v49 = vsel %vm5827_vm14, %v6080_v42, %v14789_v17  ;;  %v10376_v42 = vld [vmem:[%s16089_s6 + $0x24] ss:$8 sps:$4 sm:$0xff]  }
 0x5a5   :  { %6801 = vmatmul.mubr.bf16.gmra.mxu1 %v5922_v24  ;;  %10061 = vmatmul.mubr.msk.bf16.gmra.mxu0 %vm5505_vm12, %v14645_v55  ;;  %v14930_v26 = vpop.permute.xlu1 %5209  ;;  %v16206_v24 = vld [vmem:[#allocation34_spill] sm:$0xff] }
 0x5a6   :  { %10064 = vmatprep.mubr.msk.bf16.mxu0 %vm5505_vm12, %v14909_v19  ;;  %v5067_v9 = vpop.permute.xlu0 %5066  ;;  %6806 = vmatprep.mubr.bf16.mxu1 %v6189_v41  ;;  %v5764_v8 = vsel %vm5698_vm13, %v14581_v6, %v16206_v24 }
 0x5a7   :  { %v14943_v57 = vsel %vm5505_vm12, %v14240_v58, %v5067_v9  ;;  %5221 = vrot.lane.b32.xlu1 %v14909_v19, %s10730_s18  ;;  %7970 = vmatprep.subr.bf16.mxu0 %v10376_v42 }
 0x5a8   :  { %5082 = vrot.lane.b32.xlu0 %v16198_v44, %s10729_s24  ;;  %v5794_v59 = vsel %vm5698_vm13, %v14943_v57, %v14794_v31 }
 0x5a9   :  { %v14951_v34 = vpop.f32.mrf.mxu1  ;;  %v5069_v2 = vpop.permute.xlu1 %5068 }
 0x5aa   :  { %v14958_v58 = vsel %vm5505_vm12, %v14251_v0, %v5069_v2  ;;  %v14965_v4 = vpop.permute.xlu0 %5357  ;;  %v5925_v0 = vsel %vm5827_vm14, %v5764_v8, %v14545_v48 }
 0x5ab   :  { %v14972_v9 = vsel %vm5827_vm14, %v5794_v59, %v14965_v4  ;;  %v6658_v41 = vpop.f32.mrf.mxu1  ;;  %5080 = vrot.lane.b32.xlu1 %v14451_v60, %s10729_s24  ;;  %v5796_v6 = vsel %vm5698_vm13, %v14958_v58, %v14803_v1  ;;  %v10629_v59 = vld [vmem:[#allocation3 + $0x158] sm:$0xff]  }
 0x5ac   :  { %16207 = vst [vmem:[#allocation37_spill] sm:$0xff] %v14972_v9  ;;  %v14997_v24 = vsel %vm5505_vm12, %v10629_v59, %v14815_v53  ;;  %v10374_v41 = vld [vmem:[%s16089_s6 + $0x20] ss:$8 sps:$4 sm:$0xff]  }
 0x5ad   :  { %v14978_v44 = vpop.f32.mrf.mxu1  ;;  %6807 = vmatmul.mubr.bf16.gmra.mxu1 %v5925_v0  ;;  %10065 = vmatmul.mubr.msk.bf16.gmra.mxu0 %vm5505_vm12, %v14888_v27  ;;  %v14985_v31 = vpop.permute.xlu1 %5359  ;;  %v16209_v0 = vld [vmem:[#allocation35_spill] sm:$0xff] }
 0x5ae   :  { %v14991_v60 = vsel %vm5827_vm14, %v5796_v6, %v14985_v31  ;;  %v14993_v48 = vpop.permute.xlu0 %5211  ;;  %6812 = vmatprep.mubr.bf16.mxu1 %v6191_v49  ;;  %v5766_v6 = vsel %vm5698_vm13, %v14622_v28, %v16209_v0  ;;  %7971 = vmatpush1.bf16.msra.mxu0 %v10374_v41  ;;  %v16211_v41 = vld [vmem:[#allocation36_spill] sm:$0xff] }
 0x5af   :  { %16208 = vst [vmem:[#allocation32_spill] sm:$0xff] %v14991_v60  ;;  %v6661_v2 = vpop.f32.mrf.mxu1  ;;  %v5928_v53 = vsel %vm5827_vm14, %v5766_v6, %v14576_v3  ;;  %v10630_v3 = vld [vmem:[#allocation3 + $0x160] sm:$0xff]   ;;  %v5768_v42 = vsel %vm5698_vm13, %v14656_v46, %v16211_v41  ;;  %v10631_v46 = vld [vmem:[#allocation3 + $0x168] sm:$0xff]  }
 0x5b0   :  { %v6081_v2 = vsel %vm5698_vm13, %v14997_v24, %v14803_v1  ;;  %v15030_v1 = vsel %vm5505_vm12, %v10630_v3, %v14828_v40  ;;  %v5931_v6 = vsel %vm5827_vm14, %v5768_v42, %v14583_v45  ;;  %v15051_v45 = vsel %vm5505_vm12, %v10631_v46, %v14869_v51  ;;  %v16213_v42 = vld [vmem:[#allocation17_spill] sm:$0xff] }
 0x5b1   :  { %v6193_v59 = vsel %vm5827_vm14, %v6081_v2, %v14834_v39  ;;  %16212 = vst [vmem:[#allocation33_spill] sm:$0xff] %v15051_v45 }
 0x5b2   :  { %v5071_v8 = vpop.permute.xlu0 %5070 }
 0x5b3   :  { %v15010_v49 = vsel %vm5505_vm12, %v14282_v56, %v5071_v8  ;;  %v6082_v8 = vsel %vm5698_vm13, %v15030_v1, %v14854_v50 }
 0x5b4   :  { %v5798_v28 = vsel %vm5698_vm13, %v15010_v49, %v14854_v50  ;;  %v6195_v2 = vsel %vm5827_vm14, %v6082_v8, %v14847_v12  ;;  %v15047_v50 = vld [vmem:[%s16088_s5] ss:$0 sm:$0xff]  ;;  %v5770_v8 = vsel %vm5698_vm13, %v14690_v15, %v16213_v42  ;;  %v16217_v12 = vld [vmem:[#allocation15_spill] sm:$0xff] }
 0x5b5   :  { %6813 = vmatmul.mubr.bf16.gmra.mxu1 %v5928_v53  ;;  %v5934_v60 = vsel %vm5827_vm14, %v5770_v8, %v14625_v61  ;;  %v10383_v15 = vld [vmem:[%s16089_s6 + $0x1c0] ss:$8 sps:$4 sm:$0xff]  }
 0x5b6   :  { %v15022_v0 = vpop.permute.xlu0 %5361  ;;  %6818 = vmatprep.mubr.bf16.mxu1 %v6193_v59 }
 0x5b7   :  { %v15026_v56 = vsel %vm5827_vm14, %v5798_v28, %v15022_v0 }
 0x5b8   :  { %16210 = vst [vmem:[#allocation38_spill] sm:$0xff] %v15026_v56  ;;  %v16214_v56 = vld [vmem:[#allocation18_spill] sm:$0xff] }
 0x5b9   :  { %v6593_v51 = vadd.f32 %v15047_v50, %v16214_v56  ;;  %v6083_v56 = vsel %vm5698_vm13, %v15051_v45, %v14863_v47  ;;  %v16216_v45 = vld [vmem:[#allocation19_spill] sm:$0xff] }
 0x5ba   :  { %v6197_v9 = vsel %vm5827_vm14, %v6083_v56, %v14886_v11 }
 0x5bd   :  { %v9974_v53 = vpop.f32.mrf.mxu0  ;;  %6819 = vmatmul.mubr.bf16.gmra.mxu1 %v5931_v6 }
 0x5be   :  { %v3708_v59 = vadd.f32 %v14810_v63, %v9974_v53  ;;  %6824 = vmatprep.mubr.bf16.mxu1 %v6195_v2 }
 0x5bf   :  { %v3699_v40 = vpop.f32.mrf.mxu0 }
 0x5c0   :  { %v3840_v28 = vmax.f32 %v3708_v59, 0.0  ;;  %v3700_v3 = vadd.f32 %v14810_v63, %v3699_v40  ;;  %v10379_v59 = vld [vmem:[%s16089_s6 + $0x10] ss:$8 sps:$4 sm:$0xff]   ;;  %v10381_v40 = vld [vmem:[%s16089_s6 + $0x14] ss:$8 sps:$4 sm:$0xff]  }
 0x5c1   :  { %v9975_v41 = vpop.f32.mrf.mxu0  ;;  %7972 = vmatprep.subr.bf16.mxu0 %v10381_v40 }
 0x5c2   :  { %v9654_v6 = vpack.c.bf16 %v3840_v28, %v3840_v28  ;;  %v3838_v53 = vmax.f32 %v3700_v3, 0.0  ;;  %v3711_v2 = vadd.f32 %v14810_v63, %v9975_v41  ;;  %v10385_v28 = vld [vmem:[%s16089_s6 + $0x1c4] ss:$8 sps:$4 sm:$0xff]   ;;  %7973 = vmatpush1.bf16.msra.mxu0 %v10379_v59 }
 0x5c3   :  { %v3702_v46 = vpop.f32.mrf.mxu0  ;;  %8025 = vmatprep.subr.bf16.mxu1 %v10385_v28  ;;  %v16219_v28 = vld [vmem:[#allocation11_spill] sm:$0xff] }
 0x5c4   :  { %4481 = vst.msk [vmem:[#allocation3 + $0x1f8] sm:$0xf] %vm4354_vm11, %v9654_v6  ;;  %v9652_v3 = vpack.c.bf16 %v3838_v53, %v3838_v53  ;;  %v3841_v41 = vmax.f32 %v3711_v2, 0.0  ;;  %v3703_v42 = vadd.f32 %v14810_v63, %v3702_v46  ;;  %v6585_v6 = vadd.f32 %v15047_v50, %v16215_v54  ;;  %8026 = vmatpush2.bf16.msra.mxu1 %v10383_v15  ;;  %v16218_v15 = vld [vmem:[#allocation26_spill] sm:$0xff] }
 0x5c5   :  { %v15078_v61 = vpop.f32.mrf.mxu1  ;;  %6825 = vmatmul.mubr.bf16.gmra.mxu1 %v5934_v60  ;;  %v9982_v8 = vpop.f32.mrf.mxu0  ;;  %v6596_v60 = vadd.f32 %v15047_v50, %v16216_v45  ;;  %v6609_v45 = vadd.f32 %v15047_v50, %v16218_v15 }
 0x5c6   :  { %4479 = vst.msk [vmem:[#allocation3 + $0x1f0] sm:$0xf] %vm4354_vm11, %v9652_v3  ;;  %v9655_v53 = vpack.c.bf16 %v3841_v41, %v3841_v41  ;;  %v3839_v63 = vmax.f32 %v3703_v42, 0.0  ;;  %v7042_v2 = vadd.f32 %v9982_v8, %v6593_v51  ;;  %6830 = vmatprep.mubr.bf16.mxu1 %v6197_v9  ;;  %v6588_v3 = vadd.f32 %v15047_v50, %v16217_v12 }
 0x5c7   :  { %v6666_v46 = vpop.f32.mrf.mxu1  ;;  %v7033_v40 = vpop.f32.mrf.mxu0  ;;  %v6084_v9 = vsel %vm5698_vm13, %v14882_v37, %v14919_v10  ;;  %v5772_v41 = vsel %vm5698_vm13, %v14718_v5, %v16219_v28 }
 0x5c8   :  { %4482 = vst.msk [vmem:[#allocation3 + $0x1fc] sm:$0xf] %vm4354_vm11, %v9655_v53  ;;  %v9653_v56 = vpack.c.bf16 %v3839_v63, %v3839_v63  ;;  %v7034_v59 = vadd.f32 %v7033_v40, %v6585_v6  ;;  %v7450_v6 = vmax.f32 %v7042_v2, 0.0  ;;  %v5937_v12 = vsel %vm5827_vm14, %v5772_v41, %v14637_v22  ;;  %v16220_v46 = vld [vmem:[#allocation22_spill] sm:$0xff]  ;;  %v16221_v22 = vld [vmem:[#allocation27_spill] sm:$0xff] }
 0x5c9   :  { %v15088_v11 = vpop.f32.mrf.mxu1  ;;  %v9983_v54 = vpop.f32.mrf.mxu0  ;;  %v6601_v37 = vadd.f32 %v15047_v50, %v16220_v46  ;;  %v6612_v41 = vadd.f32 %v15047_v50, %v16221_v22  ;;  %v6085_v22 = vsel %vm5698_vm13, %v14943_v57, %v14930_v26 }
 0x5ca   :  { %4480 = vst.msk [vmem:[#allocation3 + $0x1f4] sm:$0xf] %vm4354_vm11, %v9653_v56  ;;  %v7045_v51 = vadd.f32 %v9983_v54, %v6596_v60  ;;  %v6199_v56 = vsel %vm5827_vm14, %v6084_v9, %v14905_v13  ;;  %v7448_v54 = vmax.f32 %v7034_v59, 0.0  ;;  %v10388_v13 = vld [vmem:[%s16089_s6 + $0x4] ss:$8 sps:$4 sm:$0xff]  }
 0x5cb   :  { %v6669_v42 = vpop.f32.mrf.mxu1  ;;  %v7036_v8 = vpop.f32.mrf.mxu0  ;;  %7974 = vmatprep.subr.bf16.mxu0 %v10388_v13 }
 0x5cc   :  { %v7451_v53 = vmax.f32 %v7045_v51, 0.0  ;;  %v7037_v63 = vadd.f32 %v7036_v8, %v6588_v3  ;;  %v15113_v42 = vpop.permute.xlu0 %5215 }
 0x5cd   :  { %v6672_v40 = vpop.f32.mrf.mxu1  ;;  %6831 = vmatmul.mubr.bf16.gmra.mxu1 %v5937_v12  ;;  %v9986_v60 = vpop.f32.mrf.mxu0 }
 0x5ce   :  { %v15107_v15 = vpack.c.bf16 %v7451_v53, %v7450_v6  ;;  %v7449_v5 = vmax.f32 %v7037_v63, 0.0  ;;  %v7058_v28 = vadd.f32 %v9986_v60, %v6609_v45  ;;  %6836 = vmatprep.mubr.bf16.mxu1 %v6199_v56  ;;  %v16222_v6 = vld [vmem:[#allocation23_spill] sm:$0xff]  ;;  %v16223_v63 = vld [vmem:[#allocation20_spill] sm:$0xff]  ;;  %v15129_v40 = vpop.permute.xlu1 %5213  ;;  %v10386_v60 = vld [vmem:[%s16089_s6] ss:$8 sps:$4 sm:$0xff]  }
 0x5cf   :  { %v6673_v2 = vpop.f32.mrf.mxu1  ;;  %v7049_v3 = vpop.f32.mrf.mxu0  ;;  %v15109_v51 = vld [vmem:[#allocation3 + $0x1f8] sm:$0xff]   ;;  %v6604_v53 = vadd.f32 %v15047_v50, %v16222_v6  ;;  %v5774_v46 = vsel %vm5698_vm13, %v14760_v62, %v16223_v63  ;;  %7975 = vmatpush1.bf16.msra.mxu0 %v10386_v60  ;;  %v15164_v60 = vld [vmem:[#allocation3 + $0x208] sm:$0xff]  }
 0x5d0   :  { %v15115_v8 = vpack.c.bf16 %v7449_v5, %v7448_v54  ;;  %v7050_v12 = vadd.f32 %v7049_v3, %v6601_v37  ;;  %5373 = vrot.lane.b32.xlu0 %v15109_v51, %s10731_s0  ;;  %v5940_v5 = vsel %vm5827_vm14, %v5774_v46, %v14676_v20  ;;  %v7454_v62 = vmax.f32 %v7058_v28, 0.0  ;;  %v15149_v20 = vld [vmem:[#allocation3 + $0x200] sm:$0xff]   ;;  %v5075_v28 = vpop.permute.xlu0 %5074 }
 0x5d1   :  { %v6674_v59 = vpop.f32.mrf.mxu1  ;;  %v9987_v9 = vpop.f32.mrf.mxu0  ;;  %v15122_v45 = vld [vmem:[#allocation3 + $0x1f0] sm:$0xff]  }
 0x5d2   :  { %v7061_v37 = vadd.f32 %v9987_v9, %v6612_v41  ;;  %5371 = vrot.lane.b32.xlu1 %v15122_v45, %s10731_s0  ;;  %10068 = vmatprep.mubr.msk.bf16.mxu0 %vm5505_vm12, %v15122_v45  ;;  %v6201_v59 = vsel %vm5827_vm14, %v6085_v22, %v14965_v4  ;;  %v7452_v9 = vmax.f32 %v7050_v12, 0.0  ;;  %v5073_v46 = vpop.permute.xlu1 %5072  ;;  %v10632_v4 = vld [vmem:[#allocation3 + $0x198] sm:$0xff]  }
 0x5d3   :  { %v6675_v56 = vpop.f32.mrf.mxu1  ;;  %v7052_v54 = vpop.f32.mrf.mxu0  ;;  %10069 = vmatmul.mubr.msk.bf16.gmra.mxu0 %vm5505_vm12, %v15109_v51 }
 0x5d4   :  { %v7455_v2 = vmax.f32 %v7061_v37, 0.0  ;;  %v7053_v3 = vadd.f32 %v7052_v54, %v6604_v53  ;;  %5227 = vrot.lane.b32.xlu0 %v15109_v51, %s10730_s18  ;;  %10072 = vmatprep.mubr.msk.bf16.mxu0 %vm5505_vm12, %v15149_v20  ;;  %v15160_v56 = vsel %vm5505_vm12, %v10632_v4, %v5075_v28  ;;  %v10391_v28 = vld [vmem:[%s16089_s6 + $0xf4] ss:$8 sps:$4 sm:$0xff]  }
 0x5d5   :  { %v6678_v41 = vpop.f32.mrf.mxu1  ;;  %6837 = vmatmul.mubr.bf16.gmra.mxu1 %v5940_v5  ;;  %v9990_v13 = vpop.f32.mrf.mxu0  ;;  %v6086_v5 = vsel %vm5698_vm13, %v14958_v58, %v14993_v48  ;;  %7976 = vmatprep.subr.bf16.mxu0 %v10391_v28  ;;  %v10394_v4 = vld [vmem:[%s16089_s6 + $0x1b4] ss:$8 sps:$4 sm:$0xff]  }
 0x5d6   :  { %v15151_v6 = vpack.c.bf16 %v7455_v2, %v7454_v62  ;;  %v7453_v53 = vmax.f32 %v7053_v3, 0.0  ;;  %6842 = vmatprep.mubr.bf16.mxu1 %v6201_v59  ;;  %5225 = vrot.lane.b32.xlu1 %v15122_v45, %s10730_s18  ;;  %v5776_v62 = vsel %vm5698_vm13, %v14787_v43, %v14557_v23  ;;  %v10633_v2 = vld [vmem:[#allocation3 + $0x190] sm:$0xff]  }
 0x5d7   :  { %v6679_v63 = vpop.f32.mrf.mxu1  ;;  %v7065_v57 = vpop.f32.mrf.mxu0  ;;  %v15173_v3 = vsel %vm5505_vm12, %v10633_v2, %v5073_v46  ;;  %v5943_v58 = vsel %vm5827_vm14, %v5776_v62, %v14692_v25  ;;  %v15184_v59 = vld [vmem:[#allocation3 + $0x210] sm:$0xff]   ;;  %v10389_v25 = vld [vmem:[%s16089_s6 + $0xf0] ss:$8 sps:$4 sm:$0xff]   ;;  %v15227_v62 = vld [vmem:[#allocation3 + $0x218] sm:$0xff]   ;;  %8027 = vmatprep.subr.bf16.mxu1 %v10394_v4  ;;  %v5778_v2 = vsel %vm5698_vm13, %v14826_v35, %v14589_v29 }
 0x5d8   :  { %v15157_v37 = vpack.c.bf16 %v7453_v53, %v7452_v9  ;;  %5086 = vrot.lane.b32.xlu0 %v14651_v14, %s10729_s24  ;;  %v5802_v14 = vsel %vm5698_vm13, %v15160_v56, %v14919_v10  ;;  %v6203_v10 = vsel %vm5827_vm14, %v6086_v5, %v14985_v31  ;;  %v5800_v9 = vsel %vm5698_vm13, %v15173_v3, %v14863_v47  ;;  %v10392_v47 = vld [vmem:[%s16089_s6 + $0x1b0] ss:$8 sps:$4 sm:$0xff]  }
 0x5d9   :  { %v6680_v12 = vpop.f32.mrf.mxu1  ;;  %v9991_v54 = vpop.f32.mrf.mxu0  ;;  %7977 = vmatpush2.bf16.msra.mxu0 %v10389_v25  ;;  %8028 = vmatpush2.bf16.msra.mxu1 %v10392_v47  ;;  %v10634_v29 = vld [vmem:[#allocation3 + $0x1a8] sm:$0xff]  }
 0x5da   :  { %5084 = vrot.lane.b32.xlu1 %v16200_v33, %s10729_s24  ;;  %v15180_v13 = vpop.permute.xlu0 %5365 }
 0x5db   :  { %v6681_v22 = vpop.f32.mrf.mxu1  ;;  %v7067_v41 = vpop.f32.mrf.mxu0  ;;  %10073 = vmatmul.mubr.msk.bf16.gmra.mxu0 %vm5505_vm12, %v15164_v60  ;;  %v15190_v23 = vsel %vm5827_vm14, %v5802_v14, %v15180_v13  ;;  %v6649_v14 = vadd.f32 %v15047_v50, %v14843_v16 }
 0x5dc   :  { %5377 = vrot.lane.b32.xlu0 %v15164_v60, %s10731_s0  ;;  %v15205_v53 = vpop.permute.xlu1 %5363  ;;  %10076 = vmatprep.mubr.msk.bf16.mxu0 %vm5505_vm12, %v15184_v59 }
 0x5dd   :  { %v6684_v43 = vpop.f32.mrf.mxu1  ;;  %6843 = vmatmul.mubr.bf16.gmra.mxu1 %v5943_v58  ;;  %v9994_v33 = vpop.f32.mrf.mxu0  ;;  %v15211_v31 = vsel %vm5827_vm14, %v5800_v9, %v15205_v53 }
 0x5de   :  { %6848 = vmatprep.mubr.bf16.mxu1 %v6203_v10  ;;  %5375 = vrot.lane.b32.xlu1 %v15149_v20, %s10731_s0  ;;  %v15215_v46 = vpop.permute.xlu0 %5219  ;;  %v5946_v43 = vsel %vm5827_vm14, %v5778_v2, %v14725_v36  ;;  %v6087_v33 = vsel %vm5698_vm13, %v15010_v49, %v15129_v40  ;;  %v15241_v10 = vld [vmem:[#allocation3 + $0x220] sm:$0xff]   ;;  %v6641_v49 = vadd.f32 %v15047_v50, %v14730_v21 }
 0x5df   :  { %v6685_v63 = vpop.f32.mrf.mxu1  ;;  %v7077_v57 = vpop.f32.mrf.mxu0  ;;  %v6205_v36 = vsel %vm5827_vm14, %v6087_v33, %v15022_v0  ;;  %v6652_v21 = vadd.f32 %v15047_v50, %v14861_v38  ;;  %v5780_v2 = vsel %vm5698_vm13, %v14859_v32, %v14600_v30  ;;  %v15280_v38 = vld [vmem:[#allocation3 + $0x228] sm:$0xff]   ;;  %v6665_v30 = vadd.f32 %v15047_v50, %v15078_v61 }
 0x5e0   :  { %5231 = vrot.lane.b32.xlu0 %v15164_v60, %s10730_s18  ;;  %v10635_v57 = vld [vmem:[#allocation3 + $0x1a0] sm:$0xff]  }
 0x5e1   :  { %v6686_v12 = vpop.f32.mrf.mxu1  ;;  %v9995_v54 = vpop.f32.mrf.mxu0 }
 0x5e2   :  { %v15225_v5 = vpop.permute.xlu1 %5217  ;;  %5229 = vrot.lane.b32.xlu1 %v15149_v20, %s10730_s18  ;;  %v5079_v58 = vpop.permute.xlu0 %5078 }
 0x5e3   :  { %v6687_v22 = vpop.f32.mrf.mxu1  ;;  %v7079_v41 = vpop.f32.mrf.mxu0  ;;  %10077 = vmatmul.mubr.msk.bf16.gmra.mxu0 %vm5505_vm12, %v15227_v62  ;;  %v15246_v35 = vsel %vm5505_vm12, %v10634_v29, %v5079_v58 }
 0x5e4   :  { %5090 = vrot.lane.b32.xlu0 %v14909_v19, %s10729_s24  ;;  %v15257_v63 = vsel %vm5698_vm13, %v15246_v35, %v14993_v48  ;;  %10080 = vmatprep.mubr.msk.bf16.mxu0 %vm5505_vm12, %v15241_v10  ;;  %v16224_v22 = vld [vmem:[#allocation40_spill] sm:$0xff] }
 0x5e5   :  { %v6690_v25 = vpop.f32.mrf.mxu1  ;;  %6849 = vmatmul.mubr.bf16.gmra.mxu1 %v5946_v43  ;;  %v9998_v16 = vpop.f32.mrf.mxu0  ;;  %v16225_v43 = vld [vmem:[#allocation28_spill] sm:$0xff] }
 0x5e6   :  { %v7098_v28 = vadd.f32 %v9998_v16, %v6649_v14  ;;  %v5077_v9 = vpop.permute.xlu1 %5076  ;;  %6854 = vmatprep.mubr.bf16.mxu1 %v6205_v36  ;;  %5088 = vrot.lane.b32.xlu1 %v14645_v55, %s10729_s24  ;;  %v6644_v55 = vadd.f32 %v15047_v50, %v16224_v22  ;;  %v5949_v33 = vsel %vm5827_vm14, %v5780_v2, %v16225_v43  ;;  %v15291_v16 = vld [vmem:[#allocation3 + $0x230] sm:$0xff]  }
 0x5e7   :  { %v15262_v19 = vsel %vm5505_vm12, %v10635_v57, %v5077_v9  ;;  %v6691_v47 = vpop.f32.mrf.mxu1  ;;  %v7089_v0 = vpop.f32.mrf.mxu0  ;;  %v10397_v9 = vld [vmem:[%s16089_s6 + $0xe4] ss:$8 sps:$4 sm:$0xff]  }
 0x5e8   :  { %v7090_v4 = vadd.f32 %v7089_v0, %v6641_v49  ;;  %v15271_v48 = vsel %vm5698_vm13, %v15262_v19, %v14930_v26  ;;  %5381 = vrot.lane.b32.xlu0 %v15227_v62, %s10731_s0  ;;  %v6088_v26 = vsel %vm5698_vm13, %v15173_v3, %v15113_v42  ;;  %v7458_v32 = vmax.f32 %v7098_v28, 0.0  ;;  %v10395_v28 = vld [vmem:[%s16089_s6 + $0xe0] ss:$8 sps:$4 sm:$0xff]   ;;  %7978 = vmatprep.subr.bf16.mxu0 %v10397_v9 }
 0x5e9   :  { %v6692_v12 = vpop.f32.mrf.mxu1  ;;  %v9999_v54 = vpop.f32.mrf.mxu0  ;;  %v6657_v3 = vadd.f32 %v15047_v50, %v14951_v34  ;;  %v6207_v61 = vsel %vm5827_vm14, %v6088_v26, %v15205_v53  ;;  %v6668_v53 = vadd.f32 %v15047_v50, %v15088_v11  ;;  %7979 = vmatpush2.bf16.msra.mxu0 %v10395_v28  ;;  %v16226_v11 = vld [vmem:[#allocation13_spill] sm:$0xff] }
 0x5ea   :  { %v7101_v41 = vadd.f32 %v9999_v54, %v6652_v21  ;;  %5379 = vrot.lane.b32.xlu1 %v15184_v59, %s10731_s0  ;;  %v7456_v57 = vmax.f32 %v7090_v4, 0.0 }
 0x5eb   :  { %v6693_v14 = vpop.f32.mrf.mxu1  ;;  %v7092_v58 = vpop.f32.mrf.mxu0  ;;  %10081 = vmatmul.mubr.msk.bf16.gmra.mxu0 %vm5505_vm12, %v15280_v38 }
 0x5ec   :  { %v7459_v29 = vmax.f32 %v7101_v41, 0.0  ;;  %v7093_v25 = vadd.f32 %v7092_v58, %v6644_v55  ;;  %5451 = vrot.lane.b32.xlu0 %v15227_v62, %s10730_s18  ;;  %10084 = vmatprep.mubr.msk.bf16.mxu0 %vm5505_vm12, %v15291_v16  ;;  %v6660_v55 = vadd.f32 %v15047_v50, %v14978_v44  ;;  %v6089_v41 = vsel %vm5698_vm13, %v15160_v56, %v15225_v5  ;;  %v15328_v14 = vld [vmem:[#allocation3 + $0x238] sm:$0xff]  }
 0x5ed   :  { %v15297_v36 = vpop.f32.mrf.mxu1  ;;  %6855 = vmatmul.mubr.bf16.gmra.mxu1 %v5949_v33  ;;  %v10002_v49 = vpop.f32.mrf.mxu0  ;;  %v5782_v58 = vsel %vm5698_vm13, %v14913_v52, %v16226_v11  ;;  %v10403_v11 = vld [vmem:[%s16089_s6 + $0x1a4] ss:$8 sps:$4 sm:$0xff]  }
 0x5ee   :  { %v15309_v34 = vpack.c.bf16 %v7459_v29, %v7458_v32  ;;  %v7457_v47 = vmax.f32 %v7093_v25, 0.0  ;;  %v7114_v0 = vadd.f32 %v10002_v49, %v6665_v30  ;;  %6860 = vmatprep.mubr.bf16.mxu1 %v6207_v61  ;;  %5449 = vrot.lane.b32.xlu1 %v15184_v59, %s10730_s18  ;;  %v5952_v44 = vsel %vm5827_vm14, %v5782_v58, %v14782_v7  ;;  %v15337_v29 = vld [vmem:[#allocation3 + $0x240] sm:$0xff]  }
 0x5ef   :  { %v6698_v21 = vpop.f32.mrf.mxu1  ;;  %v7105_v12 = vpop.f32.mrf.mxu0  ;;  %8029 = vmatprep.subr.bf16.mxu1 %v10403_v11 }
 0x5f0   :  { %v15317_v54 = vpack.c.bf16 %v7457_v47, %v7456_v57  ;;  %v7106_v4 = vadd.f32 %v7105_v12, %v6657_v3  ;;  %5094 = vrot.lane.b32.xlu0 %v15122_v45, %s10729_s24  ;;  %v7462_v45 = vmax.f32 %v7114_v0, 0.0  ;;  %v16227_v47 = vld [vmem:[#allocation16_spill] sm:$0xff] }
 0x5f1   :  { %v15319_v2 = vpop.f32.mrf.mxu1  ;;  %v10003_v22 = vpop.f32.mrf.mxu0  ;;  %v5784_v0 = vsel %vm5698_vm13, %v14949_v18, %v16227_v47  ;;  %v10398_v18 = vld [vmem:[%s16089_s6 + $0xd0] ss:$8 sps:$4 sm:$0xff]  }
 0x5f2   :  { %v7117_v26 = vadd.f32 %v10003_v22, %v6668_v53  ;;  %5092 = vrot.lane.b32.xlu1 %v14888_v27, %s10729_s24  ;;  %v6209_v27 = vsel %vm5827_vm14, %v6089_v41, %v15180_v13  ;;  %v7460_v52 = vmax.f32 %v7106_v4, 0.0  ;;  %v15355_v13 = vld [vmem:[#allocation3 + $0x248] sm:$0xff]   ;;  %v5955_v53 = vsel %vm5827_vm14, %v5784_v0, %v14789_v17  ;;  %v15364_v4 = vld [vmem:[#allocation3 + $0x250] sm:$0xff]  }
 0x5f3   :  { %v6701_v43 = vpop.f32.mrf.mxu1  ;;  %v7108_v33 = vpop.f32.mrf.mxu0  ;;  %10085 = vmatmul.mubr.msk.bf16.gmra.mxu0 %vm5505_vm12, %v15328_v14  ;;  %v10400_v17 = vld [vmem:[%s16089_s6 + $0xd4] ss:$8 sps:$4 sm:$0xff]   ;;  %v6700_v0 = vadd.f32 %v15047_v50, %v15319_v2 }
 0x5f4   :  { %v7463_v30 = vmax.f32 %v7117_v26, 0.0  ;;  %v7109_v32 = vadd.f32 %v7108_v33, %v6660_v55  ;;  %5385 = vrot.lane.b32.xlu0 %v15280_v38, %s10731_s0  ;;  %10088 = vmatprep.mubr.msk.bf16.mxu0 %vm5505_vm12, %v15337_v29  ;;  %v15390_v33 = vld [vmem:[#allocation3 + $0x258] sm:$0xff]  }
 0x5f5   :  { %v6704_v56 = vpop.f32.mrf.mxu1  ;;  %6861 = vmatmul.mubr.bf16.gmra.mxu1 %v5952_v44  ;;  %v10006_v25 = vpop.f32.mrf.mxu0  ;;  %7980 = vmatprep.subr.bf16.mxu0 %v10400_v17 }
 0x5f6   :  { %v15345_v3 = vpack.c.bf16 %v7463_v30, %v7462_v45  ;;  %v7461_v49 = vmax.f32 %v7109_v32, 0.0  ;;  %6866 = vmatprep.mubr.bf16.mxu1 %v6209_v27  ;;  %5383 = vrot.lane.b32.xlu1 %v15241_v10, %s10731_s0  ;;  %v15394_v30 = vld [vmem:[#allocation3 + $0x260] sm:$0xff]   ;;  %v6705_v32 = vadd.f32 %v15047_v50, %v6704_v56  ;;  %v6697_v27 = vadd.f32 %v15047_v50, %v15297_v36 }
 0x5f7   :  { %v6706_v7 = vpop.f32.mrf.mxu1  ;;  %v7121_v61 = vpop.f32.mrf.mxu0  ;;  %7981 = vmatpush2.bf16.msra.mxu0 %v10398_v18 }
 0x5f8   :  { %v15351_v28 = vpack.c.bf16 %v7461_v49, %v7460_v52  ;;  %5455 = vrot.lane.b32.xlu0 %v15280_v38, %s10730_s18 }
 0x5f9   :  { %v6707_v9 = vpop.f32.mrf.mxu1  ;;  %v10007_v57 = vpop.f32.mrf.mxu0 }
 0x5fa   :  { %5453 = vrot.lane.b32.xlu1 %v15241_v10, %s10730_s18  ;;  %v6708_v56 = vadd.f32 %v15047_v50, %v6707_v9 }
 0x5fb   :  { %v6709_v21 = vpop.f32.mrf.mxu1  ;;  %v7123_v12 = vpop.f32.mrf.mxu0  ;;  %10089 = vmatmul.mubr.msk.bf16.gmra.mxu0 %vm5505_vm12, %v15355_v13 }
 0x5fc   :  { %5098 = vrot.lane.b32.xlu0 %v15149_v20, %s10729_s24  ;;  %10092 = vmatprep.mubr.msk.bf16.mxu0 %vm5505_vm12, %v15364_v4  ;;  %v10401_v20 = vld [vmem:[%s16089_s6 + $0x1a0] ss:$8 sps:$4 sm:$0xff]   ;;  %v15412_v12 = vld [vmem:[#allocation3 + $0x268] sm:$0xff]  }
 0x5fd   :  { %v15368_v22 = vpop.f32.mrf.mxu1  ;;  %6867 = vmatmul.mubr.bf16.gmra.mxu1 %v5955_v53  ;;  %v10010_v55 = vpop.f32.mrf.mxu0 }
 0x5fe   :  { %5096 = vrot.lane.b32.xlu1 %v15109_v51, %s10729_s24  ;;  %8030 = vmatpush2.bf16.msra.mxu1 %v10401_v20  ;;  %v15416_v55 = vld [vmem:[#allocation3 + $0x270] sm:$0xff]  }
 0x5ff   :  { %v6714_v41 = vpop.f32.mrf.mxu1  ;;  %v7133_v26 = vpop.f32.mrf.mxu0 }
 0x600   :  { %5389 = vrot.lane.b32.xlu0 %v15328_v14, %s10731_s0  ;;  %v10404_v26 = vld [vmem:[%s16089_s6 + $0xc0] ss:$8 sps:$4 sm:$0xff]  }
 0x601   :  { %v6715_v58 = vpop.f32.mrf.mxu1  ;;  %v10011_v43 = vpop.f32.mrf.mxu0 }
 0x602   :  { %5387 = vrot.lane.b32.xlu1 %v15291_v16, %s10731_s0 }
 0x603   :  { %v6717_v45 = vpop.f32.mrf.mxu1  ;;  %v7135_v51 = vpop.f32.mrf.mxu0  ;;  %10093 = vmatmul.mubr.msk.bf16.gmra.mxu0 %vm5505_vm12, %v15390_v33 }
 0x604   :  { %5459 = vrot.lane.b32.xlu0 %v15328_v14, %s10730_s18  ;;  %10096 = vmatprep.mubr.msk.bf16.mxu0 %vm5505_vm12, %v15394_v30 }
 0x605   :  { %v6720_v44 = vpop.f32.mrf.mxu1  ;;  %v10014_v25 = vpop.f32.mrf.mxu0 }
 0x606   :  { %v7154_v52 = vadd.f32 %v10014_v25, %v6705_v32  ;;  %5457 = vrot.lane.b32.xlu1 %v15291_v16, %s10730_s18  ;;  %v6721_v9 = vadd.f32 %v15047_v50, %v6720_v44  ;;  %v6713_v44 = vadd.f32 %v15047_v50, %v15368_v22  ;;  %v15447_v22 = vld [vmem:[#allocation3 + $0x280] sm:$0xff]  }
 0x607   :  { %v6722_v49 = vpop.f32.mrf.mxu1  ;;  %v7145_v7 = vpop.f32.mrf.mxu0 }
 0x608   :  { %v7146_v61 = vadd.f32 %v7145_v7, %v6697_v27  ;;  %5403 = vrot.lane.b32.xlu0 %v15184_v59, %s10729_s24  ;;  %v7466_v18 = vmax.f32 %v7154_v52, 0.0  ;;  %v6716_v7 = vadd.f32 %v15047_v50, %v6715_v58 }
 0x609   :  { %v6723_v57 = vpop.f32.mrf.mxu1  ;;  %v10015_v47 = vpop.f32.mrf.mxu0 }
 0x60a   :  { %v7157_v21 = vadd.f32 %v10015_v47, %v6708_v56  ;;  %5401 = vrot.lane.b32.xlu1 %v15164_v60, %s10729_s24  ;;  %v10406_v60 = vld [vmem:[%s16089_s6 + $0xc4] ss:$8 sps:$4 sm:$0xff]   ;;  %v7464_v20 = vmax.f32 %v7146_v61, 0.0  ;;  %v6724_v25 = vadd.f32 %v15047_v50, %v6723_v57 }
 0x60b   :  { %v6725_v36 = vpop.f32.mrf.mxu1  ;;  %v7148_v53 = vpop.f32.mrf.mxu0  ;;  %10097 = vmatmul.mubr.msk.bf16.gmra.mxu0 %vm5505_vm12, %v15412_v12  ;;  %7982 = vmatprep.subr.bf16.mxu0 %v10406_v60  ;;  %v15443_v47 = vld [vmem:[#allocation3 + $0x278] sm:$0xff]   ;;  %v6090_v60 = vsel %vm5698_vm13, %v15262_v19, %v15215_v46 }
 0x60c   :  { %v7467_v17 = vmax.f32 %v7157_v21, 0.0  ;;  %v7149_v41 = vadd.f32 %v7148_v53, %v6700_v0  ;;  %5484 = vrot.lane.b32.xlu0 %v15355_v13, %s10731_s0  ;;  %10100 = vmatprep.mubr.msk.bf16.mxu0 %vm5505_vm12, %v15416_v55 }
 0x60d   :  { %v6728_v59 = vpop.f32.mrf.mxu1  ;;  %v10018_v2 = vpop.f32.mrf.mxu0  ;;  %7983 = vmatpush2.bf16.msra.mxu0 %v10404_v26 }
 0x60e   :  { %v15431_v11 = vpack.c.bf16 %v7467_v17, %v7466_v18  ;;  %v7465_v43 = vmax.f32 %v7149_v41, 0.0  ;;  %v7170_v45 = vadd.f32 %v10018_v2, %v6721_v9  ;;  %5482 = vrot.lane.b32.xlu1 %v15337_v29, %s10731_s0 }
 0x60f   :  { %v6729_v51 = vpop.f32.mrf.mxu1  ;;  %v7161_v32 = vpop.f32.mrf.mxu0 }
 0x610   :  { %v15438_v27 = vpack.c.bf16 %v7465_v43, %v7464_v20  ;;  %5463 = vrot.lane.b32.xlu0 %v15355_v13, %s10730_s18  ;;  %v7162_v56 = vadd.f32 %v7161_v32, %v6713_v44  ;;  %v7470_v57 = vmax.f32 %v7170_v45, 0.0  ;;  %v16228_v20 = vld [vmem:[#allocation21_spill] sm:$0xff] }
 0x611   :  { %v6730_v52 = vpop.f32.mrf.mxu1  ;;  %v10019_v49 = vpop.f32.mrf.mxu0 }
 0x612   :  { %v7173_v61 = vadd.f32 %v10019_v49, %v6724_v25  ;;  %5461 = vrot.lane.b32.xlu1 %v15337_v29, %s10730_s18  ;;  %v5370_v9 = vpop.permute.xlu0 %5369  ;;  %v7468_v41 = vmax.f32 %v7162_v56, 0.0  ;;  %v10407_v56 = vld [vmem:[%s16089_s6 + $0xb0] ss:$8 sps:$4 sm:$0xff]  }
 0x613   :  { %v6731_v0 = vpop.f32.mrf.mxu1  ;;  %v7164_v21 = vpop.f32.mrf.mxu0  ;;  %10101 = vmatmul.mubr.msk.bf16.gmra.mxu0 %vm5505_vm12, %v15443_v47  ;;  %v15453_v58 = vsel %vm5827_vm14, %v15257_v63, %v5370_v9  ;;  %v5786_v63 = vsel %vm5698_vm13, %v14997_v24, %v16228_v20 }
 0x614   :  { %v7471_v36 = vmax.f32 %v7173_v61, 0.0  ;;  %v7165_v53 = vadd.f32 %v7164_v21, %v6716_v7  ;;  %5407 = vrot.lane.b32.xlu0 %v15241_v10, %s10729_s24  ;;  %10104 = vmatprep.mubr.msk.bf16.mxu0 %vm5505_vm12, %v15447_v22  ;;  %v5368_v26 = vpop.permute.xlu1 %5367  ;;  %v5958_v19 = vsel %vm5827_vm14, %v5786_v63, %v14834_v39  ;;  %v16229_v61 = vld [vmem:[#allocation24_spill] sm:$0xff] }
 0x615   :  { %v6734_v18 = vpop.f32.mrf.mxu1  ;;  %v10022_v17 = vpop.f32.mrf.mxu0  ;;  %v15469_v43 = vsel %vm5827_vm14, %v15271_v48, %v5368_v26  ;;  %v6211_v51 = vsel %vm5827_vm14, %v6090_v60, %v5368_v26  ;;  %v5788_v0 = vsel %vm5698_vm13, %v15030_v1, %v16229_v61  ;;  %v10410_v1 = vld [vmem:[%s16089_s6 + $0x190] ss:$8 sps:$4 sm:$0xff]  }
 0x616   :  { %v15459_v59 = vpack.c.bf16 %v7471_v36, %v7470_v57  ;;  %v7469_v2 = vmax.f32 %v7165_v53, 0.0  ;;  %5405 = vrot.lane.b32.xlu1 %v15227_v62, %s10729_s24  ;;  %6872 = vmatprep.mubr.bf16.mxu1 %v6211_v51  ;;  %v16230_v36 = vld [vmem:[#allocation29_spill] sm:$0xff]  ;;  %v10412_v18 = vld [vmem:[%s16089_s6 + $0x194] ss:$8 sps:$4 sm:$0xff]  }
 0x617   :  { %v6735_v10 = vpop.f32.mrf.mxu1  ;;  %v7177_v45 = vpop.f32.mrf.mxu0  ;;  %6873 = vmatmul.mubr.bf16.gmra.mxu1 %v5958_v19  ;;  %8031 = vmatprep.subr.bf16.mxu1 %v10412_v18  ;;  %v10413_v51 = vld [vmem:[%s16089_s6 + $0xa0] ss:$8 sps:$4 sm:$0xff]   ;;  %v10415_v19 = vld [vmem:[%s16089_s6 + $0xa4] ss:$8 sps:$4 sm:$0xff]  }
 0x618   :  { %v15474_v32 = vpack.c.bf16 %v7469_v2, %v7468_v41  ;;  %5488 = vrot.lane.b32.xlu0 %v15390_v33, %s10731_s0  ;;  %8032 = vmatpush2.bf16.msra.mxu1 %v10410_v1 }
 0x619   :  { %v6736_v44 = vpop.f32.mrf.mxu1  ;;  %v10023_v24 = vpop.f32.mrf.mxu0 }
 0x61a   :  { %v15480_v48 = vpop.permute.xlu1 %5221  ;;  %5486 = vrot.lane.b32.xlu1 %v15364_v4, %s10731_s0 }
 0x61b   :  { %v6091_v62 = vsel %vm5698_vm13, %v15246_v35, %v15480_v48  ;;  %v6737_v25 = vpop.f32.mrf.mxu1  ;;  %v7179_v52 = vpop.f32.mrf.mxu0  ;;  %v10409_v35 = vld [vmem:[%s16089_s6 + $0xb4] ss:$8 sps:$4 sm:$0xff]  }
 0x61c   :  { %v6213_v49 = vsel %vm5827_vm14, %v6091_v62, %v5370_v9  ;;  %5467 = vrot.lane.b32.xlu0 %v15390_v33, %s10730_s18  ;;  %7984 = vmatprep.subr.bf16.mxu0 %v10409_v35  ;;  %v5961_v33 = vsel %vm5827_vm14, %v5788_v0, %v16230_v36 }
 0x61d   :  { %v6740_v39 = vpop.f32.mrf.mxu1  ;;  %6878 = vmatprep.mubr.bf16.mxu1 %v6213_v49  ;;  %v10026_v7 = vpop.f32.mrf.mxu0  ;;  %7985 = vmatpush2.bf16.msra.mxu0 %v10407_v56  ;;  %v10417_v56 = vld [vmem:[%s16089_s6 + $0x90] ss:$8 sps:$4 sm:$0xff]  }
 0x61e   :  { %5465 = vrot.lane.b32.xlu1 %v15364_v4, %s10730_s18  ;;  %7986 = vmatprep.subr.bf16.mxu0 %v10415_v19  ;;  %v10416_v39 = vld [vmem:[#allocation3 + $0x288] sm:$0xff]  }
 0x61f   :  { %v6741_v21 = vpop.f32.mrf.mxu1  ;;  %v7189_v57 = vpop.f32.mrf.mxu0  ;;  %6879 = vmatmul.mubr.bf16.gmra.mxu1 %v5961_v33  ;;  %10105 = vmatmul.mubr.msk.bf16.gmra.mxu0 %vm5505_vm12, %v10416_v39  ;;  %v10422_v33 = vld [vmem:[%s16089_s6 + $0x84] ss:$8 sps:$4 sm:$0xff]  }
 0x620   :  { %5411 = vrot.lane.b32.xlu0 %v15291_v16, %s10729_s24 }
 0x621   :  { %v6742_v53 = vpop.f32.mrf.mxu1  ;;  %v10027_v9 = vpop.f32.mrf.mxu0  ;;  %7987 = vmatpush2.bf16.msra.mxu0 %v10413_v51  ;;  %v10425_v51 = vld [vmem:[%s16089_s6 + $0x184] ss:$8 sps:$4 sm:$0xff]  }
 0x622   :  { %5409 = vrot.lane.b32.xlu1 %v15280_v38, %s10729_s24  ;;  %v15559_v53 = vpop.permute.xlu0 %5223  ;;  %8033 = vmatprep.subr.bf16.mxu1 %v10425_v51 }
 0x623   :  { %v6743_v4 = vpop.f32.mrf.mxu1  ;;  %v7191_v17 = vpop.f32.mrf.mxu0 }
 0x624   :  { %5492 = vrot.lane.b32.xlu0 %v15412_v12, %s10731_s0 }
 0x625   :  { %v6746_v41 = vpop.f32.mrf.mxu1  ;;  %v15513_v2 = vpop.f32.mrf.mxu0 }
 0x626   :  { %5490 = vrot.lane.b32.xlu1 %v15394_v30, %s10731_s0 }
 0x627   :  { %v6747_v16 = vpop.f32.mrf.mxu1  ;;  %v7201_v26 = vpop.f32.mrf.mxu0 }
 0x628   :  { %5471 = vrot.lane.b32.xlu0 %v15412_v12, %s10730_s18 }
 0x629   :  { %v6748_v60 = vpop.f32.mrf.mxu1  ;;  %v15519_v20 = vpop.f32.mrf.mxu0 }
 0x62a   :  { %5469 = vrot.lane.b32.xlu1 %v15394_v30, %s10730_s18  ;;  %v5081_v60 = vpop.permute.xlu1 %5080 }
 0x62b   :  { %v6749_v38 = vpop.f32.mrf.mxu1  ;;  %v7204_v63 = vpop.f32.mrf.mxu0 }
 0x62c   :  { %5415 = vrot.lane.b32.xlu0 %v15337_v29, %s10729_s24 }
 0x62d   :  { %v6752_v10 = vpop.f32.mrf.mxu1  ;;  %v15525_v45 = vpop.f32.mrf.mxu0 }
 0x62e   :  { %v6753_v12 = vadd.f32 %v15047_v50, %v6752_v10  ;;  %5413 = vrot.lane.b32.xlu1 %v15328_v14, %s10729_s24  ;;  %v10419_v14 = vld [vmem:[%s16089_s6 + $0x94] ss:$8 sps:$4 sm:$0xff]  }
 0x62f   :  { %v6754_v44 = vpop.f32.mrf.mxu1  ;;  %v7217_v24 = vpop.f32.mrf.mxu0  ;;  %7988 = vmatprep.subr.bf16.mxu0 %v10419_v14 }
 0x630   :  { %v7202_v30 = vadd.f32 %v7201_v26, %v6753_v12  ;;  %5496 = vrot.lane.b32.xlu0 %v15443_v47, %s10731_s0  ;;  %7989 = vmatpush2.bf16.msra.mxu0 %v10417_v56  ;;  %v5083_v26 = vpop.permute.xlu0 %5082 }
 0x631   :  { %v6755_v62 = vpop.f32.mrf.mxu1  ;;  %v15538_v29 = vpop.f32.mrf.mxu0  ;;  %7990 = vmatprep.subr.bf16.mxu0 %v10422_v33  ;;  %v16232_v33 = vld [vmem:[#allocation33_spill] sm:$0xff] }
 0x632   :  { %v6756_v25 = vadd.f32 %v15047_v50, %v6755_v62  ;;  %5494 = vrot.lane.b32.xlu1 %v15416_v55, %s10731_s0  ;;  %v7472_v0 = vmax.f32 %v7202_v30, 0.0 }
 0x633   :  { %v6757_v52 = vpop.f32.mrf.mxu1  ;;  %v7220_v49 = vpop.f32.mrf.mxu0 }
 0x634   :  { %v7205_v7 = vadd.f32 %v7204_v63, %v6756_v25  ;;  %5475 = vrot.lane.b32.xlu0 %v15443_v47, %s10730_s18  ;;  %v10420_v47 = vld [vmem:[%s16089_s6 + $0x80] ss:$8 sps:$4 sm:$0xff]  }
 0x635   :  { %v6760_v35 = vpop.f32.mrf.mxu1  ;;  %v10038_v61 = vpop.f32.mrf.mxu0  ;;  %7991 = vmatpush2.bf16.msra.mxu0 %v10420_v47 }
 0x636   :  { %v7473_v21 = vmax.f32 %v7205_v7, 0.0  ;;  %5473 = vrot.lane.b32.xlu1 %v15416_v55, %s10730_s18 }
 0x637   :  { %v6762_v57 = vpop.f32.mrf.mxu1  ;;  %v7233_v36 = vpop.f32.mrf.mxu0 }
 0x638   :  { %v15561_v9 = vpack.c.bf16 %v7473_v21, %v7472_v0  ;;  %7506 = vrot.lane.b32.xlu0 %v15309_v34, %s10729_s24  ;;  %v6761_v34 = vadd.f32 %v15047_v50, %v6760_v35  ;;  %v16231_v36 = vld [vmem:[#allocation39_spill] sm:$0xff] }
 0x639   :  { %v6763_v1 = vpop.f32.mrf.mxu1  ;;  %v10039_v18 = vpop.f32.mrf.mxu0  ;;  %v5790_v47 = vsel %vm5698_vm13, %v16232_v33, %v16231_v36 }
 0x63a   :  { %5417 = vrot.lane.b32.xlu1 %v15355_v13, %s10729_s24  ;;  %v6764_v17 = vadd.f32 %v15047_v50, %v6763_v1  ;;  %v10423_v13 = vld [vmem:[%s16089_s6 + $0x180] ss:$8 sps:$4 sm:$0xff]   ;;  %v7210_v39 = vadd.f32 %v15513_v2, %v6761_v34 }
 0x63b   :  { %v6765_v55 = vpop.f32.mrf.mxu1  ;;  %v7235_v4 = vpop.f32.mrf.mxu0  ;;  %8034 = vmatpush2.bf16.msra.mxu1 %v10423_v13  ;;  %v10638_v34 = vld [vmem:[%s16088_s5] ss:$0 sm:$0xff] }
 0x63c   :  { %7509 = vrot.lane.b32.xlu0 %v15351_v28, %s10730_s18  ;;  %v10636_v28 = vld [vmem:[#allocation3 + $0x1b8] sm:$0xff]   ;;  %v7213_v12 = vadd.f32 %v15519_v20, %v6764_v17  ;;  %v7474_v1 = vmax.f32 %v7210_v39, 0.0 }
 0x63d   :  { %v6768_v41 = vpop.f32.mrf.mxu1  ;;  %v10042_v16 = vpop.f32.mrf.mxu0  ;;  %v5673_v19 = vsel %vm5505_vm12, %v10636_v28, %v5083_v26  ;;  %v16233_v17 = vld [vmem:[#allocation30_spill] sm:$0xff] }
 0x63e   :  { %v6769_v38 = vadd.f32 %v15047_v50, %v6768_v41  ;;  %5498 = vrot.lane.b32.xlu1 %v15447_v22, %s10731_s0  ;;  %v10637_v22 = vld [vmem:[#allocation3 + $0x1b0] sm:$0xff]   ;;  %v5810_v56 = vsel %vm5698_vm13, %v5673_v19, %v15113_v42  ;;  %v7475_v35 = vmax.f32 %v7213_v12, 0.0  ;;  %v5964_v41 = vsel %vm5827_vm14, %v5790_v47, %v16233_v17  ;;  %v10641_v17 = vld [vmem:[#allocation3 + $0x1d8] sm:$0xff]  }
 0x63f   :  { %v6770_v63 = vpop.f32.mrf.mxu1  ;;  %v7245_v10 = vpop.f32.mrf.mxu0  ;;  %v5670_v62 = vsel %vm5505_vm12, %v10637_v22, %v5081_v60 }
 0x640   :  { %7512 = vrot.lane.b32.xlu0 %v15345_v3, %s10731_s0  ;;  %v7218_v25 = vadd.f32 %v7217_v24, %v6769_v38  ;;  %v5808_v21 = vsel %vm5698_vm13, %v5670_v62, %v15129_v40  ;;  %v6092_v42 = vsel %vm5698_vm13, %v5670_v62, %v15559_v53  ;;  %v7493_v16 = vpack.c.bf16 %v7475_v35, %v7474_v1 }
 0x641   :  { %v6771_v44 = vpop.f32.mrf.mxu1  ;;  %v10043_v30 = vpop.f32.mrf.mxu0 }
 0x642   :  { %v6772_v52 = vadd.f32 %v15047_v50, %v6771_v44  ;;  %7497 = vrot.lane.b32.xlu1 %v15107_v15, %s10729_s24  ;;  %v5374_v3 = vpop.permute.xlu0 %5373  ;;  %v7476_v2 = vmax.f32 %v7218_v25, 0.0  ;;  %v10639_v44 = vld [vmem:[#allocation3 + $0x1c8] sm:$0xff]  }
 0x643   :  { %v6773_v14 = vpop.f32.mrf.mxu1  ;;  %v7247_v7 = vpop.f32.mrf.mxu0  ;;  %v15595_v61 = vsel %vm5827_vm14, %v5810_v56, %v5374_v3 }
 0x644   :  { %v7221_v20 = vadd.f32 %v7220_v49, %v6772_v52  ;;  %7503 = vrot.lane.b32.xlu0 %v15151_v6, %s10731_s0  ;;  %v5372_v49 = vpop.permute.xlu1 %5371  ;;  %v10640_v14 = vld [vmem:[#allocation3 + $0x1c0] sm:$0xff]  }
 0x645   :  { %v6776_v24 = vpop.f32.mrf.mxu1  ;;  %v10046_v0 = vpop.f32.mrf.mxu0  ;;  %v15608_v18 = vsel %vm5827_vm14, %v5808_v21, %v5372_v49  ;;  %v6215_v6 = vsel %vm5827_vm14, %v6092_v42, %v5372_v49 }
 0x646   :  { %v7477_v57 = vmax.f32 %v7221_v20, 0.0  ;;  %v6777_v15 = vadd.f32 %v15047_v50, %v6776_v24  ;;  %7500 = vrot.lane.b32.xlu1 %v15157_v37, %s10730_s18  ;;  %v15613_v4 = vpop.permute.xlu0 %5227  ;;  %6884 = vmatprep.mubr.bf16.mxu1 %v6215_v6  ;;  %v16234_v0 = vld [vmem:[#allocation31_spill] sm:$0xff] }
 0x647   :  { %v6778_v40 = vpop.f32.mrf.mxu1  ;;  %v7257_v55 = vpop.f32.mrf.mxu0  ;;  %6885 = vmatmul.mubr.bf16.gmra.mxu1 %v5964_v41 }
 0x648   :  { %v7494_v50 = vpack.c.bf16 %v7477_v57, %v7476_v2  ;;  %v7226_v38 = vadd.f32 %v15525_v45, %v6777_v15  ;;  %v15621_v10 = vpop.permute.xlu1 %5225 }
 0x649   :  { %v6779_v26 = vpop.f32.mrf.mxu1  ;;  %v10047_v60 = vpop.f32.mrf.mxu0  ;;  %v6093_v37 = vsel %vm5698_vm13, %v5673_v19, %v15621_v10 }
 0x64a   :  { %v6780_v63 = vadd.f32 %v10638_v34, %v6779_v26  ;;  %7527 = vrot.lane.b32.xlu0 %v7494_v50, %s10730_s18  ;;  %7524 = vrot.lane.b32.xlu1 %v7493_v16, %s10729_s24  ;;  %v5087_v12 = vpop.permute.xlu0 %5086  ;;  %v6217_v45 = vsel %vm5827_vm14, %v6093_v37, %v5374_v3  ;;  %v7478_v25 = vmax.f32 %v7226_v38, 0.0  ;;  %v16235_v16 = vld [vmem:[#allocation37_spill] sm:$0xff] }
 0x64b   :  { %v6781_v13 = vpop.f32.mrf.mxu1  ;;  %v7259_v51 = vpop.f32.mrf.mxu0  ;;  %v5679_v30 = vsel %vm5505_vm12, %v10639_v44, %v5087_v12  ;;  %6890 = vmatprep.mubr.bf16.mxu1 %v6217_v45  ;;  %v10642_v34 = vld [vmem:[#allocation3 + $0x1d0] sm:$0xff]  }
 0x64c   :  { %v7229_v28 = vadd.f32 %v15538_v29, %v6780_v63  ;;  %v5085_v39 = vpop.permute.xlu1 %5084  ;;  %v5814_v56 = vsel %vm5698_vm13, %v5679_v30, %v15215_v46 }
 0x64d   :  { %v6784_v22 = vpop.f32.mrf.mxu1  ;;  %v10050_v62 = vpop.f32.mrf.mxu0  ;;  %v5676_v19 = vsel %vm5505_vm12, %v10640_v14, %v5085_v39  ;;  %v16236_v39 = vld [vmem:[#allocation32_spill] sm:$0xff] }
 0x64e   :  { %v7479_v52 = vmax.f32 %v7229_v28, 0.0  ;;  %7515 = vrot.lane.b32.xlu1 %v15431_v11, %s10729_s24  ;;  %v5378_v3 = vpop.permute.xlu0 %5377  ;;  %v5812_v2 = vsel %vm5698_vm13, %v5676_v19, %v15225_v5  ;;  %v6094_v11 = vsel %vm5698_vm13, %v5676_v19, %v15613_v4 }
 0x64f   :  { %v6785_v7 = vpop.f32.mrf.mxu1  ;;  %v7269_v20 = vpop.f32.mrf.mxu0  ;;  %v15636_v35 = vsel %vm5827_vm14, %v5814_v56, %v5378_v3  ;;  %6891 = vmatmul.mubr.bf16.gmra.mxu1 %v16234_v0  ;;  %v10643_v56 = vld [vmem:[#allocation3 + $0x1e8] sm:$0xff]  }
 0x650   :  { %v7495_v29 = vpack.c.bf16 %v7479_v52, %v7478_v25  ;;  %v5376_v57 = vpop.permute.xlu1 %5375 }
 0x651   :  { %v6786_v24 = vpop.f32.mrf.mxu1  ;;  %v10051_v21 = vpop.f32.mrf.mxu0  ;;  %v15645_v15 = vsel %vm5827_vm14, %v5812_v2, %v5376_v57  ;;  %v6219_v42 = vsel %vm5827_vm14, %v6094_v11, %v5376_v57  ;;  %v10644_v11 = vld [vmem:[#allocation3 + $0x1e0] sm:$0xff]  }
 0x652   :  { %7530 = vrot.lane.b32.xlu0 %v7495_v29, %s10731_s0  ;;  %7518 = vrot.lane.b32.xlu1 %v15474_v32, %s10730_s18  ;;  %v15650_v36 = vpop.permute.xlu0 %5231 }
 0x653   :  { %v6787_v46 = vpop.f32.mrf.mxu1  ;;  %v7271_v49 = vpop.f32.mrf.mxu0  ;;  %6896 = vmatprep.mubr.bf16.mxu1 %v6219_v42 }
 0x654   :  { %v15652_v47 = vpop.permute.xlu1 %5229 }
 0x655   :  { %v6790_v5 = vpop.f32.mrf.mxu1  ;;  %v10054_v33 = vpop.f32.mrf.mxu0  ;;  %v6095_v1 = vsel %vm5698_vm13, %v5679_v30, %v15652_v47 }
 0x656   :  { %7521 = vrot.lane.b32.xlu1 %v15459_v59, %s10731_s0  ;;  %v5091_v6 = vpop.permute.xlu0 %5090  ;;  %v6221_v50 = vsel %vm5827_vm14, %v6095_v1, %v5378_v3 }
 0x657   :  { %v6791_v40 = vpop.f32.mrf.mxu1  ;;  %v7281_v55 = vpop.f32.mrf.mxu0  ;;  %v5685_v32 = vsel %vm5505_vm12, %v10641_v17, %v5091_v6  ;;  %6897 = vmatmul.mubr.bf16.gmra.mxu1 %v16235_v16 }
 0x658   :  { %v5089_v60 = vpop.permute.xlu1 %5088  ;;  %6902 = vmatprep.mubr.bf16.mxu1 %v6221_v50  ;;  %v5818_v38 = vsel %vm5698_vm13, %v5685_v32, %v15559_v53  ;;  %v16237_v55 = vld [vmem:[#allocation38_spill] sm:$0xff] }
 0x659   :  { %v6792_v41 = vpop.f32.mrf.mxu1  ;;  %v10055_v26 = vpop.f32.mrf.mxu0  ;;  %v5682_v63 = vsel %vm5505_vm12, %v10642_v34, %v5089_v60 }
 0x65a   :  { %v5382_v13 = vpop.permute.xlu0 %5381  ;;  %v5816_v45 = vsel %vm5698_vm13, %v5682_v63, %v15480_v48  ;;  %v6096_v25 = vsel %vm5698_vm13, %v5682_v63, %v15650_v36 }
 0x65b   :  { %v6793_v37 = vpop.f32.mrf.mxu1  ;;  %v7283_v59 = vpop.f32.mrf.mxu0  ;;  %v15665_v51 = vsel %vm5827_vm14, %v5818_v38, %v5382_v13 }
 0x65c   :  { %v5380_v44 = vpop.permute.xlu1 %5379  ;;  %v10645_v59 = vld [vmem:[#allocation3 + $0x1f8] sm:$0xff]  }
 0x65d   :  { %v6796_v28 = vpop.f32.mrf.mxu1  ;;  %v10058_v12 = vpop.f32.mrf.mxu0  ;;  %v15670_v30 = vsel %vm5827_vm14, %v5816_v45, %v5380_v44  ;;  %v6223_v19 = vsel %vm5827_vm14, %v6096_v25, %v5380_v44 }
 0x65e   :  { %v5452_v62 = vpop.permute.xlu0 %5451 }
 0x65f   :  { %v6797_v22 = vpop.f32.mrf.mxu1  ;;  %v7293_v53 = vpop.f32.mrf.mxu0  ;;  %6903 = vmatmul.mubr.bf16.gmra.mxu1 %v16236_v39 }
 0x660   :  { %v5450_v7 = vpop.permute.xlu1 %5449  ;;  %6908 = vmatprep.mubr.bf16.mxu1 %v6223_v19  ;;  %v10646_v53 = vld [vmem:[#allocation3 + $0x1f0] sm:$0xff]  }
 0x661   :  { %v6798_v52 = vpop.f32.mrf.mxu1  ;;  %v10059_v14 = vpop.f32.mrf.mxu0  ;;  %v6098_v21 = vsel %vm5698_vm13, %v5685_v32, %v5450_v7 }
 0x662   :  { %v5095_v29 = vpop.permute.xlu0 %5094  ;;  %v6225_v50 = vsel %vm5827_vm14, %v6098_v21, %v5382_v13 }
 0x663   :  { %v6799_v20 = vpop.f32.mrf.mxu1  ;;  %v7295_v48 = vpop.f32.mrf.mxu0  ;;  %v5691_v3 = vsel %vm5505_vm12, %v10643_v56, %v5095_v29 }
 0x664   :  { %v5093_v2 = vpop.permute.xlu1 %5092  ;;  %v5822_v57 = vsel %vm5698_vm13, %v5691_v3, %v15613_v4 }
 0x665   :  { %v6802_v24 = vpop.f32.mrf.mxu1  ;;  %v10062_v0 = vpop.f32.mrf.mxu0  ;;  %v5688_v46 = vsel %vm5505_vm12, %v10644_v11, %v5093_v2 }
 0x666   :  { %v5386_v5 = vpop.permute.xlu0 %5385  ;;  %v5820_v33 = vsel %vm5698_vm13, %v5688_v46, %v15621_v10  ;;  %v6100_v37 = vsel %vm5698_vm13, %v5688_v46, %v5452_v62 }
 0x667   :  { %v6803_v49 = vpop.f32.mrf.mxu1  ;;  %v7305_v42 = vpop.f32.mrf.mxu0  ;;  %v15684_v1 = vsel %vm5827_vm14, %v5822_v57, %v5386_v5  ;;  %6909 = vmatmul.mubr.bf16.gmra.mxu1 %v16237_v55 }
 0x668   :  { %v5384_v17 = vpop.permute.xlu1 %5383  ;;  %6914 = vmatprep.mubr.bf16.mxu1 %v6225_v50 }
 0x669   :  { %v6804_v40 = vpop.f32.mrf.mxu1  ;;  %v10063_v6 = vpop.f32.mrf.mxu0  ;;  %v15689_v4 = vsel %vm5827_vm14, %v5820_v33, %v5384_v17  ;;  %v6227_v45 = vsel %vm5827_vm14, %v6100_v37, %v5384_v17 }
 0x66a   :  { %v5456_v16 = vpop.permute.xlu0 %5455 }
 0x66b   :  { %v6805_v32 = vpop.f32.mrf.mxu1  ;;  %v7307_v41 = vpop.f32.mrf.mxu0 }
 0x66c   :  { %v5454_v10 = vpop.permute.xlu1 %5453  ;;  %v10647_v32 = vld [vmem:[#allocation3 + $0x200] sm:$0xff]  }
 0x66d   :  { %v6808_v26 = vpop.f32.mrf.mxu1  ;;  %v10066_v60 = vpop.f32.mrf.mxu0  ;;  %v6102_v7 = vsel %vm5698_vm13, %v5691_v3, %v5454_v10 }
 0x66e   :  { %v5099_v63 = vpop.permute.xlu0 %5098  ;;  %v6229_v24 = vsel %vm5827_vm14, %v6102_v7, %v5386_v5 }
 0x66f   :  { %v6809_v38 = vpop.f32.mrf.mxu1  ;;  %v7317_v34 = vpop.f32.mrf.mxu0  ;;  %v5697_v28 = vsel %vm5505_vm12, %v10645_v59, %v5099_v63  ;;  %6915 = vmatmul.mubr.bf16.gmra.mxu1 %v15211_v31 }
 0x670   :  { %v5097_v44 = vpop.permute.xlu1 %5096  ;;  %6920 = vmatprep.mubr.bf16.mxu1 %v6227_v45  ;;  %v5826_v22 = vsel %vm5698_vm13, %v5697_v28, %v15650_v36 }
 0x671   :  { %v6810_v13 = vpop.f32.mrf.mxu1  ;;  %v10067_v12 = vpop.f32.mrf.mxu0  ;;  %v5694_v25 = vsel %vm5505_vm12, %v10646_v53, %v5097_v44 }
 0x672   :  { %v5390_v62 = vpop.permute.xlu0 %5389  ;;  %v5824_v14 = vsel %vm5698_vm13, %v5694_v25, %v15652_v47  ;;  %v6104_v3 = vsel %vm5698_vm13, %v5694_v25, %v5456_v16  ;;  %v10648_v13 = vld [vmem:[#allocation3 + $0x208] sm:$0xff]  }
 0x673   :  { %v6811_v52 = vpop.f32.mrf.mxu1  ;;  %v7319_v39 = vpop.f32.mrf.mxu0  ;;  %v15701_v19 = vsel %vm5827_vm14, %v5826_v22, %v5390_v62 }
 0x674   :  { %v5388_v20 = vpop.permute.xlu1 %5387 }
 0x675   :  { %v6814_v31 = vpop.f32.mrf.mxu1  ;;  %v15705_v48 = vsel %vm5827_vm14, %v5824_v14, %v5388_v20  ;;  %v6231_v42 = vsel %vm5827_vm14, %v6104_v3, %v5388_v20 }
 0x676   :  { %v5460_v29 = vpop.permute.xlu0 %5459 }
 0x677   :  { %v6815_v36 = vpop.f32.mrf.mxu1  ;;  %6921 = vmatmul.mubr.bf16.gmra.mxu1 %v15190_v23 }
 0x678   :  { %v5458_v0 = vpop.permute.xlu1 %5457  ;;  %6926 = vmatprep.mubr.bf16.mxu1 %v6229_v24  ;;  %v10649_v36 = vld [vmem:[#allocation3 + $0x210] sm:$0xff]  }
 0x679   :  { %v6816_v56 = vpop.f32.mrf.mxu1  ;;  %v6106_v55 = vsel %vm5698_vm13, %v5697_v28, %v5458_v0 }
 0x67a   :  { %v5404_v21 = vpop.permute.xlu0 %5403 }
 0x67b   :  { %v6817_v47 = vpop.f32.mrf.mxu1  ;;  %v6025_v12 = vsel %vm5505_vm12, %v10648_v13, %v5404_v21 }
 0x67c   :  { %v5402_v57 = vpop.permute.xlu1 %5401 }
 0x67d   :  { %v6820_v2 = vpop.f32.mrf.mxu1  ;;  %v6022_v41 = vsel %vm5505_vm12, %v10647_v32, %v5402_v57 }
 0x67e   :  { %v5485_v46 = vpop.permute.xlu0 %5484  ;;  %v6108_v38 = vsel %vm5698_vm13, %v6022_v41, %v5460_v29 }
 0x67f   :  { %v6821_v11 = vpop.f32.mrf.mxu1  ;;  %6927 = vmatmul.mubr.bf16.gmra.mxu1 %v15469_v43  ;;  %v6233_v43 = vsel %vm5827_vm14, %v6106_v55, %v5390_v62 }
 0x680   :  { %v5483_v33 = vpop.permute.xlu1 %5482  ;;  %6932 = vmatprep.mubr.bf16.mxu1 %v6231_v42 }
 0x681   :  { %v6822_v49 = vpop.f32.mrf.mxu1  ;;  %v6236_v59 = vsel %vm5827_vm14, %v6108_v38, %v5483_v33 }
 0x682   :  { %v5464_v40 = vpop.permute.xlu0 %5463 }
 0x683   :  { %v6823_v23 = vpop.f32.mrf.mxu1 }
 0x684   :  { %v5462_v6 = vpop.permute.xlu1 %5461  ;;  %v10650_v23 = vld [vmem:[#allocation3 + $0x218] sm:$0xff]  }
 0x685   :  { %v6826_v5 = vpop.f32.mrf.mxu1  ;;  %v6110_v22 = vsel %vm5698_vm13, %v6025_v12, %v5462_v6 }
 0x686   :  { %v5408_v17 = vpop.permute.xlu0 %5407  ;;  %v6239_v31 = vsel %vm5827_vm14, %v6110_v22, %v5485_v46 }
 0x687   :  { %v6827_v50 = vpop.f32.mrf.mxu1  ;;  %6933 = vmatmul.mubr.bf16.gmra.mxu1 %v15453_v58 }
 0x688   :  { %v5406_v16 = vpop.permute.xlu1 %5405  ;;  %6938 = vmatprep.mubr.bf16.mxu1 %v6233_v43 }
 0x689   :  { %v6828_v26 = vpop.f32.mrf.mxu1 }
 0x68a   :  { %v5489_v10 = vpop.permute.xlu0 %5488 }
 0x68b   :  { %v6829_v60 = vpop.f32.mrf.mxu1 }
 0x68c   :  { %v5487_v63 = vpop.permute.xlu1 %5486 }
 0x68d   :  { %v6832_v34 = vpop.f32.mrf.mxu1 }
 0x68e   :  { %v15718_v28 = vpop.permute.xlu0 %5467 }
 0x68f   :  { %v6833_v37 = vpop.f32.mrf.mxu1  ;;  %6939 = vmatmul.mubr.bf16.gmra.mxu1 %v15608_v18  ;;  %v6028_v18 = vsel %vm5505_vm12, %v10649_v36, %v5406_v16  ;;  %v10652_v36 = vld [vmem:[#allocation3 + $0x228] sm:$0xff]  }
 0x690   :  { %v5466_v58 = vpop.permute.xlu1 %5465  ;;  %6944 = vmatprep.mubr.bf16.mxu1 %v6236_v59  ;;  %v6112_v21 = vsel %vm5698_vm13, %v6028_v18, %v5464_v40  ;;  %v10651_v59 = vld [vmem:[#allocation3 + $0x220] sm:$0xff]  }
 0x691   :  { %v6834_v45 = vpop.f32.mrf.mxu1  ;;  %v6242_v49 = vsel %vm5827_vm14, %v6112_v21, %v5487_v63 }
 0x692   :  { %v15723_v53 = vpop.permute.xlu0 %5411 }
 0x693   :  { %v6835_v44 = vpop.f32.mrf.mxu1  ;;  %v10070_v25 = vpop.f32.mrf.mxu0  ;;  %v6037_v18 = vsel %vm5505_vm12, %v10652_v36, %v15723_v53 }
 0x694   :  { %v5410_v39 = vpop.permute.xlu1 %5409 }
 0x695   :  { %v6838_v52 = vpop.f32.mrf.mxu1  ;;  %v7329_v62 = vpop.f32.mrf.mxu0  ;;  %v6034_v13 = vsel %vm5505_vm12, %v10651_v59, %v5410_v39 }
 0x696   :  { %v15726_v7 = vpop.permute.xlu0 %5492 }
 0x697   :  { %v6839_v14 = vpop.f32.mrf.mxu1  ;;  %v10071_v20 = vpop.f32.mrf.mxu0  ;;  %6945 = vmatmul.mubr.bf16.gmra.mxu1 %v15595_v61  ;;  %v6031_v61 = vsel %vm5505_vm12, %v10650_v23, %v5408_v17 }
 0x698   :  { %v5491_v56 = vpop.permute.xlu1 %5490  ;;  %6950 = vmatprep.mubr.bf16.mxu1 %v6239_v31  ;;  %v6114_v50 = vsel %vm5698_vm13, %v6031_v61, %v5466_v58 }
 0x699   :  { %v6840_v29 = vpop.f32.mrf.mxu1  ;;  %v7331_v24 = vpop.f32.mrf.mxu0  ;;  %v6245_v38 = vsel %vm5827_vm14, %v6114_v50, %v5489_v10  ;;  %v6116_v10 = vsel %vm5698_vm13, %v6034_v13, %v15718_v28 }
 0x69a   :  { %v15730_v47 = vpop.permute.xlu0 %5471  ;;  %v6248_v31 = vsel %vm5827_vm14, %v6116_v10, %v5491_v56 }
 0x69b   :  { %v6841_v0 = vpop.f32.mrf.mxu1  ;;  %v10074_v2 = vpop.f32.mrf.mxu0 }
 0x69c   :  { %v5470_v11 = vpop.permute.xlu1 %5469 }
 0x69d   :  { %v6844_v57 = vpop.f32.mrf.mxu1  ;;  %v7341_v46 = vpop.f32.mrf.mxu0  ;;  %v6118_v56 = vsel %vm5698_vm13, %v6037_v18, %v5470_v11 }
 0x69e   :  { %v15734_v42 = vpop.permute.xlu0 %5415 }
 0x69f   :  { %v6845_v3 = vpop.f32.mrf.mxu1  ;;  %v10075_v33 = vpop.f32.mrf.mxu0  ;;  %6951 = vmatmul.mubr.bf16.gmra.mxu1 %v15645_v15 }
 0x6a0   :  { %v5414_v55 = vpop.permute.xlu1 %5413  ;;  %6956 = vmatprep.mubr.bf16.mxu1 %v6242_v49 }
 0x6a1   :  { %v6846_v5 = vpop.f32.mrf.mxu1  ;;  %v7343_v6 = vpop.f32.mrf.mxu0 }
 0x6a2   :  { %v15739_v32 = vpop.permute.xlu0 %5496  ;;  %v10653_v5 = vld [vmem:[#allocation3 + $0x230] sm:$0xff]  }
 0x6a3   :  { %v6847_v40 = vpop.f32.mrf.mxu1  ;;  %v10078_v41 = vpop.f32.mrf.mxu0  ;;  %v6040_v11 = vsel %vm5505_vm12, %v10653_v5, %v5414_v55  ;;  %v10428_v5 = vld [vmem:[%s16091_s8 + $0xa8] ss:$12 sps:$4 sm:$0xff]  }
 0x6a4   :  { %v15741_v43 = vpop.permute.xlu1 %5494 }
 0x6a5   :  { %v6850_v26 = vpop.f32.mrf.mxu1  ;;  %v7353_v16 = vpop.f32.mrf.mxu0 }
 0x6a6   :  { %v15744_v17 = vpop.permute.xlu0 %5475 }
 0x6a7   :  { %v6851_v60 = vpop.f32.mrf.mxu1  ;;  %v10079_v34 = vpop.f32.mrf.mxu0  ;;  %6957 = vmatmul.mubr.bf16.gmra.mxu1 %v15636_v35 }
 0x6a8   :  { %v15747_v63 = vpop.permute.xlu1 %5473  ;;  %6962 = vmatprep.mubr.bf16.mxu1 %v6245_v38 }
 0x6a9   :  { %v6852_v15 = vpop.f32.mrf.mxu1  ;;  %v7355_v37 = vpop.f32.mrf.mxu0 }
 0x6aa   :  { %v7507_v45 = vpop.permute.xlu0 %7506  ;;  %v10654_v15 = vld [vmem:[#allocation3 + $0x238] sm:$0xff]  }
 0x6ab   :  { %v6853_v12 = vpop.f32.mrf.mxu1  ;;  %v10082_v58 = vpop.f32.mrf.mxu0  ;;  %v7542_v28 = vsel %vm5505_vm12, %v15317_v54, %v7507_v45  ;;  %v6251_v54 = vsel %vm5827_vm14, %v6118_v56, %v15726_v7  ;;  %v6120_v7 = vsel %vm5698_vm13, %v6040_v11, %v15730_v47  ;;  %v6043_v37 = vsel %vm5505_vm12, %v10654_v15, %v15734_v42  ;;  %v10433_v11 = vld [vmem:[%s16091_s8 + $0x94] ss:$12 sps:$4 sm:$0xff]   ;;  %v10448_v15 = vld [vmem:[%s16092_s9 + $0x1c] ss:$12 sps:$4 sm:$0xff]  }
 0x6ac   :  { %v15750_v22 = vpop.permute.xlu1 %5417  ;;  %v6254_v55 = vsel %vm5827_vm14, %v6120_v7, %v15741_v43  ;;  %v6122_v47 = vsel %vm5698_vm13, %v6043_v37, %v15747_v63  ;;  %v10655_v58 = vld [vmem:[#allocation3 + $0x240] sm:$0xff]   ;;  %v10451_v37 = vld [vmem:[%s16091_s8 + $0x1c] ss:$12 sps:$4 sm:$0xff]   ;;  %8174 = vmatprep.subr.bf16.mxu1 %v10448_v15 }
 0x6ad   :  { %v6856_v44 = vpop.f32.mrf.mxu1  ;;  %v7365_v25 = vpop.f32.mrf.mxu0  ;;  %v10439_v7 = vld [vmem:[%s16091_s8 + $0x64] ss:$12 sps:$4 sm:$0xff]  }
 0x6ae   :  { %v7510_v62 = vpop.permute.xlu0 %7509  ;;  %v6046_v44 = vsel %vm5505_vm12, %v10655_v58, %v15750_v22 }
 0x6af   :  { %v6857_v52 = vpop.f32.mrf.mxu1  ;;  %v10083_v35 = vpop.f32.mrf.mxu0  ;;  %6963 = vmatmul.mubr.bf16.gmra.mxu1 %v15670_v30  ;;  %v7544_v24 = vsel %vm5698_vm13, %v7542_v28, %v7510_v62  ;;  %v6124_v25 = vsel %vm5698_vm13, %v6046_v44, %v15744_v17 }
 0x6b0   :  { %v15756_v20 = vpop.permute.xlu1 %5498  ;;  %6968 = vmatprep.mubr.bf16.mxu1 %v6248_v31 }
 0x6b1   :  { %v6858_v14 = vpop.f32.mrf.mxu1  ;;  %v7367_v39 = vpop.f32.mrf.mxu0 }
 0x6b2   :  { %v7513_v0 = vpop.permute.xlu0 %7512 }
 0x6b3   :  { %v6859_v29 = vpop.f32.mrf.mxu1  ;;  %v10086_v21 = vpop.f32.mrf.mxu0  ;;  %v7546_v30 = vsel %vm5827_vm14, %v7544_v24, %v7513_v0 }
 0x6b4   :  { %7992 = vmatprep.mubr.bf16.mxu0 %v7546_v30  ;;  %v7498_v57 = vpop.permute.xlu1 %7497 }
 0x6b5   :  { %v6862_v2 = vpop.f32.mrf.mxu1  ;;  %v7377_v46 = vpop.f32.mrf.mxu0  ;;  %v7534_v53 = vsel %vm5505_vm12, %v15115_v8, %v7498_v57  ;;  %v10732_v57 = vmov 0.0  }
 0x6b6   :  { %v7504_v6 = vpop.permute.xlu0 %7503  ;;  %10108 = vmatprep.subr.bf16.mxu0 %v10732_v57  ;;  %v16238_v46 = vmov 0  }
 0x6b7   :  { %v6863_v3 = vpop.f32.mrf.mxu1  ;;  %v10087_v49 = vpop.f32.mrf.mxu0  ;;  %6969 = vmatmul.mubr.bf16.gmra.mxu1 %v15665_v51 }
 0x6b8   :  { %6974 = vmatprep.mubr.bf16.mxu1 %v6251_v54  ;;  %v7501_v23 = vpop.permute.xlu1 %7500  ;;  %v10427_v49 = vld [vmem:[%s16092_s9 + $0x8] ss:$12 sps:$4 sm:$0xff]   ;;  %v8116_v54 = vld [vmem:[%s16084_s1] sm:$0xff] }
 0x6b9   :  { %v6864_v33 = vpop.f32.mrf.mxu1  ;;  %v7379_v61 = vpop.f32.mrf.mxu0  ;;  %v7536_v40 = vsel %vm5698_vm13, %v7534_v53, %v7501_v23  ;;  %v8117_v53 = vld [vmem:[%s16084_s1 + $0x8] sm:$0xff] }
 0x6ba   :  { %v7538_v41 = vsel %vm5827_vm14, %v7536_v40, %v7504_v6  ;;  %v8118_v23 = vpack.c.bf16 %v8117_v53, %v8116_v54  ;;  %v10430_v61 = vld [vmem:[%s16091_s8 + $0xac] ss:$12 sps:$4 sm:$0xff]   ;;  %v10431_v6 = vld [vmem:[%s16091_s8 + $0x90] ss:$12 sps:$4 sm:$0xff]  }
 0x6bb   :  { %v6865_v50 = vpop.f32.mrf.mxu1  ;;  %v10090_v26 = vpop.f32.mrf.mxu0  ;;  %7993 = vmatmul.mubr.bf16.vlgmr.msra.gmra.mxu0 %v7538_v41  ;;  %v10434_v41 = vld [vmem:[%s16091_s8 + $0x78] ss:$12 sps:$4 sm:$0xff]  }
 0x6bc   :  { %v7525_v10 = vpop.permute.xlu1 %7524  ;;  %10112 = vmatprep.mubr.msk.bf16.mxu0 %vm10733_vm15, %v10732_v57  ;;  %v10436_v50 = vld [vmem:[%s16091_s8 + $0x7c] ss:$12 sps:$4 sm:$0xff]   ;;  %v10487_v54 = vld [vmem:[%s16091_s8 + $0x38] ss:$12 sps:$4 sm:$0xff]  }
 0x6bd   :  { %v6868_v51 = vpop.f32.mrf.mxu1  ;;  %v7389_v16 = vpop.f32.mrf.mxu0  ;;  %v7558_v22 = vsel %vm5505_vm12, %v15561_v9, %v7525_v10  ;;  %v10460_v10 = vld [vmem:[%s16091_s8 + $0x16c] ss:$12 sps:$4 sm:$0xff]  }
 0x6be   :  { %v10437_v16 = vld [vmem:[%s16091_s8 + $0x60] ss:$12 sps:$4 sm:$0xff]  }
 0x6bf   :  { %v6869_v8 = vpop.f32.mrf.mxu1  ;;  %v10091_v60 = vpop.f32.mrf.mxu0  ;;  %6975 = vmatmul.mubr.bf16.gmra.mxu1 %v15689_v4  ;;  %v6257_v4 = vsel %vm5827_vm14, %v6122_v47, %v15739_v32 }
 0x6c0   :  { %6980 = vmatprep.mubr.bf16.mxu1 %v6254_v55  ;;  %v7516_v62 = vpop.permute.xlu1 %7515  ;;  %v7528_v32 = vpop.permute.xlu0 %7527  ;;  %v10442_v60 = vld [vmem:[%s16091_s8 + $0x4c] ss:$12 sps:$4 sm:$0xff]   ;;  %v10445_v55 = vld [vmem:[%s16091_s8 + $0x34] ss:$12 sps:$4 sm:$0xff]  }
 0x6c1   :  { %v6870_v38 = vpop.f32.mrf.mxu1  ;;  %v7391_v34 = vpop.f32.mrf.mxu0  ;;  %v7560_v17 = vsel %vm5698_vm13, %v7558_v22, %v7528_v32  ;;  %v7550_v21 = vsel %vm5505_vm12, %v15438_v27, %v7516_v62  ;;  %v10466_v32 = vld [vmem:[%s16091_s8 + $0x158] ss:$12 sps:$4 sm:$0xff]  }
 0x6c2   :  { %v10440_v38 = vld [vmem:[%s16091_s8 + $0x48] ss:$12 sps:$4 sm:$0xff]   ;;  %v10443_v34 = vld [vmem:[%s16091_s8 + $0x30] ss:$12 sps:$4 sm:$0xff]  }
 0x6c3   :  { %v6871_v59 = vpop.f32.mrf.mxu1  ;;  %v10094_v13 = vpop.f32.mrf.mxu0 }
 0x6c4   :  { %v7531_v31 = vpop.permute.xlu0 %7530  ;;  %v7519_v36 = vpop.permute.xlu1 %7518  ;;  %v10446_v59 = vld [vmem:[%s16092_s9 + $0x18] ss:$12 sps:$4 sm:$0xff]  }
 0x6c5   :  { %v7401_v12 = vpop.f32.mrf.mxu0  ;;  %v7552_v9 = vsel %vm5698_vm13, %v7550_v21, %v7519_v36  ;;  %v10449_v13 = vld [vmem:[%s16091_s8 + $0x18] ss:$12 sps:$4 sm:$0xff]   ;;  %v10471_v36 = vld [vmem:[%s16091_s8 + $0x140] ss:$12 sps:$4 sm:$0xff]  }
 0x6c6   :  { %v10454_v12 = vld [vmem:[%s16092_s9 + $0x4] ss:$12 sps:$4 sm:$0xff]  }
 0x6c7   :  { %v10095_v45 = vpop.f32.mrf.mxu0  ;;  %6981 = vmatmul.mubr.bf16.gmra.mxu1 %v15684_v1  ;;  %v6260_v1 = vsel %vm5827_vm14, %v6124_v25, %v15756_v20  ;;  %v10458_v25 = vld [vmem:[%s16091_s8 + $0x168] ss:$12 sps:$4 sm:$0xff]  }
 0x6c8   :  { %6986 = vmatprep.mubr.bf16.mxu1 %v6257_v4  ;;  %v7522_v24 = vpop.permute.xlu1 %7521  ;;  %v10457_v45 = vld [vmem:[%s16091_s8 + $0x4] ss:$12 sps:$4 sm:$0xff]   ;;  %v10452_v4 = vld [vmem:[%s16092_s9] ss:$12 sps:$4 sm:$0xff]  }
 0x6c9   :  { %v7403_v43 = vpop.f32.mrf.mxu0  ;;  %v7554_v30 = vsel %vm5827_vm14, %v7552_v9, %v7522_v24  ;;  %v10473_v24 = vld [vmem:[%s16091_s8 + $0x120] ss:$12 sps:$4 sm:$0xff]  }
 0x6ca   :  { %v10455_v43 = vld [vmem:[%s16091_s8] ss:$12 sps:$4 sm:$0xff]  }
 0x6cb   :  { %v10098_v42 = vpop.f32.mrf.mxu0 }
 0x6cc   :  { %v10461_v42 = vld [vmem:[%s16091_s8 + $0x170] ss:$12 sps:$4 sm:$0xff]  }
 0x6cd   :  { %v7413_v52 = vpop.f32.mrf.mxu0 }
 0x6ce   :  { %v10462_v52 = vld [vmem:[%s16091_s8 + $0xb0] ss:$12 sps:$4 sm:$0xff]  }
 0x6cf   :  { %v10099_v63 = vpop.f32.mrf.mxu0  ;;  %6987 = vmatmul.mubr.bf16.gmra.mxu1 %v15705_v48  ;;  %v7562_v48 = vsel %vm5827_vm14, %v7560_v17, %v7531_v31  ;;  %v10468_v17 = vld [vmem:[%s16091_s8 + $0x138] ss:$12 sps:$4 sm:$0xff]  }
 0x6d0   :  { %6992 = vmatprep.mubr.bf16.mxu1 %v6260_v1  ;;  %v10465_v1 = vld [vmem:[%s16091_s8 + $0x154] ss:$12 sps:$4 sm:$0xff]  }
 0x6d1   :  { %v7415_v35 = vpop.f32.mrf.mxu0 }
 0x6d2   :  { %v10463_v35 = vld [vmem:[%s16091_s8 + $0x150] ss:$12 sps:$4 sm:$0xff]  }
 0x6d3   :  { %v10102_v14 = vpop.f32.mrf.mxu0 }
 0x6d4   :  { %v10467_v14 = vld [vmem:[%s16091_s8 + $0x98] ss:$12 sps:$4 sm:$0xff]  }
 0x6d5   :  { %v7425_v39 = vpop.f32.mrf.mxu0 }
 0x6d6   :  { %v10470_v39 = vld [vmem:[%s16091_s8 + $0x13c] ss:$12 sps:$4 sm:$0xff]  }
 0x6d7   :  { %v10103_v18 = vpop.f32.mrf.mxu0  ;;  %v6874_v28 = vpop.f32.mrf.mxu1  ;;  %6993 = vmatmul.mubr.bf16.gmra.mxu1 %v15701_v19  ;;  %v10426_v19 = vld [vmem:[%s16092_s9 + $0x20] ss:$12 sps:$4 sm:$0xff]  }
 0x6d8   :  { %8035 = vmatprep.mubr.bf16.mxu1 %v7562_v48  ;;  %10109 = vmatpush3.bf16.msra.mxu0 %v10426_v19  ;;  %v10472_v18 = vld [vmem:[%s16091_s8 + $0x80] ss:$12 sps:$4 sm:$0xff]   ;;  %v10482_v19 = vld [vmem:[%s16091_s8 + $0x50] ss:$12 sps:$4 sm:$0xff]  }
 0x6d9   :  { %v7427_v20 = vpop.f32.mrf.mxu0  ;;  %v6875_v29 = vpop.f32.mrf.mxu1  ;;  %10110 = vmatprep.subr.bf16.mxu0 %v10732_v57 }
 0x6da   :  { %v10475_v20 = vld [vmem:[%s16091_s8 + $0x124] ss:$12 sps:$4 sm:$0xff]   ;;  %v10476_v29 = vld [vmem:[%s16091_s8 + $0x128] ss:$12 sps:$4 sm:$0xff]  }
 0x6db   :  { %v6876_v0 = vpop.f32.mrf.mxu1 }
 0x6dc   :  { %10111 = vmatpush3.bf16.msra.mxu0 %v10427_v49  ;;  %v10477_v0 = vld [vmem:[%s16091_s8 + $0x68] ss:$12 sps:$4 sm:$0xff]   ;;  %v10486_v49 = vld [vmem:[%s16091_s8 + $0xf8] ss:$12 sps:$4 sm:$0xff]  }
 0x6dd   :  { %v6877_v2 = vpop.f32.mrf.mxu1  ;;  %8502 = vmatprep.subr.bf16.mxu0 %v10430_v61  ;;  %v10490_v61 = vld [vmem:[%s16091_s8 + $0xdc] ss:$12 sps:$4 sm:$0xff]  }
 0x6de   :  { %v10480_v2 = vld [vmem:[%s16091_s8 + $0x10c] ss:$12 sps:$4 sm:$0xff]  }
 0x6df   :  { %v6880_v56 = vpop.f32.mrf.mxu1  ;;  %8036 = vmatmul.mubr.bf16.vlgmr.msra.gmra.mxu1 %v7554_v30  ;;  %10113 = vmatmul.mubr.msk.bf16.vlgmr.msra.gmra.mxu0 %vm5505_vm12, %v8118_v23  ;;  %v10106_v40 = vpop.f32.mrf.mxu0  ;;  %v10481_v30 = vld [vmem:[%s16091_s8 + $0x110] ss:$12 sps:$4 sm:$0xff]  }
 0x6e0   :  { %8194 = vmatprep.mubr.bf16.mxu1 %v16238_v46  ;;  %8503 = vmatpush1.bf16.msra.mxu0 %v10428_v5  ;;  %v10478_v56 = vld [vmem:[%s16091_s8 + $0x108] ss:$12 sps:$4 sm:$0xff]   ;;  %v10491_v5 = vld [vmem:[%s16091_s8 + $0xe0] ss:$12 sps:$4 sm:$0xff]  }
 0x6e1   :  { %v6881_v3 = vpop.f32.mrf.mxu1  ;;  %8504 = vmatprep.subr.bf16.mxu0 %v10433_v11  ;;  %v7437_v26 = vpop.f32.mrf.mxu0  ;;  %8175 = vmatpush1.bf16.msra.mxu1 %v10446_v59  ;;  %v10488_v11 = vld [vmem:[%s16091_s8 + $0xd8] ss:$12 sps:$4 sm:$0xff]  }
 0x6e2   :  { %8176 = vmatprep.subr.bf16.mxu1 %v10454_v12  ;;  %v10496_v26 = vld [vmem:[%s16091_s8 + $0xc8] ss:$12 sps:$4 sm:$0xff]  }
 0x6e3   :  { %v6882_v27 = vpop.f32.mrf.mxu1  ;;  %v10107_v51 = vpop.f32.mrf.mxu0 }
 0x6e4   :  { %8505 = vmatpush1.bf16.msra.mxu0 %v10431_v6  ;;  %v10485_v27 = vld [vmem:[%s16091_s8 + $0xf4] ss:$12 sps:$4 sm:$0xff]  }
 0x6e5   :  { %v6883_v33 = vpop.f32.mrf.mxu1  ;;  %8506 = vmatprep.subr.bf16.mxu0 %v10436_v50  ;;  %v7439_v8 = vpop.f32.mrf.mxu0  ;;  %8177 = vmatpush1.bf16.msra.mxu1 %v10452_v4  ;;  %v10492_v6 = vld [vmem:[%s16091_s8 + $0x20] ss:$12 sps:$4 sm:$0xff]  }
 0x6e6   :  { %9793 = vmatprep.subr.bf16.mxu1 %v10461_v42  ;;  %v10483_v33 = vld [vmem:[%s16091_s8 + $0xf0] ss:$12 sps:$4 sm:$0xff]   ;;  %v10493_v51 = vld [vmem:[%s16091_s8 + $0xc0] ss:$12 sps:$4 sm:$0xff]  }
 0x6e8   :  { %8507 = vmatpush1.bf16.msra.mxu0 %v10434_v41  ;;  %9458 = vmatmul.mubr.msk.bf16.vlgmr.msra.gmra.mxu1 %vm5505_vm12, %v8118_v23  ;;  %v10495_v41 = vld [vmem:[%s16091_s8 + $0xc4] ss:$12 sps:$4 sm:$0xff]  }
 0x6e9   :  { %8508 = vmatprep.subr.bf16.mxu0 %v10439_v7  ;;  %9794 = vmatpush3.bf16.msra.mxu1 %v10462_v52  ;;  %v10497_v7 = vld [vmem:[%s16091_s8 + $0x8] ss:$12 sps:$4 sm:$0xff]  }
 0x6ea   :  { %9795 = vmatprep.subr.bf16.mxu1 %v10466_v32 }
 0x6ec   :  { %8509 = vmatpush1.bf16.msra.mxu0 %v10437_v16 }
 0x6ed   :  { %8510 = vmatprep.subr.bf16.mxu0 %v10442_v60  ;;  %9796 = vmatpush3.bf16.msra.mxu1 %v10467_v14 }
 0x6ee   :  { %9797 = vmatprep.subr.bf16.mxu1 %v10471_v36 }
 0x6f0   :  { %8511 = vmatpush1.bf16.msra.mxu0 %v10440_v38 }
 0x6f1   :  { %8512 = vmatprep.subr.bf16.mxu0 %v10445_v55  ;;  %9798 = vmatpush3.bf16.msra.mxu1 %v10472_v18 }
 0x6f2   :  { %9799 = vmatprep.subr.bf16.mxu1 %v10476_v29 }
 0x6f4   :  { %8513 = vmatpush1.bf16.msra.mxu0 %v10443_v34 }
 0x6f5   :  { %8514 = vmatprep.subr.bf16.mxu0 %v10451_v37  ;;  %9800 = vmatpush3.bf16.msra.mxu1 %v10477_v0 }
 0x6f6   :  { %9801 = vmatprep.subr.bf16.mxu1 %v10481_v30 }
 0x6f8   :  { %8515 = vmatpush1.bf16.msra.mxu0 %v10449_v13 }
 0x6f9   :  { %8516 = vmatprep.subr.bf16.mxu0 %v10457_v45  ;;  %9802 = vmatpush3.bf16.msra.mxu1 %v10482_v19 }
 0x6fa   :  { %9803 = vmatprep.subr.bf16.mxu1 %v10486_v49 }
 0x6fc   :  { %8517 = vmatpush1.bf16.msra.mxu0 %v10455_v43 }
 0x6fd   :  { %8518 = vmatprep.subr.bf16.mxu0 %v10460_v10  ;;  %9804 = vmatpush3.bf16.msra.mxu1 %v10487_v54 }
 0x6fe   :  { %9805 = vmatprep.subr.bf16.mxu1 %v10491_v5  ;;  %v7630_v5 = vlaneseq }
 0x700   :  { %8519 = vmatpush2.bf16.msra.mxu0 %v10458_v25 }
 0x701   :  { %8520 = vmatprep.subr.bf16.mxu0 %v10465_v1  ;;  %9806 = vmatpush3.bf16.msra.mxu1 %v10492_v6 }
 0x702   :  { %9807 = vmatprep.subr.bf16.mxu1 %v10496_v26 }
 0x704   :  { %8521 = vmatpush2.bf16.msra.mxu0 %v10463_v35 }
 0x705   :  { %8522 = vmatprep.subr.bf16.mxu0 %v10470_v39  ;;  %9808 = vmatpush3.bf16.msra.mxu1 %v10497_v7 }
 0x706   :  { %10116 = vmatprep.subr.bf16.mxu1 %v10732_v57 }
 0x707   :  { %v6886_v47 = vpop.f32.mrf.mxu1 }
 0x708   :  { %8523 = vmatpush2.bf16.msra.mxu0 %v10468_v17 }
 0x709   :  { %v6887_v58 = vpop.f32.mrf.mxu1  ;;  %8524 = vmatprep.subr.bf16.mxu0 %v10475_v20 }
 0x70b   :  { %v6888_v44 = vpop.f32.mrf.mxu1 }
 0x70c   :  { %8525 = vmatpush2.bf16.msra.mxu0 %v10473_v24 }
 0x70d   :  { %v6889_v63 = vpop.f32.mrf.mxu1  ;;  %8526 = vmatprep.subr.bf16.mxu0 %v10480_v2 }
 0x70f   :  { %v6892_v62 = vpop.f32.mrf.mxu1 }
 0x710   :  { %8527 = vmatpush2.bf16.msra.mxu0 %v10478_v56  ;;  %v10498_v62 = vld [vmem:[%s16094_s11 + $0x78] sm:$0xff]  }
 0x711   :  { %v6893_v22 = vpop.f32.mrf.mxu1  ;;  %8528 = vmatprep.subr.bf16.mxu0 %v10485_v27 }
 0x713   :  { %v6894_v31 = vpop.f32.mrf.mxu1 }
 0x714   :  { %8529 = vmatpush2.bf16.msra.mxu0 %v10483_v33 }
 0x715   :  { %v6895_v28 = vpop.f32.mrf.mxu1  ;;  %8530 = vmatprep.subr.bf16.mxu0 %v10490_v61 }
 0x717   :  { %v6898_v48 = vpop.f32.mrf.mxu1 }
 0x718   :  { %8531 = vmatpush2.bf16.msra.mxu0 %v10488_v11 }
 0x719   :  { %v6899_v21 = vpop.f32.mrf.mxu1  ;;  %8532 = vmatprep.subr.bf16.mxu0 %v10495_v41 }
 0x71b   :  { %v6900_v9 = vpop.f32.mrf.mxu1 }
 0x71c   :  { %8533 = vmatpush2.bf16.msra.mxu0 %v10493_v51 }
 0x71d   :  { %v6901_v46 = vpop.f32.mrf.mxu1  ;;  %9815 = vmatprep.subr.bf16.mxu0 %v10498_v62 }
 0x71f   :  { %v6904_v3 = vpop.f32.mrf.mxu1 }
 0x721   :  { %v6905_v53 = vpop.f32.mrf.mxu1 }
 0x723   :  { %v6906_v23 = vpop.f32.mrf.mxu1 }
 0x725   :  { %v6907_v40 = vpop.f32.mrf.mxu1 }
 0x727   :  { %v6910_v50 = vpop.f32.mrf.mxu1 }
 0x728   :  { %v15981_v50 = vshrl.u32 %v7630_v5, 7 }
 0x729   :  { %v6911_v16 = vpop.f32.mrf.mxu1 }
 0x72a   :  { %v7636_v7 = vsub.s32 1, %v15981_v50  ;;  %v7632_v16 = vsub.s32 0, %v15981_v50 }
 0x72b   :  { %v6912_v8 = vpop.f32.mrf.mxu1 }
 0x72d   :  { %v6913_v60 = vpop.f32.mrf.mxu1 }
 0x72e   :  { %v7628_v60 = vld [vmem:[%s16090_s7] sm:$0x3] }
 0x72f   :  { %v6916_v38 = vpop.f32.mrf.mxu1 }
 0x731   :  { %v6917_v55 = vpop.f32.mrf.mxu1 }
 0x733   :  { %v6918_v34 = vpop.f32.mrf.mxu1 }
 0x734   :  { %v7637_v34 = vrot.slane %v7628_v60, %v7636_v7 }
 0x735   :  { %v6919_v15 = vpop.f32.mrf.mxu1 }
 0x736   :  { %v7633_v15 = vrot.slane %v7628_v60, %v7632_v16 }
 0x737   :  { %v6922_v37 = vpop.f32.mrf.mxu1 }
 0x739   :  { %v6923_v59 = vpop.f32.mrf.mxu1 }
 0x73b   :  { %v6924_v13 = vpop.f32.mrf.mxu1 }
 0x73d   :  { %v6925_v47 = vpop.f32.mrf.mxu1 }
 0x73f   :  { %v6928_v12 = vpop.f32.mrf.mxu1 }
 0x741   :  { %v6929_v45 = vpop.f32.mrf.mxu1 }
 0x743   :  { %v6930_v4 = vpop.f32.mrf.mxu1 }
 0x745   :  { %v6931_v43 = vpop.f32.mrf.mxu1 }
 0x747   :  { %v6934_v58 = vpop.f32.mrf.mxu1 }
 0x749   :  { %v6935_v44 = vpop.f32.mrf.mxu1 }
 0x74b   :  { %v6936_v10 = vpop.f32.mrf.mxu1 }
 0x74d   :  { %v6937_v42 = vpop.f32.mrf.mxu1 }
 0x74f   :  { %v6940_v25 = vpop.f32.mrf.mxu1 }
 0x751   :  { %v6941_v52 = vpop.f32.mrf.mxu1 }
 0x753   :  { %v6942_v63 = vpop.f32.mrf.mxu1 }
 0x755   :  { %v6943_v1 = vpop.f32.mrf.mxu1 }
 0x757   :  { %v6946_v32 = vpop.f32.mrf.mxu1 }
 0x759   :  { %v6947_v35 = vpop.f32.mrf.mxu1 }
 0x75b   :  { %v6948_v14 = vpop.f32.mrf.mxu1 }
 0x75d   :  { %v6949_v22 = vpop.f32.mrf.mxu1 }
 0x75e   :  { %v10499_v22 = vld [vmem:[%s16094_s11 + $0x38] sm:$0xff]  }
 0x75f   :  { %v6952_v31 = vpop.f32.mrf.mxu1 }
 0x761   :  { %v6953_v39 = vpop.f32.mrf.mxu1 }
 0x762   :  { %v10500_v39 = vld [vmem:[%s16094_s11 + $0x70] sm:$0xff]  }
 0x763   :  { %v6954_v36 = vpop.f32.mrf.mxu1 }
 0x765   :  { %v6955_v17 = vpop.f32.mrf.mxu1 }
 0x767   :  { %v6958_v18 = vpop.f32.mrf.mxu1 }
 0x768   :  { %v10501_v18 = vld [vmem:[%s16094_s11 + $0x30] sm:$0xff]  }
 0x769   :  { %v6959_v28 = vpop.f32.mrf.mxu1 }
 0x76a   :  { %v10502_v28 = vld [vmem:[%s16094_s11 + $0x68] sm:$0xff]  }
 0x76b   :  { %v6960_v48 = vpop.f32.mrf.mxu1 }
 0x76c   :  { %v10503_v48 = vld [vmem:[%s16094_s11 + $0x28] sm:$0xff]  }
 0x76d   :  { %v6961_v20 = vpop.f32.mrf.mxu1 }
 0x76e   :  { %v10504_v20 = vld [vmem:[%s16094_s11 + $0x60] sm:$0xff]  }
 0x76f   :  { %v6964_v29 = vpop.f32.mrf.mxu1 }
 0x770   :  { %v10505_v29 = vld [vmem:[%s16094_s11 + $0x20] sm:$0xff]  }
 0x771   :  { %v6965_v24 = vpop.f32.mrf.mxu1 }
 0x772   :  { %v10506_v24 = vld [vmem:[%s16094_s11 + $0x58] sm:$0xff]  }
 0x773   :  { %v6966_v0 = vpop.f32.mrf.mxu1 }
 0x774   :  { %v10507_v0 = vld [vmem:[%s16094_s11 + $0x18] sm:$0xff]  }
 0x775   :  { %v6967_v21 = vpop.f32.mrf.mxu1 }
 0x776   :  { %v10508_v21 = vld [vmem:[%s16094_s11 + $0x50] sm:$0xff]  }
 0x777   :  { %v6970_v9 = vpop.f32.mrf.mxu1 }
 0x778   :  { %v10509_v9 = vld [vmem:[%s16094_s11 + $0x10] sm:$0xff]  }
 0x779   :  { %v6971_v2 = vpop.f32.mrf.mxu1 }
 0x77a   :  { %v10510_v2 = vld [vmem:[%s16094_s11 + $0x48] sm:$0xff]  }
 0x77b   :  { %v6972_v30 = vpop.f32.mrf.mxu1  ;;  %v7994_v6 = vpop.f32.mrf.mxu0 }
 0x77c   :  { %v7995_v45 = vadd.f32 %v7994_v6, %v7633_v15  ;;  %v10511_v30 = vld [vmem:[%s16094_s11 + $0x8] sm:$0xff]  }
 0x77d   :  { %v6973_v56 = vpop.f32.mrf.mxu1  ;;  %v7996_v26 = vpop.f32.mrf.mxu0 }
 0x77e   :  { %v7997_v47 = vadd.f32 %v7996_v26, %v7637_v34  ;;  %v10512_v56 = vld [vmem:[%s16094_s11 + $0x88] sm:$0xff]  }
 0x77f   :  { %v6976_v19 = vpop.f32.mrf.mxu1  ;;  %v7998_v38 = vpop.f32.mrf.mxu0 }
 0x780   :  { %v7999_v12 = vadd.f32 %v7998_v38, %v7633_v15  ;;  %v10513_v19 = vld [vmem:[%s16094_s11 + $0x40] sm:$0xff]  }
 0x781   :  { %v6977_v46 = vpop.f32.mrf.mxu1  ;;  %v8000_v59 = vpop.f32.mrf.mxu0 }
 0x782   :  { %v8001_v43 = vadd.f32 %v8000_v59, %v7637_v34  ;;  %v10514_v46 = vld [vmem:[%s16094_s11] sm:$0xff]  }
 0x783   :  { %v6978_v3 = vpop.f32.mrf.mxu1 }
 0x784   :  { %v10515_v3 = vld [vmem:[%s16094_s11 + $0x80] sm:$0xff]  }
 0x785   :  { %v6979_v27 = vpop.f32.mrf.mxu1 }
 0x787   :  { %v6982_v49 = vpop.f32.mrf.mxu1 }
 0x789   :  { %v6983_v33 = vpop.f32.mrf.mxu1 }
 0x78b   :  { %v6984_v54 = vpop.f32.mrf.mxu1 }
 0x78d   :  { %v6985_v53 = vpop.f32.mrf.mxu1 }
 0x78f   :  { %v6988_v23 = vpop.f32.mrf.mxu1 }
 0x791   :  { %v6989_v61 = vpop.f32.mrf.mxu1 }
 0x792   :  { %v8586_v61 = vld [vmem:[%s16093_s10] sm:$0x7] }
 0x793   :  { %v6990_v11 = vpop.f32.mrf.mxu1 }
 0x795   :  { %v6991_v40 = vpop.f32.mrf.mxu1 }
 0x797   :  { %v6994_v41 = vpop.f32.mrf.mxu1 }
 0x798   :  { %v8595_v41 = vrot.slane %v8586_v61, %v7636_v7 }
 0x799   :  { %v6995_v51 = vpop.f32.mrf.mxu1 }
 0x79b   :  { %v6996_v8 = vpop.f32.mrf.mxu1 }
 0x79c   :  { %v8591_v8 = vrot.slane %v8586_v61, %v7632_v16 }
 0x79d   :  { %v6997_v55 = vpop.f32.mrf.mxu1 }
 0x79f   :  { %v8037_v37 = vpop.f32.mrf.mxu1  ;;  %v15992_v1 = vpop.f32.mrf.mxu0 }
 0x7a0   :  { %v8038_v10 = vadd.f32 %v8037_v37, %v7995_v45 }
 0x7a1   :  { %v8039_v13 = vpop.f32.mrf.mxu1  ;;  %v10114_v14 = vpop.f32.mrf.mxu0 }
 0x7a2   :  { %v8040_v58 = vadd.f32 %v8039_v13, %v7997_v47  ;;  %v8046_v32 = vmax.f32 %v8038_v10, 0.0  ;;  %v9508_v14 = vld [vmem:[%s16095_s12] ss:$0 sm:$0xff]  ;;  %s10734_s12 = smov [#allocation6]  }
 0x7a3   :  { %v8041_v4 = vpop.f32.mrf.mxu1  ;;  %v16000_v36 = vpop.f32.mrf.mxu0  ;;  %s8914_s25 = sshll.u32 %s10734_s12, 4  ;;  %s8915_s25 = int_to_ptr.vmem [resolvable:$true] %s8914_s25 }
 0x7a4   :  { %v8042_v44 = vadd.f32 %v8041_v4, %v7999_v12  ;;  %v8047_v63 = vmax.f32 %v8040_v58, 0.0  ;;  %s10656_s1 = scalar_lea.vmem %s8915_s25, 256  ;;  %p10661_p1 = scmp.lt.s32.totalorder %s8915_s25, %s8915_s25 }
 0x7a5   :  { %v8043_v42 = vpop.f32.mrf.mxu1  ;;  %v10115_v17 = vpop.f32.mrf.mxu0  ;;  %p10657_p0 = scmp.ne.s32.totalorder %s8915_s25, %s10656_s1  ;;  %p10662_p2 = scmp.lt.s32.totalorder %s10656_s1, %s10656_s1 }
 0x7a6   :  { %v8044_v25 = vadd.f32 %v8043_v42, %v8001_v43  ;;  %v8048_v52 = vmax.f32 %v8042_v44, 0.0 }
 0x7a7   :  { %p10663_p3 = por %p10662_p2, %p10661_p1 }
 0x7a8   :  { %v8049_v62 = vmax.f32 %v8044_v25, 0.0  ;;  %v8050_v31 = vpack.c.bf16 %v8048_v52, %v8046_v32  ;;  %v8196_v27 = vpop.f32.mrf.mxu1 }
 0x7a9   :  { %p10664_p4 = pnand %p10663_p3, %p10657_p0 }
 0x7aa   :  { %v8051_v35 = vpack.c.bf16 %v8049_v62, %v8047_v63  ;;  %v8198_v49 = vpop.f32.mrf.mxu1 }
 0x7ac   :  { %8534 = vmatprep.mubr.bf16.mxu0 %v8051_v35  ;;  %8577 = vmatprep.mubr.bf16.mxu1 %v8051_v35  ;;  %v8200_v33 = vpop.f32.mrf.mxu1 }
 0x7ad   :  { %8535 = vmatmul.mubr.bf16.vlgmr.msra.gmra.mxu0 %v8050_v31  ;;  %8578 = vmatmul.mubr.bf16.vlgmr.msra.gmra.mxu1 %v8050_v31  ;;  %v8855_v31 = vand.u32 127, %v7630_v5 }
 0x7ae   :  { %9816 = vmatpush3.bf16.msra.mxu0 %v10499_v22  ;;  %10120 = vmatprep.mubr.msk.bf16.mxu1 %vm10733_vm15, %v10732_v57  ;;  %v8202_v54 = vpop.f32.mrf.mxu1 }
 0x7af   :  { %9817 = vmatprep.subr.bf16.mxu0 %v10500_v39  ;;  %10117 = vmatpush3.bf16.msra.mxu1 %v10512_v56  ;;  %vm8856_vm0 = vcmp.lt.s32.totalorder %v8855_v31, 9 }
 0x7b0   :  { %10118 = vmatprep.subr.bf16.mxu1 %v10732_v57  ;;  %v8598_v57 = vsub.s32 2, %v15981_v50 }
 0x7b2   :  { %9818 = vmatpush3.bf16.msra.mxu0 %v10501_v18  ;;  %v8599_v15 = vrot.slane %v8586_v61, %v8598_v57 }
 0x7b3   :  { %9819 = vmatprep.subr.bf16.mxu0 %v10502_v28  ;;  %10119 = vmatpush3.bf16.msra.mxu1 %v10515_v3 }
 0x7b6   :  { %9820 = vmatpush3.bf16.msra.mxu0 %v10503_v48 }
 0x7b7   :  { %9821 = vmatprep.subr.bf16.mxu0 %v10504_v20 }
 0x7ba   :  { %9822 = vmatpush3.bf16.msra.mxu0 %v10505_v29 }
 0x7bb   :  { %9823 = vmatprep.subr.bf16.mxu0 %v10506_v24 }
 0x7be   :  { %9824 = vmatpush3.bf16.msra.mxu0 %v10507_v0 }
 0x7bf   :  { %9825 = vmatprep.subr.bf16.mxu0 %v10508_v21 }
 0x7c2   :  { %9826 = vmatpush3.bf16.msra.mxu0 %v10509_v9 }
 0x7c3   :  { %9827 = vmatprep.subr.bf16.mxu0 %v10510_v2 }
 0x7c6   :  { %9828 = vmatpush3.bf16.msra.mxu0 %v10511_v30 }
 0x7c7   :  { %9829 = vmatprep.subr.bf16.mxu0 %v10513_v19 }
 0x7ca   :  { %9830 = vmatpush3.bf16.msra.mxu0 %v10514_v46 }
 0x86d   :  { %v8536_v53 = vpop.f32.mrf.mxu0  ;;  %v9809_v23 = vpop.f32.mrf.mxu1 }
 0x86e   :  { %v8537_v51 = vadd.f32 %v8536_v53, %v8196_v27 }
 0x86f   :  { %v8538_v11 = vpop.f32.mrf.mxu0  ;;  %v9810_v6 = vpop.f32.mrf.mxu1 }
 0x870   :  { %v8539_v40 = vadd.f32 %v8538_v11, %v8198_v49  ;;  %v9811_v26 = vadd.f32 %v9810_v6, %v9809_v23  ;;  %v8603_v45 = vadd.f32 %v8591_v8, %v8537_v51 }
 0x871   :  { %v8540_v60 = vpop.f32.mrf.mxu0  ;;  %v9812_v38 = vpop.f32.mrf.mxu1 }
 0x872   :  { %v8541_v55 = vadd.f32 %v8540_v60, %v8200_v33  ;;  %v8580_v34 = vadd.f32 %v9811_v26, %v15992_v1  ;;  %v8604_v13 = vadd.f32 %v8595_v41, %v8539_v40  ;;  %v8609_v10 = vmax.f32 %v8603_v45, 0.0 }
 0x873   :  { %v8542_v37 = vpop.f32.mrf.mxu0  ;;  %v9813_v59 = vpop.f32.mrf.mxu1 }
 0x874   :  { %v8606_v47 = vadd.f32 %v8591_v8, %v8541_v55  ;;  %v8543_v12 = vadd.f32 %v8542_v37, %v8202_v54  ;;  %v9814_v4 = vadd.f32 %v9813_v59, %v9812_v38  ;;  %v8605_v7 = vadd.f32 %v8599_v15, %v8580_v34 }
 0x875   :  { %v8610_v50 = vmax.f32 %v8604_v13, 0.0 }
 0x876   :  { %v8607_v43 = vadd.f32 %v8595_v41, %v8543_v12  ;;  %v8612_v58 = vmax.f32 %v8606_v47, 0.0  ;;  %v8583_v44 = vadd.f32 %v9814_v4, %v16000_v36  ;;  %v8611_v52 = vmax.f32 %v8605_v7, 0.0 }
 0x878   :  { %v8613_v16 = vmax.f32 %v8607_v43, 0.0  ;;  %v8608_v42 = vadd.f32 %v8599_v15, %v8583_v44  ;;  %v8615_v63 = vpack.c.bf16 %v8612_v58, %v8609_v10 }
 0x87a   :  { %v8616_v25 = vpack.c.bf16 %v8613_v16, %v8610_v50  ;;  %v8614_v62 = vmax.f32 %v8608_v42, 0.0 }
 0x87c   :  { %8804 = vmatprep.mubr.bf16.mxu0 %v8616_v25  ;;  %v8617_v1 = vpack.c.bf16 %v8614_v62, %v8611_v52 }
 0x87d   :  { %8805 = vmatmul.mubr.bf16.vlgmr.msra.gmra.mxu0 %v8615_v63 }
 0x87e   :  { %10121 = vmatmul.mubr.msk.bf16.vlgmr.msra.gmra.mxu1 %vm5505_vm12, %v8617_v1 }
 0x93d   :  { %v9831_v32 = vpop.f32.mrf.mxu0 }
 0x93e   :  { %v8847_v35 = vpop.f32.mrf.mxu1 }
 0x93f   :  { %v9832_v22 = vpop.f32.mrf.mxu0 }
 0x940   :  { %v9833_v39 = vadd.f32 %v9832_v22, %v9831_v32  ;;  %v10122_v36 = vpop.f32.mrf.mxu1 }
 0x941   :  { %v9834_v17 = vpop.f32.mrf.mxu0 }
 0x942   :  { %v8807_v18 = vadd.f32 %v9833_v39, %v9508_v14  ;;  %v8850_v28 = vpop.f32.mrf.mxu1 }
 0x943   :  { %v9835_v48 = vpop.f32.mrf.mxu0 }
 0x944   :  { %v9836_v20 = vadd.f32 %v9835_v48, %v9834_v17  ;;  %v8848_v29 = vadd.f32 %v8847_v35, %v8807_v18  ;;  %v10123_v24 = vpop.f32.mrf.mxu1 }
 0x946   :  { %v8810_v0 = vadd.f32 %v9836_v20, %v9508_v14  ;;  %v8857_v21 = vsel %vm8856_vm0, %v8848_v29, -1e+30 }
 0x947   :  { %8859 = vmax.xlane.f32.xlu0 %v8857_v21 }
 0x948   :  { %v8851_v9 = vadd.f32 %v8850_v28, %v8810_v0 }
 0x94a   :  { %v8858_v2 = vsel %vm8856_vm0, %v8851_v9, -1e+30 }
 0x94b   :  { %8861 = vmax.xlane.f32.xlu1 %v8858_v2 }
 0x9d0   :  { %v8860_v30 = vpop.xlane.xlu0 %8859 }
 0x9d1   :  { %v8863_v56 = vsub.f32 %v8857_v21, %v8860_v30 }
 0x9d3   :  { %v8865_v19 = vmul.f32 1.442695, %v8863_v56 }
 0x9d4   :  { %v8862_v5 = vpop.xlane.xlu1 %8861 }
 0x9d5   :  { %10516 = vpow2.f32 %v8865_v19  ;;  %v8864_v46 = vsub.f32 %v8858_v2, %v8862_v5 }
 0x9d7   :  { %v8867_v3 = vmul.f32 1.442695, %v8864_v46 }
 0x9d9   :  { %10518 = vpow2.f32 %v8867_v3 }
 0x9e2   :  { %v10517_v27 = vpop.eup %10516 }
 0x9e3   :  { %8869 = vadd.xlane.f32.xlu0 %v10517_v27 }
 0x9e6   :  { %v10519_v49 = vpop.eup %10518 }
 0x9e7   :  { %8871 = vadd.xlane.f32.xlu0 %v10519_v49 }
 0xa6c   :  { %v8870_v33 = vpop.xlane.xlu0 %8869 }
 0xa6d   :  { %10520 = vrcp.f32 %v8870_v33 }
 0xa6e   :  { %10522 = vlog2.f32 %v8870_v33 }
 0xa70   :  { %v8872_v54 = vpop.xlane.xlu0 %8871 }
 0xa71   :  { %10524 = vrcp.f32 %v8872_v54 }
 0xa72   :  { %10526 = vlog2.f32 %v8872_v54 }
 0xa7a   :  { %v10521_v53 = vpop.eup %10520 }
 0xa7b   :  { %v10523_v23 = vpop.eup %10522  ;;  %v8875_v61 = vmul.f32 %v10521_v53, %v10517_v27 }
 0xa7c   :  { %v8878_v11 = vmul.f32 0.6931472, %v10523_v23 }
 0xa7d   :  { %8883 = vst [vmem:[#allocation4] sm:$0xff] %v8875_v61 }
 0xa7e   :  { %v10525_v6 = vpop.eup %10524  ;;  %v8881_v57 = vsub.f32 %v8863_v56, %v8878_v11 }
 0xa7f   :  { %v10527_v40 = vpop.eup %10526  ;;  %v8876_v41 = vmul.f32 %v10525_v6, %v10519_v49 }
 0xa80   :  { %v8880_v26 = vmul.f32 0.6931472, %v10527_v40  ;;  %8885 = vst [vmem:[#allocation6] sm:$0xff] %v8881_v57  ;;  %v8887_v51 = vmul.f32 %v8881_v57, %v8875_v61 }
 0xa81   :  { %8884 = vst [vmem:[#allocation4 + $0x8] sm:$0xff] %v8876_v41 }
 0xa82   :  { %8889 = vadd.xlane.f32.xlu1 %v8887_v51  ;;  %v8882_v8 = vsub.f32 %v8864_v46, %v8880_v26 }
 0xa84   :  { %8886 = vst [vmem:[#allocation6 + $0x8] sm:$0xff] %v8882_v8  ;;  %v8888_v60 = vmul.f32 %v8882_v8, %v8876_v41 }
 0xa86   :  { %8891 = vadd.xlane.f32.xlu0 %v8888_v60 }
 0xa87   :  { %10667 = shalt.err (!%p10664_p4)
}
 0xa88   :  { %s10736_s28 = smov 128   ;;  %s10737_s29 = smov 8  }
 0xa89   :  { %8920 = dma.vmem_to_hbm [thread:$0]  %s8915_s25, 256, %s16097_s14, [#allocation7], %s10736_s28, %s10736_s28, %s10737_s29  }
 0xa8a   :  { %s10676_s19 = scalar_lea.vmem %s8903_s21, 256  ;;  %p10681_p6 = scmp.lt.s32.totalorder %s8903_s21, %s8903_s21 }
 0xa8b   :  { %p10677_p5 = scmp.ne.s32.totalorder %s8903_s21, %s10676_s19  ;;  %p10682_p7 = scmp.lt.s32.totalorder %s10676_s19, %s10676_s19 }
 0xa8d   :  { %p10683_p8 = por %p10682_p7, %p10681_p6 }
 0xa8f   :  { %p10684_p9 = pnand %p10683_p8, %p10677_p5 }
 0xa91   :  { %10687 = shalt.err (!%p10684_p9)
}
 0xa92   :  { %8908 = dma.vmem_to_hbm [thread:$0]  %s8903_s21, 256, %s16096_s13, [#allocation5], %s10736_s28, %s10736_s28, %s10737_s29  }
 0xa93   :  { %s10738_s20 = smov [#allocation8]  }
 0xa94   :  { %s8926_s5 = sshll.u32 %s10738_s20, 4  ;;  %s8927_s5 = int_to_ptr.vmem [resolvable:$true] %s8926_s5 }
 0xa95   :  { %s10696_s14 = scalar_lea.vmem %s8927_s5, 256  ;;  %p10701_p11 = scmp.lt.s32.totalorder %s8927_s5, %s8927_s5 }
 0xa96   :  { %p10697_p10 = scmp.ne.s32.totalorder %s8927_s5, %s10696_s14  ;;  %p10702_p12 = scmp.lt.s32.totalorder %s10696_s14, %s10696_s14 }
 0xa98   :  { %p10703_p13 = por %p10702_p12, %p10701_p11 }
 0xa9a   :  { %p10704_p0 = pnand %p10703_p13, %p10697_p10 }
 0xb0b   :  { %v8890_v38 = vpop.xlane.xlu1 %8889 }
 0xb0c   :  { %v8893_v55 = vsub.f32 0.0, %v8890_v38 }
 0xb0e   :  { %8895 = vst [vmem:[#allocation8] sm:$0xff] %v8893_v55 }
 0xb0f   :  { %v8892_v34 = vpop.xlane.xlu0 %8891 }
 0xb10   :  { %v8894_v15 = vsub.f32 0.0, %v8892_v34 }
 0xb12   :  { %8896 = vst [vmem:[#allocation8 + $0x8] sm:$0xff] %v8894_v15 }
 0xb13   :  { %10707 = shalt.err (!%p10704_p0)
}
 0xb14   :  { %8932 = dma.vmem_to_hbm [thread:$0]  %s8927_s5, 256, %s16098_s15, [#allocation7], %s10736_s28, %s10736_s28, %s10737_s29  }
 0xb15   :  { %10716 = dma.done.wait [#allocation5], 256  }
 0xb16   :  { %10717 = vsyncadd [#allocation5], 4294967040 }
 0xb17   :  { %10718 = dma.done.wait [#allocation7], 512  }
 0xb18   :  { %10719 = vsyncadd [#allocation7], 4294966784 }
 0xb19   :  { %8942 = vsyncpa [#allocation5], 1 }
 0xb1a   :  { %8943 = vsyncpa [#allocation7], 1 }

</bundles_post_ra>
